<compile_context>
chip_gen: v7x
topology: tpu7x:2x2x1
jax: 0.10.0
libtpu: 0.0.40
codegen_flags: <defaults>
</compile_context>

<pallas_src>
import jax
import jax.numpy as jnp
from jax.experimental import pallas as pl
from jax.experimental.pallas import tpu as pltpu

CLASS_NUM = 10            # CLASS_NUM is undefined in the reference; pick 10.
IN_DIM, H1, H2 = 1664, 2000, 1000
BN_EPS = 1e-5

# Lane-aligned padded sizes (multiples of 128) and the streamed H1 tile.
H1_PAD, H2_PAD, OUT_PAD = 2048, 1024, 128
TILE_H1 = 1024            # 2048 / 1024 = 2 grid steps (was 8)
N_TILES = H1_PAD // TILE_H1


def mynet22_kernel(x_ref, w1_ref, b1_ref, g_ref, beta_ref,
                   w2_ref, b2_ref, w3_ref, b3_ref, o_ref, acc_ref):
    j = pl.program_id(0)

    @pl.when(j == 0)
    def _():
        acc_ref[...] = jnp.zeros_like(acc_ref)

    # Resident per-tile vectors: dynamic row select along the leading axis.
    b1 = b1_ref[j]          # (1, TILE_H1)
    gamma = g_ref[j]        # (1, TILE_H1)
    beta = beta_ref[j]      # (1, TILE_H1)

    # --- Linear(1664 -> TILE_H1 slice of 2000) + ReLU (bf16 MXU, f32 acc) ---
    h1 = jnp.dot(x_ref[...], w1_ref[...],
                 preferred_element_type=jnp.float32) + b1
    h1 = jnp.maximum(h1, 0.0)

    # --- BatchNorm1d on this feature tile (training-mode batch statistics).
    #     Per-feature, so tile-local stats are exact.  Folded to scale/shift.
    mean = jnp.mean(h1, axis=0, keepdims=True)
    var = jnp.mean(jnp.square(h1 - mean), axis=0, keepdims=True)  # biased var
    scale = gamma * jax.lax.rsqrt(var + BN_EPS)
    shift = beta - mean * scale
    h1 = h1 * scale + shift

    # --- Partial Linear(2000 -> 1000): this tile's contribution ---
    acc_ref[...] += jnp.dot(h1.astype(jnp.bfloat16), w2_ref[...],
                            preferred_element_type=jnp.float32)

    # --- Finalize on the last tile: +b2, ReLU, Linear(1000 -> CLASS_NUM) ---
    @pl.when(j == pl.num_programs(0) - 1)
    def _():
        h2 = jnp.maximum(acc_ref[...] + b2_ref[...], 0.0)
        o_ref[...] = (jnp.dot(h2.astype(jnp.bfloat16), w3_ref[...],
                              preferred_element_type=jnp.float32)
                      + b3_ref[...])


def mynet22_forward(x, params):
    w1, b1, gamma, beta, w2, b2, w3, b3 = params
    B = x.shape[0]
    x_bf = x.astype(jnp.bfloat16)

    grid_spec = pltpu.PrefetchScalarGridSpec(
        num_scalar_prefetch=0,
        grid=(N_TILES,),
        in_specs=[
            pl.BlockSpec((B, IN_DIM), lambda j: (0, 0)),          # x (resident)
            # w1 pre-tiled to (N_TILES, IN_DIM, TILE_H1): contiguous tile DMA.
            pl.BlockSpec((None, IN_DIM, TILE_H1), lambda j: (j, 0, 0)),
            pl.BlockSpec((N_TILES, 1, TILE_H1), lambda j: (0, 0, 0)),  # b1 (resident)
            pl.BlockSpec((N_TILES, 1, TILE_H1), lambda j: (0, 0, 0)),  # gamma (resident)
            pl.BlockSpec((N_TILES, 1, TILE_H1), lambda j: (0, 0, 0)),  # beta (resident)
            pl.BlockSpec((TILE_H1, H2_PAD), lambda j: (j, 0)),    # w2 tile (row slice, contiguous)
            pl.BlockSpec((1, H2_PAD), lambda j: (0, 0)),          # b2 (resident)
            pl.BlockSpec((H2_PAD, OUT_PAD), lambda j: (0, 0)),    # w3 (resident)
            pl.BlockSpec((1, OUT_PAD), lambda j: (0, 0)),         # b3 (resident)
        ],
        out_specs=pl.BlockSpec((B, OUT_PAD), lambda j: (0, 0)),
        scratch_shapes=[pltpu.VMEM((B, H2_PAD), jnp.float32)],    # h2 accumulator
    )

    cost = pl.CostEstimate(
        flops=2 * B * (IN_DIM * H1 + H1 * H2 + H2 * CLASS_NUM),
        transcendentals=H1,
        bytes_accessed=(w1.size + w2.size + w3.size) * 2          # bf16 weights
                       + (b1.size + b2.size + b3.size
                          + gamma.size + beta.size) * 4
                       + x_bf.size * 2 + B * OUT_PAD * 4,
    )

    out_padded = pl.pallas_call(
        mynet22_kernel,
        out_shape=jax.ShapeDtypeStruct((B, OUT_PAD), jnp.float32),
        grid_spec=grid_spec,
        compiler_params=pltpu.CompilerParams(
            dimension_semantics=("arbitrary",),      # H1-tile axis is a reduction
            vmem_limit_bytes=32 * 1024 * 1024,       # ~11 MiB used; safe on v5e/v6e/v7x
        ),
        cost_estimate=cost,
    )(x_bf, w1, b1, gamma, beta, w2, b2, w3, b3)

    return out_padded[:, :CLASS_NUM]


def mynet22_ref(x, params):
    """Pure-JAX reference mirroring the kernel's precision (bf16 matmul inputs,
    f32 accumulation / elementwise).  Un-tiles the pre-tiled parameters."""
    w1_t, b1_t, gamma_t, beta_t, w2, b2, w3, b3 = params
    w1 = jnp.transpose(w1_t, (1, 0, 2)).reshape(IN_DIM, H1_PAD)
    b1 = b1_t.reshape(1, H1_PAD)
    gamma = gamma_t.reshape(1, H1_PAD)
    beta = beta_t.reshape(1, H1_PAD)

    h1 = jnp.dot(x.astype(jnp.bfloat16), w1,
                 preferred_element_type=jnp.float32) + b1
    h1 = jnp.maximum(h1, 0.0)
    mean = jnp.mean(h1, axis=0, keepdims=True)
    var = jnp.mean(jnp.square(h1 - mean), axis=0, keepdims=True)
    h1 = (h1 - mean) * jax.lax.rsqrt(var + BN_EPS) * gamma + beta
    h2 = jnp.dot(h1.astype(jnp.bfloat16), w2,
                 preferred_element_type=jnp.float32) + b2
    h2 = jnp.maximum(h2, 0.0)
    out = jnp.dot(h2.astype(jnp.bfloat16), w3,
                  preferred_element_type=jnp.float32) + b3
    return out[:, :CLASS_NUM]


def init_params(key):
    """PyTorch-default Linear init (U(-1/sqrt(fan_in), +bound)), zero-padded to
    lane-aligned shapes; matmul weights stored in bf16 for weight streaming.
    w1 / b1 / gamma / beta are pre-tiled along H1 so each streamed w1 tile is
    one contiguous HBM region."""
    k1, k2, k3 = jax.random.split(key, 3)

    def lin(k, fan_in, fan_out, fan_in_pad, fan_out_pad):
        bound = 1.0 / float(fan_in) ** 0.5
        kw, kb = jax.random.split(k)
        w = jax.random.uniform(kw, (fan_in, fan_out), jnp.float32, -bound, bound)
        b = jax.random.uniform(kb, (1, fan_out), jnp.float32, -bound, bound)
        w_pad = jnp.zeros((fan_in_pad, fan_out_pad), jnp.float32)
        w_pad = w_pad.at[:fan_in, :fan_out].set(w)
        b_pad = jnp.zeros((1, fan_out_pad), jnp.float32).at[:, :fan_out].set(b)
        return w_pad.astype(jnp.bfloat16), b_pad

    w1_full, b1_full = lin(k1, IN_DIM, H1, IN_DIM, H1_PAD)
    w2, b2 = lin(k2, H1, H2, H1_PAD, H2_PAD)
    w3, b3 = lin(k3, H2, CLASS_NUM, H2_PAD, OUT_PAD)

    # Pre-tile the H1 axis: (IN_DIM, H1_PAD) -> (N_TILES, IN_DIM, TILE_H1).
    w1 = jnp.transpose(w1_full.reshape(IN_DIM, N_TILES, TILE_H1), (1, 0, 2))
    b1 = b1_full.reshape(N_TILES, 1, TILE_H1)
    gamma = jnp.ones((N_TILES, 1, TILE_H1), jnp.float32)   # BatchNorm1d weight
    beta = jnp.zeros((N_TILES, 1, TILE_H1), jnp.float32)   # BatchNorm1d bias
    # TODO(synk): BatchNorm1d running_mean/running_var buffers are not
    # maintained (training-mode batch statistics only, like a fresh module).
    return (w1, b1, gamma, beta, w2, b2, w3, b3)


if __name__ == "__main__":
    key = jax.random.PRNGKey(0)
    kx, kp = jax.random.split(key)

    B = 8
    x = jax.random.normal(kx, (B, IN_DIM), dtype=jnp.float32)
    params = init_params(kp)

    out = mynet22_forward(x, params)
    jax.block_until_ready(out)

    assert out.shape == (B, CLASS_NUM) and out.dtype == jnp.float32
    ref = mynet22_ref(x, params)
    assert bool(jnp.all(jnp.isfinite(out)))
    assert bool(jnp.allclose(out, ref, rtol=5e-2, atol=1e-1)), \
        "kernel output diverges from pure-JAX reference"
    print("KERNEL_OK")
</pallas_src>

<mosaic_0001>
module attributes {stable_mosaic.version = 11 : i64} {
  func.func @mynet22_kernel(%arg0: i32, %arg1: memref<8x1664xbf16, #tpu.memory_space<vmem>>, %arg2: memref<1x1664x1024xbf16, #tpu.memory_space<vmem>>, %arg3: memref<2x1x1024xf32, #tpu.memory_space<vmem>>, %arg4: memref<2x1x1024xf32, #tpu.memory_space<vmem>>, %arg5: memref<2x1x1024xf32, #tpu.memory_space<vmem>>, %arg6: memref<1024x1024xbf16, #tpu.memory_space<vmem>>, %arg7: memref<1x1024xf32, #tpu.memory_space<vmem>>, %arg8: memref<1024x128xbf16, #tpu.memory_space<vmem>>, %arg9: memref<1x128xf32, #tpu.memory_space<vmem>>, %arg10: memref<8x128xf32, #tpu.memory_space<vmem>>, %arg11: memref<8x1024xf32, #tpu.memory_space<vmem>>) attributes {dimension_semantics = [#tpu.dimension_semantics<arbitrary>], iteration_bounds = array<i64: 2>, scalar_prefetch = 0 : i64, scratch_operands = 1 : i64, tpu.core_type = #tpu.core_type<tc>, window_params = [{pipeline_mode = #tpu.pipeline_mode<synchronous>, transform_indices = @transform_0, window_bounds = array<i64: 8, 1664>}, {transform_indices = @transform_1, window_bounds = array<i64: 1, 1664, 1024>}, {pipeline_mode = #tpu.pipeline_mode<synchronous>, transform_indices = @transform_2, window_bounds = array<i64: 2, 1, 1024>}, {pipeline_mode = #tpu.pipeline_mode<synchronous>, transform_indices = @transform_3, window_bounds = array<i64: 2, 1, 1024>}, {pipeline_mode = #tpu.pipeline_mode<synchronous>, transform_indices = @transform_4, window_bounds = array<i64: 2, 1, 1024>}, {transform_indices = @transform_5, window_bounds = array<i64: 1024, 1024>}, {pipeline_mode = #tpu.pipeline_mode<synchronous>, transform_indices = @transform_6, window_bounds = array<i64: 1, 1024>}, {pipeline_mode = #tpu.pipeline_mode<synchronous>, transform_indices = @transform_7, window_bounds = array<i64: 1024, 128>}, {pipeline_mode = #tpu.pipeline_mode<synchronous>, transform_indices = @transform_8, window_bounds = array<i64: 1, 128>}, {pipeline_mode = #tpu.pipeline_mode<synchronous>, transform_indices = @transform_9, window_bounds = array<i64: 8, 128>}]} {
    %c0_i32 = arith.constant 0 : i32
    %0 = arith.cmpi eq, %arg0, %c0_i32 : i32
    %1 = arith.extui %0 : i1 to i32
    %c0_i32_0 = arith.constant 0 : i32
    %2 = arith.cmpi ne, %1, %c0_i32_0 : i32
    scf.if %2 {
      %cst_25 = arith.constant 0.000000e+00 : f32
      %50 = vector.broadcast %cst_25 : f32 to vector<8x1024xf32>
      %c0_26 = arith.constant 0 : index
      %c0_27 = arith.constant 0 : index
      %51 = vector.load %arg11[%c0_26, %c0_27] : memref<8x1024xf32, #tpu.memory_space<vmem>>, vector<8x1024xf32>
      tpu.vector_store %arg11[%c0_26, %c0_27], %50 {strides = array<i32>} : memref<8x1024xf32, #tpu.memory_space<vmem>>, vector<8x1024xf32>,
    } else {
    }
    %3 = arith.index_cast %arg0 : i32 to index
    %c0 = arith.constant 0 : index
    %c0_1 = arith.constant 0 : index
    %4 = vector.load %arg3[%3, %c0, %c0_1] : memref<2x1x1024xf32, #tpu.memory_space<vmem>>, vector<1x1x1024xf32>
    %5 = vector.shape_cast %4 : vector<1x1x1024xf32> to vector<1x1024xf32>
    %6 = arith.index_cast %arg0 : i32 to index
    %c0_2 = arith.constant 0 : index
    %c0_3 = arith.constant 0 : index
    %7 = vector.load %arg4[%6, %c0_2, %c0_3] : memref<2x1x1024xf32, #tpu.memory_space<vmem>>, vector<1x1x1024xf32>
    %8 = vector.shape_cast %7 : vector<1x1x1024xf32> to vector<1x1024xf32>
    %9 = arith.index_cast %arg0 : i32 to index
    %c0_4 = arith.constant 0 : index
    %c0_5 = arith.constant 0 : index
    %10 = vector.load %arg5[%9, %c0_4, %c0_5] : memref<2x1x1024xf32, #tpu.memory_space<vmem>>, vector<1x1x1024xf32>
    %11 = vector.shape_cast %10 : vector<1x1x1024xf32> to vector<1x1024xf32>
    %c0_6 = arith.constant 0 : index
    %c0_7 = arith.constant 0 : index
    %12 = vector.load %arg1[%c0_6, %c0_7] : memref<8x1664xbf16, #tpu.memory_space<vmem>>, vector<8x1664xbf16>
    %c0_8 = arith.constant 0 : index
    %c0_9 = arith.constant 0 : index
    %c0_10 = arith.constant 0 : index
    %13 = vector.load %arg2[%c0_8, %c0_9, %c0_10] : memref<1x1664x1024xbf16, #tpu.memory_space<vmem>>, vector<1x1664x1024xbf16>
    %14 = vector.shape_cast %13 : vector<1x1664x1024xbf16> to vector<1664x1024xbf16>
    %cst = arith.constant dense<0.000000e+00> : vector<8x1024xf32>
    %15 = tpu.matmul %12, %14, %cst {dimension_numbers = #tpu.dot_dimension_numbers<[1], [0], [0], [1], [0, 0, 1, 1], [], []>} : vector<8x1664xbf16>, vector<1664x1024xbf16>, vector<8x1024xf32> -> vector<8x1024xf32>
    %16 = vector.broadcast %5 : vector<1x1024xf32> to vector<8x1024xf32>
    %17 = arith.addf %15, %16 : vector<8x1024xf32>
    %cst_11 = arith.constant 0.000000e+00 : f32
    %18 = vector.broadcast %cst_11 : f32 to vector<8x1024xf32>
    %19 = arith.maximumf %17, %18 : vector<8x1024xf32>
    %cst_12 = arith.constant dense<0.000000e+00> : vector<1024xf32>
    %20 = vector.multi_reduction <add>, %19, %cst_12 [0] : vector<8x1024xf32> to vector<1024xf32>
    %21 = vector.shape_cast %20 : vector<1024xf32> to vector<1x1024xf32>
    %cst_13 = arith.constant 8.000000e+00 : f32
    %22 = vector.broadcast %cst_13 : f32 to vector<1x1024xf32>
    %23 = arith.divf %21, %22 : vector<1x1024xf32>
    %24 = vector.broadcast %23 : vector<1x1024xf32> to vector<8x1024xf32>
    %25 = arith.subf %19, %24 : vector<8x1024xf32>
    %26 = arith.mulf %25, %25 : vector<8x1024xf32>
    %cst_14 = arith.constant dense<0.000000e+00> : vector<1024xf32>
    %27 = vector.multi_reduction <add>, %26, %cst_14 [0] : vector<8x1024xf32> to vector<1024xf32>
    %28 = vector.shape_cast %27 : vector<1024xf32> to vector<1x1024xf32>
    %cst_15 = arith.constant 8.000000e+00 : f32
    %29 = vector.broadcast %cst_15 : f32 to vector<1x1024xf32>
    %30 = arith.divf %28, %29 : vector<1x1024xf32>
    %cst_16 = arith.constant 9.99999974E-6 : f32
    %31 = vector.broadcast %cst_16 : f32 to vector<1x1024xf32>
    %32 = arith.addf %30, %31 : vector<1x1024xf32>
    %33 = math.rsqrt %32 : vector<1x1024xf32>
    %34 = arith.mulf %8, %33 : vector<1x1024xf32>
    %35 = arith.mulf %23, %34 : vector<1x1024xf32>
    %36 = arith.subf %11, %35 : vector<1x1024xf32>
    %37 = vector.broadcast %34 : vector<1x1024xf32> to vector<8x1024xf32>
    %38 = arith.mulf %19, %37 : vector<8x1024xf32>
    %39 = vector.broadcast %36 : vector<1x1024xf32> to vector<8x1024xf32>
    %40 = arith.addf %38, %39 : vector<8x1024xf32>
    %c0_17 = arith.constant 0 : index
    %c0_18 = arith.constant 0 : index
    %41 = vector.load %arg11[%c0_17, %c0_18] : memref<8x1024xf32, #tpu.memory_space<vmem>>, vector<8x1024xf32>
    %42 = arith.truncf %40 : vector<8x1024xf32> to vector<8x1024xbf16>
    %c0_19 = arith.constant 0 : index
    %c0_20 = arith.constant 0 : index
    %43 = vector.load %arg6[%c0_19, %c0_20] : memref<1024x1024xbf16, #tpu.memory_space<vmem>>, vector<1024x1024xbf16>
    %cst_21 = arith.constant dense<0.000000e+00> : vector<8x1024xf32>
    %44 = tpu.matmul %42, %43, %cst_21 {dimension_numbers = #tpu.dot_dimension_numbers<[1], [0], [0], [1], [0, 0, 1, 1], [], []>} : vector<8x1024xbf16>, vector<1024x1024xbf16>, vector<8x1024xf32> -> vector<8x1024xf32>
    %45 = arith.addf %41, %44 : vector<8x1024xf32>
    %c0_22 = arith.constant 0 : index
    %c0_23 = arith.constant 0 : index
    %46 = vector.load %arg11[%c0_22, %c0_23] : memref<8x1024xf32, #tpu.memory_space<vmem>>, vector<8x1024xf32>
    tpu.vector_store %arg11[%c0_22, %c0_23], %45 {strides = array<i32>} : memref<8x1024xf32, #tpu.memory_space<vmem>>, vector<8x1024xf32>,
    %c1_i32 = arith.constant 1 : i32
    %47 = arith.cmpi eq, %arg0, %c1_i32 : i32
    %48 = arith.extui %47 : i1 to i32
    %c0_i32_24 = arith.constant 0 : i32
    %49 = arith.cmpi ne, %48, %c0_i32_24 : i32
    scf.if %49 {
      %c0_25 = arith.constant 0 : index
      %c0_26 = arith.constant 0 : index
      %50 = vector.load %arg11[%c0_25, %c0_26] : memref<8x1024xf32, #tpu.memory_space<vmem>>, vector<8x1024xf32>
      %c0_27 = arith.constant 0 : index
      %c0_28 = arith.constant 0 : index
      %51 = vector.load %arg7[%c0_27, %c0_28] : memref<1x1024xf32, #tpu.memory_space<vmem>>, vector<1x1024xf32>
      %52 = vector.broadcast %51 : vector<1x1024xf32> to vector<8x1024xf32>
      %53 = arith.addf %50, %52 : vector<8x1024xf32>
      %cst_29 = arith.constant 0.000000e+00 : f32
      %54 = vector.broadcast %cst_29 : f32 to vector<8x1024xf32>
      %55 = arith.maximumf %53, %54 : vector<8x1024xf32>
      %56 = arith.truncf %55 : vector<8x1024xf32> to vector<8x1024xbf16>
      %c0_30 = arith.constant 0 : index
      %c0_31 = arith.constant 0 : index
      %57 = vector.load %arg8[%c0_30, %c0_31] : memref<1024x128xbf16, #tpu.memory_space<vmem>>, vector<1024x128xbf16>
      %cst_32 = arith.constant dense<0.000000e+00> : vector<8x128xf32>
      %58 = tpu.matmul %56, %57, %cst_32 {dimension_numbers = #tpu.dot_dimension_numbers<[1], [0], [0], [1], [0, 0, 1, 1], [], []>} : vector<8x1024xbf16>, vector<1024x128xbf16>, vector<8x128xf32> -> vector<8x128xf32>
      %c0_33 = arith.constant 0 : index
      %c0_34 = arith.constant 0 : index
      %59 = vector.load %arg9[%c0_33, %c0_34] : memref<1x128xf32, #tpu.memory_space<vmem>>, vector<1x128xf32>
      %60 = vector.broadcast %59 : vector<1x128xf32> to vector<8x128xf32>
      %61 = arith.addf %58, %60 : vector<8x128xf32>
      %c0_35 = arith.constant 0 : index
      %c0_36 = arith.constant 0 : index
      %62 = vector.load %arg10[%c0_35, %c0_36] : memref<8x128xf32, #tpu.memory_space<vmem>>, vector<8x128xf32>
      tpu.vector_store %arg10[%c0_35, %c0_36], %61 {strides = array<i32>} : memref<8x128xf32, #tpu.memory_space<vmem>>, vector<8x128xf32>,
    } else {
    }
    return
  }
  func.func @transform_0(%arg0: i32) -> (i32, i32) {
    %c0_i32 = arith.constant 0 : i32
    %c0_i32_0 = arith.constant 0 : i32
    %c0_i32_1 = arith.constant 0 : i32
    return %c0_i32, %c0_i32_0 : i32, i32
  }
  func.func @transform_1(%arg0: i32) -> (i32, i32, i32) {
    %c0_i32 = arith.constant 0 : i32
    %c0_i32_0 = arith.constant 0 : i32
    %c0_i32_1 = arith.constant 0 : i32
    return %arg0, %c0_i32, %c0_i32_0 : i32, i32, i32
  }
  func.func @transform_2(%arg0: i32) -> (i32, i32, i32) {
    %c0_i32 = arith.constant 0 : i32
    %c0_i32_0 = arith.constant 0 : i32
    %c0_i32_1 = arith.constant 0 : i32
    %c0_i32_2 = arith.constant 0 : i32
    return %c0_i32, %c0_i32_0, %c0_i32_1 : i32, i32, i32
  }
  func.func @transform_3(%arg0: i32) -> (i32, i32, i32) {
    %c0_i32 = arith.constant 0 : i32
    %c0_i32_0 = arith.constant 0 : i32
    %c0_i32_1 = arith.constant 0 : i32
    %c0_i32_2 = arith.constant 0 : i32
    return %c0_i32, %c0_i32_0, %c0_i32_1 : i32, i32, i32
  }
  func.func @transform_4(%arg0: i32) -> (i32, i32, i32) {
    %c0_i32 = arith.constant 0 : i32
    %c0_i32_0 = arith.constant 0 : i32
    %c0_i32_1 = arith.constant 0 : i32
    %c0_i32_2 = arith.constant 0 : i32
    return %c0_i32, %c0_i32_0, %c0_i32_1 : i32, i32, i32
  }
  func.func @transform_5(%arg0: i32) -> (i32, i32) {
    %c0_i32 = arith.constant 0 : i32
    %c0_i32_0 = arith.constant 0 : i32
    return %arg0, %c0_i32 : i32, i32
  }
  func.func @transform_6(%arg0: i32) -> (i32, i32) {
    %c0_i32 = arith.constant 0 : i32
    %c0_i32_0 = arith.constant 0 : i32
    %c0_i32_1 = arith.constant 0 : i32
    return %c0_i32, %c0_i32_0 : i32, i32
  }
  func.func @transform_7(%arg0: i32) -> (i32, i32) {
    %c0_i32 = arith.constant 0 : i32
    %c0_i32_0 = arith.constant 0 : i32
    %c0_i32_1 = arith.constant 0 : i32
    return %c0_i32, %c0_i32_0 : i32, i32
  }
  func.func @transform_8(%arg0: i32) -> (i32, i32) {
    %c0_i32 = arith.constant 0 : i32
    %c0_i32_0 = arith.constant 0 : i32
    %c0_i32_1 = arith.constant 0 : i32
    return %c0_i32, %c0_i32_0 : i32, i32
  }
  func.func @transform_9(%arg0: i32) -> (i32, i32) {
    %c0_i32 = arith.constant 0 : i32
    %c0_i32_0 = arith.constant 0 : i32
    %c0_i32_1 = arith.constant 0 : i32
    return %c0_i32, %c0_i32_0 : i32, i32
  }
}

</mosaic_0001>

<bundles_post_ra>
// kernel: tpu_custom_call.1
= control target key start
LH: loop header
LB: loop body
LE: loop exit
PB: predicated region body
PF: predicated region fallthrough
CT: control target
= control target key end

     0   :  { %s16186_s0 = inlined_call_operand.hbm [shape: bf16[8,1664], index: 0, kind: input, shape index: {}]   ;;  %s16187_s1 = inlined_call_operand.hbm [shape: bf16[2,1664,1024], index: 1, kind: input, shape index: {}]   ;;  %s16188_s2 = inlined_call_operand.hbm [shape: f32[2,1,1024], index: 2, kind: input, shape index: {}]   ;;  %s16189_s3 = inlined_call_operand.hbm [shape: f32[2,1,1024], index: 3, kind: input, shape index: {}]   ;;  %s16190_s4 = inlined_call_operand.hbm [shape: f32[2,1,1024], index: 4, kind: input, shape index: {}]   ;;  %s16191_s5 = inlined_call_operand.hbm [shape: bf16[2048,1024], index: 5, kind: input, shape index: {}]   ;;  %s16192_s6 = inlined_call_operand.hbm [shape: f32[1,1024], index: 6, kind: input, shape index: {}]   ;;  %s16193_s7 = inlined_call_operand.hbm [shape: bf16[1024,128], index: 7, kind: input, shape index: {}]   ;;  %s16194_s8 = inlined_call_operand.hbm [shape: f32[1,128], index: 8, kind: input, shape index: {}]   ;;  %s16195_s9 = inlined_call_operand.hbm [shape: f32[8,128], index: 9, kind: output, shape index: {}]  }
   0x1   :  { %16202 = sst [smem:[#allocation27_spill]] %s16186_s0 }
   0x2   :  { %16203 = sst [smem:[#allocation28_spill]] %s16187_s1 }
   0x3   :  { %16204 = sst [smem:[#allocation29_spill]] %s16195_s9 }
   0x4   :  { %14 = vsyncpa [#allocation4], 0 }
   0x5   :  { %15 = vsyncpa [#allocation7], 0 }
   0x6   :  { %17 = vsyncpa [#allocation7 + $0x1], 0 }
   0x7   :  { %18 = vsyncpa [#allocation10], 0 }
   0x8   :  { %19 = vsyncpa [#allocation13], 0 }
   0x9   :  { %21 = vsyncpa [#allocation13 + $0x1], 0 }
   0xa   :  { %22 = vsyncpa [#allocation16], 0 }
   0xb   :  { %23 = vsyncpa [#allocation5], 0  ;;  %s14069_s30 = smov 0   ;;  %s14071_s10 = smov 0  }
   0xc   :  { %s14073_s11 = smov 0   ;;  %s14075_s12 = smov 0  }
   0xd LB: > { %s14000_s13 = smov [#allocation8]   ;;  %s14090_s15 = sadd.s32 4294967295, %s13998_s12   ;;  %s13998_s12 = sphi %s14075_s12, %s16232_s12   ;;  %s13994_s11 = sphi %s14073_s11, %s16231_s11   ;;  %s13990_s10 = sphi %s14071_s10, %s16230_s10   ;;  %s13986_s30 = sphi %s14069_s30, %s16229_s30  }
   0xe   : > { %s277_s14 = sshll.u32 %s14000_s13, 4  ;;  %p11780_p0 = scmp.ge.s32.totalorder %s13998_s12, 1  ;;  %s14096_s14 = int_to_ptr.vmem [resolvable:$true] %s277_s14 }
   0xf   : > { %p16197_p1 = scmp.eq.s32.totalorder %s14090_s15, 0  ;;  %p254_p2 = scmp.lt.s32.totalorder %s13998_s12, 3 }
  0x10   : > { %s14001_s17 = smov [#allocation9]   ;;  %s14002_s20 = smov [#allocation14]  }
  0x11   : > { %p14098_p4 = pnand %p11780_p0, %p254_p2  ;;  %s290_s18 = sshll.u32 %s14001_s17, 4  ;;  %s14110_s18 = int_to_ptr.vmem [resolvable:$true] %s290_s18 }
  0x12   : > { %s317_s21 = sshll.u32 %s14002_s20, 4  ;;  %s13654_s24 = scalar_lea.hbm %s16188_s2, 256  ;;  %s14112_s21 = int_to_ptr.vmem [resolvable:$true] %s317_s21 }
  0x13   : > { %s16205_s16 = scalar_select %p14098_p4, 1, 0 }
  0x14   : > { %p13465_p5 = pneg %p14098_p4  ;;  %p13655_p7 = scmp.ne.s32.totalorder %s16188_s2, %s13654_s24 }
  0x15   : > { %p13661_p11 = scmp.lt.u32.totalorder %s13654_s24, %s16188_s2 }
  0x16   : > { %p14106_p6 = pnand %p13465_p5, %p16197_p1 }
  0x18   : > { %p14122_p8 = pneg %p14106_p6 }
  0x1a   : > { %p13657_p9 = pnand %p14122_p8, %p13655_p7 }
  0x1c   : > { %p13658_p10 = pneg %p13657_p9 }
  0x1e   : > { %p13663_p12 = pnand %p13661_p11, %p13658_p10 }
  0x20   : > { %13666 = shalt.err (!%p13663_p12)
}
  0x21   : > { %s13667_s13 = scalar_lea.vmem %s14096_s14, 256  ;;  %p13675_p5 = scmp.lt.s32.totalorder %s14096_s14, %s14096_s14 }
  0x22   : > { %p13668_p13 = scmp.ne.s32.totalorder %s14096_s14, %s13667_s13  ;;  %p13676_p3 = scmp.lt.s32.totalorder %s13667_s13, %s13667_s13 }
  0x24   : > { %p13670_p0 = pnand %p13668_p13, %p14122_p8  ;;  %p13677_p7 = por %p13676_p3, %p13675_p5 }
  0x26   : > { %p13671_p2 = pneg %p13670_p0 }
  0x28   : > { %p13678_p9 = pnand %p13677_p7, %p13671_p2 }
  0x2a   : > { %13681 = shalt.err (!%p13678_p9)
}
  0x2b   : > { %s16199_s17 = smov 128   ;;  %s16200_s20 = smov 8  }
  0x2c   : > { %13471 = dma.hbm_to_vmem [thread:$0]  (!%p14106_p6), %s16188_s2, 256, %s14096_s14, [#allocation7], %s16199_s17, %s16199_s17, %s16200_s20  }
  0x2d   : > { %s13682_s26 = scalar_lea.hbm %s16189_s3, 256 }
  0x2e   : > { %p13683_p3 = scmp.ne.s32.totalorder %s16189_s3, %s13682_s26  ;;  %p13689_p12 = scmp.lt.u32.totalorder %s13682_s26, %s16189_s3 }
  0x30   : > { %p13685_p10 = pnand %p13683_p3, %p14122_p8 }
  0x32   : > { %p13686_p11 = pneg %p13685_p10 }
  0x34   : > { %p13691_p13 = pnand %p13689_p12, %p13686_p11 }
  0x36   : > { %13694 = shalt.err (!%p13691_p13)
}
  0x37   : > { %s13695_s14 = scalar_lea.vmem %s14110_s18, 256  ;;  %p13703_p7 = scmp.lt.s32.totalorder %s14110_s18, %s14110_s18 }
  0x38   : > { %p13696_p0 = scmp.ne.s32.totalorder %s14110_s18, %s13695_s14  ;;  %p13704_p9 = scmp.lt.s32.totalorder %s13695_s14, %s13695_s14 }
  0x3a   : > { %p13698_p2 = pnand %p13696_p0, %p14122_p8  ;;  %p13705_p3 = por %p13704_p9, %p13703_p7 }
  0x3c   : > { %p13699_p5 = pneg %p13698_p2 }
  0x3e   : > { %p13706_p10 = pnand %p13705_p3, %p13699_p5 }
  0x40   : > { %13709 = shalt.err (!%p13706_p10)
}
  0x41   : > { %13474 = dma.hbm_to_vmem [thread:$0]  (!%p14106_p6), %s16189_s3, 256, %s14110_s18, [#allocation10], %s16199_s17, %s16199_s17, %s16200_s20  }
  0x42   : > { %s13710_s25 = scalar_lea.hbm %s16192_s6, 128 }
  0x43   : > { %p13711_p11 = scmp.ne.s32.totalorder %s16192_s6, %s13710_s25  ;;  %p13717_p0 = scmp.lt.u32.totalorder %s13710_s25, %s16192_s6 }
  0x45   : > { %p13713_p12 = pnand %p13711_p11, %p14122_p8 }
  0x47   : > { %p13714_p13 = pneg %p13713_p12 }
  0x49   : > { %p13719_p2 = pnand %p13717_p0, %p13714_p13 }
  0x4b   : > { %13722 = shalt.err (!%p13719_p2)
}
  0x4c   : > { %s13723_s18 = scalar_lea.vmem %s14112_s21, 128  ;;  %p13731_p3 = scmp.lt.s32.totalorder %s14112_s21, %s14112_s21 }
  0x4d   : > { %p13724_p5 = scmp.ne.s32.totalorder %s14112_s21, %s13723_s18  ;;  %p13732_p10 = scmp.lt.s32.totalorder %s13723_s18, %s13723_s18 }
  0x4f   : > { %p13726_p7 = pnand %p13724_p5, %p14122_p8  ;;  %p13733_p11 = por %p13732_p10, %p13731_p3 }
  0x51   : > { %p13727_p9 = pneg %p13726_p7 }
  0x53   : > { %p13734_p12 = pnand %p13733_p11, %p13727_p9 }
  0x55   : > { %13737 = shalt.err (!%p13734_p12)
}
  0x56   : > { %13480 = dma.hbm_to_vmem [thread:$0]  (!%p14106_p6), %s16192_s6, 128, %s14112_s21, [#allocation13]  }
  0x57   : > { %s14005_s22 = smov [#allocation15]   ;;  %s13738_s26 = scalar_lea.hbm %s16193_s7, 8192 }
  0x58   : > { %s327_s23 = sshll.u32 %s14005_s22, 4  ;;  %p13739_p13 = scmp.ne.s32.totalorder %s16193_s7, %s13738_s26  ;;  %s328_s23 = int_to_ptr.vmem [resolvable:$true] %s327_s23 }
  0x59   : > { %p13745_p5 = scmp.lt.u32.totalorder %s13738_s26, %s16193_s7 }
  0x5a   : > { %p13741_p0 = pnand %p13739_p13, %p14122_p8 }
  0x5c   : > { %p13742_p2 = pneg %p13741_p0 }
  0x5e   : > { %p13747_p7 = pnand %p13745_p5, %p13742_p2 }
  0x60   : > { %13750 = shalt.err (!%p13747_p7)
}
  0x61   : > { %s13751_s21 = scalar_lea.vmem %s328_s23, 8192  ;;  %p13759_p11 = scmp.lt.s32.totalorder %s328_s23, %s328_s23 }
  0x62   : > { %p13752_p9 = scmp.ne.s32.totalorder %s328_s23, %s13751_s21  ;;  %p13760_p12 = scmp.lt.s32.totalorder %s13751_s21, %s13751_s21 }
  0x64   : > { %p13754_p3 = pnand %p13752_p9, %p14122_p8  ;;  %p13761_p1 = por %p13760_p12, %p13759_p11 }
  0x66   : > { %p13755_p10 = pneg %p13754_p3 }
  0x68   : > { %p13762_p4 = pnand %p13761_p1, %p13755_p10 }
  0x6a   : > { %13765 = shalt.err (!%p13762_p4)
}
  0x6b   : > { %s14006_s14 = smov 64   ;;  %s14007_s9 = smov 4  }
  0x6c   : > { %13483 = dma.hbm_to_vmem [thread:$0]  (!%p14106_p6), %s16193_s7, 8192, %s328_s23, [#allocation16], %s14006_s14, %s14006_s14, %s14007_s9  }
  0x6d   : > { %s14008_s25 = smov [#allocation3]   ;;  %s14009_s28 = smov [#allocation11]  }
  0x6e   : > { %s267_s26 = sshll.u32 %s14008_s25, 4  ;;  %s303_s29 = sshll.u32 %s14009_s28, 4  ;;  %s268_s26 = int_to_ptr.vmem [resolvable:$true] %s267_s26  ;;  %s14213_s29 = int_to_ptr.vmem [resolvable:$true] %s303_s29 }
  0x6f   : > { %s16208_s0 = sld [smem:[#allocation27_spill]] }
  0x75   : > { %s13766_s21 = scalar_lea.hbm %s16208_s0, 832 }
  0x76   : > { %p13767_p1 = scmp.ne.s32.totalorder %s16208_s0, %s13766_s21  ;;  %p13773_p0 = scmp.lt.u32.totalorder %s13766_s21, %s16208_s0 }
  0x78   : > { %p13769_p4 = pnand %p13767_p1, %p14122_p8 }
  0x7a   : > { %p13770_p13 = pneg %p13769_p4 }
  0x7c   : > { %p13775_p2 = pnand %p13773_p0, %p13770_p13 }
  0x7e   : > { %13778 = shalt.err (!%p13775_p2)
}
  0x7f   : > { %s13779_s14 = scalar_lea.vmem %s268_s26, 832  ;;  %p13787_p3 = scmp.lt.s32.totalorder %s268_s26, %s268_s26 }
  0x80   : > { %p13780_p5 = scmp.ne.s32.totalorder %s268_s26, %s13779_s14  ;;  %p13788_p10 = scmp.lt.s32.totalorder %s13779_s14, %s13779_s14 }
  0x82   : > { %p13782_p7 = pnand %p13780_p5, %p14122_p8  ;;  %p13789_p11 = por %p13788_p10, %p13787_p3 }
  0x84   : > { %p13783_p9 = pneg %p13782_p7 }
  0x86   : > { %p13790_p12 = pnand %p13789_p11, %p13783_p9 }
  0x88   : > { %13793 = shalt.err (!%p13790_p12)
}
  0x89   : > { %13468 = dma.hbm_to_vmem [thread:$0]  (!%p14106_p6), %s16208_s0, 832, %s268_s26, [#allocation4]  }
  0x8a   : > { %s13794_s25 = scalar_lea.hbm %s16190_s4, 256 }
  0x8b   : > { %p13795_p1 = scmp.ne.s32.totalorder %s16190_s4, %s13794_s25  ;;  %p13801_p0 = scmp.lt.u32.totalorder %s13794_s25, %s16190_s4 }
  0x8d   : > { %p13797_p4 = pnand %p13795_p1, %p14122_p8 }
  0x8f   : > { %p13798_p13 = pneg %p13797_p4 }
  0x91   : > { %p13803_p2 = pnand %p13801_p0, %p13798_p13 }
  0x93   : > { %13806 = shalt.err (!%p13803_p2)
}
  0x94   : > { %s13807_s26 = scalar_lea.vmem %s14213_s29, 256  ;;  %p13815_p3 = scmp.lt.s32.totalorder %s14213_s29, %s14213_s29 }
  0x95   : > { %p13808_p5 = scmp.ne.s32.totalorder %s14213_s29, %s13807_s26  ;;  %p13816_p10 = scmp.lt.s32.totalorder %s13807_s26, %s13807_s26 }
  0x97   : > { %p13810_p7 = pnand %p13808_p5, %p14122_p8  ;;  %p13817_p11 = por %p13816_p10, %p13815_p3 }
  0x99   : > { %p13811_p9 = pneg %p13810_p7 }
  0x9b   : > { %p13818_p12 = pnand %p13817_p11, %p13811_p9 }
  0x9d   : > { %13821 = shalt.err (!%p13818_p12)
}
  0x9e   : > { %s16209_s22 = smov 8   ;;  %s16210_s23 = smov 128  }
  0x9f   : > { %13477 = dma.hbm_to_vmem [thread:$0]  (!%p14106_p6), %s16190_s4, 256, %s14213_s29, [#allocation10], %s16210_s23, %s16210_s23, %s16209_s22  }
  0xa0   : > { %s14010_s20 = smov [#allocation17]   ;;  %s13822_s28 = scalar_lea.hbm %s16194_s8, 16 }
  0xa1   : > { %s341_s9 = sshll.u32 %s14010_s20, 4  ;;  %p13823_p1 = scmp.ne.s32.totalorder %s16194_s8, %s13822_s28  ;;  %s342_s9 = int_to_ptr.vmem [resolvable:$true] %s341_s9 }
  0xa2   : > { %p13829_p0 = scmp.lt.u32.totalorder %s13822_s28, %s16194_s8 }
  0xa3   : > { %p13825_p4 = pnand %p13823_p1, %p14122_p8 }
  0xa5   : > { %p13826_p13 = pneg %p13825_p4 }
  0xa7   : > { %p13831_p2 = pnand %p13829_p0, %p13826_p13 }
  0xa9   : > { %13834 = shalt.err (!%p13831_p2)
}
  0xaa   : > { %s13835_s29 = scalar_lea.vmem %s342_s9, 16  ;;  %s13842_s22 = scalar_lea.vmem %s342_s9, 32 }
  0xab   : > { %p13836_p5 = scmp.ne.s32.totalorder %s342_s9, %s13835_s29  ;;  %p13843_p3 = scmp.lt.s32.totalorder %s342_s9, %s342_s9 }
  0xac   : > { %p13844_p10 = scmp.lt.s32.totalorder %s13842_s22, %s13835_s29 }
  0xad   : > { %p13838_p7 = pnand %p13836_p5, %p14122_p8 }
  0xae   : > { %p13845_p11 = por %p13844_p10, %p13843_p3 }
  0xaf   : > { %p13839_p9 = pneg %p13838_p7 }
  0xb1   : > { %p13846_p12 = pnand %p13845_p11, %p13839_p9 }
  0xb3   : > { %13849 = shalt.err (!%p13846_p12)
}
  0xb4   : > { %13486 = dma.hbm_to_vmem [thread:$0]  (!%p14106_p6), %s16194_s8, 16, %s342_s9, [#allocation16]  }
  0xb5   : > { %s14278_s19 = sadd.s32 1, %s13998_s12   ;;  %s57_s17 = sadd.s32 1, %s13994_s11 }
  0xb6   : > { %s54_s27 = ssub.s32 %s13998_s12, %s14278_s19  ;;  %p64_p1 = scmp.ne.s32.totalorder %s13994_s11, %s13990_s10 }
  0xb7   : > { %p55_p8 = scmp.eq.s32.totalorder %s54_s27, 0  ;;  %p65_p4 = scmp.eq.s32.totalorder %s13998_s12, 0 }
  0xb8   : > { %p70_p13 = scmp.ne.s32.totalorder %s13990_s10, %s13986_s30  ;;  %p16211_p2 = scmp.eq.s32.totalorder %s14090_s15, 0 }
  0xb9   : > { %s14289_s20 = scalar_select %p55_p8, %s13994_s11, %s57_s17  }
  0xba   : > { %p66_p0 = por %p65_p4, %p64_p1  ;;  %p14293_p5 = por %p16211_p2, %p70_p13 }
  0xbb   : > { %p13501_p6 = scmp.lt.s32.totalorder %s13998_s12, 2  ;;  %s16201_s9 = sand.u32 1, %s13998_s12  }
  0xbc   : > { %s354_s25 = sand.u32 1, %s13994_s11   ;;  %s13427_s30 = smul.u32 106496, %s13998_s12 }
  0xbd   : > { %s13426_s28 = smul.u32 6656, %s354_s25  ;;  %p14302_p7 = pnand %p13501_p6, %p66_p0 }
  0xbe   : > { %s16214_s1 = sld [smem:[#allocation28_spill]]  ;;  %s14316_s23 = scalar_lea.sflag [#allocation7], %s16201_s9 }
  0xbf   : > { %s356_s29 = scalar_lea.vmem [#allocation6], %s13426_s28  ;;  %p13852_p3 = pneg %p14302_p7 }
  0xc0   : > { %s363_s22 = sshll.u32 %s356_s29, 4  ;;  %s14312_s22 = int_to_ptr.vmem [resolvable:$true] %s363_s22 }
  0xc4   : > { %s14310_s26 = scalar_lea.hbm %s16214_s1, %s13427_s30  ;;  %s13855_s30 = scalar_lea.hbm %s16214_s1, 212992 }
  0xc5   : > { %s13850_s14 = scalar_lea.hbm %s14310_s26, 106496  ;;  %p13856_p12 = scmp.lt.u32.totalorder %s14310_s26, %s16214_s1 }
  0xc6   : > { %p13851_p9 = scmp.ne.s32.totalorder %s14310_s26, %s13850_s14  ;;  %p13857_p8 = scmp.lt.u32.totalorder %s13855_s30, %s13850_s14 }
  0xc7   : > { %p13859_p4 = scmp.lt.u32.totalorder %s13850_s14, %s14310_s26 }
  0xc8   : > { %p13853_p10 = pnand %p13852_p3, %p13851_p9  ;;  %p13858_p1 = por %p13857_p8, %p13856_p12 }
  0xca   : > { %p13854_p11 = pneg %p13853_p10  ;;  %p13860_p13 = por %p13859_p4, %p13858_p1 }
  0xcc   : > { %p13861_p0 = pnand %p13860_p13, %p13854_p11 }
  0xce   : > { %13864 = shalt.err (!%p13861_p0)
}
  0xcf   : > { %s13865_s21 = scalar_lea.vmem %s14312_s22, 106496  ;;  %s14011_s29 = smov [#allocation6]  }
  0xd0   : > { %p13866_p2 = scmp.ne.s32.totalorder %s14312_s22, %s13865_s21  ;;  %s13870_s27 = sshll.u32 %s14011_s29, 4  ;;  %s13871_s27 = int_to_ptr.vmem [resolvable:$false] %s13870_s27 }
  0xd1   : > { %s13872_s17 = scalar_lea.vmem %s13871_s27, 212992  ;;  %p13873_p10 = scmp.lt.s32.totalorder %s14312_s22, %s13871_s27 }
  0xd2   : > { %p13868_p6 = pnand %p13866_p2, %p13852_p3  ;;  %p13874_p12 = scmp.lt.s32.totalorder %s13872_s17, %s13865_s21 }
  0xd4   : > { %p13869_p9 = pneg %p13868_p6  ;;  %p13875_p8 = por %p13874_p12, %p13873_p10 }
  0xd6   : > { %p13876_p1 = pnand %p13875_p8, %p13869_p9 }
  0xd8   : > { %13879 = shalt.err (!%p13876_p1)
}
  0xd9   : > { %s14012_s14 = smov 512   ;;  %s14013_s30 = smov 32  }
  0xda   : > { %13490 = dma.hbm_to_vmem [thread:$0]  (!%p14302_p7), %s14310_s26, 106496, %s14312_s22, %s14316_s23, %s14012_s14, %s14012_s14, %s14013_s30  }
  0xdb   : > { %s11790_s18 = sshll.u32 %s354_s25, 12  ;;  %s13233_s28 = sshll.u32 %s13998_s12, 16 }
  0xdc   : > { %s14353_s27 = scalar_lea.hbm %s16191_s5, %s13233_s28  ;;  %s377_s17 = scalar_lea.vmem [#allocation12], %s11790_s18 }
  0xdd   : > { %s385_s9 = sshll.u32 %s377_s17, 4  ;;  %s16215_s0 = sand.u32 1, %s13998_s12   ;;  %s14355_s9 = int_to_ptr.vmem [resolvable:$true] %s385_s9 }
  0xde   : > { %s14359_s1 = scalar_lea.sflag [#allocation13], %s16215_s0  ;;  %s13880_s26 = scalar_lea.hbm %s14353_s27, 65536 }
  0xdf   : > { %p13881_p11 = scmp.ne.s32.totalorder %s14353_s27, %s13880_s26  ;;  %s13885_s23 = scalar_lea.hbm %s16191_s5, 131072 }
  0xe0   : > { %p13886_p0 = scmp.lt.u32.totalorder %s14353_s27, %s16191_s5  ;;  %p13887_p2 = scmp.lt.u32.totalorder %s13885_s23, %s13880_s26 }
  0xe1   : > { %p13883_p4 = pnand %p13881_p11, %p13852_p3  ;;  %p13889_p9 = scmp.lt.u32.totalorder %s13880_s26, %s14353_s27 }
  0xe2   : > { %p13888_p6 = por %p13887_p2, %p13886_p0 }
  0xe3   : > { %p13884_p13 = pneg %p13883_p4 }
  0xe4   : > { %p13890_p10 = por %p13889_p9, %p13888_p6 }
  0xe6   : > { %p13891_p12 = pnand %p13890_p10, %p13884_p13 }
  0xe8   : > { %13894 = shalt.err (!%p13891_p12)
}
  0xe9   : > { %s13895_s0 = scalar_lea.vmem %s14355_s9, 65536  ;;  %s14014_s12 = smov [#allocation12]  }
  0xea   : > { %p13896_p8 = scmp.ne.s32.totalorder %s14355_s9, %s13895_s0  ;;  %s13900_s18 = sshll.u32 %s14014_s12, 4  ;;  %s13901_s18 = int_to_ptr.vmem [resolvable:$false] %s13900_s18 }
  0xeb   : > { %s13902_s29 = scalar_lea.vmem %s13901_s18, 131072  ;;  %p13903_p4 = scmp.lt.s32.totalorder %s14355_s9, %s13901_s18 }
  0xec   : > { %p13898_p1 = pnand %p13896_p8, %p13852_p3  ;;  %p13904_p0 = scmp.lt.s32.totalorder %s13902_s29, %s13895_s0 }
  0xee   : > { %p13899_p11 = pneg %p13898_p1  ;;  %p13905_p2 = por %p13904_p0, %p13903_p4 }
  0xf0   : > { %p13906_p6 = pnand %p13905_p2, %p13899_p11 }
  0xf2   : > { %13909 = shalt.err (!%p13906_p6)
}
  0xf3   : > { %13493 = dma.hbm_to_vmem [thread:$0]  (!%p14302_p7), %s14353_s27, 65536, %s14355_s9, %s14359_s1, %s14012_s14, %s14012_s14, %s14013_s30  }
  0xf4   : > { %p16216_p3 = scmp.ne.s32.totalorder %s16205_s16, 0 }
  0xf5   : > { %p16217_p13 = scmp.eq.s32.totalorder (!%p16216_p3), %s14090_s15, 0 }
  0xf6   : > { %397 = sbr.rel (%p16216_p3) target bundleno = 2373 (0x945), region = 56 }
  0xfd   : > { %13953 = dma.done.wait (%p16217_p13), [#allocation4], 832   ;;  %p16218_p9 = pmov %p16217_p13 }
  0xfe   : > { %s403_s13 = sand.u32 1, %s14090_s15   ;;  %s405_s17 = sand.u32 1, %s13990_s10  }
  0xff   : > { %13955 = vsyncadd (%p16218_p9), [#allocation4], 4294966464  ;;  %s13428_s26 = smul.u32 6656, %s405_s17  ;;  %s404_s25 = scalar_lea.sflag [#allocation7], %s403_s13 }
 0x101   : > { %s14396_s22 = scalar_lea.vmem [#allocation6], %s13428_s26 }
 0x102   : > { %13957 = dma.done.wait (%p14293_p5), %s404_s25, 106496  }
 0x103   : > { %13959 = vsyncadd (%p14293_p5), %s404_s25, 4294860800  ;;  %p16219_p7 = pmov %p16218_p9 }
 0x105   : > { %13961 = dma.done.wait (%p16219_p7), [#allocation7], 256   ;;  %p16220_p10 = pmov %p16219_p7 }
 0x106   : > { %p16221_p12 = pmov %p16219_p7 }
 0x107   : > { %13963 = vsyncadd (%p16220_p10), [#allocation7], 4294967040 }
 0x108   : > { %13965 = dma.done.wait (%p16221_p12), [#allocation10], 512   ;;  %p16222_p8 = pmov %p16219_p7 }
 0x109   : > { %s11799_s1 = sshll.u32 %s405_s17, 12  ;;  %s425_s16 = scalar_lea.sflag [#allocation13], %s403_s13 }
 0x10a   : > { %13967 = vsyncadd (%p16222_p8), [#allocation10], 4294966784  ;;  %s14410_s9 = scalar_lea.vmem [#allocation12], %s11799_s1 }
 0x10b   : > { %13969 = dma.done.wait (%p14293_p5), %s425_s16, 65536  }
 0x10c   : > { %13971 = vsyncadd (%p14293_p5), %s425_s16, 4294901760  ;;  %p16223_p1 = pmov %p16219_p7 }
 0x10e   : > { %13973 = dma.done.wait (%p16223_p1), [#allocation13], 128   ;;  %p16224_p11 = pmov %p16223_p1 }
 0x10f   : > { %p16225_p4 = pmov %p16223_p1 }
 0x110   : > { %13975 = vsyncadd (%p16224_p11), [#allocation13], 4294967168 }
 0x111   : > { %13977 = dma.done.wait (%p16225_p4), [#allocation16], 8208   ;;  %p16226_p0 = pmov %p16223_p1 }
 0x112   : > { %p16227_p2 = scmp.ne.s32.totalorder %s14090_s15, 0 }
 0x113   : > { %13979 = vsyncadd (%p16226_p0), [#allocation16], 4294959088  ;;  %v14015_v0 = vmov (!%p16227_p2), 0.0  }
 0x114   : > { %480 = sbr.rel (%p16227_p2) target bundleno = 283 (0x11b), region = 96  ;;  %481 = vst [vmem:[#allocation2] sm:$0xff] (!%p16227_p2), %v14015_v0  ;;  %482 = vst [vmem:[#allocation2 + $0x8] sm:$0xff] (!%p16227_p2), %v14015_v0 }
 0x115   : > { %483 = vst [vmem:[#allocation2 + $0x10] sm:$0xff] (!%p16227_p2), %v14015_v0  ;;  %484 = vst [vmem:[#allocation2 + $0x18] sm:$0xff] (!%p16227_p2), %v14015_v0 }
 0x116   : > { %485 = vst [vmem:[#allocation2 + $0x20] sm:$0xff] (!%p16227_p2), %v14015_v0  ;;  %486 = vst [vmem:[#allocation2 + $0x28] sm:$0xff] (!%p16227_p2), %v14015_v0 }
 0x117   : > { %487 = vst [vmem:[#allocation2 + $0x30] sm:$0xff] (!%p16227_p2), %v14015_v0  ;;  %488 = vst [vmem:[#allocation2 + $0x38] sm:$0xff] (!%p16227_p2), %v14015_v0 }
 0x11b PF: > { %v503_v1 = vld [vmem:[%s14396_s22] sm:$0xff]  ;;  %v504_v3 = vld [vmem:[%s14396_s22 + $0x8] sm:$0xff]  ;;  %s15427_s24 = sshll.u32 %s14090_s15, 3  ;;  %p13162_p5 = scmp.ne.s32.totalorder %s14090_s15, 1 }
 0x11c   : > { %v507_v2 = vld [vmem:[%s14396_s22 + $0x20] sm:$0xff]  ;;  %v508_v5 = vld [vmem:[%s14396_s22 + $0x28] sm:$0xff]  ;;  %s490_s14 = scalar_lea.vmem [#allocation8], %s15427_s24  ;;  %s492_s30 = scalar_lea.vmem [#allocation9], %s15427_s24 }
 0x11d   : > { %v11819_v4 = vcombine.high %v503_v1, %v507_v2  ;;  %v11818_v6 = vcombine.low %v503_v1, %v507_v2  ;;  %v511_v7 = vld [vmem:[%s14396_s22 + $0x40] sm:$0xff]  ;;  %v11821_v9 = vcombine.high %v504_v3, %v508_v5  ;;  %v11820_v10 = vcombine.low %v504_v3, %v508_v5  ;;  %v512_v12 = vld [vmem:[%s14396_s22 + $0x48] sm:$0xff]  ;;  %s494_s27 = scalar_lea.vmem [#allocation11], %s15427_s24 }
 0x11e   : > { %v515_v8 = vld [vmem:[%s14396_s22 + $0x60] sm:$0xff]  ;;  %v516_v13 = vld [vmem:[%s14396_s22 + $0x68] sm:$0xff] }
 0x11f   : > { %v11827_v11 = vcombine.high %v511_v7, %v515_v8  ;;  %v519_v14 = vld [vmem:[%s14396_s22 + $0x80] sm:$0xff]  ;;  %5582 = vmatprep.subr.bf16.mxu0 %v11819_v4  ;;  %v11829_v15 = vcombine.high %v512_v12, %v516_v13  ;;  %v520_v17 = vld [vmem:[%s14396_s22 + $0x88] sm:$0xff]  ;;  %5869 = vmatprep.subr.bf16.mxu1 %v11821_v9  ;;  %v11826_v19 = vcombine.low %v511_v7, %v515_v8 }
 0x120   : > { %v523_v16 = vld [vmem:[%s14396_s22 + $0xa0] sm:$0xff]  ;;  %v524_v18 = vld [vmem:[%s14396_s22 + $0xa8] sm:$0xff]  ;;  %5583 = vmatpush1.bf16.msra.mxu0 %v11818_v6  ;;  %5870 = vmatpush1.bf16.msra.mxu1 %v11820_v10  ;;  %v11828_v20 = vcombine.low %v512_v12, %v516_v13 }
 0x121   : > { %5584 = vmatprep.subr.bf16.mxu0 %v11827_v11  ;;  %v11835_v21 = vcombine.high %v519_v14, %v523_v16  ;;  %5871 = vmatprep.subr.bf16.mxu1 %v11829_v15  ;;  %v11837_v22 = vcombine.high %v520_v17, %v524_v18  ;;  %v527_v23 = vld [vmem:[%s14396_s22 + $0xc0] sm:$0xff]  ;;  %v528_v25 = vld [vmem:[%s14396_s22 + $0xc8] sm:$0xff]  ;;  %v11834_v27 = vcombine.low %v519_v14, %v523_v16 }
 0x122   : > { %v531_v24 = vld [vmem:[%s14396_s22 + $0xe0] sm:$0xff]  ;;  %v532_v26 = vld [vmem:[%s14396_s22 + $0xe8] sm:$0xff]  ;;  %v11836_v28 = vcombine.low %v520_v17, %v524_v18 }
 0x123   : > { %v11843_v29 = vcombine.high %v527_v23, %v531_v24  ;;  %v11845_v30 = vcombine.high %v528_v25, %v532_v26  ;;  %v535_v31 = vld [vmem:[%s14396_s22 + $0x100] sm:$0xff]  ;;  %v536_v33 = vld [vmem:[%s14396_s22 + $0x108] sm:$0xff]  ;;  %v11842_v35 = vcombine.low %v527_v23, %v531_v24  ;;  %v11844_v36 = vcombine.low %v528_v25, %v532_v26 }
 0x124   : > { %5585 = vmatpush1.bf16.msra.mxu0 %v11826_v19  ;;  %5872 = vmatpush1.bf16.msra.mxu1 %v11828_v20  ;;  %v539_v32 = vld [vmem:[%s14396_s22 + $0x120] sm:$0xff]  ;;  %v540_v34 = vld [vmem:[%s14396_s22 + $0x128] sm:$0xff] }
 0x125   : > { %5586 = vmatprep.subr.bf16.mxu0 %v11835_v21  ;;  %5873 = vmatprep.subr.bf16.mxu1 %v11837_v22  ;;  %v11851_v37 = vcombine.high %v535_v31, %v539_v32  ;;  %v11853_v38 = vcombine.high %v536_v33, %v540_v34  ;;  %v543_v39 = vld [vmem:[%s14396_s22 + $0x140] sm:$0xff]  ;;  %v544_v41 = vld [vmem:[%s14396_s22 + $0x148] sm:$0xff]  ;;  %v11850_v43 = vcombine.low %v535_v31, %v539_v32 }
 0x126   : > { %v547_v40 = vld [vmem:[%s14396_s22 + $0x160] sm:$0xff]  ;;  %v548_v42 = vld [vmem:[%s14396_s22 + $0x168] sm:$0xff]  ;;  %v11852_v44 = vcombine.low %v536_v33, %v540_v34 }
 0x127   : > { %v11859_v45 = vcombine.high %v543_v39, %v547_v40  ;;  %v11861_v46 = vcombine.high %v544_v41, %v548_v42  ;;  %v551_v47 = vld [vmem:[%s14396_s22 + $0x180] sm:$0xff]  ;;  %v552_v49 = vld [vmem:[%s14396_s22 + $0x188] sm:$0xff]  ;;  %v11858_v51 = vcombine.low %v543_v39, %v547_v40  ;;  %v11860_v52 = vcombine.low %v544_v41, %v548_v42 }
 0x128   : > { %5587 = vmatpush1.bf16.msra.mxu0 %v11834_v27  ;;  %5874 = vmatpush1.bf16.msra.mxu1 %v11836_v28  ;;  %v555_v48 = vld [vmem:[%s14396_s22 + $0x1a0] sm:$0xff]  ;;  %v556_v50 = vld [vmem:[%s14396_s22 + $0x1a8] sm:$0xff] }
 0x129   : > { %5588 = vmatprep.subr.bf16.mxu0 %v11843_v29  ;;  %5875 = vmatprep.subr.bf16.mxu1 %v11845_v30  ;;  %v11867_v53 = vcombine.high %v551_v47, %v555_v48  ;;  %v14454_v54 = vld [vmem:[#allocation3] sm:$0xff]  ;;  %v11869_v55 = vcombine.high %v552_v49, %v556_v50  ;;  %v559_v56 = vld [vmem:[%s14396_s22 + $0x1c0] sm:$0xff]  ;;  %v11866_v61 = vcombine.low %v551_v47, %v555_v48 }
 0x12a   : > { %v563_v57 = vld [vmem:[%s14396_s22 + $0x1e0] sm:$0xff]  ;;  %v14460_v58 = vcombine.high %v14454_v54, %v14454_v54  ;;  %v560_v59 = vld [vmem:[%s14396_s22 + $0x1c8] sm:$0xff]  ;;  %v11868_v62 = vcombine.low %v552_v49, %v556_v50 }
 0x12b   : > { %v564_v60 = vld [vmem:[%s14396_s22 + $0x1e8] sm:$0xff]  ;;  %v11875_v63 = vcombine.high %v559_v56, %v563_v57  ;;  %v567_v1 = vld [vmem:[%s14396_s22 + $0x200] sm:$0xff]  ;;  %v11874_v5 = vcombine.low %v559_v56, %v563_v57 }
 0x12c   : > { %5589 = vmatpush1.bf16.msra.mxu0 %v11842_v35  ;;  %5876 = vmatpush1.bf16.msra.mxu1 %v11844_v36  ;;  %v11877_v0 = vcombine.high %v560_v59, %v564_v60  ;;  %v571_v2 = vld [vmem:[%s14396_s22 + $0x220] sm:$0xff]  ;;  %v568_v3 = vld [vmem:[%s14396_s22 + $0x208] sm:$0xff]  ;;  %v11876_v6 = vcombine.low %v560_v59, %v564_v60 }
 0x12d   : > { %5590 = vmatprep.subr.bf16.mxu0 %v11851_v37  ;;  %5877 = vmatprep.subr.bf16.mxu1 %v11853_v38  ;;  %v572_v4 = vld [vmem:[%s14396_s22 + $0x228] sm:$0xff]  ;;  %v11883_v7 = vcombine.high %v567_v1, %v571_v2  ;;  %v575_v9 = vld [vmem:[%s14396_s22 + $0x240] sm:$0xff]  ;;  %v11882_v13 = vcombine.low %v567_v1, %v571_v2 }
 0x12e   : > { %5614 = vmatprep.mubr.bf16.mxu0 %v14460_v58  ;;  %5901 = vmatprep.mubr.bf16.mxu1 %v14460_v58  ;;  %v11885_v8 = vcombine.high %v568_v3, %v572_v4  ;;  %v579_v10 = vld [vmem:[%s14396_s22 + $0x260] sm:$0xff]  ;;  %v576_v11 = vld [vmem:[%s14396_s22 + $0x248] sm:$0xff]  ;;  %v11884_v14 = vcombine.low %v568_v3, %v572_v4 }
 0x12f   : > { %v580_v12 = vld [vmem:[%s14396_s22 + $0x268] sm:$0xff]  ;;  %v11891_v15 = vcombine.high %v575_v9, %v579_v10  ;;  %v583_v17 = vld [vmem:[%s14396_s22 + $0x280] sm:$0xff]  ;;  %v11890_v21 = vcombine.low %v575_v9, %v579_v10 }
 0x130   : > { %5591 = vmatpush1.bf16.msra.mxu0 %v11850_v43  ;;  %5878 = vmatpush1.bf16.msra.mxu1 %v11852_v44  ;;  %v11893_v16 = vcombine.high %v576_v11, %v580_v12  ;;  %v587_v18 = vld [vmem:[%s14396_s22 + $0x2a0] sm:$0xff]  ;;  %v584_v19 = vld [vmem:[%s14396_s22 + $0x288] sm:$0xff]  ;;  %v11892_v22 = vcombine.low %v576_v11, %v580_v12 }
 0x131   : > { %5592 = vmatprep.subr.bf16.mxu0 %v11859_v45  ;;  %5879 = vmatprep.subr.bf16.mxu1 %v11861_v46  ;;  %v588_v20 = vld [vmem:[%s14396_s22 + $0x2a8] sm:$0xff]  ;;  %v11899_v23 = vcombine.high %v583_v17, %v587_v18  ;;  %v591_v25 = vld [vmem:[%s14396_s22 + $0x2c0] sm:$0xff]  ;;  %v11898_v29 = vcombine.low %v583_v17, %v587_v18 }
 0x132   : > { %v11901_v24 = vcombine.high %v584_v19, %v588_v20  ;;  %v595_v26 = vld [vmem:[%s14396_s22 + $0x2e0] sm:$0xff]  ;;  %v592_v27 = vld [vmem:[%s14396_s22 + $0x2c8] sm:$0xff]  ;;  %v11900_v30 = vcombine.low %v584_v19, %v588_v20 }
 0x133   : > { %v596_v28 = vld [vmem:[%s14396_s22 + $0x2e8] sm:$0xff]  ;;  %v11907_v31 = vcombine.high %v591_v25, %v595_v26  ;;  %v599_v33 = vld [vmem:[%s14396_s22 + $0x300] sm:$0xff]  ;;  %v11906_v37 = vcombine.low %v591_v25, %v595_v26 }
 0x134   : > { %5593 = vmatpush1.bf16.msra.mxu0 %v11858_v51  ;;  %5880 = vmatpush1.bf16.msra.mxu1 %v11860_v52  ;;  %v11909_v32 = vcombine.high %v592_v27, %v596_v28  ;;  %v603_v34 = vld [vmem:[%s14396_s22 + $0x320] sm:$0xff]  ;;  %v600_v35 = vld [vmem:[%s14396_s22 + $0x308] sm:$0xff]  ;;  %v11908_v38 = vcombine.low %v592_v27, %v596_v28 }
 0x135   : > { %5594 = vmatprep.subr.bf16.mxu0 %v11867_v53  ;;  %5881 = vmatprep.subr.bf16.mxu1 %v11869_v55  ;;  %v604_v36 = vld [vmem:[%s14396_s22 + $0x328] sm:$0xff]  ;;  %v11915_v39 = vcombine.high %v599_v33, %v603_v34  ;;  %v607_v41 = vld [vmem:[%s14396_s22 + $0x340] sm:$0xff]  ;;  %v11914_v45 = vcombine.low %v599_v33, %v603_v34 }
 0x136   : > { %v11917_v40 = vcombine.high %v600_v35, %v604_v36  ;;  %v611_v42 = vld [vmem:[%s14396_s22 + $0x360] sm:$0xff]  ;;  %v608_v43 = vld [vmem:[%s14396_s22 + $0x348] sm:$0xff]  ;;  %v11916_v46 = vcombine.low %v600_v35, %v604_v36 }
 0x137   : > { %v612_v44 = vld [vmem:[%s14396_s22 + $0x368] sm:$0xff]  ;;  %v11923_v47 = vcombine.high %v607_v41, %v611_v42  ;;  %v615_v49 = vld [vmem:[%s14396_s22 + $0x380] sm:$0xff]  ;;  %v11922_v53 = vcombine.low %v607_v41, %v611_v42 }
 0x138   : > { %5595 = vmatpush1.bf16.msra.mxu0 %v11866_v61  ;;  %5882 = vmatpush1.bf16.msra.mxu1 %v11868_v62  ;;  %v11925_v48 = vcombine.high %v608_v43, %v612_v44  ;;  %v619_v50 = vld [vmem:[%s14396_s22 + $0x3a0] sm:$0xff]  ;;  %v616_v51 = vld [vmem:[%s14396_s22 + $0x388] sm:$0xff]  ;;  %v11924_v55 = vcombine.low %v608_v43, %v612_v44 }
 0x139   : > { %5596 = vmatprep.subr.bf16.mxu0 %v11875_v63  ;;  %5883 = vmatprep.subr.bf16.mxu1 %v11877_v0  ;;  %v620_v52 = vld [vmem:[%s14396_s22 + $0x3a8] sm:$0xff]  ;;  %v11931_v56 = vcombine.high %v615_v49, %v619_v50  ;;  %v623_v59 = vld [vmem:[%s14396_s22 + $0x3c0] sm:$0xff]  ;;  %v11930_v63 = vcombine.low %v615_v49, %v619_v50 }
 0x13a   : > { %v11933_v57 = vcombine.high %v616_v51, %v620_v52  ;;  %v627_v60 = vld [vmem:[%s14396_s22 + $0x3e0] sm:$0xff]  ;;  %v624_v61 = vld [vmem:[%s14396_s22 + $0x3c8] sm:$0xff]  ;;  %v11932_v0 = vcombine.low %v616_v51, %v620_v52 }
 0x13b   : > { %v628_v62 = vld [vmem:[%s14396_s22 + $0x3e8] sm:$0xff]  ;;  %v11939_v1 = vcombine.high %v623_v59, %v627_v60  ;;  %v631_v3 = vld [vmem:[%s14396_s22 + $0x400] sm:$0xff] }
 0x13c   : > { %5597 = vmatpush1.bf16.msra.mxu0 %v11874_v5  ;;  %5884 = vmatpush1.bf16.msra.mxu1 %v11876_v6  ;;  %v11941_v2 = vcombine.high %v624_v61, %v628_v62  ;;  %v635_v4 = vld [vmem:[%s14396_s22 + $0x420] sm:$0xff]  ;;  %v632_v5 = vld [vmem:[%s14396_s22 + $0x408] sm:$0xff] }
 0x13d   : > { %5598 = vmatprep.subr.bf16.mxu0 %v11883_v7  ;;  %5885 = vmatprep.subr.bf16.mxu1 %v11885_v8  ;;  %v636_v6 = vld [vmem:[%s14396_s22 + $0x428] sm:$0xff]  ;;  %v11938_v7 = vcombine.low %v623_v59, %v627_v60  ;;  %v11940_v8 = vcombine.low %v624_v61, %v628_v62  ;;  %v11947_v9 = vcombine.high %v631_v3, %v635_v4  ;;  %v639_v11 = vld [vmem:[%s14396_s22 + $0x440] sm:$0xff] }
 0x13e   : > { %v11949_v10 = vcombine.high %v632_v5, %v636_v6  ;;  %v643_v12 = vld [vmem:[%s14396_s22 + $0x460] sm:$0xff]  ;;  %v11946_v17 = vcombine.low %v631_v3, %v635_v4  ;;  %v11948_v18 = vcombine.low %v632_v5, %v636_v6 }
 0x13f   : > { %v11955_v19 = vcombine.high %v639_v11, %v643_v12  ;;  %v11954_v25 = vcombine.low %v639_v11, %v643_v12 }
 0x140   : > { %5599 = vmatpush1.bf16.msra.mxu0 %v11882_v13  ;;  %5886 = vmatpush1.bf16.msra.mxu1 %v11884_v14  ;;  %v14506_v13 = vcombine.low %v14454_v54, %v14454_v54  ;;  %v640_v14 = vld [vmem:[%s14396_s22 + $0x448] sm:$0xff] }
 0x141   : > { %5600 = vmatprep.subr.bf16.mxu0 %v11891_v15  ;;  %5887 = vmatprep.subr.bf16.mxu1 %v11893_v16  ;;  %v644_v15 = vld [vmem:[%s14396_s22 + $0x468] sm:$0xff]  ;;  %v14510_v16 = vld [vmem:[#allocation3 + $0x8] sm:$0xff] }
 0x142   : > { %v11957_v20 = vcombine.high %v640_v14, %v644_v15  ;;  %v14516_v54 = vcombine.high %v14510_v16, %v14510_v16  ;;  %v11956_v26 = vcombine.low %v640_v14, %v644_v15 }
 0x144   : > { %5601 = vmatpush1.bf16.msra.mxu0 %v11890_v21  ;;  %5888 = vmatpush1.bf16.msra.mxu1 %v11892_v22  ;;  %v647_v21 = vld [vmem:[%s14396_s22 + $0x480] sm:$0xff] }
 0x145   : > { %5602 = vmatprep.subr.bf16.mxu0 %v11899_v23  ;;  %5889 = vmatprep.subr.bf16.mxu1 %v11901_v24  ;;  %v651_v22 = vld [vmem:[%s14396_s22 + $0x4a0] sm:$0xff]  ;;  %v648_v23 = vld [vmem:[%s14396_s22 + $0x488] sm:$0xff] }
 0x146   : > { %v652_v24 = vld [vmem:[%s14396_s22 + $0x4a8] sm:$0xff]  ;;  %v11963_v27 = vcombine.high %v647_v21, %v651_v22  ;;  %v11962_v33 = vcombine.low %v647_v21, %v651_v22 }
 0x147   : > { %v11965_v28 = vcombine.high %v648_v23, %v652_v24  ;;  %v11964_v34 = vcombine.low %v648_v23, %v652_v24 }
 0x148   : > { %5603 = vmatpush1.bf16.msra.mxu0 %v11898_v29  ;;  %5890 = vmatpush1.bf16.msra.mxu1 %v11900_v30  ;;  %v655_v29 = vld [vmem:[%s14396_s22 + $0x4c0] sm:$0xff] }
 0x149   : > { %5604 = vmatprep.subr.bf16.mxu0 %v11907_v31  ;;  %5891 = vmatprep.subr.bf16.mxu1 %v11909_v32  ;;  %v659_v30 = vld [vmem:[%s14396_s22 + $0x4e0] sm:$0xff]  ;;  %v656_v31 = vld [vmem:[%s14396_s22 + $0x4c8] sm:$0xff] }
 0x14a   : > { %v660_v32 = vld [vmem:[%s14396_s22 + $0x4e8] sm:$0xff]  ;;  %v11971_v35 = vcombine.high %v655_v29, %v659_v30  ;;  %v11970_v41 = vcombine.low %v655_v29, %v659_v30 }
 0x14b   : > { %v11973_v36 = vcombine.high %v656_v31, %v660_v32  ;;  %v11972_v42 = vcombine.low %v656_v31, %v660_v32 }
 0x14c   : > { %5605 = vmatpush1.bf16.msra.mxu0 %v11906_v37  ;;  %5892 = vmatpush1.bf16.msra.mxu1 %v11908_v38  ;;  %v663_v37 = vld [vmem:[%s14396_s22 + $0x500] sm:$0xff] }
 0x14d   : > { %5606 = vmatprep.subr.bf16.mxu0 %v11915_v39  ;;  %5893 = vmatprep.subr.bf16.mxu1 %v11917_v40  ;;  %v667_v38 = vld [vmem:[%s14396_s22 + $0x520] sm:$0xff]  ;;  %v664_v39 = vld [vmem:[%s14396_s22 + $0x508] sm:$0xff] }
 0x14e   : > { %v668_v40 = vld [vmem:[%s14396_s22 + $0x528] sm:$0xff]  ;;  %v11979_v43 = vcombine.high %v663_v37, %v667_v38  ;;  %v11978_v49 = vcombine.low %v663_v37, %v667_v38 }
 0x14f   : > { %v11981_v44 = vcombine.high %v664_v39, %v668_v40  ;;  %v11980_v50 = vcombine.low %v664_v39, %v668_v40 }
 0x150   : > { %5607 = vmatpush1.bf16.msra.mxu0 %v11914_v45  ;;  %5894 = vmatpush1.bf16.msra.mxu1 %v11916_v46  ;;  %v671_v45 = vld [vmem:[%s14396_s22 + $0x540] sm:$0xff] }
 0x151   : > { %5608 = vmatprep.subr.bf16.mxu0 %v11923_v47  ;;  %5895 = vmatprep.subr.bf16.mxu1 %v11925_v48  ;;  %v675_v46 = vld [vmem:[%s14396_s22 + $0x560] sm:$0xff]  ;;  %v672_v47 = vld [vmem:[%s14396_s22 + $0x548] sm:$0xff] }
 0x152   : > { %v676_v48 = vld [vmem:[%s14396_s22 + $0x568] sm:$0xff]  ;;  %v11987_v51 = vcombine.high %v671_v45, %v675_v46  ;;  %v11986_v59 = vcombine.low %v671_v45, %v675_v46 }
 0x153   : > { %v11989_v52 = vcombine.high %v672_v47, %v676_v48  ;;  %v11988_v60 = vcombine.low %v672_v47, %v676_v48 }
 0x154   : > { %5609 = vmatpush1.bf16.msra.mxu0 %v11922_v53  ;;  %5896 = vmatpush1.bf16.msra.mxu1 %v11924_v55  ;;  %v679_v53 = vld [vmem:[%s14396_s22 + $0x580] sm:$0xff] }
 0x155   : > { %5610 = vmatprep.subr.bf16.mxu0 %v11931_v56  ;;  %5897 = vmatprep.subr.bf16.mxu1 %v11933_v57  ;;  %v683_v55 = vld [vmem:[%s14396_s22 + $0x5a0] sm:$0xff]  ;;  %v680_v56 = vld [vmem:[%s14396_s22 + $0x588] sm:$0xff] }
 0x156   : > { %v684_v57 = vld [vmem:[%s14396_s22 + $0x5a8] sm:$0xff]  ;;  %v11995_v61 = vcombine.high %v679_v53, %v683_v55  ;;  %v11994_v3 = vcombine.low %v679_v53, %v683_v55 }
 0x157   : > { %v11997_v62 = vcombine.high %v680_v56, %v684_v57  ;;  %v11996_v4 = vcombine.low %v680_v56, %v684_v57 }
 0x158   : > { %5611 = vmatpush1.bf16.msra.mxu0 %v11930_v63  ;;  %5898 = vmatpush1.bf16.msra.mxu1 %v11932_v0  ;;  %v687_v63 = vld [vmem:[%s14396_s22 + $0x5c0] sm:$0xff] }
 0x159   : > { %5612 = vmatprep.subr.bf16.mxu0 %v11939_v1  ;;  %5899 = vmatprep.subr.bf16.mxu1 %v11941_v2  ;;  %v691_v0 = vld [vmem:[%s14396_s22 + $0x5e0] sm:$0xff]  ;;  %v688_v1 = vld [vmem:[%s14396_s22 + $0x5c8] sm:$0xff] }
 0x15a   : > { %v692_v2 = vld [vmem:[%s14396_s22 + $0x5e8] sm:$0xff]  ;;  %v12003_v5 = vcombine.high %v687_v63, %v691_v0  ;;  %v12002_v11 = vcombine.low %v687_v63, %v691_v0 }
 0x15b   : > { %v12005_v6 = vcombine.high %v688_v1, %v692_v2  ;;  %v12004_v12 = vcombine.low %v688_v1, %v692_v2 }
 0x15c   : > { %5613 = vmatpush1.bf16.msra.mxu0 %v11938_v7  ;;  %5900 = vmatpush1.bf16.msra.mxu1 %v11940_v8  ;;  %v695_v7 = vld [vmem:[%s14396_s22 + $0x600] sm:$0xff] }
 0x15d   : > { %5623 = vmatprep.subr.bf16.mxu0 %v11947_v9  ;;  %5910 = vmatprep.subr.bf16.mxu1 %v11949_v10  ;;  %v699_v8 = vld [vmem:[%s14396_s22 + $0x620] sm:$0xff]  ;;  %v696_v9 = vld [vmem:[%s14396_s22 + $0x608] sm:$0xff] }
 0x15e   : > { %v700_v10 = vld [vmem:[%s14396_s22 + $0x628] sm:$0xff]  ;;  %v12011_v14 = vcombine.high %v695_v7, %v699_v8  ;;  %v12010_v21 = vcombine.low %v695_v7, %v699_v8 }
 0x15f   : > { %5615 = vmatmul.mubr.bf16.vlgmr.msra.gmra.mrb[0].mxu0 %v14506_v13  ;;  %5902 = vmatmul.mubr.bf16.vlgmr.msra.gmra.mrb[0].mxu1 %v14506_v13  ;;  %v12013_v15 = vcombine.high %v696_v9, %v700_v10  ;;  %v12012_v22 = vcombine.low %v696_v9, %v700_v10 }
 0x160   : > { %5624 = vmatpush1.bf16.msra.mxu0 %v11946_v17  ;;  %5911 = vmatpush1.bf16.msra.mxu1 %v11948_v18  ;;  %v703_v17 = vld [vmem:[%s14396_s22 + $0x640] sm:$0xff] }
 0x161   : > { %5625 = vmatprep.subr.bf16.mxu0 %v11955_v19  ;;  %5912 = vmatprep.subr.bf16.mxu1 %v11957_v20  ;;  %v707_v18 = vld [vmem:[%s14396_s22 + $0x660] sm:$0xff]  ;;  %v704_v19 = vld [vmem:[%s14396_s22 + $0x648] sm:$0xff] }
 0x162   : > { %5655 = vmatprep.mubr.bf16.mxu0 %v14516_v54  ;;  %5942 = vmatprep.mubr.bf16.mxu1 %v14516_v54  ;;  %v708_v20 = vld [vmem:[%s14396_s22 + $0x668] sm:$0xff]  ;;  %v12019_v23 = vcombine.high %v703_v17, %v707_v18  ;;  %v12018_v29 = vcombine.low %v703_v17, %v707_v18 }
 0x163   : > { %v12021_v24 = vcombine.high %v704_v19, %v708_v20  ;;  %v12020_v30 = vcombine.low %v704_v19, %v708_v20 }
 0x164   : > { %5626 = vmatpush1.bf16.msra.mxu0 %v11954_v25  ;;  %5913 = vmatpush1.bf16.msra.mxu1 %v11956_v26  ;;  %v711_v25 = vld [vmem:[%s14396_s22 + $0x680] sm:$0xff] }
 0x165   : > { %5627 = vmatprep.subr.bf16.mxu0 %v11963_v27  ;;  %5914 = vmatprep.subr.bf16.mxu1 %v11965_v28  ;;  %v715_v26 = vld [vmem:[%s14396_s22 + $0x6a0] sm:$0xff]  ;;  %v712_v27 = vld [vmem:[%s14396_s22 + $0x688] sm:$0xff] }
 0x166   : > { %v716_v28 = vld [vmem:[%s14396_s22 + $0x6a8] sm:$0xff]  ;;  %v12027_v31 = vcombine.high %v711_v25, %v715_v26  ;;  %v12026_v37 = vcombine.low %v711_v25, %v715_v26  ;;  %v14588_v26 = vld [vmem:[#allocation3 + $0x10] sm:$0xff] }
 0x167   : > { %v12029_v32 = vcombine.high %v712_v27, %v716_v28  ;;  %v12028_v38 = vcombine.low %v712_v27, %v716_v28  ;;  %v772_v25 = vld [vmem:[%s14396_s22 + $0x868] sm:$0xff] }
 0x168   : > { %5628 = vmatpush1.bf16.msra.mxu0 %v11962_v33  ;;  %5915 = vmatpush1.bf16.msra.mxu1 %v11964_v34  ;;  %v719_v33 = vld [vmem:[%s14396_s22 + $0x6c0] sm:$0xff] }
 0x169   : > { %5629 = vmatprep.subr.bf16.mxu0 %v11971_v35  ;;  %5916 = vmatprep.subr.bf16.mxu1 %v11973_v36  ;;  %v723_v34 = vld [vmem:[%s14396_s22 + $0x6e0] sm:$0xff]  ;;  %v720_v35 = vld [vmem:[%s14396_s22 + $0x6c8] sm:$0xff] }
 0x16a   : > { %v724_v36 = vld [vmem:[%s14396_s22 + $0x6e8] sm:$0xff]  ;;  %v12035_v39 = vcombine.high %v719_v33, %v723_v34  ;;  %v12034_v45 = vcombine.low %v719_v33, %v723_v34 }
 0x16b   : > { %v12037_v40 = vcombine.high %v720_v35, %v724_v36  ;;  %v12036_v46 = vcombine.low %v720_v35, %v724_v36  ;;  %v776_v33 = vld [vmem:[%s14396_s22 + $0x888] sm:$0xff] }
 0x16c   : > { %5630 = vmatpush1.bf16.msra.mxu0 %v11970_v41  ;;  %5917 = vmatpush1.bf16.msra.mxu1 %v11972_v42  ;;  %v727_v41 = vld [vmem:[%s14396_s22 + $0x700] sm:$0xff]  ;;  %v780_v34 = vld [vmem:[%s14396_s22 + $0x8a8] sm:$0xff] }
 0x16d   : > { %5631 = vmatprep.subr.bf16.mxu0 %v11979_v43  ;;  %5918 = vmatprep.subr.bf16.mxu1 %v11981_v44  ;;  %v731_v42 = vld [vmem:[%s14396_s22 + $0x720] sm:$0xff]  ;;  %v728_v43 = vld [vmem:[%s14396_s22 + $0x708] sm:$0xff] }
 0x16e   : > { %v732_v44 = vld [vmem:[%s14396_s22 + $0x728] sm:$0xff]  ;;  %v12043_v47 = vcombine.high %v727_v41, %v731_v42  ;;  %v12042_v53 = vcombine.low %v727_v41, %v731_v42 }
 0x16f   : > { %v12045_v48 = vcombine.high %v728_v43, %v732_v44  ;;  %v12044_v55 = vcombine.low %v728_v43, %v732_v44  ;;  %v784_v41 = vld [vmem:[%s14396_s22 + $0x8c8] sm:$0xff]  ;;  %v12092_v44 = vcombine.low %v776_v33, %v780_v34 }
 0x170   : > { %5632 = vmatpush1.bf16.msra.mxu0 %v11978_v49  ;;  %5919 = vmatpush1.bf16.msra.mxu1 %v11980_v50  ;;  %v735_v49 = vld [vmem:[%s14396_s22 + $0x740] sm:$0xff]  ;;  %v788_v42 = vld [vmem:[%s14396_s22 + $0x8e8] sm:$0xff] }
 0x171   : > { %5633 = vmatprep.subr.bf16.mxu0 %v11987_v51  ;;  %5920 = vmatprep.subr.bf16.mxu1 %v11989_v52  ;;  %v739_v50 = vld [vmem:[%s14396_s22 + $0x760] sm:$0xff]  ;;  %v736_v51 = vld [vmem:[%s14396_s22 + $0x748] sm:$0xff] }
 0x172   : > { %v740_v52 = vld [vmem:[%s14396_s22 + $0x768] sm:$0xff]  ;;  %v12051_v56 = vcombine.high %v735_v49, %v739_v50  ;;  %v12050_v63 = vcombine.low %v735_v49, %v739_v50 }
 0x173   : > { %v12053_v57 = vcombine.high %v736_v51, %v740_v52  ;;  %v12052_v0 = vcombine.low %v736_v51, %v740_v52  ;;  %v792_v49 = vld [vmem:[%s14396_s22 + $0x908] sm:$0xff]  ;;  %v12100_v52 = vcombine.low %v784_v41, %v788_v42 }
 0x174   : > { %5634 = vmatpush1.bf16.msra.mxu0 %v11986_v59  ;;  %5921 = vmatpush1.bf16.msra.mxu1 %v11988_v60  ;;  %v743_v59 = vld [vmem:[%s14396_s22 + $0x780] sm:$0xff]  ;;  %v796_v50 = vld [vmem:[%s14396_s22 + $0x928] sm:$0xff] }
 0x175   : > { %5635 = vmatprep.subr.bf16.mxu0 %v11995_v61  ;;  %5922 = vmatprep.subr.bf16.mxu1 %v11997_v62  ;;  %v747_v60 = vld [vmem:[%s14396_s22 + $0x7a0] sm:$0xff]  ;;  %v744_v61 = vld [vmem:[%s14396_s22 + $0x788] sm:$0xff] }
 0x176   : > { %v748_v62 = vld [vmem:[%s14396_s22 + $0x7a8] sm:$0xff]  ;;  %v12059_v1 = vcombine.high %v743_v59, %v747_v60  ;;  %v12058_v7 = vcombine.low %v743_v59, %v747_v60 }
 0x177   : > { %v12061_v2 = vcombine.high %v744_v61, %v748_v62  ;;  %v12060_v8 = vcombine.low %v744_v61, %v748_v62  ;;  %v800_v59 = vld [vmem:[%s14396_s22 + $0x948] sm:$0xff]  ;;  %v12108_v62 = vcombine.low %v792_v49, %v796_v50 }
 0x178   : > { %5636 = vmatpush1.bf16.msra.mxu0 %v11994_v3  ;;  %5923 = vmatpush1.bf16.msra.mxu1 %v11996_v4  ;;  %v751_v3 = vld [vmem:[%s14396_s22 + $0x7c0] sm:$0xff]  ;;  %v804_v60 = vld [vmem:[%s14396_s22 + $0x968] sm:$0xff] }
 0x179   : > { %5637 = vmatprep.subr.bf16.mxu0 %v12003_v5  ;;  %5924 = vmatprep.subr.bf16.mxu1 %v12005_v6  ;;  %v755_v4 = vld [vmem:[%s14396_s22 + $0x7e0] sm:$0xff]  ;;  %v752_v5 = vld [vmem:[%s14396_s22 + $0x7c8] sm:$0xff] }
 0x17a   : > { %v756_v6 = vld [vmem:[%s14396_s22 + $0x7e8] sm:$0xff]  ;;  %v12067_v9 = vcombine.high %v751_v3, %v755_v4  ;;  %v12066_v17 = vcombine.low %v751_v3, %v755_v4 }
 0x17b   : > { %v12069_v10 = vcombine.high %v752_v5, %v756_v6  ;;  %v12068_v18 = vcombine.low %v752_v5, %v756_v6  ;;  %v808_v3 = vld [vmem:[%s14396_s22 + $0x988] sm:$0xff]  ;;  %v12116_v6 = vcombine.low %v800_v59, %v804_v60 }
 0x17c   : > { %5638 = vmatpush1.bf16.msra.mxu0 %v12002_v11  ;;  %5925 = vmatpush1.bf16.msra.mxu1 %v12004_v12  ;;  %v759_v11 = vld [vmem:[%s14396_s22 + $0x800] sm:$0xff]  ;;  %v812_v4 = vld [vmem:[%s14396_s22 + $0x9a8] sm:$0xff] }
 0x17d   : > { %5639 = vmatprep.subr.bf16.mxu0 %v12011_v14  ;;  %5926 = vmatprep.subr.bf16.mxu1 %v12013_v15  ;;  %v763_v12 = vld [vmem:[%s14396_s22 + $0x820] sm:$0xff]  ;;  %v760_v14 = vld [vmem:[%s14396_s22 + $0x808] sm:$0xff] }
 0x17e   : > { %v764_v15 = vld [vmem:[%s14396_s22 + $0x828] sm:$0xff]  ;;  %v12075_v19 = vcombine.high %v759_v11, %v763_v12  ;;  %v12074_v27 = vcombine.low %v759_v11, %v763_v12 }
 0x17f   : > { %v12077_v20 = vcombine.high %v760_v14, %v764_v15  ;;  %v12076_v28 = vcombine.low %v760_v14, %v764_v15  ;;  %v816_v11 = vld [vmem:[%s14396_s22 + $0x9c8] sm:$0xff]  ;;  %v12124_v15 = vcombine.low %v808_v3, %v812_v4 }
 0x180   : > { %5640 = vmatpush1.bf16.msra.mxu0 %v12010_v21  ;;  %5927 = vmatpush1.bf16.msra.mxu1 %v12012_v22  ;;  %v767_v21 = vld [vmem:[%s14396_s22 + $0x840] sm:$0xff]  ;;  %v820_v12 = vld [vmem:[%s14396_s22 + $0x9e8] sm:$0xff] }
 0x181   : > { %5641 = vmatprep.subr.bf16.mxu0 %v12019_v23  ;;  %5928 = vmatprep.subr.bf16.mxu1 %v12021_v24  ;;  %v771_v22 = vld [vmem:[%s14396_s22 + $0x860] sm:$0xff]  ;;  %v14584_v23 = vcombine.low %v14510_v16, %v14510_v16  ;;  %v768_v24 = vld [vmem:[%s14396_s22 + $0x848] sm:$0xff]  ;;  %v14594_v16 = vcombine.high %v14588_v26, %v14588_v26 }
 0x182   : > { %v12082_v35 = vcombine.low %v767_v21, %v771_v22  ;;  %v12084_v36 = vcombine.low %v768_v24, %v772_v25 }
 0x184   : > { %5642 = vmatpush1.bf16.msra.mxu0 %v12018_v29  ;;  %5929 = vmatpush1.bf16.msra.mxu1 %v12020_v30  ;;  %v12083_v29 = vcombine.high %v767_v21, %v771_v22  ;;  %v12085_v30 = vcombine.high %v768_v24, %v772_v25  ;;  %v824_v21 = vld [vmem:[%s14396_s22 + $0xa08] sm:$0xff]  ;;  %v12132_v25 = vcombine.low %v816_v11, %v820_v12 }
 0x185   : > { %5643 = vmatprep.subr.bf16.mxu0 %v12027_v31  ;;  %5930 = vmatprep.subr.bf16.mxu1 %v12029_v32  ;;  %v775_v31 = vld [vmem:[%s14396_s22 + $0x880] sm:$0xff]  ;;  %v828_v22 = vld [vmem:[%s14396_s22 + $0xa28] sm:$0xff] }
 0x186   : > { %v779_v32 = vld [vmem:[%s14396_s22 + $0x8a0] sm:$0xff] }
 0x187   : > { %v12090_v43 = vcombine.low %v775_v31, %v779_v32 }
 0x188   : > { %5644 = vmatpush1.bf16.msra.mxu0 %v12026_v37  ;;  %5931 = vmatpush1.bf16.msra.mxu1 %v12028_v38  ;;  %v12091_v37 = vcombine.high %v775_v31, %v779_v32  ;;  %v12093_v38 = vcombine.high %v776_v33, %v780_v34  ;;  %v832_v31 = vld [vmem:[%s14396_s22 + $0xa48] sm:$0xff]  ;;  %v12140_v34 = vcombine.low %v824_v21, %v828_v22 }
 0x189   : > { %5645 = vmatprep.subr.bf16.mxu0 %v12035_v39  ;;  %5932 = vmatprep.subr.bf16.mxu1 %v12037_v40  ;;  %v783_v39 = vld [vmem:[%s14396_s22 + $0x8c0] sm:$0xff]  ;;  %v836_v32 = vld [vmem:[%s14396_s22 + $0xa68] sm:$0xff] }
 0x18a   : > { %v787_v40 = vld [vmem:[%s14396_s22 + $0x8e0] sm:$0xff] }
 0x18b   : > { %v12098_v51 = vcombine.low %v783_v39, %v787_v40 }
 0x18c   : > { %5646 = vmatpush1.bf16.msra.mxu0 %v12034_v45  ;;  %5933 = vmatpush1.bf16.msra.mxu1 %v12036_v46  ;;  %v12099_v45 = vcombine.high %v783_v39, %v787_v40  ;;  %v12101_v46 = vcombine.high %v784_v41, %v788_v42  ;;  %v840_v39 = vld [vmem:[%s14396_s22 + $0xa88] sm:$0xff]  ;;  %v12148_v42 = vcombine.low %v832_v31, %v836_v32 }
 0x18d   : > { %5647 = vmatprep.subr.bf16.mxu0 %v12043_v47  ;;  %5934 = vmatprep.subr.bf16.mxu1 %v12045_v48  ;;  %v791_v47 = vld [vmem:[%s14396_s22 + $0x900] sm:$0xff]  ;;  %v844_v40 = vld [vmem:[%s14396_s22 + $0xaa8] sm:$0xff] }
 0x18e   : > { %v795_v48 = vld [vmem:[%s14396_s22 + $0x920] sm:$0xff] }
 0x18f   : > { %v12106_v61 = vcombine.low %v791_v47, %v795_v48 }
 0x190   : > { %5648 = vmatpush1.bf16.msra.mxu0 %v12042_v53  ;;  %5935 = vmatpush1.bf16.msra.mxu1 %v12044_v55  ;;  %v12107_v53 = vcombine.high %v791_v47, %v795_v48  ;;  %v12109_v55 = vcombine.high %v792_v49, %v796_v50  ;;  %v848_v47 = vld [vmem:[%s14396_s22 + $0xac8] sm:$0xff]  ;;  %v12156_v50 = vcombine.low %v840_v39, %v844_v40 }
 0x191   : > { %5649 = vmatprep.subr.bf16.mxu0 %v12051_v56  ;;  %5936 = vmatprep.subr.bf16.mxu1 %v12053_v57  ;;  %v799_v56 = vld [vmem:[%s14396_s22 + $0x940] sm:$0xff]  ;;  %v852_v48 = vld [vmem:[%s14396_s22 + $0xae8] sm:$0xff] }
 0x192   : > { %v803_v57 = vld [vmem:[%s14396_s22 + $0x960] sm:$0xff] }
 0x193   : > { %v12114_v5 = vcombine.low %v799_v56, %v803_v57 }
 0x194   : > { %5650 = vmatpush1.bf16.msra.mxu0 %v12050_v63  ;;  %5937 = vmatpush1.bf16.msra.mxu1 %v12052_v0  ;;  %v12115_v63 = vcombine.high %v799_v56, %v803_v57  ;;  %v12117_v0 = vcombine.high %v800_v59, %v804_v60  ;;  %v856_v56 = vld [vmem:[%s14396_s22 + $0xb08] sm:$0xff]  ;;  %v12164_v60 = vcombine.low %v848_v47, %v852_v48 }
 0x195   : > { %5651 = vmatprep.subr.bf16.mxu0 %v12059_v1  ;;  %5938 = vmatprep.subr.bf16.mxu1 %v12061_v2  ;;  %v807_v1 = vld [vmem:[%s14396_s22 + $0x980] sm:$0xff]  ;;  %v860_v57 = vld [vmem:[%s14396_s22 + $0xb28] sm:$0xff] }
 0x196   : > { %v811_v2 = vld [vmem:[%s14396_s22 + $0x9a0] sm:$0xff] }
 0x197   : > { %v12122_v14 = vcombine.low %v807_v1, %v811_v2 }
 0x198   : > { %5652 = vmatpush1.bf16.msra.mxu0 %v12058_v7  ;;  %5939 = vmatpush1.bf16.msra.mxu1 %v12060_v8  ;;  %v12123_v7 = vcombine.high %v807_v1, %v811_v2  ;;  %v12125_v8 = vcombine.high %v808_v3, %v812_v4  ;;  %v864_v1 = vld [vmem:[%s14396_s22 + $0xb48] sm:$0xff]  ;;  %v12172_v4 = vcombine.low %v856_v56, %v860_v57 }
 0x199   : > { %5653 = vmatprep.subr.bf16.mxu0 %v12067_v9  ;;  %5940 = vmatprep.subr.bf16.mxu1 %v12069_v10  ;;  %v815_v9 = vld [vmem:[%s14396_s22 + $0x9c0] sm:$0xff]  ;;  %v868_v2 = vld [vmem:[%s14396_s22 + $0xb68] sm:$0xff] }
 0x19a   : > { %v819_v10 = vld [vmem:[%s14396_s22 + $0x9e0] sm:$0xff] }
 0x19b   : > { %v12130_v24 = vcombine.low %v815_v9, %v819_v10 }
 0x19c   : > { %5654 = vmatpush1.bf16.msra.mxu0 %v12066_v17  ;;  %5941 = vmatpush1.bf16.msra.mxu1 %v12068_v18  ;;  %v12131_v17 = vcombine.high %v815_v9, %v819_v10  ;;  %v12133_v18 = vcombine.high %v816_v11, %v820_v12  ;;  %v872_v9 = vld [vmem:[%s14396_s22 + $0xb88] sm:$0xff]  ;;  %v12180_v12 = vcombine.low %v864_v1, %v868_v2 }
 0x19d   : > { %5664 = vmatprep.subr.bf16.mxu0 %v12075_v19  ;;  %5951 = vmatprep.subr.bf16.mxu1 %v12077_v20  ;;  %v823_v19 = vld [vmem:[%s14396_s22 + $0xa00] sm:$0xff]  ;;  %v876_v10 = vld [vmem:[%s14396_s22 + $0xba8] sm:$0xff] }
 0x19e   : > { %v827_v20 = vld [vmem:[%s14396_s22 + $0xa20] sm:$0xff] }
 0x19f   : > { %5656 = vmatmul.mubr.bf16.vlgmr.msra.gmra.mrb[0].mxu0 %v14584_v23  ;;  %5943 = vmatmul.mubr.bf16.vlgmr.msra.gmra.mrb[0].mxu1 %v14584_v23  ;;  %v12138_v33 = vcombine.low %v823_v19, %v827_v20 }
 0x1a0   : > { %5665 = vmatpush1.bf16.msra.mxu0 %v12074_v27  ;;  %5952 = vmatpush1.bf16.msra.mxu1 %v12076_v28  ;;  %v12139_v27 = vcombine.high %v823_v19, %v827_v20  ;;  %v12141_v28 = vcombine.high %v824_v21, %v828_v22  ;;  %v880_v19 = vld [vmem:[%s14396_s22 + $0xbc8] sm:$0xff]  ;;  %v12188_v22 = vcombine.low %v872_v9, %v876_v10 }
 0x1a1   : > { %5666 = vmatprep.subr.bf16.mxu0 %v12083_v29  ;;  %5953 = vmatprep.subr.bf16.mxu1 %v12085_v30  ;;  %v831_v29 = vld [vmem:[%s14396_s22 + $0xa40] sm:$0xff]  ;;  %v884_v20 = vld [vmem:[%s14396_s22 + $0xbe8] sm:$0xff] }
 0x1a2   : > { %5696 = vmatprep.mubr.bf16.mxu0 %v14594_v16  ;;  %5983 = vmatprep.mubr.bf16.mxu1 %v14594_v16  ;;  %v835_v30 = vld [vmem:[%s14396_s22 + $0xa60] sm:$0xff] }
 0x1a3   : > { %v12146_v41 = vcombine.low %v831_v29, %v835_v30 }
 0x1a4   : > { %5667 = vmatpush1.bf16.msra.mxu0 %v12082_v35  ;;  %5954 = vmatpush1.bf16.msra.mxu1 %v12084_v36  ;;  %v12147_v35 = vcombine.high %v831_v29, %v835_v30  ;;  %v12149_v36 = vcombine.high %v832_v31, %v836_v32  ;;  %v888_v29 = vld [vmem:[%s14396_s22 + $0xc08] sm:$0xff]  ;;  %v12196_v32 = vcombine.low %v880_v19, %v884_v20 }
 0x1a5   : > { %5668 = vmatprep.subr.bf16.mxu0 %v12091_v37  ;;  %5955 = vmatprep.subr.bf16.mxu1 %v12093_v38  ;;  %v839_v37 = vld [vmem:[%s14396_s22 + $0xa80] sm:$0xff]  ;;  %v892_v30 = vld [vmem:[%s14396_s22 + $0xc28] sm:$0xff] }
 0x1a6   : > { %v843_v38 = vld [vmem:[%s14396_s22 + $0xaa0] sm:$0xff] }
 0x1a7   : > { %v12154_v49 = vcombine.low %v839_v37, %v843_v38 }
 0x1a8   : > { %5669 = vmatpush1.bf16.msra.mxu0 %v12090_v43  ;;  %5956 = vmatpush1.bf16.msra.mxu1 %v12092_v44  ;;  %v12155_v43 = vcombine.high %v839_v37, %v843_v38  ;;  %v12157_v44 = vcombine.high %v840_v39, %v844_v40  ;;  %v14662_v37 = vcombine.low %v14588_v26, %v14588_v26  ;;  %v896_v38 = vld [vmem:[%s14396_s22 + $0xc48] sm:$0xff] }
 0x1a9   : > { %5670 = vmatprep.subr.bf16.mxu0 %v12099_v45  ;;  %5957 = vmatprep.subr.bf16.mxu1 %v12101_v46  ;;  %v847_v45 = vld [vmem:[%s14396_s22 + $0xac0] sm:$0xff]  ;;  %v900_v39 = vld [vmem:[%s14396_s22 + $0xc68] sm:$0xff] }
 0x1aa   : > { %v851_v46 = vld [vmem:[%s14396_s22 + $0xae0] sm:$0xff] }
 0x1ab   : > { %v12162_v59 = vcombine.low %v847_v45, %v851_v46  ;;  %v14666_v40 = vld [vmem:[#allocation3 + $0x18] sm:$0xff] }
 0x1ac   : > { %5671 = vmatpush1.bf16.msra.mxu0 %v12098_v51  ;;  %5958 = vmatpush1.bf16.msra.mxu1 %v12100_v52  ;;  %v12163_v51 = vcombine.high %v847_v45, %v851_v46  ;;  %v12165_v52 = vcombine.high %v848_v47, %v852_v48  ;;  %v903_v45 = vld [vmem:[%s14396_s22 + $0xc80] sm:$0xff]  ;;  %v14672_v26 = vcombine.high %v14666_v40, %v14666_v40  ;;  %v904_v47 = vld [vmem:[%s14396_s22 + $0xc88] sm:$0xff] }
 0x1ad   : > { %5672 = vmatprep.subr.bf16.mxu0 %v12107_v53  ;;  %5959 = vmatprep.subr.bf16.mxu1 %v12109_v55  ;;  %v855_v53 = vld [vmem:[%s14396_s22 + $0xb00] sm:$0xff]  ;;  %v908_v48 = vld [vmem:[%s14396_s22 + $0xca8] sm:$0xff] }
 0x1ae   : > { %v859_v55 = vld [vmem:[%s14396_s22 + $0xb20] sm:$0xff] }
 0x1af   : > { %v12170_v3 = vcombine.low %v855_v53, %v859_v55  ;;  %v907_v46 = vld [vmem:[%s14396_s22 + $0xca0] sm:$0xff] }
 0x1b0   : > { %5673 = vmatpush1.bf16.msra.mxu0 %v12106_v61  ;;  %5960 = vmatpush1.bf16.msra.mxu1 %v12108_v62  ;;  %v12171_v61 = vcombine.high %v855_v53, %v859_v55  ;;  %v12173_v62 = vcombine.high %v856_v56, %v860_v57  ;;  %v911_v53 = vld [vmem:[%s14396_s22 + $0xcc0] sm:$0xff]  ;;  %v912_v56 = vld [vmem:[%s14396_s22 + $0xcc8] sm:$0xff] }
 0x1b1   : > { %5674 = vmatprep.subr.bf16.mxu0 %v12115_v63  ;;  %5961 = vmatprep.subr.bf16.mxu1 %v12117_v0  ;;  %v863_v63 = vld [vmem:[%s14396_s22 + $0xb40] sm:$0xff]  ;;  %v916_v57 = vld [vmem:[%s14396_s22 + $0xce8] sm:$0xff] }
 0x1b2   : > { %v867_v0 = vld [vmem:[%s14396_s22 + $0xb60] sm:$0xff] }
 0x1b3   : > { %v12178_v11 = vcombine.low %v863_v63, %v867_v0  ;;  %v915_v55 = vld [vmem:[%s14396_s22 + $0xce0] sm:$0xff] }
 0x1b4   : > { %5675 = vmatpush1.bf16.msra.mxu0 %v12114_v5  ;;  %5962 = vmatpush1.bf16.msra.mxu1 %v12116_v6  ;;  %v12179_v5 = vcombine.high %v863_v63, %v867_v0  ;;  %v12181_v6 = vcombine.high %v864_v1, %v868_v2  ;;  %v919_v63 = vld [vmem:[%s14396_s22 + $0xd00] sm:$0xff]  ;;  %v920_v1 = vld [vmem:[%s14396_s22 + $0xd08] sm:$0xff] }
 0x1b5   : > { %5676 = vmatprep.subr.bf16.mxu0 %v12123_v7  ;;  %5963 = vmatprep.subr.bf16.mxu1 %v12125_v8  ;;  %v871_v7 = vld [vmem:[%s14396_s22 + $0xb80] sm:$0xff]  ;;  %v924_v2 = vld [vmem:[%s14396_s22 + $0xd28] sm:$0xff] }
 0x1b6   : > { %v875_v8 = vld [vmem:[%s14396_s22 + $0xba0] sm:$0xff] }
 0x1b7   : > { %v12186_v21 = vcombine.low %v871_v7, %v875_v8  ;;  %v923_v0 = vld [vmem:[%s14396_s22 + $0xd20] sm:$0xff] }
 0x1b8   : > { %5677 = vmatpush1.bf16.msra.mxu0 %v12122_v14  ;;  %5964 = vmatpush1.bf16.msra.mxu1 %v12124_v15  ;;  %v12187_v14 = vcombine.high %v871_v7, %v875_v8  ;;  %v12189_v15 = vcombine.high %v872_v9, %v876_v10  ;;  %v927_v7 = vld [vmem:[%s14396_s22 + $0xd40] sm:$0xff]  ;;  %v928_v9 = vld [vmem:[%s14396_s22 + $0xd48] sm:$0xff] }
 0x1b9   : > { %5678 = vmatprep.subr.bf16.mxu0 %v12131_v17  ;;  %5965 = vmatprep.subr.bf16.mxu1 %v12133_v18  ;;  %v879_v17 = vld [vmem:[%s14396_s22 + $0xbc0] sm:$0xff]  ;;  %v932_v10 = vld [vmem:[%s14396_s22 + $0xd68] sm:$0xff] }
 0x1ba   : > { %v883_v18 = vld [vmem:[%s14396_s22 + $0xbe0] sm:$0xff] }
 0x1bb   : > { %v12194_v31 = vcombine.low %v879_v17, %v883_v18  ;;  %v931_v8 = vld [vmem:[%s14396_s22 + $0xd60] sm:$0xff] }
 0x1bc   : > { %5679 = vmatpush1.bf16.msra.mxu0 %v12130_v24  ;;  %5966 = vmatpush1.bf16.msra.mxu1 %v12132_v25  ;;  %v12195_v24 = vcombine.high %v879_v17, %v883_v18  ;;  %v12197_v25 = vcombine.high %v880_v19, %v884_v20  ;;  %v935_v17 = vld [vmem:[%s14396_s22 + $0xd80] sm:$0xff]  ;;  %v936_v19 = vld [vmem:[%s14396_s22 + $0xd88] sm:$0xff] }
 0x1bd   : > { %5680 = vmatprep.subr.bf16.mxu0 %v12139_v27  ;;  %5967 = vmatprep.subr.bf16.mxu1 %v12141_v28  ;;  %v887_v27 = vld [vmem:[%s14396_s22 + $0xc00] sm:$0xff]  ;;  %v940_v20 = vld [vmem:[%s14396_s22 + $0xda8] sm:$0xff] }
 0x1be   : > { %v891_v28 = vld [vmem:[%s14396_s22 + $0xc20] sm:$0xff] }
 0x1bf   : > { %v939_v18 = vld [vmem:[%s14396_s22 + $0xda0] sm:$0xff] }
 0x1c0   : > { %5681 = vmatpush1.bf16.msra.mxu0 %v12138_v33  ;;  %5968 = vmatpush1.bf16.msra.mxu1 %v12140_v34  ;;  %v12203_v33 = vcombine.high %v887_v27, %v891_v28  ;;  %v12205_v34 = vcombine.high %v888_v29, %v892_v30 }
 0x1c1   : > { %5682 = vmatprep.subr.bf16.mxu0 %v12147_v35  ;;  %5969 = vmatprep.subr.bf16.mxu1 %v12149_v36  ;;  %v895_v35 = vld [vmem:[%s14396_s22 + $0xc40] sm:$0xff] }
 0x1c2   : > { %v899_v36 = vld [vmem:[%s14396_s22 + $0xc60] sm:$0xff] }
 0x1c4   : > { %5683 = vmatpush1.bf16.msra.mxu0 %v12146_v41  ;;  %5970 = vmatpush1.bf16.msra.mxu1 %v12148_v42  ;;  %v12202_v41 = vcombine.low %v887_v27, %v891_v28  ;;  %v12204_v42 = vcombine.low %v888_v29, %v892_v30  ;;  %v943_v27 = vld [vmem:[%s14396_s22 + $0xdc0] sm:$0xff]  ;;  %v944_v29 = vld [vmem:[%s14396_s22 + $0xdc8] sm:$0xff] }
 0x1c5   : > { %5684 = vmatprep.subr.bf16.mxu0 %v12155_v43  ;;  %5971 = vmatprep.subr.bf16.mxu1 %v12157_v44  ;;  %v12211_v43 = vcombine.high %v895_v35, %v899_v36  ;;  %v12213_v44 = vcombine.high %v896_v38, %v900_v39  ;;  %v947_v28 = vld [vmem:[%s14396_s22 + $0xde0] sm:$0xff]  ;;  %v948_v30 = vld [vmem:[%s14396_s22 + $0xde8] sm:$0xff] }
 0x1c8   : > { %5685 = vmatpush1.bf16.msra.mxu0 %v12154_v49  ;;  %5972 = vmatpush1.bf16.msra.mxu1 %v12156_v50  ;;  %v12210_v49 = vcombine.low %v895_v35, %v899_v36  ;;  %v12212_v50 = vcombine.low %v896_v38, %v900_v39  ;;  %v951_v35 = vld [vmem:[%s14396_s22 + $0xe00] sm:$0xff]  ;;  %v952_v38 = vld [vmem:[%s14396_s22 + $0xe08] sm:$0xff] }
 0x1c9   : > { %5686 = vmatprep.subr.bf16.mxu0 %v12163_v51  ;;  %5973 = vmatprep.subr.bf16.mxu1 %v12165_v52  ;;  %v12219_v51 = vcombine.high %v903_v45, %v907_v46  ;;  %v12221_v52 = vcombine.high %v904_v47, %v908_v48  ;;  %v955_v36 = vld [vmem:[%s14396_s22 + $0xe20] sm:$0xff]  ;;  %v956_v39 = vld [vmem:[%s14396_s22 + $0xe28] sm:$0xff] }
 0x1cc   : > { %5687 = vmatpush1.bf16.msra.mxu0 %v12162_v59  ;;  %5974 = vmatpush1.bf16.msra.mxu1 %v12164_v60  ;;  %v12218_v59 = vcombine.low %v903_v45, %v907_v46  ;;  %v12220_v60 = vcombine.low %v904_v47, %v908_v48  ;;  %v959_v45 = vld [vmem:[%s14396_s22 + $0xe40] sm:$0xff]  ;;  %v960_v47 = vld [vmem:[%s14396_s22 + $0xe48] sm:$0xff] }
 0x1cd   : > { %5688 = vmatprep.subr.bf16.mxu0 %v12171_v61  ;;  %5975 = vmatprep.subr.bf16.mxu1 %v12173_v62  ;;  %v12227_v61 = vcombine.high %v911_v53, %v915_v55  ;;  %v12229_v62 = vcombine.high %v912_v56, %v916_v57  ;;  %v963_v46 = vld [vmem:[%s14396_s22 + $0xe60] sm:$0xff]  ;;  %v964_v48 = vld [vmem:[%s14396_s22 + $0xe68] sm:$0xff] }
 0x1d0   : > { %5689 = vmatpush1.bf16.msra.mxu0 %v12170_v3  ;;  %5976 = vmatpush1.bf16.msra.mxu1 %v12172_v4  ;;  %v12226_v3 = vcombine.low %v911_v53, %v915_v55  ;;  %v12228_v4 = vcombine.low %v912_v56, %v916_v57  ;;  %v967_v53 = vld [vmem:[%s14396_s22 + $0xe80] sm:$0xff]  ;;  %v968_v56 = vld [vmem:[%s14396_s22 + $0xe88] sm:$0xff] }
 0x1d1   : > { %5690 = vmatprep.subr.bf16.mxu0 %v12179_v5  ;;  %5977 = vmatprep.subr.bf16.mxu1 %v12181_v6  ;;  %v12235_v5 = vcombine.high %v919_v63, %v923_v0  ;;  %v12237_v6 = vcombine.high %v920_v1, %v924_v2  ;;  %v971_v55 = vld [vmem:[%s14396_s22 + $0xea0] sm:$0xff]  ;;  %v972_v57 = vld [vmem:[%s14396_s22 + $0xea8] sm:$0xff] }
 0x1d4   : > { %5691 = vmatpush1.bf16.msra.mxu0 %v12178_v11  ;;  %5978 = vmatpush1.bf16.msra.mxu1 %v12180_v12  ;;  %v12234_v11 = vcombine.low %v919_v63, %v923_v0  ;;  %v12236_v12 = vcombine.low %v920_v1, %v924_v2  ;;  %v975_v63 = vld [vmem:[%s14396_s22 + $0xec0] sm:$0xff]  ;;  %v976_v1 = vld [vmem:[%s14396_s22 + $0xec8] sm:$0xff] }
 0x1d5   : > { %5692 = vmatprep.subr.bf16.mxu0 %v12187_v14  ;;  %5979 = vmatprep.subr.bf16.mxu1 %v12189_v15  ;;  %v12243_v14 = vcombine.high %v927_v7, %v931_v8  ;;  %v12245_v15 = vcombine.high %v928_v9, %v932_v10  ;;  %v979_v0 = vld [vmem:[%s14396_s22 + $0xee0] sm:$0xff]  ;;  %v980_v2 = vld [vmem:[%s14396_s22 + $0xee8] sm:$0xff] }
 0x1d8   : > { %5693 = vmatpush1.bf16.msra.mxu0 %v12186_v21  ;;  %5980 = vmatpush1.bf16.msra.mxu1 %v12188_v22  ;;  %v12242_v21 = vcombine.low %v927_v7, %v931_v8  ;;  %v12244_v22 = vcombine.low %v928_v9, %v932_v10  ;;  %v983_v7 = vld [vmem:[%s14396_s22 + $0xf00] sm:$0xff]  ;;  %v984_v9 = vld [vmem:[%s14396_s22 + $0xf08] sm:$0xff] }
 0x1d9   : > { %5694 = vmatprep.subr.bf16.mxu0 %v12195_v24  ;;  %5981 = vmatprep.subr.bf16.mxu1 %v12197_v25  ;;  %v12251_v24 = vcombine.high %v935_v17, %v939_v18  ;;  %v12253_v25 = vcombine.high %v936_v19, %v940_v20  ;;  %v987_v8 = vld [vmem:[%s14396_s22 + $0xf20] sm:$0xff]  ;;  %v988_v10 = vld [vmem:[%s14396_s22 + $0xf28] sm:$0xff] }
 0x1dc   : > { %5695 = vmatpush1.bf16.msra.mxu0 %v12194_v31  ;;  %5982 = vmatpush1.bf16.msra.mxu1 %v12196_v32  ;;  %v12250_v31 = vcombine.low %v935_v17, %v939_v18  ;;  %v12252_v32 = vcombine.low %v936_v19, %v940_v20  ;;  %v991_v17 = vld [vmem:[%s14396_s22 + $0xf40] sm:$0xff]  ;;  %v992_v19 = vld [vmem:[%s14396_s22 + $0xf48] sm:$0xff] }
 0x1dd   : > { %5705 = vmatprep.subr.bf16.mxu0 %v12203_v33  ;;  %5992 = vmatprep.subr.bf16.mxu1 %v12205_v34  ;;  %v12259_v33 = vcombine.high %v943_v27, %v947_v28  ;;  %v12261_v34 = vcombine.high %v944_v29, %v948_v30  ;;  %v995_v18 = vld [vmem:[%s14396_s22 + $0xf60] sm:$0xff]  ;;  %v996_v20 = vld [vmem:[%s14396_s22 + $0xf68] sm:$0xff] }
 0x1df   : > { %5697 = vmatmul.mubr.bf16.vlgmr.msra.gmra.mrb[0].mxu0 %v14662_v37  ;;  %5984 = vmatmul.mubr.bf16.vlgmr.msra.gmra.mrb[0].mxu1 %v14662_v37 }
 0x1e0   : > { %5706 = vmatpush1.bf16.msra.mxu0 %v12202_v41  ;;  %5993 = vmatpush1.bf16.msra.mxu1 %v12204_v42  ;;  %v12258_v41 = vcombine.low %v943_v27, %v947_v28  ;;  %v12260_v42 = vcombine.low %v944_v29, %v948_v30  ;;  %v999_v27 = vld [vmem:[%s14396_s22 + $0xf80] sm:$0xff]  ;;  %v1000_v29 = vld [vmem:[%s14396_s22 + $0xf88] sm:$0xff] }
 0x1e1   : > { %5707 = vmatprep.subr.bf16.mxu0 %v12211_v43  ;;  %5994 = vmatprep.subr.bf16.mxu1 %v12213_v44  ;;  %v12267_v43 = vcombine.high %v951_v35, %v955_v36  ;;  %v12269_v44 = vcombine.high %v952_v38, %v956_v39  ;;  %v1003_v28 = vld [vmem:[%s14396_s22 + $0xfa0] sm:$0xff]  ;;  %v1004_v30 = vld [vmem:[%s14396_s22 + $0xfa8] sm:$0xff] }
 0x1e2   : > { %5737 = vmatprep.mubr.bf16.mxu0 %v14672_v26  ;;  %6024 = vmatprep.mubr.bf16.mxu1 %v14672_v26 }
 0x1e4   : > { %5708 = vmatpush1.bf16.msra.mxu0 %v12210_v49  ;;  %5995 = vmatpush1.bf16.msra.mxu1 %v12212_v50  ;;  %v12266_v49 = vcombine.low %v951_v35, %v955_v36  ;;  %v12268_v50 = vcombine.low %v952_v38, %v956_v39  ;;  %v1007_v35 = vld [vmem:[%s14396_s22 + $0xfc0] sm:$0xff]  ;;  %v1008_v38 = vld [vmem:[%s14396_s22 + $0xfc8] sm:$0xff] }
 0x1e5   : > { %5709 = vmatprep.subr.bf16.mxu0 %v12219_v51  ;;  %5996 = vmatprep.subr.bf16.mxu1 %v12221_v52  ;;  %v12275_v51 = vcombine.high %v959_v45, %v963_v46  ;;  %v12277_v52 = vcombine.high %v960_v47, %v964_v48  ;;  %v1011_v36 = vld [vmem:[%s14396_s22 + $0xfe0] sm:$0xff]  ;;  %v1012_v39 = vld [vmem:[%s14396_s22 + $0xfe8] sm:$0xff] }
 0x1e8   : > { %5710 = vmatpush1.bf16.msra.mxu0 %v12218_v59  ;;  %5997 = vmatpush1.bf16.msra.mxu1 %v12220_v60  ;;  %v12274_v59 = vcombine.low %v959_v45, %v963_v46  ;;  %v12276_v60 = vcombine.low %v960_v47, %v964_v48  ;;  %v1015_v45 = vld [vmem:[%s14396_s22 + $0x1000] sm:$0xff]  ;;  %v1016_v47 = vld [vmem:[%s14396_s22 + $0x1008] sm:$0xff] }
 0x1e9   : > { %5711 = vmatprep.subr.bf16.mxu0 %v12227_v61  ;;  %5998 = vmatprep.subr.bf16.mxu1 %v12229_v62  ;;  %v12283_v61 = vcombine.high %v967_v53, %v971_v55  ;;  %v12285_v62 = vcombine.high %v968_v56, %v972_v57  ;;  %v1019_v46 = vld [vmem:[%s14396_s22 + $0x1020] sm:$0xff]  ;;  %v1020_v48 = vld [vmem:[%s14396_s22 + $0x1028] sm:$0xff] }
 0x1ec   : > { %5712 = vmatpush1.bf16.msra.mxu0 %v12226_v3  ;;  %5999 = vmatpush1.bf16.msra.mxu1 %v12228_v4  ;;  %v12282_v3 = vcombine.low %v967_v53, %v971_v55  ;;  %v12284_v4 = vcombine.low %v968_v56, %v972_v57  ;;  %v1023_v53 = vld [vmem:[%s14396_s22 + $0x1040] sm:$0xff]  ;;  %v14740_v56 = vcombine.low %v14666_v40, %v14666_v40  ;;  %v1024_v57 = vld [vmem:[%s14396_s22 + $0x1048] sm:$0xff] }
 0x1ed   : > { %5713 = vmatprep.subr.bf16.mxu0 %v12235_v5  ;;  %6000 = vmatprep.subr.bf16.mxu1 %v12237_v6  ;;  %v12291_v5 = vcombine.high %v975_v63, %v979_v0  ;;  %v12293_v6 = vcombine.high %v976_v1, %v980_v2  ;;  %v1027_v55 = vld [vmem:[%s14396_s22 + $0x1060] sm:$0xff] }
 0x1f0   : > { %5714 = vmatpush1.bf16.msra.mxu0 %v12234_v11  ;;  %6001 = vmatpush1.bf16.msra.mxu1 %v12236_v12  ;;  %v12290_v11 = vcombine.low %v975_v63, %v979_v0  ;;  %v12292_v12 = vcombine.low %v976_v1, %v980_v2  ;;  %v12339_v63 = vcombine.high %v1023_v53, %v1027_v55  ;;  %v1031_v1 = vld [vmem:[%s14396_s22 + $0x1080] sm:$0xff] }
 0x1f1   : > { %5715 = vmatprep.subr.bf16.mxu0 %v12243_v14  ;;  %6002 = vmatprep.subr.bf16.mxu1 %v12245_v15  ;;  %v12299_v14 = vcombine.high %v983_v7, %v987_v8  ;;  %v12301_v15 = vcombine.high %v984_v9, %v988_v10  ;;  %v1035_v2 = vld [vmem:[%s14396_s22 + $0x10a0] sm:$0xff] }
 0x1f4   : > { %5716 = vmatpush1.bf16.msra.mxu0 %v12242_v21  ;;  %6003 = vmatpush1.bf16.msra.mxu1 %v12244_v22  ;;  %v12298_v21 = vcombine.low %v983_v7, %v987_v8  ;;  %v12300_v22 = vcombine.low %v984_v9, %v988_v10  ;;  %v12347_v7 = vcombine.high %v1031_v1, %v1035_v2  ;;  %v1039_v9 = vld [vmem:[%s14396_s22 + $0x10c0] sm:$0xff] }
 0x1f5   : > { %5717 = vmatprep.subr.bf16.mxu0 %v12251_v24  ;;  %6004 = vmatprep.subr.bf16.mxu1 %v12253_v25  ;;  %v12307_v24 = vcombine.high %v991_v17, %v995_v18  ;;  %v12309_v25 = vcombine.high %v992_v19, %v996_v20  ;;  %v1043_v10 = vld [vmem:[%s14396_s22 + $0x10e0] sm:$0xff] }
 0x1f8   : > { %5718 = vmatpush1.bf16.msra.mxu0 %v12250_v31  ;;  %6005 = vmatpush1.bf16.msra.mxu1 %v12252_v32  ;;  %v12306_v31 = vcombine.low %v991_v17, %v995_v18  ;;  %v12308_v32 = vcombine.low %v992_v19, %v996_v20  ;;  %v12355_v17 = vcombine.high %v1039_v9, %v1043_v10  ;;  %v1047_v19 = vld [vmem:[%s14396_s22 + $0x1100] sm:$0xff] }
 0x1f9   : > { %5719 = vmatprep.subr.bf16.mxu0 %v12259_v33  ;;  %6006 = vmatprep.subr.bf16.mxu1 %v12261_v34  ;;  %v12315_v33 = vcombine.high %v999_v27, %v1003_v28  ;;  %v12317_v34 = vcombine.high %v1000_v29, %v1004_v30  ;;  %v1051_v20 = vld [vmem:[%s14396_s22 + $0x1120] sm:$0xff] }
 0x1fc   : > { %5720 = vmatpush1.bf16.msra.mxu0 %v12258_v41  ;;  %6007 = vmatpush1.bf16.msra.mxu1 %v12260_v42  ;;  %v12314_v41 = vcombine.low %v999_v27, %v1003_v28  ;;  %v12316_v42 = vcombine.low %v1000_v29, %v1004_v30  ;;  %v12363_v27 = vcombine.high %v1047_v19, %v1051_v20  ;;  %v1055_v29 = vld [vmem:[%s14396_s22 + $0x1140] sm:$0xff] }
 0x1fd   : > { %5721 = vmatprep.subr.bf16.mxu0 %v12267_v43  ;;  %6008 = vmatprep.subr.bf16.mxu1 %v12269_v44  ;;  %v12323_v43 = vcombine.high %v1007_v35, %v1011_v36  ;;  %v12325_v44 = vcombine.high %v1008_v38, %v1012_v39  ;;  %v1059_v30 = vld [vmem:[%s14396_s22 + $0x1160] sm:$0xff] }
 0x200   : > { %5722 = vmatpush1.bf16.msra.mxu0 %v12266_v49  ;;  %6009 = vmatpush1.bf16.msra.mxu1 %v12268_v50  ;;  %v12322_v49 = vcombine.low %v1007_v35, %v1011_v36  ;;  %v12324_v50 = vcombine.low %v1008_v38, %v1012_v39  ;;  %v12371_v35 = vcombine.high %v1055_v29, %v1059_v30  ;;  %v1063_v38 = vld [vmem:[%s14396_s22 + $0x1180] sm:$0xff] }
 0x201   : > { %5723 = vmatprep.subr.bf16.mxu0 %v12275_v51  ;;  %6010 = vmatprep.subr.bf16.mxu1 %v12277_v52  ;;  %v12331_v51 = vcombine.high %v1015_v45, %v1019_v46  ;;  %v12333_v52 = vcombine.high %v1016_v47, %v1020_v48  ;;  %v1067_v39 = vld [vmem:[%s14396_s22 + $0x11a0] sm:$0xff] }
 0x204   : > { %5724 = vmatpush1.bf16.msra.mxu0 %v12274_v59  ;;  %6011 = vmatpush1.bf16.msra.mxu1 %v12276_v60  ;;  %v1028_v59 = vld [vmem:[%s14396_s22 + $0x1068] sm:$0xff] }
 0x205   : > { %5725 = vmatprep.subr.bf16.mxu0 %v12283_v61  ;;  %6012 = vmatprep.subr.bf16.mxu1 %v12285_v62  ;;  %v14744_v60 = vld [vmem:[#allocation3 + $0x20] sm:$0xff]  ;;  %v12330_v61 = vcombine.low %v1015_v45, %v1019_v46  ;;  %v12332_v62 = vcombine.low %v1016_v47, %v1020_v48  ;;  %v12341_v0 = vcombine.high %v1024_v57, %v1028_v59  ;;  %v1071_v47 = vld [vmem:[%s14396_s22 + $0x11c0] sm:$0xff] }
 0x206   : > { %v14750_v40 = vcombine.high %v14744_v60, %v14744_v60  ;;  %v12379_v45 = vcombine.high %v1063_v38, %v1067_v39  ;;  %v1075_v48 = vld [vmem:[%s14396_s22 + $0x11e0] sm:$0xff] }
 0x208   : > { %5726 = vmatpush1.bf16.msra.mxu0 %v12282_v3  ;;  %6013 = vmatpush1.bf16.msra.mxu1 %v12284_v4  ;;  %v1032_v3 = vld [vmem:[%s14396_s22 + $0x1088] sm:$0xff] }
 0x209   : > { %5727 = vmatprep.subr.bf16.mxu0 %v12291_v5  ;;  %6014 = vmatprep.subr.bf16.mxu1 %v12293_v6  ;;  %v1036_v4 = vld [vmem:[%s14396_s22 + $0x10a8] sm:$0xff]  ;;  %v12338_v5 = vcombine.low %v1023_v53, %v1027_v55  ;;  %v12340_v6 = vcombine.low %v1024_v57, %v1028_v59  ;;  %v12387_v53 = vcombine.high %v1071_v47, %v1075_v48  ;;  %v1079_v57 = vld [vmem:[%s14396_s22 + $0x1200] sm:$0xff] }
 0x20a   : > { %v12349_v8 = vcombine.high %v1032_v3, %v1036_v4  ;;  %v1083_v59 = vld [vmem:[%s14396_s22 + $0x1220] sm:$0xff] }
 0x20c   : > { %5728 = vmatpush1.bf16.msra.mxu0 %v12290_v11  ;;  %6015 = vmatpush1.bf16.msra.mxu1 %v12292_v12  ;;  %v1040_v11 = vld [vmem:[%s14396_s22 + $0x10c8] sm:$0xff] }
 0x20d   : > { %5729 = vmatprep.subr.bf16.mxu0 %v12299_v14  ;;  %6016 = vmatprep.subr.bf16.mxu1 %v12301_v15  ;;  %v1044_v12 = vld [vmem:[%s14396_s22 + $0x10e8] sm:$0xff]  ;;  %v12346_v14 = vcombine.low %v1031_v1, %v1035_v2  ;;  %v12348_v15 = vcombine.low %v1032_v3, %v1036_v4  ;;  %v12395_v1 = vcombine.high %v1079_v57, %v1083_v59  ;;  %v1087_v3 = vld [vmem:[%s14396_s22 + $0x1240] sm:$0xff] }
 0x20e   : > { %v12357_v18 = vcombine.high %v1040_v11, %v1044_v12  ;;  %v1091_v4 = vld [vmem:[%s14396_s22 + $0x1260] sm:$0xff] }
 0x210   : > { %5730 = vmatpush1.bf16.msra.mxu0 %v12298_v21  ;;  %6017 = vmatpush1.bf16.msra.mxu1 %v12300_v22  ;;  %v1048_v21 = vld [vmem:[%s14396_s22 + $0x1108] sm:$0xff] }
 0x211   : > { %5731 = vmatprep.subr.bf16.mxu0 %v12307_v24  ;;  %6018 = vmatprep.subr.bf16.mxu1 %v12309_v25  ;;  %v1052_v22 = vld [vmem:[%s14396_s22 + $0x1128] sm:$0xff]  ;;  %v12354_v24 = vcombine.low %v1039_v9, %v1043_v10  ;;  %v12356_v25 = vcombine.low %v1040_v11, %v1044_v12  ;;  %v12403_v9 = vcombine.high %v1087_v3, %v1091_v4  ;;  %v1095_v11 = vld [vmem:[%s14396_s22 + $0x1280] sm:$0xff] }
 0x212   : > { %v12365_v28 = vcombine.high %v1048_v21, %v1052_v22  ;;  %v1099_v12 = vld [vmem:[%s14396_s22 + $0x12a0] sm:$0xff] }
 0x214   : > { %5732 = vmatpush1.bf16.msra.mxu0 %v12306_v31  ;;  %6019 = vmatpush1.bf16.msra.mxu1 %v12308_v32  ;;  %v1056_v31 = vld [vmem:[%s14396_s22 + $0x1148] sm:$0xff] }
 0x215   : > { %5733 = vmatprep.subr.bf16.mxu0 %v12315_v33  ;;  %6020 = vmatprep.subr.bf16.mxu1 %v12317_v34  ;;  %v1060_v32 = vld [vmem:[%s14396_s22 + $0x1168] sm:$0xff]  ;;  %v12362_v33 = vcombine.low %v1047_v19, %v1051_v20  ;;  %v12364_v34 = vcombine.low %v1048_v21, %v1052_v22  ;;  %v12411_v19 = vcombine.high %v1095_v11, %v1099_v12  ;;  %v1103_v21 = vld [vmem:[%s14396_s22 + $0x12c0] sm:$0xff] }
 0x216   : > { %v12373_v36 = vcombine.high %v1056_v31, %v1060_v32  ;;  %v1107_v22 = vld [vmem:[%s14396_s22 + $0x12e0] sm:$0xff] }
 0x218   : > { %5734 = vmatpush1.bf16.msra.mxu0 %v12314_v41  ;;  %6021 = vmatpush1.bf16.msra.mxu1 %v12316_v42  ;;  %v1064_v41 = vld [vmem:[%s14396_s22 + $0x1188] sm:$0xff] }
 0x219   : > { %5735 = vmatprep.subr.bf16.mxu0 %v12323_v43  ;;  %6022 = vmatprep.subr.bf16.mxu1 %v12325_v44  ;;  %v1068_v42 = vld [vmem:[%s14396_s22 + $0x11a8] sm:$0xff]  ;;  %v12370_v43 = vcombine.low %v1055_v29, %v1059_v30  ;;  %v12372_v44 = vcombine.low %v1056_v31, %v1060_v32  ;;  %v12419_v29 = vcombine.high %v1103_v21, %v1107_v22  ;;  %v1111_v31 = vld [vmem:[%s14396_s22 + $0x1300] sm:$0xff] }
 0x21a   : > { %v12381_v46 = vcombine.high %v1064_v41, %v1068_v42  ;;  %v1115_v32 = vld [vmem:[%s14396_s22 + $0x1320] sm:$0xff] }
 0x21c   : > { %5736 = vmatpush1.bf16.msra.mxu0 %v12322_v49  ;;  %6023 = vmatpush1.bf16.msra.mxu1 %v12324_v50  ;;  %v1072_v49 = vld [vmem:[%s14396_s22 + $0x11c8] sm:$0xff] }
 0x21d   : > { %5746 = vmatprep.subr.bf16.mxu0 %v12331_v51  ;;  %6033 = vmatprep.subr.bf16.mxu1 %v12333_v52  ;;  %v1076_v50 = vld [vmem:[%s14396_s22 + $0x11e8] sm:$0xff]  ;;  %v12378_v51 = vcombine.low %v1063_v38, %v1067_v39  ;;  %v12380_v52 = vcombine.low %v1064_v41, %v1068_v42  ;;  %v12427_v38 = vcombine.high %v1111_v31, %v1115_v32  ;;  %v1119_v41 = vld [vmem:[%s14396_s22 + $0x1340] sm:$0xff] }
 0x21e   : > { %v12389_v55 = vcombine.high %v1072_v49, %v1076_v50  ;;  %v1123_v42 = vld [vmem:[%s14396_s22 + $0x1360] sm:$0xff] }
 0x21f   : > { %5738 = vmatmul.mubr.bf16.vlgmr.msra.gmra.mrb[0].mxu0 %v14740_v56  ;;  %6025 = vmatmul.mubr.bf16.vlgmr.msra.gmra.mrb[0].mxu1 %v14740_v56 }
 0x220   : > { %5747 = vmatpush1.bf16.msra.mxu0 %v12330_v61  ;;  %6034 = vmatpush1.bf16.msra.mxu1 %v12332_v62  ;;  %v1080_v61 = vld [vmem:[%s14396_s22 + $0x1208] sm:$0xff] }
 0x221   : > { %5748 = vmatprep.subr.bf16.mxu0 %v12339_v63  ;;  %6035 = vmatprep.subr.bf16.mxu1 %v12341_v0  ;;  %v1084_v62 = vld [vmem:[%s14396_s22 + $0x1228] sm:$0xff]  ;;  %v12386_v63 = vcombine.low %v1071_v47, %v1075_v48  ;;  %v12388_v0 = vcombine.low %v1072_v49, %v1076_v50  ;;  %v12435_v47 = vcombine.high %v1119_v41, %v1123_v42  ;;  %v1127_v49 = vld [vmem:[%s14396_s22 + $0x1380] sm:$0xff] }
 0x222   : > { %5778 = vmatprep.mubr.bf16.mxu0 %v14750_v40  ;;  %6065 = vmatprep.mubr.bf16.mxu1 %v14750_v40  ;;  %v12397_v2 = vcombine.high %v1080_v61, %v1084_v62  ;;  %v1131_v50 = vld [vmem:[%s14396_s22 + $0x13a0] sm:$0xff] }
 0x224   : > { %5749 = vmatpush1.bf16.msra.mxu0 %v12338_v5  ;;  %6036 = vmatpush1.bf16.msra.mxu1 %v12340_v6  ;;  %v1088_v5 = vld [vmem:[%s14396_s22 + $0x1248] sm:$0xff] }
 0x225   : > { %5750 = vmatprep.subr.bf16.mxu0 %v12347_v7  ;;  %6037 = vmatprep.subr.bf16.mxu1 %v12349_v8  ;;  %v1092_v6 = vld [vmem:[%s14396_s22 + $0x1268] sm:$0xff]  ;;  %v12394_v7 = vcombine.low %v1079_v57, %v1083_v59  ;;  %v12396_v8 = vcombine.low %v1080_v61, %v1084_v62  ;;  %v12443_v57 = vcombine.high %v1127_v49, %v1131_v50  ;;  %v1135_v61 = vld [vmem:[%s14396_s22 + $0x13c0] sm:$0xff] }
 0x226   : > { %v12405_v10 = vcombine.high %v1088_v5, %v1092_v6  ;;  %v1139_v62 = vld [vmem:[%s14396_s22 + $0x13e0] sm:$0xff] }
 0x228   : > { %5751 = vmatpush1.bf16.msra.mxu0 %v12346_v14  ;;  %6038 = vmatpush1.bf16.msra.mxu1 %v12348_v15  ;;  %v1096_v14 = vld [vmem:[%s14396_s22 + $0x1288] sm:$0xff] }
 0x229   : > { %5752 = vmatprep.subr.bf16.mxu0 %v12355_v17  ;;  %6039 = vmatprep.subr.bf16.mxu1 %v12357_v18  ;;  %v1100_v15 = vld [vmem:[%s14396_s22 + $0x12a8] sm:$0xff]  ;;  %v12402_v17 = vcombine.low %v1087_v3, %v1091_v4  ;;  %v12404_v18 = vcombine.low %v1088_v5, %v1092_v6  ;;  %v12451_v3 = vcombine.high %v1135_v61, %v1139_v62  ;;  %v1143_v5 = vld [vmem:[%s14396_s22 + $0x1400] sm:$0xff] }
 0x22a   : > { %v12413_v20 = vcombine.high %v1096_v14, %v1100_v15  ;;  %v1147_v6 = vld [vmem:[%s14396_s22 + $0x1420] sm:$0xff] }
 0x22c   : > { %5753 = vmatpush1.bf16.msra.mxu0 %v12354_v24  ;;  %6040 = vmatpush1.bf16.msra.mxu1 %v12356_v25  ;;  %v1104_v24 = vld [vmem:[%s14396_s22 + $0x12c8] sm:$0xff] }
 0x22d   : > { %5754 = vmatprep.subr.bf16.mxu0 %v12363_v27  ;;  %6041 = vmatprep.subr.bf16.mxu1 %v12365_v28  ;;  %v1108_v25 = vld [vmem:[%s14396_s22 + $0x12e8] sm:$0xff]  ;;  %v12410_v27 = vcombine.low %v1095_v11, %v1099_v12  ;;  %v12412_v28 = vcombine.low %v1096_v14, %v1100_v15  ;;  %v12459_v11 = vcombine.high %v1143_v5, %v1147_v6  ;;  %v1151_v14 = vld [vmem:[%s14396_s22 + $0x1440] sm:$0xff] }
 0x22e   : > { %v12421_v30 = vcombine.high %v1104_v24, %v1108_v25  ;;  %v1155_v15 = vld [vmem:[%s14396_s22 + $0x1460] sm:$0xff] }
 0x230   : > { %5755 = vmatpush1.bf16.msra.mxu0 %v12362_v33  ;;  %6042 = vmatpush1.bf16.msra.mxu1 %v12364_v34  ;;  %v1112_v33 = vld [vmem:[%s14396_s22 + $0x1308] sm:$0xff] }
 0x231   : > { %5756 = vmatprep.subr.bf16.mxu0 %v12371_v35  ;;  %6043 = vmatprep.subr.bf16.mxu1 %v12373_v36  ;;  %v1116_v34 = vld [vmem:[%s14396_s22 + $0x1328] sm:$0xff]  ;;  %v12418_v35 = vcombine.low %v1103_v21, %v1107_v22  ;;  %v12420_v36 = vcombine.low %v1104_v24, %v1108_v25  ;;  %v12458_v21 = vcombine.low %v1143_v5, %v1147_v6 }
 0x232   : > { %v12429_v39 = vcombine.high %v1112_v33, %v1116_v34  ;;  %v12467_v24 = vcombine.high %v1151_v14, %v1155_v15 }
 0x234   : > { %5757 = vmatpush1.bf16.msra.mxu0 %v12370_v43  ;;  %6044 = vmatpush1.bf16.msra.mxu1 %v12372_v44  ;;  %v1120_v43 = vld [vmem:[%s14396_s22 + $0x1348] sm:$0xff] }
 0x235   : > { %5758 = vmatprep.subr.bf16.mxu0 %v12379_v45  ;;  %6045 = vmatprep.subr.bf16.mxu1 %v12381_v46  ;;  %v1124_v44 = vld [vmem:[%s14396_s22 + $0x1368] sm:$0xff]  ;;  %v12426_v45 = vcombine.low %v1111_v31, %v1115_v32  ;;  %v12428_v46 = vcombine.low %v1112_v33, %v1116_v34  ;;  %v12466_v31 = vcombine.low %v1151_v14, %v1155_v15 }
 0x236   : > { %v12437_v48 = vcombine.high %v1120_v43, %v1124_v44 }
 0x238   : > { %5759 = vmatpush1.bf16.msra.mxu0 %v12378_v51  ;;  %6046 = vmatpush1.bf16.msra.mxu1 %v12380_v52  ;;  %v1128_v51 = vld [vmem:[%s14396_s22 + $0x1388] sm:$0xff] }
 0x239   : > { %5760 = vmatprep.subr.bf16.mxu0 %v12387_v53  ;;  %6047 = vmatprep.subr.bf16.mxu1 %v12389_v55  ;;  %v1132_v52 = vld [vmem:[%s14396_s22 + $0x13a8] sm:$0xff]  ;;  %v12434_v53 = vcombine.low %v1119_v41, %v1123_v42  ;;  %v12436_v55 = vcombine.low %v1120_v43, %v1124_v44 }
 0x23a   : > { %v12445_v59 = vcombine.high %v1128_v51, %v1132_v52 }
 0x23c   : > { %5761 = vmatpush1.bf16.msra.mxu0 %v12386_v63  ;;  %6048 = vmatpush1.bf16.msra.mxu1 %v12388_v0  ;;  %v1136_v63 = vld [vmem:[%s14396_s22 + $0x13c8] sm:$0xff] }
 0x23d   : > { %5762 = vmatprep.subr.bf16.mxu0 %v12395_v1  ;;  %6049 = vmatprep.subr.bf16.mxu1 %v12397_v2  ;;  %v1140_v0 = vld [vmem:[%s14396_s22 + $0x13e8] sm:$0xff]  ;;  %v12442_v1 = vcombine.low %v1127_v49, %v1131_v50  ;;  %v12444_v2 = vcombine.low %v1128_v51, %v1132_v52 }
 0x23e   : > { %v12453_v4 = vcombine.high %v1136_v63, %v1140_v0 }
 0x240   : > { %5763 = vmatpush1.bf16.msra.mxu0 %v12394_v7  ;;  %6050 = vmatpush1.bf16.msra.mxu1 %v12396_v8  ;;  %v1144_v7 = vld [vmem:[%s14396_s22 + $0x1408] sm:$0xff] }
 0x241   : > { %5764 = vmatprep.subr.bf16.mxu0 %v12403_v9  ;;  %6051 = vmatprep.subr.bf16.mxu1 %v12405_v10  ;;  %v1148_v8 = vld [vmem:[%s14396_s22 + $0x1428] sm:$0xff]  ;;  %v12450_v9 = vcombine.low %v1135_v61, %v1139_v62  ;;  %v12452_v10 = vcombine.low %v1136_v63, %v1140_v0 }
 0x242   : > { %v12461_v12 = vcombine.high %v1144_v7, %v1148_v8  ;;  %v12460_v22 = vcombine.low %v1144_v7, %v1148_v8 }
 0x244   : > { %5765 = vmatpush1.bf16.msra.mxu0 %v12402_v17  ;;  %6052 = vmatpush1.bf16.msra.mxu1 %v12404_v18  ;;  %v14818_v17 = vcombine.low %v14744_v60, %v14744_v60  ;;  %v1152_v18 = vld [vmem:[%s14396_s22 + $0x1448] sm:$0xff] }
 0x245   : > { %5766 = vmatprep.subr.bf16.mxu0 %v12411_v19  ;;  %6053 = vmatprep.subr.bf16.mxu1 %v12413_v20  ;;  %v1156_v19 = vld [vmem:[%s14396_s22 + $0x1468] sm:$0xff]  ;;  %v14822_v20 = vld [vmem:[#allocation3 + $0x28] sm:$0xff] }
 0x246   : > { %v12469_v25 = vcombine.high %v1152_v18, %v1156_v19  ;;  %v14828_v60 = vcombine.high %v14822_v20, %v14822_v20  ;;  %v12468_v32 = vcombine.low %v1152_v18, %v1156_v19 }
 0x248   : > { %5767 = vmatpush1.bf16.msra.mxu0 %v12410_v27  ;;  %6054 = vmatpush1.bf16.msra.mxu1 %v12412_v28  ;;  %v1159_v27 = vld [vmem:[%s14396_s22 + $0x1480] sm:$0xff] }
 0x249   : > { %5768 = vmatprep.subr.bf16.mxu0 %v12419_v29  ;;  %6055 = vmatprep.subr.bf16.mxu1 %v12421_v30  ;;  %v1163_v28 = vld [vmem:[%s14396_s22 + $0x14a0] sm:$0xff]  ;;  %v1160_v29 = vld [vmem:[%s14396_s22 + $0x1488] sm:$0xff] }
 0x24a   : > { %v1164_v30 = vld [vmem:[%s14396_s22 + $0x14a8] sm:$0xff]  ;;  %v12475_v33 = vcombine.high %v1159_v27, %v1163_v28  ;;  %v12474_v41 = vcombine.low %v1159_v27, %v1163_v28 }
 0x24b   : > { %v12477_v34 = vcombine.high %v1160_v29, %v1164_v30  ;;  %v12476_v42 = vcombine.low %v1160_v29, %v1164_v30 }
 0x24c   : > { %5769 = vmatpush1.bf16.msra.mxu0 %v12418_v35  ;;  %6056 = vmatpush1.bf16.msra.mxu1 %v12420_v36  ;;  %v1167_v35 = vld [vmem:[%s14396_s22 + $0x14c0] sm:$0xff] }
 0x24d   : > { %5770 = vmatprep.subr.bf16.mxu0 %v12427_v38  ;;  %6057 = vmatprep.subr.bf16.mxu1 %v12429_v39  ;;  %v1171_v36 = vld [vmem:[%s14396_s22 + $0x14e0] sm:$0xff]  ;;  %v1168_v38 = vld [vmem:[%s14396_s22 + $0x14c8] sm:$0xff] }
 0x24e   : > { %v1172_v39 = vld [vmem:[%s14396_s22 + $0x14e8] sm:$0xff]  ;;  %v12483_v43 = vcombine.high %v1167_v35, %v1171_v36  ;;  %v12482_v49 = vcombine.low %v1167_v35, %v1171_v36 }
 0x24f   : > { %v12485_v44 = vcombine.high %v1168_v38, %v1172_v39  ;;  %v12484_v50 = vcombine.low %v1168_v38, %v1172_v39 }
 0x250   : > { %5771 = vmatpush1.bf16.msra.mxu0 %v12426_v45  ;;  %6058 = vmatpush1.bf16.msra.mxu1 %v12428_v46  ;;  %v1175_v45 = vld [vmem:[%s14396_s22 + $0x1500] sm:$0xff] }
 0x251   : > { %5772 = vmatprep.subr.bf16.mxu0 %v12435_v47  ;;  %6059 = vmatprep.subr.bf16.mxu1 %v12437_v48  ;;  %v1179_v46 = vld [vmem:[%s14396_s22 + $0x1520] sm:$0xff]  ;;  %v1176_v47 = vld [vmem:[%s14396_s22 + $0x1508] sm:$0xff] }
 0x252   : > { %v1180_v48 = vld [vmem:[%s14396_s22 + $0x1528] sm:$0xff]  ;;  %v12491_v51 = vcombine.high %v1175_v45, %v1179_v46  ;;  %v12490_v61 = vcombine.low %v1175_v45, %v1179_v46 }
 0x253   : > { %v12493_v52 = vcombine.high %v1176_v47, %v1180_v48  ;;  %v12492_v62 = vcombine.low %v1176_v47, %v1180_v48 }
 0x254   : > { %5773 = vmatpush1.bf16.msra.mxu0 %v12434_v53  ;;  %6060 = vmatpush1.bf16.msra.mxu1 %v12436_v55  ;;  %v1183_v53 = vld [vmem:[%s14396_s22 + $0x1540] sm:$0xff] }
 0x255   : > { %5774 = vmatprep.subr.bf16.mxu0 %v12443_v57  ;;  %6061 = vmatprep.subr.bf16.mxu1 %v12445_v59  ;;  %v1187_v55 = vld [vmem:[%s14396_s22 + $0x1560] sm:$0xff]  ;;  %v1184_v57 = vld [vmem:[%s14396_s22 + $0x1548] sm:$0xff] }
 0x256   : > { %v1188_v59 = vld [vmem:[%s14396_s22 + $0x1568] sm:$0xff]  ;;  %v12499_v63 = vcombine.high %v1183_v53, %v1187_v55  ;;  %v12498_v5 = vcombine.low %v1183_v53, %v1187_v55 }
 0x257   : > { %v12501_v0 = vcombine.high %v1184_v57, %v1188_v59  ;;  %v12500_v6 = vcombine.low %v1184_v57, %v1188_v59 }
 0x258   : > { %5775 = vmatpush1.bf16.msra.mxu0 %v12442_v1  ;;  %6062 = vmatpush1.bf16.msra.mxu1 %v12444_v2  ;;  %v1191_v1 = vld [vmem:[%s14396_s22 + $0x1580] sm:$0xff] }
 0x259   : > { %5776 = vmatprep.subr.bf16.mxu0 %v12451_v3  ;;  %6063 = vmatprep.subr.bf16.mxu1 %v12453_v4  ;;  %v1195_v2 = vld [vmem:[%s14396_s22 + $0x15a0] sm:$0xff]  ;;  %v1192_v3 = vld [vmem:[%s14396_s22 + $0x1588] sm:$0xff] }
 0x25a   : > { %v1196_v4 = vld [vmem:[%s14396_s22 + $0x15a8] sm:$0xff]  ;;  %v12507_v7 = vcombine.high %v1191_v1, %v1195_v2  ;;  %v12506_v14 = vcombine.low %v1191_v1, %v1195_v2 }
 0x25b   : > { %v12509_v8 = vcombine.high %v1192_v3, %v1196_v4  ;;  %v12508_v15 = vcombine.low %v1192_v3, %v1196_v4 }
 0x25c   : > { %5777 = vmatpush1.bf16.msra.mxu0 %v12450_v9  ;;  %6064 = vmatpush1.bf16.msra.mxu1 %v12452_v10  ;;  %v1199_v9 = vld [vmem:[%s14396_s22 + $0x15c0] sm:$0xff] }
 0x25d   : > { %5787 = vmatprep.subr.bf16.mxu0 %v12459_v11  ;;  %6074 = vmatprep.subr.bf16.mxu1 %v12461_v12  ;;  %v1203_v10 = vld [vmem:[%s14396_s22 + $0x15e0] sm:$0xff]  ;;  %v1200_v11 = vld [vmem:[%s14396_s22 + $0x15c8] sm:$0xff] }
 0x25e   : > { %v1204_v12 = vld [vmem:[%s14396_s22 + $0x15e8] sm:$0xff]  ;;  %v12515_v18 = vcombine.high %v1199_v9, %v1203_v10  ;;  %v12514_v27 = vcombine.low %v1199_v9, %v1203_v10 }
 0x25f   : > { %5779 = vmatmul.mubr.bf16.vlgmr.msra.gmra.mrb[0].mxu0 %v14818_v17  ;;  %6066 = vmatmul.mubr.bf16.vlgmr.msra.gmra.mrb[0].mxu1 %v14818_v17  ;;  %v12517_v19 = vcombine.high %v1200_v11, %v1204_v12  ;;  %v12516_v28 = vcombine.low %v1200_v11, %v1204_v12 }
 0x260   : > { %5788 = vmatpush1.bf16.msra.mxu0 %v12458_v21  ;;  %6075 = vmatpush1.bf16.msra.mxu1 %v12460_v22  ;;  %v1207_v21 = vld [vmem:[%s14396_s22 + $0x1600] sm:$0xff] }
 0x261   : > { %5789 = vmatprep.subr.bf16.mxu0 %v12467_v24  ;;  %6076 = vmatprep.subr.bf16.mxu1 %v12469_v25  ;;  %v1211_v22 = vld [vmem:[%s14396_s22 + $0x1620] sm:$0xff]  ;;  %v1208_v24 = vld [vmem:[%s14396_s22 + $0x1608] sm:$0xff] }
 0x262   : > { %5819 = vmatprep.mubr.bf16.mxu0 %v14828_v60  ;;  %6106 = vmatprep.mubr.bf16.mxu1 %v14828_v60  ;;  %v1212_v25 = vld [vmem:[%s14396_s22 + $0x1628] sm:$0xff]  ;;  %v12523_v29 = vcombine.high %v1207_v21, %v1211_v22  ;;  %v12522_v35 = vcombine.low %v1207_v21, %v1211_v22 }
 0x263   : > { %v12525_v30 = vcombine.high %v1208_v24, %v1212_v25  ;;  %v12524_v36 = vcombine.low %v1208_v24, %v1212_v25 }
 0x264   : > { %5790 = vmatpush1.bf16.msra.mxu0 %v12466_v31  ;;  %6077 = vmatpush1.bf16.msra.mxu1 %v12468_v32  ;;  %v1215_v31 = vld [vmem:[%s14396_s22 + $0x1640] sm:$0xff] }
 0x265   : > { %5791 = vmatprep.subr.bf16.mxu0 %v12475_v33  ;;  %6078 = vmatprep.subr.bf16.mxu1 %v12477_v34  ;;  %v1219_v32 = vld [vmem:[%s14396_s22 + $0x1660] sm:$0xff]  ;;  %v1216_v33 = vld [vmem:[%s14396_s22 + $0x1648] sm:$0xff] }
 0x266   : > { %v1220_v34 = vld [vmem:[%s14396_s22 + $0x1668] sm:$0xff]  ;;  %v12531_v38 = vcombine.high %v1215_v31, %v1219_v32  ;;  %v12530_v45 = vcombine.low %v1215_v31, %v1219_v32 }
 0x267   : > { %v12533_v39 = vcombine.high %v1216_v33, %v1220_v34  ;;  %v12532_v46 = vcombine.low %v1216_v33, %v1220_v34 }
 0x268   : > { %5792 = vmatpush1.bf16.msra.mxu0 %v12474_v41  ;;  %6079 = vmatpush1.bf16.msra.mxu1 %v12476_v42  ;;  %v1223_v41 = vld [vmem:[%s14396_s22 + $0x1680] sm:$0xff] }
 0x269   : > { %5793 = vmatprep.subr.bf16.mxu0 %v12483_v43  ;;  %6080 = vmatprep.subr.bf16.mxu1 %v12485_v44  ;;  %v1227_v42 = vld [vmem:[%s14396_s22 + $0x16a0] sm:$0xff]  ;;  %v1224_v43 = vld [vmem:[%s14396_s22 + $0x1688] sm:$0xff] }
 0x26a   : > { %v1228_v44 = vld [vmem:[%s14396_s22 + $0x16a8] sm:$0xff]  ;;  %v12539_v47 = vcombine.high %v1223_v41, %v1227_v42  ;;  %v12538_v53 = vcombine.low %v1223_v41, %v1227_v42 }
 0x26b   : > { %v12541_v48 = vcombine.high %v1224_v43, %v1228_v44  ;;  %v12540_v55 = vcombine.low %v1224_v43, %v1228_v44 }
 0x26c   : > { %5794 = vmatpush1.bf16.msra.mxu0 %v12482_v49  ;;  %6081 = vmatpush1.bf16.msra.mxu1 %v12484_v50  ;;  %v1231_v49 = vld [vmem:[%s14396_s22 + $0x16c0] sm:$0xff] }
 0x26d   : > { %5795 = vmatprep.subr.bf16.mxu0 %v12491_v51  ;;  %6082 = vmatprep.subr.bf16.mxu1 %v12493_v52  ;;  %v1235_v50 = vld [vmem:[%s14396_s22 + $0x16e0] sm:$0xff]  ;;  %v1232_v51 = vld [vmem:[%s14396_s22 + $0x16c8] sm:$0xff] }
 0x26e   : > { %v1236_v52 = vld [vmem:[%s14396_s22 + $0x16e8] sm:$0xff]  ;;  %v12547_v57 = vcombine.high %v1231_v49, %v1235_v50  ;;  %v12546_v1 = vcombine.low %v1231_v49, %v1235_v50 }
 0x26f   : > { %v12549_v59 = vcombine.high %v1232_v51, %v1236_v52  ;;  %v12548_v2 = vcombine.low %v1232_v51, %v1236_v52  ;;  %v1284_v49 = vld [vmem:[%s14396_s22 + $0x1868] sm:$0xff] }
 0x270   : > { %5796 = vmatpush1.bf16.msra.mxu0 %v12490_v61  ;;  %6083 = vmatpush1.bf16.msra.mxu1 %v12492_v62  ;;  %v1239_v61 = vld [vmem:[%s14396_s22 + $0x1700] sm:$0xff] }
 0x271   : > { %5797 = vmatprep.subr.bf16.mxu0 %v12499_v63  ;;  %6084 = vmatprep.subr.bf16.mxu1 %v12501_v0  ;;  %v1243_v62 = vld [vmem:[%s14396_s22 + $0x1720] sm:$0xff]  ;;  %v1240_v63 = vld [vmem:[%s14396_s22 + $0x1708] sm:$0xff] }
 0x272   : > { %v1244_v0 = vld [vmem:[%s14396_s22 + $0x1728] sm:$0xff]  ;;  %v12555_v3 = vcombine.high %v1239_v61, %v1243_v62  ;;  %v12554_v9 = vcombine.low %v1239_v61, %v1243_v62 }
 0x273   : > { %v12557_v4 = vcombine.high %v1240_v63, %v1244_v0  ;;  %v12556_v10 = vcombine.low %v1240_v63, %v1244_v0 }
 0x274   : > { %5798 = vmatpush1.bf16.msra.mxu0 %v12498_v5  ;;  %6085 = vmatpush1.bf16.msra.mxu1 %v12500_v6  ;;  %v1247_v5 = vld [vmem:[%s14396_s22 + $0x1740] sm:$0xff] }
 0x275   : > { %5799 = vmatprep.subr.bf16.mxu0 %v12507_v7  ;;  %6086 = vmatprep.subr.bf16.mxu1 %v12509_v8  ;;  %v1251_v6 = vld [vmem:[%s14396_s22 + $0x1760] sm:$0xff]  ;;  %v1248_v7 = vld [vmem:[%s14396_s22 + $0x1748] sm:$0xff] }
 0x276   : > { %v1252_v8 = vld [vmem:[%s14396_s22 + $0x1768] sm:$0xff]  ;;  %v12563_v11 = vcombine.high %v1247_v5, %v1251_v6  ;;  %v12562_v21 = vcombine.low %v1247_v5, %v1251_v6 }
 0x277   : > { %v12565_v12 = vcombine.high %v1248_v7, %v1252_v8  ;;  %v12564_v22 = vcombine.low %v1248_v7, %v1252_v8  ;;  %v1300_v5 = vld [vmem:[%s14396_s22 + $0x18e8] sm:$0xff] }
 0x278   : > { %5800 = vmatpush1.bf16.msra.mxu0 %v12506_v14  ;;  %6087 = vmatpush1.bf16.msra.mxu1 %v12508_v15  ;;  %v1255_v14 = vld [vmem:[%s14396_s22 + $0x1780] sm:$0xff] }
 0x279   : > { %5801 = vmatprep.subr.bf16.mxu0 %v12515_v18  ;;  %6088 = vmatprep.subr.bf16.mxu1 %v12517_v19  ;;  %v1259_v15 = vld [vmem:[%s14396_s22 + $0x17a0] sm:$0xff]  ;;  %v1256_v18 = vld [vmem:[%s14396_s22 + $0x1788] sm:$0xff] }
 0x27a   : > { %v1260_v19 = vld [vmem:[%s14396_s22 + $0x17a8] sm:$0xff]  ;;  %v12571_v24 = vcombine.high %v1255_v14, %v1259_v15  ;;  %v12570_v31 = vcombine.low %v1255_v14, %v1259_v15 }
 0x27b   : > { %v12573_v25 = vcombine.high %v1256_v18, %v1260_v19  ;;  %v12572_v32 = vcombine.low %v1256_v18, %v1260_v19  ;;  %v1308_v14 = vld [vmem:[%s14396_s22 + $0x1928] sm:$0xff] }
 0x27c   : > { %5802 = vmatpush1.bf16.msra.mxu0 %v12514_v27  ;;  %6089 = vmatpush1.bf16.msra.mxu1 %v12516_v28  ;;  %v1263_v27 = vld [vmem:[%s14396_s22 + $0x17c0] sm:$0xff] }
 0x27d   : > { %5803 = vmatprep.subr.bf16.mxu0 %v12523_v29  ;;  %6090 = vmatprep.subr.bf16.mxu1 %v12525_v30  ;;  %v1267_v28 = vld [vmem:[%s14396_s22 + $0x17e0] sm:$0xff]  ;;  %v1264_v29 = vld [vmem:[%s14396_s22 + $0x17c8] sm:$0xff] }
 0x27e   : > { %v1268_v30 = vld [vmem:[%s14396_s22 + $0x17e8] sm:$0xff]  ;;  %v12579_v33 = vcombine.high %v1263_v27, %v1267_v28  ;;  %v12578_v41 = vcombine.low %v1263_v27, %v1267_v28 }
 0x27f   : > { %v12581_v34 = vcombine.high %v1264_v29, %v1268_v30  ;;  %v12580_v42 = vcombine.low %v1264_v29, %v1268_v30  ;;  %v1316_v27 = vld [vmem:[%s14396_s22 + $0x1968] sm:$0xff] }
 0x280   : > { %5804 = vmatpush1.bf16.msra.mxu0 %v12522_v35  ;;  %6091 = vmatpush1.bf16.msra.mxu1 %v12524_v36  ;;  %v1271_v35 = vld [vmem:[%s14396_s22 + $0x1800] sm:$0xff] }
 0x281   : > { %5805 = vmatprep.subr.bf16.mxu0 %v12531_v38  ;;  %6092 = vmatprep.subr.bf16.mxu1 %v12533_v39  ;;  %v1275_v36 = vld [vmem:[%s14396_s22 + $0x1820] sm:$0xff]  ;;  %v1272_v38 = vld [vmem:[%s14396_s22 + $0x1808] sm:$0xff] }
 0x282   : > { %v1276_v39 = vld [vmem:[%s14396_s22 + $0x1828] sm:$0xff]  ;;  %v12587_v43 = vcombine.high %v1271_v35, %v1275_v36  ;;  %v12586_v50 = vcombine.low %v1271_v35, %v1275_v36 }
 0x283   : > { %v12589_v44 = vcombine.high %v1272_v38, %v1276_v39  ;;  %v12588_v51 = vcombine.low %v1272_v38, %v1276_v39  ;;  %v1324_v35 = vld [vmem:[%s14396_s22 + $0x19a8] sm:$0xff] }
 0x284   : > { %5806 = vmatpush1.bf16.msra.mxu0 %v12530_v45  ;;  %6093 = vmatpush1.bf16.msra.mxu1 %v12532_v46  ;;  %v1279_v45 = vld [vmem:[%s14396_s22 + $0x1840] sm:$0xff] }
 0x285   : > { %5807 = vmatprep.subr.bf16.mxu0 %v12539_v47  ;;  %6094 = vmatprep.subr.bf16.mxu1 %v12541_v48  ;;  %v1283_v46 = vld [vmem:[%s14396_s22 + $0x1860] sm:$0xff]  ;;  %v14896_v47 = vcombine.low %v14822_v20, %v14822_v20  ;;  %v1280_v48 = vld [vmem:[%s14396_s22 + $0x1848] sm:$0xff] }
 0x286   : > { %v12595_v52 = vcombine.high %v1279_v45, %v1283_v46  ;;  %v1292_v20 = vld [vmem:[%s14396_s22 + $0x18a8] sm:$0xff]  ;;  %v12594_v61 = vcombine.low %v1279_v45, %v1283_v46  ;;  %v12596_v62 = vcombine.low %v1280_v48, %v1284_v49 }
 0x287   : > { %v1332_v45 = vld [vmem:[%s14396_s22 + $0x19e8] sm:$0xff] }
 0x288   : > { %5808 = vmatpush1.bf16.msra.mxu0 %v12538_v53  ;;  %6095 = vmatpush1.bf16.msra.mxu1 %v12540_v55  ;;  %v12597_v53 = vcombine.high %v1280_v48, %v1284_v49  ;;  %v1287_v55 = vld [vmem:[%s14396_s22 + $0x1880] sm:$0xff] }
 0x289   : > { %5809 = vmatprep.subr.bf16.mxu0 %v12547_v57  ;;  %6096 = vmatprep.subr.bf16.mxu1 %v12549_v59  ;;  %v1291_v57 = vld [vmem:[%s14396_s22 + $0x18a0] sm:$0xff]  ;;  %v1288_v59 = vld [vmem:[%s14396_s22 + $0x1888] sm:$0xff] }
 0x28a   : > { %v12603_v63 = vcombine.high %v1287_v55, %v1291_v57  ;;  %v12605_v0 = vcombine.high %v1288_v59, %v1292_v20  ;;  %v12602_v6 = vcombine.low %v1287_v55, %v1291_v57  ;;  %v12604_v7 = vcombine.low %v1288_v59, %v1292_v20  ;;  %v510_v55 = vld [vmem:[%s14396_s22 + $0x38] sm:$0xff] }
 0x28c   : > { %5810 = vmatpush1.bf16.msra.mxu0 %v12546_v1  ;;  %6097 = vmatpush1.bf16.msra.mxu1 %v12548_v2  ;;  %v1295_v1 = vld [vmem:[%s14396_s22 + $0x18c0] sm:$0xff] }
 0x28d   : > { %5811 = vmatprep.subr.bf16.mxu0 %v12555_v3  ;;  %6098 = vmatprep.subr.bf16.mxu1 %v12557_v4  ;;  %v1299_v2 = vld [vmem:[%s14396_s22 + $0x18e0] sm:$0xff]  ;;  %v14016_v3 = vmov 0   ;;  %v1296_v4 = vld [vmem:[%s14396_s22 + $0x18c8] sm:$0xff] }
 0x28e   : > { %v12611_v8 = vcombine.high %v1295_v1, %v1299_v2  ;;  %v12610_v15 = vcombine.low %v1295_v1, %v1299_v2  ;;  %v12612_v18 = vcombine.low %v1296_v4, %v1300_v5  ;;  %v514_v1 = vld [vmem:[%s14396_s22 + $0x58] sm:$0xff] }
 0x28f   : > { %v518_v2 = vld [vmem:[%s14396_s22 + $0x78] sm:$0xff] }
 0x290   : > { %5812 = vmatpush1.bf16.msra.mxu0 %v12554_v9  ;;  %6099 = vmatpush1.bf16.msra.mxu1 %v12556_v10  ;;  %v12613_v9 = vcombine.high %v1296_v4, %v1300_v5  ;;  %v1303_v10 = vld [vmem:[%s14396_s22 + $0x1900] sm:$0xff] }
 0x291   : > { %5813 = vmatprep.subr.bf16.mxu0 %v12563_v11  ;;  %6100 = vmatprep.subr.bf16.mxu1 %v12565_v12  ;;  %v1307_v11 = vld [vmem:[%s14396_s22 + $0x1920] sm:$0xff]  ;;  %v1304_v12 = vld [vmem:[%s14396_s22 + $0x1908] sm:$0xff] }
 0x292   : > { %v12619_v19 = vcombine.high %v1303_v10, %v1307_v11  ;;  %v12618_v28 = vcombine.low %v1303_v10, %v1307_v11  ;;  %v12620_v29 = vcombine.low %v1304_v12, %v1308_v14  ;;  %v522_v10 = vld [vmem:[%s14396_s22 + $0x98] sm:$0xff] }
 0x293   : > { %v526_v11 = vld [vmem:[%s14396_s22 + $0xb8] sm:$0xff] }
 0x294   : > { %5814 = vmatpush1.bf16.msra.mxu0 %v12562_v21  ;;  %6101 = vmatpush1.bf16.msra.mxu1 %v12564_v22  ;;  %v12621_v21 = vcombine.high %v1304_v12, %v1308_v14  ;;  %v1311_v22 = vld [vmem:[%s14396_s22 + $0x1940] sm:$0xff]  ;;  %v11832_v14 = vcombine.low %v514_v1, %v518_v2 }
 0x295   : > { %5815 = vmatprep.subr.bf16.mxu0 %v12571_v24  ;;  %6102 = vmatprep.subr.bf16.mxu1 %v12573_v25  ;;  %v1315_v24 = vld [vmem:[%s14396_s22 + $0x1960] sm:$0xff]  ;;  %v1312_v25 = vld [vmem:[%s14396_s22 + $0x1948] sm:$0xff] }
 0x296   : > { %v12627_v30 = vcombine.high %v1311_v22, %v1315_v24  ;;  %v12626_v36 = vcombine.low %v1311_v22, %v1315_v24  ;;  %v12628_v38 = vcombine.low %v1312_v25, %v1316_v27  ;;  %v530_v22 = vld [vmem:[%s14396_s22 + $0xd8] sm:$0xff] }
 0x297   : > { %v534_v24 = vld [vmem:[%s14396_s22 + $0xf8] sm:$0xff] }
 0x298   : > { %5816 = vmatpush1.bf16.msra.mxu0 %v12570_v31  ;;  %6103 = vmatpush1.bf16.msra.mxu1 %v12572_v32  ;;  %v12629_v31 = vcombine.high %v1312_v25, %v1316_v27  ;;  %v1319_v32 = vld [vmem:[%s14396_s22 + $0x1980] sm:$0xff]  ;;  %v11840_v27 = vcombine.low %v522_v10, %v526_v11 }
 0x299   : > { %5817 = vmatprep.subr.bf16.mxu0 %v12579_v33  ;;  %6104 = vmatprep.subr.bf16.mxu1 %v12581_v34  ;;  %v1323_v33 = vld [vmem:[%s14396_s22 + $0x19a0] sm:$0xff]  ;;  %v1320_v34 = vld [vmem:[%s14396_s22 + $0x1988] sm:$0xff] }
 0x29a   : > { %v12635_v39 = vcombine.high %v1319_v32, %v1323_v33  ;;  %v12634_v46 = vcombine.low %v1319_v32, %v1323_v33  ;;  %v12636_v48 = vcombine.low %v1320_v34, %v1324_v35  ;;  %v538_v32 = vld [vmem:[%s14396_s22 + $0x118] sm:$0xff] }
 0x29b   : > { %v542_v33 = vld [vmem:[%s14396_s22 + $0x138] sm:$0xff] }
 0x29c   : > { %5818 = vmatpush1.bf16.msra.mxu0 %v12578_v41  ;;  %6105 = vmatpush1.bf16.msra.mxu1 %v12580_v42  ;;  %v12637_v41 = vcombine.high %v1320_v34, %v1324_v35  ;;  %v1327_v42 = vld [vmem:[%s14396_s22 + $0x19c0] sm:$0xff] }
 0x29d   : > { %5828 = vmatprep.subr.bf16.mxu0 %v12587_v43  ;;  %6115 = vmatprep.subr.bf16.mxu1 %v12589_v44  ;;  %v1331_v43 = vld [vmem:[%s14396_s22 + $0x19e0] sm:$0xff]  ;;  %v1328_v44 = vld [vmem:[%s14396_s22 + $0x19c8] sm:$0xff] }
 0x29e   : > { %v12643_v49 = vcombine.high %v1327_v42, %v1331_v43  ;;  %v12642_v57 = vcombine.low %v1327_v42, %v1331_v43  ;;  %v12644_v59 = vcombine.low %v1328_v44, %v1332_v45  ;;  %v550_v42 = vld [vmem:[%s14396_s22 + $0x178] sm:$0xff] }
 0x29f   : > { %5820 = vmatmul.mubr.bf16.vlgmr.msra.gmra.mrb[0].mxu0 %v14896_v47  ;;  %6107 = vmatmul.mubr.bf16.vlgmr.msra.gmra.mrb[0].mxu1 %v14896_v47 }
 0x2a0   : > { %5829 = vmatpush1.bf16.msra.mxu0 %v12586_v50  ;;  %6116 = vmatpush1.bf16.msra.mxu1 %v12588_v51  ;;  %v12645_v50 = vcombine.high %v1328_v44, %v1332_v45  ;;  %v505_v51 = vld [vmem:[%s14396_s22 + $0x10] sm:$0xff]  ;;  %v11856_v44 = vcombine.low %v538_v32, %v542_v33 }
 0x2a1   : > { %5830 = vmatprep.subr.bf16.mxu0 %v12595_v52  ;;  %6117 = vmatprep.subr.bf16.mxu1 %v12597_v53  ;;  %v509_v52 = vld [vmem:[%s14396_s22 + $0x30] sm:$0xff]  ;;  %v506_v53 = vld [vmem:[%s14396_s22 + $0x18] sm:$0xff] }
 0x2a2   : > { %5860 = vmatprep.mubr.bf16.mxu0 %v14016_v3  ;;  %6147 = vmatprep.mubr.bf16.mxu1 %v14016_v3  ;;  %v11823_v20 = vcombine.high %v505_v51, %v509_v52  ;;  %v11822_v4 = vcombine.low %v505_v51, %v509_v52  ;;  %v11824_v5 = vcombine.low %v506_v53, %v510_v55  ;;  %v558_v51 = vld [vmem:[%s14396_s22 + $0x1b8] sm:$0xff] }
 0x2a4   : > { %5831 = vmatpush1.bf16.msra.mxu0 %v12594_v61  ;;  %6118 = vmatpush1.bf16.msra.mxu1 %v12596_v62  ;;  %v11825_v61 = vcombine.high %v506_v53, %v510_v55  ;;  %v513_v62 = vld [vmem:[%s14396_s22 + $0x50] sm:$0xff] }
 0x2a5   : > { %5832 = vmatprep.subr.bf16.mxu0 %v12603_v63  ;;  %6119 = vmatprep.subr.bf16.mxu1 %v12605_v0  ;;  %v517_v63 = vld [vmem:[%s14396_s22 + $0x70] sm:$0xff]  ;;  %v13572_v0 = vld [vmem:[#allocation3 + $0x30] ss:$0 sps:$4 sm:$0xff]  }
 0x2a6   : > { %v11830_v12 = vcombine.low %v513_v62, %v517_v63 }
 0x2a8   : > { %5833 = vmatpush1.bf16.msra.mxu0 %v12602_v6  ;;  %6120 = vmatpush1.bf16.msra.mxu1 %v12604_v7  ;;  %v11831_v6 = vcombine.high %v513_v62, %v517_v63  ;;  %v11833_v7 = vcombine.high %v514_v1, %v518_v2  ;;  %v566_v62 = vld [vmem:[%s14396_s22 + $0x1f8] sm:$0xff] }
 0x2a9   : > { %5834 = vmatprep.subr.bf16.mxu0 %v12611_v8  ;;  %6121 = vmatprep.subr.bf16.mxu1 %v12613_v9  ;;  %v521_v8 = vld [vmem:[%s14396_s22 + $0x90] sm:$0xff] }
 0x2aa   : > { %v525_v9 = vld [vmem:[%s14396_s22 + $0xb0] sm:$0xff] }
 0x2ab   : > { %v11838_v25 = vcombine.low %v521_v8, %v525_v9 }
 0x2ac   : > { %5835 = vmatpush1.bf16.msra.mxu0 %v12610_v15  ;;  %6122 = vmatpush1.bf16.msra.mxu1 %v12612_v18  ;;  %v11839_v15 = vcombine.high %v521_v8, %v525_v9  ;;  %v11841_v18 = vcombine.high %v522_v10, %v526_v11 }
 0x2ad   : > { %5836 = vmatprep.subr.bf16.mxu0 %v12619_v19  ;;  %6123 = vmatprep.subr.bf16.mxu1 %v12621_v21  ;;  %v529_v19 = vld [vmem:[%s14396_s22 + $0xd0] sm:$0xff] }
 0x2ae   : > { %v533_v21 = vld [vmem:[%s14396_s22 + $0xf0] sm:$0xff] }
 0x2af   : > { %v11846_v34 = vcombine.low %v529_v19, %v533_v21 }
 0x2b0   : > { %5837 = vmatpush1.bf16.msra.mxu0 %v12618_v28  ;;  %6124 = vmatpush1.bf16.msra.mxu1 %v12620_v29  ;;  %v11847_v28 = vcombine.high %v529_v19, %v533_v21  ;;  %v11849_v29 = vcombine.high %v530_v22, %v534_v24 }
 0x2b1   : > { %5838 = vmatprep.subr.bf16.mxu0 %v12627_v30  ;;  %6125 = vmatprep.subr.bf16.mxu1 %v12629_v31  ;;  %v537_v30 = vld [vmem:[%s14396_s22 + $0x110] sm:$0xff] }
 0x2b2   : > { %v541_v31 = vld [vmem:[%s14396_s22 + $0x130] sm:$0xff] }
 0x2b3   : > { %v11855_v35 = vcombine.high %v537_v30, %v541_v31  ;;  %v11854_v43 = vcombine.low %v537_v30, %v541_v31 }
 0x2b4   : > { %5839 = vmatpush1.bf16.msra.mxu0 %v12626_v36  ;;  %6126 = vmatpush1.bf16.msra.mxu1 %v12628_v38  ;;  %v11857_v36 = vcombine.high %v538_v32, %v542_v33  ;;  %v545_v38 = vld [vmem:[%s14396_s22 + $0x150] sm:$0xff] }
 0x2b5   : > { %5840 = vmatprep.subr.bf16.mxu0 %v12635_v39  ;;  %6127 = vmatprep.subr.bf16.mxu1 %v12637_v41  ;;  %v549_v39 = vld [vmem:[%s14396_s22 + $0x170] sm:$0xff]  ;;  %v546_v41 = vld [vmem:[%s14396_s22 + $0x158] sm:$0xff] }
 0x2b6   : > { %v11863_v45 = vcombine.high %v545_v38, %v549_v39  ;;  %v11862_v52 = vcombine.low %v545_v38, %v549_v39  ;;  %v11864_v53 = vcombine.low %v546_v41, %v550_v42 }
 0x2b8   : > { %5841 = vmatpush1.bf16.msra.mxu0 %v12634_v46  ;;  %6128 = vmatpush1.bf16.msra.mxu1 %v12636_v48  ;;  %v11865_v46 = vcombine.high %v546_v41, %v550_v42  ;;  %v553_v48 = vld [vmem:[%s14396_s22 + $0x190] sm:$0xff] }
 0x2b9   : > { %5842 = vmatprep.subr.bf16.mxu0 %v12643_v49  ;;  %6129 = vmatprep.subr.bf16.mxu1 %v12645_v50  ;;  %v557_v49 = vld [vmem:[%s14396_s22 + $0x1b0] sm:$0xff]  ;;  %v554_v50 = vld [vmem:[%s14396_s22 + $0x198] sm:$0xff] }
 0x2ba   : > { %v11871_v55 = vcombine.high %v553_v48, %v557_v49  ;;  %v11870_v63 = vcombine.low %v553_v48, %v557_v49 }
 0x2bc   : > { %5843 = vmatpush1.bf16.msra.mxu0 %v12642_v57  ;;  %6130 = vmatpush1.bf16.msra.mxu1 %v12644_v59  ;;  %v11873_v57 = vcombine.high %v554_v50, %v558_v51  ;;  %v561_v59 = vld [vmem:[%s14396_s22 + $0x1d0] sm:$0xff] }
 0x2bd   : > { %6156 = vmatprep.subr.bf16.mxu0 %v11823_v20  ;;  %6443 = vmatprep.subr.bf16.mxu1 %v11825_v61  ;;  %v565_v20 = vld [vmem:[%s14396_s22 + $0x1f0] sm:$0xff]  ;;  %v562_v61 = vld [vmem:[%s14396_s22 + $0x1d8] sm:$0xff] }
 0x2be   : > { %v11879_v1 = vcombine.high %v561_v59, %v565_v20  ;;  %v11881_v2 = vcombine.high %v562_v61, %v566_v62  ;;  %v11878_v8 = vcombine.low %v561_v59, %v565_v20  ;;  %v11880_v9 = vcombine.low %v562_v61, %v566_v62 }
 0x2bf   : > { %5861 = vmatmul.mubr.bf16.vlgmr.msra.gmra.mrb[0].mxu0 %v13572_v0  ;;  %6148 = vmatmul.mubr.bf16.vlgmr.msra.gmra.mrb[0].mxu1 %v13572_v0  ;;  %v11872_v0 = vcombine.low %v554_v50, %v558_v51 }
 0x2c0   : > { %6157 = vmatpush1.bf16.msra.mxu0 %v11822_v4  ;;  %6444 = vmatpush1.bf16.msra.mxu1 %v11824_v5  ;;  %v569_v4 = vld [vmem:[%s14396_s22 + $0x210] sm:$0xff] }
 0x2c1   : > { %6158 = vmatprep.subr.bf16.mxu0 %v11831_v6  ;;  %6445 = vmatprep.subr.bf16.mxu1 %v11833_v7  ;;  %v573_v5 = vld [vmem:[%s14396_s22 + $0x230] sm:$0xff]  ;;  %v570_v6 = vld [vmem:[%s14396_s22 + $0x218] sm:$0xff] }
 0x2c2   : > { %6188 = vmatprep.mubr.bf16.mxu0 %v14460_v58  ;;  %6475 = vmatprep.mubr.bf16.mxu1 %v14460_v58  ;;  %v11848_v58 = vcombine.low %v530_v22, %v534_v24  ;;  %v574_v7 = vld [vmem:[%s14396_s22 + $0x238] sm:$0xff]  ;;  %v11887_v10 = vcombine.high %v569_v4, %v573_v5  ;;  %v11886_v19 = vcombine.low %v569_v4, %v573_v5 }
 0x2c3   : > { %v11889_v11 = vcombine.high %v570_v6, %v574_v7  ;;  %v11888_v21 = vcombine.low %v570_v6, %v574_v7 }
 0x2c4   : > { %6159 = vmatpush1.bf16.msra.mxu0 %v11830_v12  ;;  %6446 = vmatpush1.bf16.msra.mxu1 %v11832_v14  ;;  %v577_v12 = vld [vmem:[%s14396_s22 + $0x250] sm:$0xff] }
 0x2c5   : > { %6160 = vmatprep.subr.bf16.mxu0 %v11839_v15  ;;  %6447 = vmatprep.subr.bf16.mxu1 %v11841_v18  ;;  %v581_v14 = vld [vmem:[%s14396_s22 + $0x270] sm:$0xff]  ;;  %v578_v15 = vld [vmem:[%s14396_s22 + $0x258] sm:$0xff] }
 0x2c6   : > { %v582_v18 = vld [vmem:[%s14396_s22 + $0x278] sm:$0xff]  ;;  %v11895_v22 = vcombine.high %v577_v12, %v581_v14  ;;  %v11894_v30 = vcombine.low %v577_v12, %v581_v14 }
 0x2c7   : > { %v11897_v24 = vcombine.high %v578_v15, %v582_v18  ;;  %v11896_v31 = vcombine.low %v578_v15, %v582_v18 }
 0x2c8   : > { %6161 = vmatpush1.bf16.msra.mxu0 %v11838_v25  ;;  %6448 = vmatpush1.bf16.msra.mxu1 %v11840_v27  ;;  %v585_v25 = vld [vmem:[%s14396_s22 + $0x290] sm:$0xff] }
 0x2c9   : > { %6162 = vmatprep.subr.bf16.mxu0 %v11847_v28  ;;  %6449 = vmatprep.subr.bf16.mxu1 %v11849_v29  ;;  %v589_v27 = vld [vmem:[%s14396_s22 + $0x2b0] sm:$0xff]  ;;  %v586_v28 = vld [vmem:[%s14396_s22 + $0x298] sm:$0xff] }
 0x2ca   : > { %v590_v29 = vld [vmem:[%s14396_s22 + $0x2b8] sm:$0xff]  ;;  %v11903_v32 = vcombine.high %v585_v25, %v589_v27  ;;  %v11902_v38 = vcombine.low %v585_v25, %v589_v27 }
 0x2cb   : > { %v11905_v33 = vcombine.high %v586_v28, %v590_v29  ;;  %v11904_v39 = vcombine.low %v586_v28, %v590_v29 }
 0x2cc   : > { %6163 = vmatpush1.bf16.msra.mxu0 %v11846_v34  ;;  %6450 = vmatpush1.bf16.msra.mxu1 %v11848_v58  ;;  %v593_v34 = vld [vmem:[%s14396_s22 + $0x2d0] sm:$0xff] }
 0x2cd   : > { %6164 = vmatprep.subr.bf16.mxu0 %v11855_v35  ;;  %6451 = vmatprep.subr.bf16.mxu1 %v11857_v36  ;;  %v597_v58 = vld [vmem:[%s14396_s22 + $0x2f0] sm:$0xff]  ;;  %v594_v35 = vld [vmem:[%s14396_s22 + $0x2d8] sm:$0xff] }
 0x2ce   : > { %v598_v36 = vld [vmem:[%s14396_s22 + $0x2f8] sm:$0xff]  ;;  %v11911_v41 = vcombine.high %v593_v34, %v597_v58  ;;  %v11910_v48 = vcombine.low %v593_v34, %v597_v58 }
 0x2cf   : > { %v11913_v42 = vcombine.high %v594_v35, %v598_v36  ;;  %v11912_v49 = vcombine.low %v594_v35, %v598_v36 }
 0x2d0   : > { %6165 = vmatpush1.bf16.msra.mxu0 %v11854_v43  ;;  %6452 = vmatpush1.bf16.msra.mxu1 %v11856_v44  ;;  %v601_v43 = vld [vmem:[%s14396_s22 + $0x310] sm:$0xff] }
 0x2d1   : > { %6166 = vmatprep.subr.bf16.mxu0 %v11863_v45  ;;  %6453 = vmatprep.subr.bf16.mxu1 %v11865_v46  ;;  %v605_v44 = vld [vmem:[%s14396_s22 + $0x330] sm:$0xff]  ;;  %v602_v45 = vld [vmem:[%s14396_s22 + $0x318] sm:$0xff] }
 0x2d2   : > { %v606_v46 = vld [vmem:[%s14396_s22 + $0x338] sm:$0xff]  ;;  %v11919_v50 = vcombine.high %v601_v43, %v605_v44  ;;  %v11918_v59 = vcombine.low %v601_v43, %v605_v44 }
 0x2d3   : > { %v11921_v51 = vcombine.high %v602_v45, %v606_v46  ;;  %v11920_v20 = vcombine.low %v602_v45, %v606_v46 }
 0x2d4   : > { %6167 = vmatpush1.bf16.msra.mxu0 %v11862_v52  ;;  %6454 = vmatpush1.bf16.msra.mxu1 %v11864_v53  ;;  %v609_v52 = vld [vmem:[%s14396_s22 + $0x350] sm:$0xff] }
 0x2d5   : > { %6168 = vmatprep.subr.bf16.mxu0 %v11871_v55  ;;  %6455 = vmatprep.subr.bf16.mxu1 %v11873_v57  ;;  %v613_v53 = vld [vmem:[%s14396_s22 + $0x370] sm:$0xff]  ;;  %v610_v55 = vld [vmem:[%s14396_s22 + $0x358] sm:$0xff] }
 0x2d6   : > { %v614_v57 = vld [vmem:[%s14396_s22 + $0x378] sm:$0xff]  ;;  %v11927_v61 = vcombine.high %v609_v52, %v613_v53  ;;  %v11926_v4 = vcombine.low %v609_v52, %v613_v53 }
 0x2d7   : > { %v11929_v62 = vcombine.high %v610_v55, %v614_v57  ;;  %v11928_v5 = vcombine.low %v610_v55, %v614_v57  ;;  %v665_v57 = vld [vmem:[%s14396_s22 + $0x510] sm:$0xff] }
 0x2d8   : > { %6169 = vmatpush1.bf16.msra.mxu0 %v11870_v63  ;;  %6456 = vmatpush1.bf16.msra.mxu1 %v11872_v0  ;;  %v617_v63 = vld [vmem:[%s14396_s22 + $0x390] sm:$0xff] }
 0x2d9   : > { %6170 = vmatprep.subr.bf16.mxu0 %v11879_v1  ;;  %6457 = vmatprep.subr.bf16.mxu1 %v11881_v2  ;;  %v621_v0 = vld [vmem:[%s14396_s22 + $0x3b0] sm:$0xff]  ;;  %v618_v1 = vld [vmem:[%s14396_s22 + $0x398] sm:$0xff] }
 0x2da   : > { %v622_v2 = vld [vmem:[%s14396_s22 + $0x3b8] sm:$0xff]  ;;  %v11935_v6 = vcombine.high %v617_v63, %v621_v0  ;;  %v11934_v12 = vcombine.low %v617_v63, %v621_v0 }
 0x2db   : > { %v11937_v7 = vcombine.high %v618_v1, %v622_v2  ;;  %v11936_v14 = vcombine.low %v618_v1, %v622_v2  ;;  %v673_v1 = vld [vmem:[%s14396_s22 + $0x550] sm:$0xff] }
 0x2dc   : > { %6171 = vmatpush1.bf16.msra.mxu0 %v11878_v8  ;;  %6458 = vmatpush1.bf16.msra.mxu1 %v11880_v9  ;;  %v625_v8 = vld [vmem:[%s14396_s22 + $0x3d0] sm:$0xff] }
 0x2dd   : > { %6172 = vmatprep.subr.bf16.mxu0 %v11887_v10  ;;  %6459 = vmatprep.subr.bf16.mxu1 %v11889_v11  ;;  %v629_v9 = vld [vmem:[%s14396_s22 + $0x3f0] sm:$0xff]  ;;  %v626_v10 = vld [vmem:[%s14396_s22 + $0x3d8] sm:$0xff] }
 0x2de   : > { %v630_v11 = vld [vmem:[%s14396_s22 + $0x3f8] sm:$0xff]  ;;  %v11943_v15 = vcombine.high %v625_v8, %v629_v9  ;;  %v11942_v25 = vcombine.low %v625_v8, %v629_v9  ;;  %v677_v2 = vld [vmem:[%s14396_s22 + $0x570] sm:$0xff] }
 0x2df   : > { %v11945_v18 = vcombine.high %v626_v10, %v630_v11  ;;  %v11944_v27 = vcombine.low %v626_v10, %v630_v11  ;;  %v11991_v8 = vcombine.high %v673_v1, %v677_v2  ;;  %v681_v10 = vld [vmem:[%s14396_s22 + $0x590] sm:$0xff] }
 0x2e0   : > { %6173 = vmatpush1.bf16.msra.mxu0 %v11886_v19  ;;  %6460 = vmatpush1.bf16.msra.mxu1 %v11888_v21  ;;  %v633_v19 = vld [vmem:[%s14396_s22 + $0x410] sm:$0xff] }
 0x2e1   : > { %6174 = vmatprep.subr.bf16.mxu0 %v11895_v22  ;;  %6461 = vmatprep.subr.bf16.mxu1 %v11897_v24  ;;  %v637_v21 = vld [vmem:[%s14396_s22 + $0x430] sm:$0xff]  ;;  %v634_v22 = vld [vmem:[%s14396_s22 + $0x418] sm:$0xff] }
 0x2e2   : > { %v638_v24 = vld [vmem:[%s14396_s22 + $0x438] sm:$0xff]  ;;  %v11951_v28 = vcombine.high %v633_v19, %v637_v21  ;;  %v11950_v34 = vcombine.low %v633_v19, %v637_v21  ;;  %v685_v11 = vld [vmem:[%s14396_s22 + $0x5b0] sm:$0xff] }
 0x2e3   : > { %v11953_v29 = vcombine.high %v634_v22, %v638_v24  ;;  %v11952_v58 = vcombine.low %v634_v22, %v638_v24  ;;  %v11999_v19 = vcombine.high %v681_v10, %v685_v11  ;;  %v689_v22 = vld [vmem:[%s14396_s22 + $0x5d0] sm:$0xff] }
 0x2e4   : > { %6175 = vmatpush1.bf16.msra.mxu0 %v11894_v30  ;;  %6462 = vmatpush1.bf16.msra.mxu1 %v11896_v31  ;;  %v641_v30 = vld [vmem:[%s14396_s22 + $0x450] sm:$0xff] }
 0x2e5   : > { %6176 = vmatprep.subr.bf16.mxu0 %v11903_v32  ;;  %6463 = vmatprep.subr.bf16.mxu1 %v11905_v33  ;;  %v645_v31 = vld [vmem:[%s14396_s22 + $0x470] sm:$0xff]  ;;  %v642_v32 = vld [vmem:[%s14396_s22 + $0x458] sm:$0xff] }
 0x2e6   : > { %v646_v33 = vld [vmem:[%s14396_s22 + $0x478] sm:$0xff]  ;;  %v11959_v35 = vcombine.high %v641_v30, %v645_v31  ;;  %v11958_v43 = vcombine.low %v641_v30, %v645_v31  ;;  %v693_v24 = vld [vmem:[%s14396_s22 + $0x5f0] sm:$0xff] }
 0x2e7   : > { %v11961_v36 = vcombine.high %v642_v32, %v646_v33  ;;  %v11960_v44 = vcombine.low %v642_v32, %v646_v33  ;;  %v12007_v30 = vcombine.high %v689_v22, %v693_v24  ;;  %v697_v32 = vld [vmem:[%s14396_s22 + $0x610] sm:$0xff] }
 0x2e8   : > { %6177 = vmatpush1.bf16.msra.mxu0 %v11902_v38  ;;  %6464 = vmatpush1.bf16.msra.mxu1 %v11904_v39  ;;  %v649_v38 = vld [vmem:[%s14396_s22 + $0x490] sm:$0xff] }
 0x2e9   : > { %6178 = vmatprep.subr.bf16.mxu0 %v11911_v41  ;;  %6465 = vmatprep.subr.bf16.mxu1 %v11913_v42  ;;  %v653_v39 = vld [vmem:[%s14396_s22 + $0x4b0] sm:$0xff]  ;;  %v650_v41 = vld [vmem:[%s14396_s22 + $0x498] sm:$0xff] }
 0x2ea   : > { %v654_v42 = vld [vmem:[%s14396_s22 + $0x4b8] sm:$0xff]  ;;  %v11967_v45 = vcombine.high %v649_v38, %v653_v39  ;;  %v701_v33 = vld [vmem:[%s14396_s22 + $0x630] sm:$0xff] }
 0x2eb   : > { %v11969_v46 = vcombine.high %v650_v41, %v654_v42  ;;  %v11968_v52 = vcombine.low %v650_v41, %v654_v42  ;;  %v705_v41 = vld [vmem:[%s14396_s22 + $0x650] sm:$0xff] }
 0x2ec   : > { %6179 = vmatpush1.bf16.msra.mxu0 %v11910_v48  ;;  %6466 = vmatpush1.bf16.msra.mxu1 %v11912_v49  ;;  %v657_v48 = vld [vmem:[%s14396_s22 + $0x4d0] sm:$0xff] }
 0x2ed   : > { %6180 = vmatprep.subr.bf16.mxu0 %v11919_v50  ;;  %6467 = vmatprep.subr.bf16.mxu1 %v11921_v51  ;;  %v661_v49 = vld [vmem:[%s14396_s22 + $0x4f0] sm:$0xff]  ;;  %v658_v50 = vld [vmem:[%s14396_s22 + $0x4d8] sm:$0xff] }
 0x2ee   : > { %v662_v51 = vld [vmem:[%s14396_s22 + $0x4f8] sm:$0xff]  ;;  %v11975_v53 = vcombine.high %v657_v48, %v661_v49  ;;  %v709_v42 = vld [vmem:[%s14396_s22 + $0x670] sm:$0xff] }
 0x2ef   : > { %v11977_v55 = vcombine.high %v658_v50, %v662_v51 }
 0x2f0   : > { %6181 = vmatpush1.bf16.msra.mxu0 %v11918_v59  ;;  %6468 = vmatpush1.bf16.msra.mxu1 %v11920_v20  ;;  %v669_v59 = vld [vmem:[%s14396_s22 + $0x530] sm:$0xff]  ;;  %v666_v20 = vld [vmem:[%s14396_s22 + $0x518] sm:$0xff] }
 0x2f1   : > { %6182 = vmatprep.subr.bf16.mxu0 %v11927_v61  ;;  %6469 = vmatprep.subr.bf16.mxu1 %v11929_v62  ;;  %v670_v61 = vld [vmem:[%s14396_s22 + $0x538] sm:$0xff]  ;;  %v11974_v62 = vcombine.low %v657_v48, %v661_v49  ;;  %v11983_v63 = vcombine.high %v665_v57, %v669_v59  ;;  %v12023_v48 = vcombine.high %v705_v41, %v709_v42 }
 0x2f2   : > { %v11985_v0 = vcombine.high %v666_v20, %v670_v61 }
 0x2f4   : > { %6183 = vmatpush1.bf16.msra.mxu0 %v11926_v4  ;;  %6470 = vmatpush1.bf16.msra.mxu1 %v11928_v5  ;;  %v674_v4 = vld [vmem:[%s14396_s22 + $0x558] sm:$0xff] }
 0x2f5   : > { %6184 = vmatprep.subr.bf16.mxu0 %v11935_v6  ;;  %6471 = vmatprep.subr.bf16.mxu1 %v11937_v7  ;;  %v678_v5 = vld [vmem:[%s14396_s22 + $0x578] sm:$0xff]  ;;  %v11982_v6 = vcombine.low %v665_v57, %v669_v59  ;;  %v11984_v7 = vcombine.low %v666_v20, %v670_v61  ;;  %v721_v20 = vld [vmem:[%s14396_s22 + $0x6d0] sm:$0xff] }
 0x2f6   : > { %v11993_v9 = vcombine.high %v674_v4, %v678_v5  ;;  %v725_v61 = vld [vmem:[%s14396_s22 + $0x6f0] sm:$0xff] }
 0x2f8   : > { %6185 = vmatpush1.bf16.msra.mxu0 %v11934_v12  ;;  %6472 = vmatpush1.bf16.msra.mxu1 %v11936_v14  ;;  %v682_v12 = vld [vmem:[%s14396_s22 + $0x598] sm:$0xff] }
 0x2f9   : > { %6186 = vmatprep.subr.bf16.mxu0 %v11943_v15  ;;  %6473 = vmatprep.subr.bf16.mxu1 %v11945_v18  ;;  %v686_v14 = vld [vmem:[%s14396_s22 + $0x5b8] sm:$0xff]  ;;  %v11990_v15 = vcombine.low %v673_v1, %v677_v2  ;;  %v11992_v18 = vcombine.low %v674_v4, %v678_v5  ;;  %v12039_v1 = vcombine.high %v721_v20, %v725_v61  ;;  %v729_v4 = vld [vmem:[%s14396_s22 + $0x710] sm:$0xff] }
 0x2fa   : > { %v12001_v21 = vcombine.high %v682_v12, %v686_v14  ;;  %v733_v5 = vld [vmem:[%s14396_s22 + $0x730] sm:$0xff] }
 0x2fc   : > { %6187 = vmatpush1.bf16.msra.mxu0 %v11942_v25  ;;  %6474 = vmatpush1.bf16.msra.mxu1 %v11944_v27  ;;  %v690_v25 = vld [vmem:[%s14396_s22 + $0x5d8] sm:$0xff] }
 0x2fd   : > { %6197 = vmatprep.subr.bf16.mxu0 %v11951_v28  ;;  %6484 = vmatprep.subr.bf16.mxu1 %v11953_v29  ;;  %v694_v27 = vld [vmem:[%s14396_s22 + $0x5f8] sm:$0xff]  ;;  %v11998_v28 = vcombine.low %v681_v10, %v685_v11  ;;  %v12000_v29 = vcombine.low %v682_v12, %v686_v14  ;;  %v12047_v10 = vcombine.high %v729_v4, %v733_v5  ;;  %v737_v12 = vld [vmem:[%s14396_s22 + $0x750] sm:$0xff] }
 0x2fe   : > { %v12009_v31 = vcombine.high %v690_v25, %v694_v27  ;;  %v741_v14 = vld [vmem:[%s14396_s22 + $0x770] sm:$0xff] }
 0x2ff   : > { %6189 = vmatmul.mubr.bf16.vlgmr.msra.gmra.mrb[4].mxu0 %v14506_v13  ;;  %6476 = vmatmul.mubr.bf16.vlgmr.msra.gmra.mrb[4].mxu1 %v14506_v13  ;;  %v11966_v13 = vcombine.low %v649_v38, %v653_v39  ;;  %v12015_v38 = vcombine.high %v697_v32, %v701_v33 }
 0x300   : > { %6198 = vmatpush1.bf16.msra.mxu0 %v11950_v34  ;;  %6485 = vmatpush1.bf16.msra.mxu1 %v11952_v58  ;;  %v698_v34 = vld [vmem:[%s14396_s22 + $0x618] sm:$0xff] }
 0x301   : > { %6199 = vmatprep.subr.bf16.mxu0 %v11959_v35  ;;  %6486 = vmatprep.subr.bf16.mxu1 %v11961_v36  ;;  %v702_v58 = vld [vmem:[%s14396_s22 + $0x638] sm:$0xff]  ;;  %v12006_v35 = vcombine.low %v689_v22, %v693_v24  ;;  %v12008_v36 = vcombine.low %v690_v25, %v694_v27  ;;  %v12055_v22 = vcombine.high %v737_v12, %v741_v14  ;;  %v745_v25 = vld [vmem:[%s14396_s22 + $0x790] sm:$0xff] }
 0x302   : > { %6229 = vmatprep.mubr.bf16.mxu0 %v14516_v54  ;;  %6516 = vmatprep.mubr.bf16.mxu1 %v14516_v54  ;;  %v11976_v54 = vcombine.low %v658_v50, %v662_v51  ;;  %v12017_v39 = vcombine.high %v698_v34, %v702_v58  ;;  %v713_v50 = vld [vmem:[%s14396_s22 + $0x690] sm:$0xff] }
 0x303   : > { %v717_v51 = vld [vmem:[%s14396_s22 + $0x6b0] sm:$0xff] }
 0x304   : > { %6200 = vmatpush1.bf16.msra.mxu0 %v11958_v43  ;;  %6487 = vmatpush1.bf16.msra.mxu1 %v11960_v44  ;;  %v706_v43 = vld [vmem:[%s14396_s22 + $0x658] sm:$0xff]  ;;  %v12031_v57 = vcombine.high %v713_v50, %v717_v51  ;;  %v749_v27 = vld [vmem:[%s14396_s22 + $0x7b0] sm:$0xff] }
 0x305   : > { %6201 = vmatprep.subr.bf16.mxu0 %v11967_v45  ;;  %6488 = vmatprep.subr.bf16.mxu1 %v11969_v46  ;;  %v710_v44 = vld [vmem:[%s14396_s22 + $0x678] sm:$0xff]  ;;  %v12014_v45 = vcombine.low %v697_v32, %v701_v33  ;;  %v12016_v46 = vcombine.low %v698_v34, %v702_v58  ;;  %v12063_v32 = vcombine.high %v745_v25, %v749_v27  ;;  %v753_v34 = vld [vmem:[%s14396_s22 + $0x7d0] sm:$0xff] }
 0x306   : > { %v12025_v49 = vcombine.high %v706_v43, %v710_v44  ;;  %v757_v58 = vld [vmem:[%s14396_s22 + $0x7f0] sm:$0xff] }
 0x308   : > { %6202 = vmatpush1.bf16.msra.mxu0 %v11966_v13  ;;  %6489 = vmatpush1.bf16.msra.mxu1 %v11968_v52  ;;  %v714_v13 = vld [vmem:[%s14396_s22 + $0x698] sm:$0xff] }
 0x309   : > { %6203 = vmatprep.subr.bf16.mxu0 %v11975_v53  ;;  %6490 = vmatprep.subr.bf16.mxu1 %v11977_v55  ;;  %v718_v52 = vld [vmem:[%s14396_s22 + $0x6b8] sm:$0xff]  ;;  %v12022_v53 = vcombine.low %v705_v41, %v709_v42  ;;  %v12024_v55 = vcombine.low %v706_v43, %v710_v44  ;;  %v12071_v41 = vcombine.high %v753_v34, %v757_v58  ;;  %v761_v43 = vld [vmem:[%s14396_s22 + $0x810] sm:$0xff] }
 0x30a   : > { %v12033_v59 = vcombine.high %v714_v13, %v718_v52  ;;  %v765_v44 = vld [vmem:[%s14396_s22 + $0x830] sm:$0xff] }
 0x30c   : > { %6204 = vmatpush1.bf16.msra.mxu0 %v11974_v62  ;;  %6491 = vmatpush1.bf16.msra.mxu1 %v11976_v54  ;;  %v722_v62 = vld [vmem:[%s14396_s22 + $0x6d8] sm:$0xff] }
 0x30d   : > { %6205 = vmatprep.subr.bf16.mxu0 %v11983_v63  ;;  %6492 = vmatprep.subr.bf16.mxu1 %v11985_v0  ;;  %v726_v54 = vld [vmem:[%s14396_s22 + $0x6f8] sm:$0xff]  ;;  %v12030_v63 = vcombine.low %v713_v50, %v717_v51  ;;  %v12032_v0 = vcombine.low %v714_v13, %v718_v52  ;;  %v12079_v50 = vcombine.high %v761_v43, %v765_v44  ;;  %v769_v13 = vld [vmem:[%s14396_s22 + $0x850] sm:$0xff] }
 0x30e   : > { %v12041_v2 = vcombine.high %v722_v62, %v726_v54  ;;  %v773_v52 = vld [vmem:[%s14396_s22 + $0x870] sm:$0xff] }
 0x310   : > { %6206 = vmatpush1.bf16.msra.mxu0 %v11982_v6  ;;  %6493 = vmatpush1.bf16.msra.mxu1 %v11984_v7  ;;  %v730_v6 = vld [vmem:[%s14396_s22 + $0x718] sm:$0xff] }
 0x311   : > { %6207 = vmatprep.subr.bf16.mxu0 %v11991_v8  ;;  %6494 = vmatprep.subr.bf16.mxu1 %v11993_v9  ;;  %v734_v7 = vld [vmem:[%s14396_s22 + $0x738] sm:$0xff]  ;;  %v12038_v8 = vcombine.low %v721_v20, %v725_v61  ;;  %v12040_v9 = vcombine.low %v722_v62, %v726_v54  ;;  %v12087_v20 = vcombine.high %v769_v13, %v773_v52  ;;  %v777_v62 = vld [vmem:[%s14396_s22 + $0x890] sm:$0xff] }
 0x312   : > { %v12049_v11 = vcombine.high %v730_v6, %v734_v7  ;;  %v781_v54 = vld [vmem:[%s14396_s22 + $0x8b0] sm:$0xff] }
 0x314   : > { %6208 = vmatpush1.bf16.msra.mxu0 %v11990_v15  ;;  %6495 = vmatpush1.bf16.msra.mxu1 %v11992_v18  ;;  %v738_v15 = vld [vmem:[%s14396_s22 + $0x758] sm:$0xff] }
 0x315   : > { %6209 = vmatprep.subr.bf16.mxu0 %v11999_v19  ;;  %6496 = vmatprep.subr.bf16.mxu1 %v12001_v21  ;;  %v742_v18 = vld [vmem:[%s14396_s22 + $0x778] sm:$0xff]  ;;  %v12046_v19 = vcombine.low %v729_v4, %v733_v5  ;;  %v12048_v21 = vcombine.low %v730_v6, %v734_v7  ;;  %v12095_v4 = vcombine.high %v777_v62, %v781_v54  ;;  %v785_v6 = vld [vmem:[%s14396_s22 + $0x8d0] sm:$0xff] }
 0x316   : > { %v12057_v24 = vcombine.high %v738_v15, %v742_v18  ;;  %v789_v7 = vld [vmem:[%s14396_s22 + $0x8f0] sm:$0xff] }
 0x318   : > { %6210 = vmatpush1.bf16.msra.mxu0 %v11998_v28  ;;  %6497 = vmatpush1.bf16.msra.mxu1 %v12000_v29  ;;  %v746_v28 = vld [vmem:[%s14396_s22 + $0x798] sm:$0xff] }
 0x319   : > { %6211 = vmatprep.subr.bf16.mxu0 %v12007_v30  ;;  %6498 = vmatprep.subr.bf16.mxu1 %v12009_v31  ;;  %v750_v29 = vld [vmem:[%s14396_s22 + $0x7b8] sm:$0xff]  ;;  %v12054_v30 = vcombine.low %v737_v12, %v741_v14  ;;  %v12056_v31 = vcombine.low %v738_v15, %v742_v18  ;;  %v793_v14 = vld [vmem:[%s14396_s22 + $0x910] sm:$0xff] }
 0x31a   : > { %v12065_v33 = vcombine.high %v746_v28, %v750_v29  ;;  %v797_v15 = vld [vmem:[%s14396_s22 + $0x930] sm:$0xff]  ;;  %v794_v18 = vld [vmem:[%s14396_s22 + $0x918] sm:$0xff] }
 0x31c   : > { %6212 = vmatpush1.bf16.msra.mxu0 %v12006_v35  ;;  %6499 = vmatpush1.bf16.msra.mxu1 %v12008_v36  ;;  %v754_v35 = vld [vmem:[%s14396_s22 + $0x7d8] sm:$0xff] }
 0x31d   : > { %6213 = vmatprep.subr.bf16.mxu0 %v12015_v38  ;;  %6500 = vmatprep.subr.bf16.mxu1 %v12017_v39  ;;  %v758_v36 = vld [vmem:[%s14396_s22 + $0x7f8] sm:$0xff]  ;;  %v12062_v38 = vcombine.low %v745_v25, %v749_v27  ;;  %v12064_v39 = vcombine.low %v746_v28, %v750_v29  ;;  %v801_v25 = vld [vmem:[%s14396_s22 + $0x950] sm:$0xff] }
 0x31e   : > { %v12073_v42 = vcombine.high %v754_v35, %v758_v36  ;;  %v805_v27 = vld [vmem:[%s14396_s22 + $0x970] sm:$0xff]  ;;  %v802_v28 = vld [vmem:[%s14396_s22 + $0x958] sm:$0xff] }
 0x31f   : > { %v806_v29 = vld [vmem:[%s14396_s22 + $0x978] sm:$0xff] }
 0x320   : > { %6214 = vmatpush1.bf16.msra.mxu0 %v12014_v45  ;;  %6501 = vmatpush1.bf16.msra.mxu1 %v12016_v46  ;;  %v762_v45 = vld [vmem:[%s14396_s22 + $0x818] sm:$0xff] }
 0x321   : > { %6215 = vmatprep.subr.bf16.mxu0 %v12023_v48  ;;  %6502 = vmatprep.subr.bf16.mxu1 %v12025_v49  ;;  %v766_v46 = vld [vmem:[%s14396_s22 + $0x838] sm:$0xff]  ;;  %v12070_v48 = vcombine.low %v753_v34, %v757_v58  ;;  %v12072_v49 = vcombine.low %v754_v35, %v758_v36  ;;  %v809_v34 = vld [vmem:[%s14396_s22 + $0x990] sm:$0xff] }
 0x322   : > { %v12081_v51 = vcombine.high %v762_v45, %v766_v46  ;;  %v813_v58 = vld [vmem:[%s14396_s22 + $0x9b0] sm:$0xff]  ;;  %v810_v35 = vld [vmem:[%s14396_s22 + $0x998] sm:$0xff] }
 0x323   : > { %v814_v36 = vld [vmem:[%s14396_s22 + $0x9b8] sm:$0xff] }
 0x324   : > { %6216 = vmatpush1.bf16.msra.mxu0 %v12022_v53  ;;  %6503 = vmatpush1.bf16.msra.mxu1 %v12024_v55  ;;  %v770_v53 = vld [vmem:[%s14396_s22 + $0x858] sm:$0xff] }
 0x325   : > { %6217 = vmatprep.subr.bf16.mxu0 %v12031_v57  ;;  %6504 = vmatprep.subr.bf16.mxu1 %v12033_v59  ;;  %v774_v55 = vld [vmem:[%s14396_s22 + $0x878] sm:$0xff]  ;;  %v12078_v57 = vcombine.low %v761_v43, %v765_v44  ;;  %v12080_v59 = vcombine.low %v762_v45, %v766_v46  ;;  %v817_v43 = vld [vmem:[%s14396_s22 + $0x9d0] sm:$0xff] }
 0x326   : > { %v12089_v61 = vcombine.high %v770_v53, %v774_v55  ;;  %v821_v44 = vld [vmem:[%s14396_s22 + $0x9f0] sm:$0xff]  ;;  %v818_v45 = vld [vmem:[%s14396_s22 + $0x9d8] sm:$0xff] }
 0x327   : > { %v822_v46 = vld [vmem:[%s14396_s22 + $0x9f8] sm:$0xff] }
 0x328   : > { %6218 = vmatpush1.bf16.msra.mxu0 %v12030_v63  ;;  %6505 = vmatpush1.bf16.msra.mxu1 %v12032_v0  ;;  %v778_v63 = vld [vmem:[%s14396_s22 + $0x898] sm:$0xff] }
 0x329   : > { %6219 = vmatprep.subr.bf16.mxu0 %v12039_v1  ;;  %6506 = vmatprep.subr.bf16.mxu1 %v12041_v2  ;;  %v782_v0 = vld [vmem:[%s14396_s22 + $0x8b8] sm:$0xff]  ;;  %v12086_v1 = vcombine.low %v769_v13, %v773_v52  ;;  %v12088_v2 = vcombine.low %v770_v53, %v774_v55  ;;  %v825_v13 = vld [vmem:[%s14396_s22 + $0xa10] sm:$0xff] }
 0x32a   : > { %v12097_v5 = vcombine.high %v778_v63, %v782_v0  ;;  %v829_v52 = vld [vmem:[%s14396_s22 + $0xa30] sm:$0xff]  ;;  %v826_v53 = vld [vmem:[%s14396_s22 + $0xa18] sm:$0xff] }
 0x32b   : > { %v830_v55 = vld [vmem:[%s14396_s22 + $0xa38] sm:$0xff] }
 0x32c   : > { %6220 = vmatpush1.bf16.msra.mxu0 %v12038_v8  ;;  %6507 = vmatpush1.bf16.msra.mxu1 %v12040_v9  ;;  %v786_v8 = vld [vmem:[%s14396_s22 + $0x8d8] sm:$0xff] }
 0x32d   : > { %6221 = vmatprep.subr.bf16.mxu0 %v12047_v10  ;;  %6508 = vmatprep.subr.bf16.mxu1 %v12049_v11  ;;  %v790_v9 = vld [vmem:[%s14396_s22 + $0x8f8] sm:$0xff]  ;;  %v12096_v10 = vcombine.low %v778_v63, %v782_v0  ;;  %v12103_v11 = vcombine.high %v785_v6, %v789_v7 }
 0x32e   : > { %v12105_v12 = vcombine.high %v786_v8, %v790_v9  ;;  %v834_v63 = vld [vmem:[%s14396_s22 + $0xa58] sm:$0xff] }
 0x32f   : > { %v838_v0 = vld [vmem:[%s14396_s22 + $0xa78] sm:$0xff] }
 0x330   : > { %6222 = vmatpush1.bf16.msra.mxu0 %v12046_v19  ;;  %6509 = vmatpush1.bf16.msra.mxu1 %v12048_v21  ;;  %v798_v19 = vld [vmem:[%s14396_s22 + $0x938] sm:$0xff]  ;;  %v12102_v21 = vcombine.low %v785_v6, %v789_v7  ;;  %v841_v6 = vld [vmem:[%s14396_s22 + $0xa90] sm:$0xff] }
 0x331   : > { %6223 = vmatprep.subr.bf16.mxu0 %v12055_v22  ;;  %6510 = vmatprep.subr.bf16.mxu1 %v12057_v24  ;;  %v12111_v22 = vcombine.high %v793_v14, %v797_v15  ;;  %v12113_v24 = vcombine.high %v794_v18, %v798_v19  ;;  %v845_v7 = vld [vmem:[%s14396_s22 + $0xab0] sm:$0xff] }
 0x334   : > { %6224 = vmatpush1.bf16.msra.mxu0 %v12054_v30  ;;  %6511 = vmatpush1.bf16.msra.mxu1 %v12056_v31  ;;  %v12110_v30 = vcombine.low %v793_v14, %v797_v15  ;;  %v12112_v31 = vcombine.low %v794_v18, %v798_v19  ;;  %v849_v14 = vld [vmem:[%s14396_s22 + $0xad0] sm:$0xff]  ;;  %v850_v18 = vld [vmem:[%s14396_s22 + $0xad8] sm:$0xff] }
 0x335   : > { %6225 = vmatprep.subr.bf16.mxu0 %v12063_v32  ;;  %6512 = vmatprep.subr.bf16.mxu1 %v12065_v33  ;;  %v12119_v32 = vcombine.high %v801_v25, %v805_v27  ;;  %v12121_v33 = vcombine.high %v802_v28, %v806_v29  ;;  %v853_v15 = vld [vmem:[%s14396_s22 + $0xaf0] sm:$0xff]  ;;  %v854_v19 = vld [vmem:[%s14396_s22 + $0xaf8] sm:$0xff] }
 0x338   : > { %6226 = vmatpush1.bf16.msra.mxu0 %v12062_v38  ;;  %6513 = vmatpush1.bf16.msra.mxu1 %v12064_v39  ;;  %v12118_v38 = vcombine.low %v801_v25, %v805_v27  ;;  %v12120_v39 = vcombine.low %v802_v28, %v806_v29  ;;  %v857_v25 = vld [vmem:[%s14396_s22 + $0xb10] sm:$0xff]  ;;  %v858_v28 = vld [vmem:[%s14396_s22 + $0xb18] sm:$0xff] }
 0x339   : > { %6227 = vmatprep.subr.bf16.mxu0 %v12071_v41  ;;  %6514 = vmatprep.subr.bf16.mxu1 %v12073_v42  ;;  %v12127_v41 = vcombine.high %v809_v34, %v813_v58  ;;  %v12129_v42 = vcombine.high %v810_v35, %v814_v36  ;;  %v861_v27 = vld [vmem:[%s14396_s22 + $0xb30] sm:$0xff]  ;;  %v862_v29 = vld [vmem:[%s14396_s22 + $0xb38] sm:$0xff] }
 0x33c   : > { %6228 = vmatpush1.bf16.msra.mxu0 %v12070_v48  ;;  %6515 = vmatpush1.bf16.msra.mxu1 %v12072_v49  ;;  %v12126_v48 = vcombine.low %v809_v34, %v813_v58  ;;  %v12128_v49 = vcombine.low %v810_v35, %v814_v36  ;;  %v865_v34 = vld [vmem:[%s14396_s22 + $0xb50] sm:$0xff]  ;;  %v866_v35 = vld [vmem:[%s14396_s22 + $0xb58] sm:$0xff] }
 0x33d   : > { %6238 = vmatprep.subr.bf16.mxu0 %v12079_v50  ;;  %6525 = vmatprep.subr.bf16.mxu1 %v12081_v51  ;;  %v12135_v50 = vcombine.high %v817_v43, %v821_v44  ;;  %v12137_v51 = vcombine.high %v818_v45, %v822_v46  ;;  %v869_v58 = vld [vmem:[%s14396_s22 + $0xb70] sm:$0xff]  ;;  %v870_v36 = vld [vmem:[%s14396_s22 + $0xb78] sm:$0xff] }
 0x33f   : > { %6230 = vmatmul.mubr.bf16.vlgmr.msra.gmra.mrb[4].mxu0 %v14584_v23  ;;  %6517 = vmatmul.mubr.bf16.vlgmr.msra.gmra.mrb[4].mxu1 %v14584_v23  ;;  %v12094_v23 = vcombine.low %v777_v62, %v781_v54  ;;  %v833_v62 = vld [vmem:[%s14396_s22 + $0xa50] sm:$0xff] }
 0x340   : > { %6239 = vmatpush1.bf16.msra.mxu0 %v12078_v57  ;;  %6526 = vmatpush1.bf16.msra.mxu1 %v12080_v59  ;;  %v12134_v57 = vcombine.low %v817_v43, %v821_v44  ;;  %v12136_v59 = vcombine.low %v818_v45, %v822_v46  ;;  %v837_v54 = vld [vmem:[%s14396_s22 + $0xa70] sm:$0xff]  ;;  %v874_v45 = vld [vmem:[%s14396_s22 + $0xb98] sm:$0xff] }
 0x341   : > { %6240 = vmatprep.subr.bf16.mxu0 %v12087_v20  ;;  %6527 = vmatprep.subr.bf16.mxu1 %v12089_v61  ;;  %v12143_v20 = vcombine.high %v825_v13, %v829_v52  ;;  %v12145_v61 = vcombine.high %v826_v53, %v830_v55  ;;  %v873_v43 = vld [vmem:[%s14396_s22 + $0xb90] sm:$0xff]  ;;  %v878_v46 = vld [vmem:[%s14396_s22 + $0xbb8] sm:$0xff] }
 0x342   : > { %6270 = vmatprep.mubr.bf16.mxu0 %v14594_v16  ;;  %6557 = vmatprep.mubr.bf16.mxu1 %v14594_v16  ;;  %v12104_v16 = vcombine.low %v786_v8, %v790_v9  ;;  %v842_v8 = vld [vmem:[%s14396_s22 + $0xa98] sm:$0xff]  ;;  %v877_v44 = vld [vmem:[%s14396_s22 + $0xbb0] sm:$0xff] }
 0x343   : > { %v846_v9 = vld [vmem:[%s14396_s22 + $0xab8] sm:$0xff] }
 0x344   : > { %6241 = vmatpush1.bf16.msra.mxu0 %v12086_v1  ;;  %6528 = vmatpush1.bf16.msra.mxu1 %v12088_v2  ;;  %v12142_v1 = vcombine.low %v825_v13, %v829_v52  ;;  %v12144_v2 = vcombine.low %v826_v53, %v830_v55  ;;  %v881_v13 = vld [vmem:[%s14396_s22 + $0xbd0] sm:$0xff]  ;;  %v882_v53 = vld [vmem:[%s14396_s22 + $0xbd8] sm:$0xff] }
 0x345   : > { %6242 = vmatprep.subr.bf16.mxu0 %v12095_v4  ;;  %6529 = vmatprep.subr.bf16.mxu1 %v12097_v5  ;;  %v12151_v4 = vcombine.high %v833_v62, %v837_v54  ;;  %v12153_v5 = vcombine.high %v834_v63, %v838_v0  ;;  %v885_v52 = vld [vmem:[%s14396_s22 + $0xbf0] sm:$0xff]  ;;  %v886_v55 = vld [vmem:[%s14396_s22 + $0xbf8] sm:$0xff] }
 0x348   : > { %6243 = vmatpush1.bf16.msra.mxu0 %v12094_v23  ;;  %6530 = vmatpush1.bf16.msra.mxu1 %v12096_v10  ;;  %v12150_v23 = vcombine.low %v833_v62, %v837_v54  ;;  %v12152_v10 = vcombine.low %v834_v63, %v838_v0  ;;  %v889_v62 = vld [vmem:[%s14396_s22 + $0xc10] sm:$0xff]  ;;  %v890_v63 = vld [vmem:[%s14396_s22 + $0xc18] sm:$0xff] }
 0x349   : > { %6244 = vmatprep.subr.bf16.mxu0 %v12103_v11  ;;  %6531 = vmatprep.subr.bf16.mxu1 %v12105_v12  ;;  %v12159_v11 = vcombine.high %v841_v6, %v845_v7  ;;  %v12161_v12 = vcombine.high %v842_v8, %v846_v9  ;;  %v893_v54 = vld [vmem:[%s14396_s22 + $0xc30] sm:$0xff]  ;;  %v894_v0 = vld [vmem:[%s14396_s22 + $0xc38] sm:$0xff] }
 0x34c   : > { %6245 = vmatpush1.bf16.msra.mxu0 %v12102_v21  ;;  %6532 = vmatpush1.bf16.msra.mxu1 %v12104_v16  ;;  %v12158_v21 = vcombine.low %v841_v6, %v845_v7  ;;  %v12160_v16 = vcombine.low %v842_v8, %v846_v9  ;;  %v897_v6 = vld [vmem:[%s14396_s22 + $0xc50] sm:$0xff]  ;;  %v898_v8 = vld [vmem:[%s14396_s22 + $0xc58] sm:$0xff] }
 0x34d   : > { %6246 = vmatprep.subr.bf16.mxu0 %v12111_v22  ;;  %6533 = vmatprep.subr.bf16.mxu1 %v12113_v24  ;;  %v12167_v22 = vcombine.high %v849_v14, %v853_v15  ;;  %v12169_v24 = vcombine.high %v850_v18, %v854_v19  ;;  %v901_v7 = vld [vmem:[%s14396_s22 + $0xc70] sm:$0xff]  ;;  %v902_v9 = vld [vmem:[%s14396_s22 + $0xc78] sm:$0xff] }
 0x350   : > { %6247 = vmatpush1.bf16.msra.mxu0 %v12110_v30  ;;  %6534 = vmatpush1.bf16.msra.mxu1 %v12112_v31  ;;  %v12166_v30 = vcombine.low %v849_v14, %v853_v15  ;;  %v12168_v31 = vcombine.low %v850_v18, %v854_v19  ;;  %v905_v14 = vld [vmem:[%s14396_s22 + $0xc90] sm:$0xff]  ;;  %v906_v18 = vld [vmem:[%s14396_s22 + $0xc98] sm:$0xff] }
 0x351   : > { %6248 = vmatprep.subr.bf16.mxu0 %v12119_v32  ;;  %6535 = vmatprep.subr.bf16.mxu1 %v12121_v33  ;;  %v12175_v32 = vcombine.high %v857_v25, %v861_v27  ;;  %v12177_v33 = vcombine.high %v858_v28, %v862_v29  ;;  %v909_v15 = vld [vmem:[%s14396_s22 + $0xcb0] sm:$0xff]  ;;  %v910_v19 = vld [vmem:[%s14396_s22 + $0xcb8] sm:$0xff] }
 0x354   : > { %6249 = vmatpush1.bf16.msra.mxu0 %v12118_v38  ;;  %6536 = vmatpush1.bf16.msra.mxu1 %v12120_v39  ;;  %v12174_v38 = vcombine.low %v857_v25, %v861_v27  ;;  %v12176_v39 = vcombine.low %v858_v28, %v862_v29  ;;  %v913_v25 = vld [vmem:[%s14396_s22 + $0xcd0] sm:$0xff]  ;;  %v914_v28 = vld [vmem:[%s14396_s22 + $0xcd8] sm:$0xff] }
 0x355   : > { %6250 = vmatprep.subr.bf16.mxu0 %v12127_v41  ;;  %6537 = vmatprep.subr.bf16.mxu1 %v12129_v42  ;;  %v12183_v41 = vcombine.high %v865_v34, %v869_v58  ;;  %v12185_v42 = vcombine.high %v866_v35, %v870_v36  ;;  %v917_v27 = vld [vmem:[%s14396_s22 + $0xcf0] sm:$0xff]  ;;  %v918_v29 = vld [vmem:[%s14396_s22 + $0xcf8] sm:$0xff] }
 0x358   : > { %6251 = vmatpush1.bf16.msra.mxu0 %v12126_v48  ;;  %6538 = vmatpush1.bf16.msra.mxu1 %v12128_v49  ;;  %v12182_v48 = vcombine.low %v865_v34, %v869_v58  ;;  %v12184_v49 = vcombine.low %v866_v35, %v870_v36  ;;  %v925_v34 = vld [vmem:[%s14396_s22 + $0xd30] sm:$0xff]  ;;  %v922_v58 = vld [vmem:[%s14396_s22 + $0xd18] sm:$0xff]  ;;  %v12230_v36 = vcombine.low %v913_v25, %v917_v27 }
 0x359   : > { %6252 = vmatprep.subr.bf16.mxu0 %v12135_v50  ;;  %6539 = vmatprep.subr.bf16.mxu1 %v12137_v51  ;;  %v12191_v50 = vcombine.high %v873_v43, %v877_v44  ;;  %v12193_v51 = vcombine.high %v874_v45, %v878_v46  ;;  %v926_v35 = vld [vmem:[%s14396_s22 + $0xd38] sm:$0xff] }
 0x35c   : > { %6253 = vmatpush1.bf16.msra.mxu0 %v12134_v57  ;;  %6540 = vmatpush1.bf16.msra.mxu1 %v12136_v59  ;;  %v12190_v57 = vcombine.low %v873_v43, %v877_v44  ;;  %v12192_v59 = vcombine.low %v874_v45, %v878_v46  ;;  %v930_v43 = vld [vmem:[%s14396_s22 + $0xd58] sm:$0xff]  ;;  %v12240_v46 = vcombine.low %v922_v58, %v926_v35 }
 0x35d   : > { %6254 = vmatprep.subr.bf16.mxu0 %v12143_v20  ;;  %6541 = vmatprep.subr.bf16.mxu1 %v12145_v61  ;;  %v12199_v20 = vcombine.high %v881_v13, %v885_v52  ;;  %v12201_v61 = vcombine.high %v882_v53, %v886_v55  ;;  %v934_v44 = vld [vmem:[%s14396_s22 + $0xd78] sm:$0xff] }
 0x360   : > { %6255 = vmatpush1.bf16.msra.mxu0 %v12142_v1  ;;  %6542 = vmatpush1.bf16.msra.mxu1 %v12144_v2  ;;  %v12198_v1 = vcombine.low %v881_v13, %v885_v52  ;;  %v12200_v2 = vcombine.low %v882_v53, %v886_v55  ;;  %v938_v13 = vld [vmem:[%s14396_s22 + $0xd98] sm:$0xff]  ;;  %v12248_v55 = vcombine.low %v930_v43, %v934_v44 }
 0x361   : > { %6256 = vmatprep.subr.bf16.mxu0 %v12151_v4  ;;  %6543 = vmatprep.subr.bf16.mxu1 %v12153_v5  ;;  %v12207_v4 = vcombine.high %v889_v62, %v893_v54  ;;  %v12209_v5 = vcombine.high %v890_v63, %v894_v0  ;;  %v942_v52 = vld [vmem:[%s14396_s22 + $0xdb8] sm:$0xff] }
 0x364   : > { %6257 = vmatpush1.bf16.msra.mxu0 %v12150_v23  ;;  %6544 = vmatpush1.bf16.msra.mxu1 %v12152_v10  ;;  %v12206_v23 = vcombine.low %v889_v62, %v893_v54  ;;  %v12208_v10 = vcombine.low %v890_v63, %v894_v0  ;;  %v949_v62 = vld [vmem:[%s14396_s22 + $0xdf0] sm:$0xff]  ;;  %v946_v0 = vld [vmem:[%s14396_s22 + $0xdd8] sm:$0xff] }
 0x365   : > { %6258 = vmatprep.subr.bf16.mxu0 %v12159_v11  ;;  %6545 = vmatprep.subr.bf16.mxu1 %v12161_v12  ;;  %v12215_v11 = vcombine.high %v897_v6, %v901_v7  ;;  %v12217_v12 = vcombine.high %v898_v8, %v902_v9 }
 0x368   : > { %6259 = vmatpush1.bf16.msra.mxu0 %v12158_v21  ;;  %6546 = vmatpush1.bf16.msra.mxu1 %v12160_v16  ;;  %v12214_v21 = vcombine.low %v897_v6, %v901_v7  ;;  %v12216_v16 = vcombine.low %v898_v8, %v902_v9  ;;  %v12256_v8 = vcombine.low %v938_v13, %v942_v52 }
 0x369   : > { %6260 = vmatprep.subr.bf16.mxu0 %v12167_v22  ;;  %6547 = vmatprep.subr.bf16.mxu1 %v12169_v24  ;;  %v12223_v22 = vcombine.high %v905_v14, %v909_v15  ;;  %v12225_v24 = vcombine.high %v906_v18, %v910_v19 }
 0x36c   : > { %6261 = vmatpush1.bf16.msra.mxu0 %v12166_v30  ;;  %6548 = vmatpush1.bf16.msra.mxu1 %v12168_v31  ;;  %v12224_v30 = vcombine.low %v906_v18, %v910_v19  ;;  %v12231_v31 = vcombine.high %v913_v25, %v917_v27  ;;  %v962_v25 = vld [vmem:[%s14396_s22 + $0xe58] sm:$0xff] }
 0x36d   : > { %6262 = vmatprep.subr.bf16.mxu0 %v12175_v32  ;;  %6549 = vmatprep.subr.bf16.mxu1 %v12177_v33  ;;  %v12233_v32 = vcombine.high %v914_v28, %v918_v29  ;;  %v921_v33 = vld [vmem:[%s14396_s22 + $0xd10] sm:$0xff]  ;;  %v966_v27 = vld [vmem:[%s14396_s22 + $0xe78] sm:$0xff] }
 0x36e   : > { %v12238_v45 = vcombine.low %v921_v33, %v925_v34 }
 0x370   : > { %6263 = vmatpush1.bf16.msra.mxu0 %v12174_v38  ;;  %6550 = vmatpush1.bf16.msra.mxu1 %v12176_v39  ;;  %v12239_v38 = vcombine.high %v921_v33, %v925_v34  ;;  %v12241_v39 = vcombine.high %v922_v58, %v926_v35  ;;  %v970_v33 = vld [vmem:[%s14396_s22 + $0xe98] sm:$0xff]  ;;  %v12280_v35 = vcombine.low %v962_v25, %v966_v27 }
 0x371   : > { %6264 = vmatprep.subr.bf16.mxu0 %v12183_v41  ;;  %6551 = vmatprep.subr.bf16.mxu1 %v12185_v42  ;;  %v929_v41 = vld [vmem:[%s14396_s22 + $0xd50] sm:$0xff]  ;;  %v974_v34 = vld [vmem:[%s14396_s22 + $0xeb8] sm:$0xff] }
 0x372   : > { %v933_v42 = vld [vmem:[%s14396_s22 + $0xd70] sm:$0xff] }
 0x373   : > { %v12246_v53 = vcombine.low %v929_v41, %v933_v42 }
 0x374   : > { %6265 = vmatpush1.bf16.msra.mxu0 %v12182_v48  ;;  %6552 = vmatpush1.bf16.msra.mxu1 %v12184_v49  ;;  %v12247_v48 = vcombine.high %v929_v41, %v933_v42  ;;  %v12249_v49 = vcombine.high %v930_v43, %v934_v44  ;;  %v978_v41 = vld [vmem:[%s14396_s22 + $0xed8] sm:$0xff]  ;;  %v12288_v44 = vcombine.low %v970_v33, %v974_v34 }
 0x375   : > { %6266 = vmatprep.subr.bf16.mxu0 %v12191_v50  ;;  %6553 = vmatprep.subr.bf16.mxu1 %v12193_v51  ;;  %v937_v50 = vld [vmem:[%s14396_s22 + $0xd90] sm:$0xff]  ;;  %v982_v42 = vld [vmem:[%s14396_s22 + $0xef8] sm:$0xff] }
 0x376   : > { %v941_v51 = vld [vmem:[%s14396_s22 + $0xdb0] sm:$0xff] }
 0x378   : > { %6267 = vmatpush1.bf16.msra.mxu0 %v12190_v57  ;;  %6554 = vmatpush1.bf16.msra.mxu1 %v12192_v59  ;;  %v12255_v57 = vcombine.high %v937_v50, %v941_v51 }
 0x379   : > { %6268 = vmatprep.subr.bf16.mxu0 %v12199_v20  ;;  %6555 = vmatprep.subr.bf16.mxu1 %v12201_v61  ;;  %v12257_v20 = vcombine.high %v938_v13, %v942_v52  ;;  %v945_v61 = vld [vmem:[%s14396_s22 + $0xdd0] sm:$0xff]  ;;  %v12296_v52 = vcombine.low %v978_v41, %v982_v42 }
 0x37a   : > { %v12263_v9 = vcombine.high %v945_v61, %v949_v62  ;;  %v12262_v18 = vcombine.low %v945_v61, %v949_v62  ;;  %v994_v61 = vld [vmem:[%s14396_s22 + $0xf58] sm:$0xff] }
 0x37b   : > { %v998_v62 = vld [vmem:[%s14396_s22 + $0xf78] sm:$0xff] }
 0x37c   : > { %6269 = vmatpush1.bf16.msra.mxu0 %v12198_v1  ;;  %6556 = vmatpush1.bf16.msra.mxu1 %v12200_v2  ;;  %v950_v1 = vld [vmem:[%s14396_s22 + $0xdf8] sm:$0xff] }
 0x37d   : > { %6279 = vmatprep.subr.bf16.mxu0 %v12207_v4  ;;  %6566 = vmatprep.subr.bf16.mxu1 %v12209_v5  ;;  %v12254_v5 = vcombine.low %v937_v50, %v941_v51  ;;  %v12264_v19 = vcombine.low %v946_v0, %v950_v1  ;;  %v986_v50 = vld [vmem:[%s14396_s22 + $0xf18] sm:$0xff] }
 0x37e   : > { %v990_v51 = vld [vmem:[%s14396_s22 + $0xf38] sm:$0xff] }
 0x37f   : > { %6271 = vmatmul.mubr.bf16.vlgmr.msra.gmra.mrb[4].mxu0 %v14662_v37  ;;  %6558 = vmatmul.mubr.bf16.vlgmr.msra.gmra.mrb[4].mxu1 %v14662_v37  ;;  %v12222_v37 = vcombine.low %v905_v14, %v909_v15  ;;  %v954_v14 = vld [vmem:[%s14396_s22 + $0xe18] sm:$0xff] }
 0x380   : > { %6280 = vmatpush1.bf16.msra.mxu0 %v12206_v23  ;;  %6567 = vmatpush1.bf16.msra.mxu1 %v12208_v10  ;;  %v12265_v10 = vcombine.high %v946_v0, %v950_v1  ;;  %v958_v15 = vld [vmem:[%s14396_s22 + $0xe38] sm:$0xff]  ;;  %v12304_v1 = vcombine.low %v986_v50, %v990_v51 }
 0x381   : > { %6281 = vmatprep.subr.bf16.mxu0 %v12215_v11  ;;  %6568 = vmatprep.subr.bf16.mxu1 %v12217_v12  ;;  %v953_v11 = vld [vmem:[%s14396_s22 + $0xe10] sm:$0xff] }
 0x382   : > { %6311 = vmatprep.mubr.bf16.mxu0 %v14672_v26  ;;  %6598 = vmatprep.mubr.bf16.mxu1 %v14672_v26  ;;  %v12232_v26 = vcombine.low %v914_v28, %v918_v29  ;;  %v957_v12 = vld [vmem:[%s14396_s22 + $0xe30] sm:$0xff]  ;;  %v12272_v29 = vcombine.low %v954_v14, %v958_v15 }
 0x383   : > { %v12270_v28 = vcombine.low %v953_v11, %v957_v12 }
 0x384   : > { %6282 = vmatpush1.bf16.msra.mxu0 %v12214_v21  ;;  %6569 = vmatpush1.bf16.msra.mxu1 %v12216_v16  ;;  %v12271_v21 = vcombine.high %v953_v11, %v957_v12  ;;  %v12273_v16 = vcombine.high %v954_v14, %v958_v15  ;;  %v1009_v14 = vld [vmem:[%s14396_s22 + $0xfd0] sm:$0xff] }
 0x385   : > { %6283 = vmatprep.subr.bf16.mxu0 %v12223_v22  ;;  %6570 = vmatprep.subr.bf16.mxu1 %v12225_v24  ;;  %v961_v22 = vld [vmem:[%s14396_s22 + $0xe50] sm:$0xff] }
 0x386   : > { %v965_v24 = vld [vmem:[%s14396_s22 + $0xe70] sm:$0xff] }
 0x387   : > { %v12278_v58 = vcombine.low %v961_v22, %v965_v24  ;;  %v1013_v15 = vld [vmem:[%s14396_s22 + $0xff0] sm:$0xff] }
 0x388   : > { %6284 = vmatpush1.bf16.msra.mxu0 %v12222_v37  ;;  %6571 = vmatpush1.bf16.msra.mxu1 %v12224_v30  ;;  %v12279_v37 = vcombine.high %v961_v22, %v965_v24  ;;  %v12281_v30 = vcombine.high %v962_v25, %v966_v27  ;;  %v12327_v22 = vcombine.high %v1009_v14, %v1013_v15  ;;  %v1017_v25 = vld [vmem:[%s14396_s22 + $0x1010] sm:$0xff] }
 0x389   : > { %6285 = vmatprep.subr.bf16.mxu0 %v12231_v31  ;;  %6572 = vmatprep.subr.bf16.mxu1 %v12233_v32  ;;  %v969_v31 = vld [vmem:[%s14396_s22 + $0xe90] sm:$0xff] }
 0x38a   : > { %v973_v32 = vld [vmem:[%s14396_s22 + $0xeb0] sm:$0xff] }
 0x38b   : > { %v12286_v43 = vcombine.low %v969_v31, %v973_v32  ;;  %v1021_v27 = vld [vmem:[%s14396_s22 + $0x1030] sm:$0xff] }
 0x38c   : > { %6286 = vmatpush1.bf16.msra.mxu0 %v12230_v36  ;;  %6573 = vmatpush1.bf16.msra.mxu1 %v12232_v26  ;;  %v12287_v36 = vcombine.high %v969_v31, %v973_v32  ;;  %v12289_v26 = vcombine.high %v970_v33, %v974_v34  ;;  %v12335_v31 = vcombine.high %v1017_v25, %v1021_v27  ;;  %v1025_v33 = vld [vmem:[%s14396_s22 + $0x1050] sm:$0xff] }
 0x38d   : > { %6287 = vmatprep.subr.bf16.mxu0 %v12239_v38  ;;  %6574 = vmatprep.subr.bf16.mxu1 %v12241_v39  ;;  %v977_v38 = vld [vmem:[%s14396_s22 + $0xed0] sm:$0xff] }
 0x38e   : > { %v981_v39 = vld [vmem:[%s14396_s22 + $0xef0] sm:$0xff] }
 0x38f   : > { %v12294_v13 = vcombine.low %v977_v38, %v981_v39  ;;  %v1029_v34 = vld [vmem:[%s14396_s22 + $0x1070] sm:$0xff] }
 0x390   : > { %6288 = vmatpush1.bf16.msra.mxu0 %v12238_v45  ;;  %6575 = vmatpush1.bf16.msra.mxu1 %v12240_v46  ;;  %v12295_v45 = vcombine.high %v977_v38, %v981_v39  ;;  %v12297_v46 = vcombine.high %v978_v41, %v982_v42  ;;  %v12343_v38 = vcombine.high %v1025_v33, %v1029_v34  ;;  %v1033_v41 = vld [vmem:[%s14396_s22 + $0x1090] sm:$0xff] }
 0x391   : > { %6289 = vmatprep.subr.bf16.mxu0 %v12247_v48  ;;  %6576 = vmatprep.subr.bf16.mxu1 %v12249_v49  ;;  %v985_v48 = vld [vmem:[%s14396_s22 + $0xf10] sm:$0xff] }
 0x392   : > { %v15162_v59 = vpop.f32.mrb[0].mxu0  ;;  %v15166_v54 = vpop.f32.mrb[0].mxu1  ;;  %v989_v49 = vld [vmem:[%s14396_s22 + $0xf30] sm:$0xff] }
 0x393   : > { %v15168_v63 = vpop.f32.mrb[1].mxu0  ;;  %v15172_v2 = vpop.f32.mrb[1].mxu1  ;;  %v12302_v0 = vcombine.low %v985_v48, %v989_v49  ;;  %v1037_v42 = vld [vmem:[%s14396_s22 + $0x10b0] sm:$0xff] }
 0x394   : > { %v5866_v4 = vpop.f32.mrb[2].mxu0  ;;  %6290 = vmatpush1.bf16.msra.mxu0 %v12246_v53  ;;  %v6153_v6 = vpop.f32.mrb[2].mxu1  ;;  %6577 = vmatpush1.bf16.msra.mxu1 %v12248_v55  ;;  %v12303_v53 = vcombine.high %v985_v48, %v989_v49  ;;  %v12305_v55 = vcombine.high %v986_v50, %v990_v51  ;;  %v12351_v48 = vcombine.high %v1033_v41, %v1037_v42  ;;  %v1041_v50 = vld [vmem:[%s14396_s22 + $0x10d0] sm:$0xff] }
 0x395   : > { %v5867_v7 = vpop.f32.mrb[3].mxu0  ;;  %6291 = vmatprep.subr.bf16.mxu0 %v12255_v57  ;;  %v6154_v23 = vpop.f32.mrb[3].mxu1  ;;  %6578 = vmatprep.subr.bf16.mxu1 %v12257_v20  ;;  %v993_v57 = vld [vmem:[%s14396_s22 + $0xf50] sm:$0xff] }
 0x396   : > { %v997_v20 = vld [vmem:[%s14396_s22 + $0xf70] sm:$0xff] }
 0x397   : > { %v12311_v4 = vcombine.high %v993_v57, %v997_v20  ;;  %v1001_v6 = vld [vmem:[%s14396_s22 + $0xf90] sm:$0xff]  ;;  %v12310_v23 = vcombine.low %v993_v57, %v997_v20 }
 0x398   : > { %6292 = vmatpush1.bf16.msra.mxu0 %v12254_v5  ;;  %6579 = vmatpush1.bf16.msra.mxu1 %v12256_v8  ;;  %v12313_v5 = vcombine.high %v994_v61, %v998_v62  ;;  %v1005_v7 = vld [vmem:[%s14396_s22 + $0xfb0] sm:$0xff]  ;;  %v1002_v8 = vld [vmem:[%s14396_s22 + $0xf98] sm:$0xff] }
 0x399   : > { %6293 = vmatprep.subr.bf16.mxu0 %v12263_v9  ;;  %6580 = vmatprep.subr.bf16.mxu1 %v12265_v10  ;;  %v1006_v9 = vld [vmem:[%s14396_s22 + $0xfb8] sm:$0xff]  ;;  %v12312_v10 = vcombine.low %v994_v61, %v998_v62  ;;  %v12319_v11 = vcombine.high %v1001_v6, %v1005_v7  ;;  %v1045_v51 = vld [vmem:[%s14396_s22 + $0x10f0] sm:$0xff] }
 0x39a   : > { %v12321_v12 = vcombine.high %v1002_v8, %v1006_v9  ;;  %v1049_v20 = vld [vmem:[%s14396_s22 + $0x1110] sm:$0xff]  ;;  %v1050_v62 = vld [vmem:[%s14396_s22 + $0x1118] sm:$0xff] }
 0x39b   : > { %v1053_v61 = vld [vmem:[%s14396_s22 + $0x1130] sm:$0xff] }
 0x39c   : > { %6294 = vmatpush1.bf16.msra.mxu0 %v12262_v18  ;;  %6581 = vmatpush1.bf16.msra.mxu1 %v12264_v19  ;;  %v1010_v18 = vld [vmem:[%s14396_s22 + $0xfd8] sm:$0xff] }
 0x39d   : > { %6295 = vmatprep.subr.bf16.mxu0 %v12271_v21  ;;  %6582 = vmatprep.subr.bf16.mxu1 %v12273_v16  ;;  %v1014_v19 = vld [vmem:[%s14396_s22 + $0xff8] sm:$0xff]  ;;  %v12318_v21 = vcombine.low %v1001_v6, %v1005_v7  ;;  %v12320_v16 = vcombine.low %v1002_v8, %v1006_v9  ;;  %v1057_v6 = vld [vmem:[%s14396_s22 + $0x1150] sm:$0xff] }
 0x39e   : > { %v12329_v24 = vcombine.high %v1010_v18, %v1014_v19  ;;  %v1061_v7 = vld [vmem:[%s14396_s22 + $0x1170] sm:$0xff]  ;;  %v1058_v8 = vld [vmem:[%s14396_s22 + $0x1158] sm:$0xff] }
 0x39f   : > { %v1062_v9 = vld [vmem:[%s14396_s22 + $0x1178] sm:$0xff] }
 0x3a0   : > { %6296 = vmatpush1.bf16.msra.mxu0 %v12270_v28  ;;  %6583 = vmatpush1.bf16.msra.mxu1 %v12272_v29  ;;  %v1018_v28 = vld [vmem:[%s14396_s22 + $0x1018] sm:$0xff] }
 0x3a1   : > { %6297 = vmatprep.subr.bf16.mxu0 %v12279_v37  ;;  %6584 = vmatprep.subr.bf16.mxu1 %v12281_v30  ;;  %v1022_v29 = vld [vmem:[%s14396_s22 + $0x1038] sm:$0xff]  ;;  %v12326_v37 = vcombine.low %v1009_v14, %v1013_v15  ;;  %v12328_v30 = vcombine.low %v1010_v18, %v1014_v19  ;;  %v1065_v14 = vld [vmem:[%s14396_s22 + $0x1190] sm:$0xff] }
 0x3a2   : > { %v12337_v32 = vcombine.high %v1018_v28, %v1022_v29  ;;  %v1069_v15 = vld [vmem:[%s14396_s22 + $0x11b0] sm:$0xff]  ;;  %v1066_v18 = vld [vmem:[%s14396_s22 + $0x1198] sm:$0xff] }
 0x3a3   : > { %v1070_v19 = vld [vmem:[%s14396_s22 + $0x11b8] sm:$0xff] }
 0x3a4   : > { %6298 = vmatpush1.bf16.msra.mxu0 %v12278_v58  ;;  %6585 = vmatpush1.bf16.msra.mxu1 %v12280_v35  ;;  %v1026_v58 = vld [vmem:[%s14396_s22 + $0x1058] sm:$0xff] }
 0x3a5   : > { %6299 = vmatprep.subr.bf16.mxu0 %v12287_v36  ;;  %6586 = vmatprep.subr.bf16.mxu1 %v12289_v26  ;;  %v1030_v35 = vld [vmem:[%s14396_s22 + $0x1078] sm:$0xff]  ;;  %v12334_v36 = vcombine.low %v1017_v25, %v1021_v27  ;;  %v12336_v26 = vcombine.low %v1018_v28, %v1022_v29  ;;  %v1073_v25 = vld [vmem:[%s14396_s22 + $0x11d0] sm:$0xff] }
 0x3a6   : > { %v12345_v39 = vcombine.high %v1026_v58, %v1030_v35  ;;  %v1077_v27 = vld [vmem:[%s14396_s22 + $0x11f0] sm:$0xff]  ;;  %v1074_v28 = vld [vmem:[%s14396_s22 + $0x11d8] sm:$0xff] }
 0x3a7   : > { %v1078_v29 = vld [vmem:[%s14396_s22 + $0x11f8] sm:$0xff] }
 0x3a8   : > { %6300 = vmatpush1.bf16.msra.mxu0 %v12286_v43  ;;  %6587 = vmatpush1.bf16.msra.mxu1 %v12288_v44  ;;  %v1034_v43 = vld [vmem:[%s14396_s22 + $0x1098] sm:$0xff] }
 0x3a9   : > { %6301 = vmatprep.subr.bf16.mxu0 %v12295_v45  ;;  %6588 = vmatprep.subr.bf16.mxu1 %v12297_v46  ;;  %v1038_v44 = vld [vmem:[%s14396_s22 + $0x10b8] sm:$0xff]  ;;  %v12342_v45 = vcombine.low %v1025_v33, %v1029_v34  ;;  %v12344_v46 = vcombine.low %v1026_v58, %v1030_v35  ;;  %v1081_v33 = vld [vmem:[%s14396_s22 + $0x1210] sm:$0xff] }
 0x3aa   : > { %v12353_v49 = vcombine.high %v1034_v43, %v1038_v44  ;;  %v1085_v34 = vld [vmem:[%s14396_s22 + $0x1230] sm:$0xff]  ;;  %v1082_v58 = vld [vmem:[%s14396_s22 + $0x1218] sm:$0xff] }
 0x3ab   : > { %v1086_v35 = vld [vmem:[%s14396_s22 + $0x1238] sm:$0xff] }
 0x3ac   : > { %6302 = vmatpush1.bf16.msra.mxu0 %v12294_v13  ;;  %6589 = vmatpush1.bf16.msra.mxu1 %v12296_v52  ;;  %v1042_v13 = vld [vmem:[%s14396_s22 + $0x10d8] sm:$0xff] }
 0x3ad   : > { %6303 = vmatprep.subr.bf16.mxu0 %v12303_v53  ;;  %6590 = vmatprep.subr.bf16.mxu1 %v12305_v55  ;;  %v1046_v52 = vld [vmem:[%s14396_s22 + $0x10f8] sm:$0xff]  ;;  %v12352_v53 = vcombine.low %v1034_v43, %v1038_v44  ;;  %v12359_v55 = vcombine.high %v1041_v50, %v1045_v51 }
 0x3ae   : > { %v12361_v57 = vcombine.high %v1042_v13, %v1046_v52  ;;  %v1090_v43 = vld [vmem:[%s14396_s22 + $0x1258] sm:$0xff] }
 0x3af   : > { %v1094_v44 = vld [vmem:[%s14396_s22 + $0x1278] sm:$0xff] }
 0x3b0   : > { %6304 = vmatpush1.bf16.msra.mxu0 %v12302_v0  ;;  %6591 = vmatpush1.bf16.msra.mxu1 %v12304_v1  ;;  %v1054_v0 = vld [vmem:[%s14396_s22 + $0x1138] sm:$0xff]  ;;  %v12358_v1 = vcombine.low %v1041_v50, %v1045_v51  ;;  %v1097_v50 = vld [vmem:[%s14396_s22 + $0x1290] sm:$0xff] }
 0x3b1   : > { %6305 = vmatprep.subr.bf16.mxu0 %v12311_v4  ;;  %6592 = vmatprep.subr.bf16.mxu1 %v12313_v5  ;;  %v12367_v4 = vcombine.high %v1049_v20, %v1053_v61  ;;  %v12369_v5 = vcombine.high %v1050_v62, %v1054_v0  ;;  %v1101_v51 = vld [vmem:[%s14396_s22 + $0x12b0] sm:$0xff] }
 0x3b4   : > { %6306 = vmatpush1.bf16.msra.mxu0 %v12310_v23  ;;  %6593 = vmatpush1.bf16.msra.mxu1 %v12312_v10  ;;  %v12366_v23 = vcombine.low %v1049_v20, %v1053_v61  ;;  %v12368_v10 = vcombine.low %v1050_v62, %v1054_v0  ;;  %v1105_v20 = vld [vmem:[%s14396_s22 + $0x12d0] sm:$0xff]  ;;  %v1106_v62 = vld [vmem:[%s14396_s22 + $0x12d8] sm:$0xff] }
 0x3b5   : > { %6307 = vmatprep.subr.bf16.mxu0 %v12319_v11  ;;  %6594 = vmatprep.subr.bf16.mxu1 %v12321_v12  ;;  %v12375_v11 = vcombine.high %v1057_v6, %v1061_v7  ;;  %v12377_v12 = vcombine.high %v1058_v8, %v1062_v9  ;;  %v1109_v61 = vld [vmem:[%s14396_s22 + $0x12f0] sm:$0xff]  ;;  %v1110_v0 = vld [vmem:[%s14396_s22 + $0x12f8] sm:$0xff] }
 0x3b8   : > { %6308 = vmatpush1.bf16.msra.mxu0 %v12318_v21  ;;  %6595 = vmatpush1.bf16.msra.mxu1 %v12320_v16  ;;  %v12374_v21 = vcombine.low %v1057_v6, %v1061_v7  ;;  %v12376_v16 = vcombine.low %v1058_v8, %v1062_v9  ;;  %v1113_v6 = vld [vmem:[%s14396_s22 + $0x1310] sm:$0xff]  ;;  %v1114_v8 = vld [vmem:[%s14396_s22 + $0x1318] sm:$0xff] }
 0x3b9   : > { %6309 = vmatprep.subr.bf16.mxu0 %v12327_v22  ;;  %6596 = vmatprep.subr.bf16.mxu1 %v12329_v24  ;;  %v12383_v22 = vcombine.high %v1065_v14, %v1069_v15  ;;  %v12385_v24 = vcombine.high %v1066_v18, %v1070_v19  ;;  %v1117_v7 = vld [vmem:[%s14396_s22 + $0x1330] sm:$0xff]  ;;  %v1118_v9 = vld [vmem:[%s14396_s22 + $0x1338] sm:$0xff] }
 0x3bc   : > { %6310 = vmatpush1.bf16.msra.mxu0 %v12326_v37  ;;  %6597 = vmatpush1.bf16.msra.mxu1 %v12328_v30  ;;  %v12382_v37 = vcombine.low %v1065_v14, %v1069_v15  ;;  %v12384_v30 = vcombine.low %v1066_v18, %v1070_v19  ;;  %v1121_v14 = vld [vmem:[%s14396_s22 + $0x1350] sm:$0xff]  ;;  %v1122_v18 = vld [vmem:[%s14396_s22 + $0x1358] sm:$0xff] }
 0x3bd   : > { %6320 = vmatprep.subr.bf16.mxu0 %v12335_v31  ;;  %6607 = vmatprep.subr.bf16.mxu1 %v12337_v32  ;;  %v12391_v31 = vcombine.high %v1073_v25, %v1077_v27  ;;  %v12393_v32 = vcombine.high %v1074_v28, %v1078_v29  ;;  %v1125_v15 = vld [vmem:[%s14396_s22 + $0x1370] sm:$0xff]  ;;  %v1126_v19 = vld [vmem:[%s14396_s22 + $0x1378] sm:$0xff] }
 0x3bf   : > { %6312 = vmatmul.mubr.bf16.vlgmr.msra.gmra.mrb[4].mxu0 %v14740_v56  ;;  %6599 = vmatmul.mubr.bf16.vlgmr.msra.gmra.mrb[4].mxu1 %v14740_v56  ;;  %v12350_v56 = vcombine.low %v1033_v41, %v1037_v42  ;;  %v1089_v41 = vld [vmem:[%s14396_s22 + $0x1250] sm:$0xff] }
 0x3c0   : > { %6321 = vmatpush1.bf16.msra.mxu0 %v12334_v36  ;;  %6608 = vmatpush1.bf16.msra.mxu1 %v12336_v26  ;;  %v12390_v36 = vcombine.low %v1073_v25, %v1077_v27  ;;  %v12392_v26 = vcombine.low %v1074_v28, %v1078_v29  ;;  %v1093_v42 = vld [vmem:[%s14396_s22 + $0x1270] sm:$0xff]  ;;  %v1130_v28 = vld [vmem:[%s14396_s22 + $0x1398] sm:$0xff] }
 0x3c1   : > { %6322 = vmatprep.subr.bf16.mxu0 %v12343_v38  ;;  %6609 = vmatprep.subr.bf16.mxu1 %v12345_v39  ;;  %v12399_v38 = vcombine.high %v1081_v33, %v1085_v34  ;;  %v12401_v39 = vcombine.high %v1082_v58, %v1086_v35  ;;  %v1129_v25 = vld [vmem:[%s14396_s22 + $0x1390] sm:$0xff]  ;;  %v1134_v29 = vld [vmem:[%s14396_s22 + $0x13b8] sm:$0xff] }
 0x3c2   : > { %6352 = vmatprep.mubr.bf16.mxu0 %v14750_v40  ;;  %6639 = vmatprep.mubr.bf16.mxu1 %v14750_v40  ;;  %v12360_v40 = vcombine.low %v1042_v13, %v1046_v52  ;;  %v1098_v13 = vld [vmem:[%s14396_s22 + $0x1298] sm:$0xff]  ;;  %v1133_v27 = vld [vmem:[%s14396_s22 + $0x13b0] sm:$0xff] }
 0x3c3   : > { %v1102_v52 = vld [vmem:[%s14396_s22 + $0x12b8] sm:$0xff] }
 0x3c4   : > { %6323 = vmatpush1.bf16.msra.mxu0 %v12342_v45  ;;  %6610 = vmatpush1.bf16.msra.mxu1 %v12344_v46  ;;  %v12398_v45 = vcombine.low %v1081_v33, %v1085_v34  ;;  %v12400_v46 = vcombine.low %v1082_v58, %v1086_v35  ;;  %v1137_v33 = vld [vmem:[%s14396_s22 + $0x13d0] sm:$0xff]  ;;  %v1138_v58 = vld [vmem:[%s14396_s22 + $0x13d8] sm:$0xff] }
 0x3c5   : > { %6324 = vmatprep.subr.bf16.mxu0 %v12351_v48  ;;  %6611 = vmatprep.subr.bf16.mxu1 %v12353_v49  ;;  %v12407_v48 = vcombine.high %v1089_v41, %v1093_v42  ;;  %v12409_v49 = vcombine.high %v1090_v43, %v1094_v44  ;;  %v1141_v34 = vld [vmem:[%s14396_s22 + $0x13f0] sm:$0xff]  ;;  %v1142_v35 = vld [vmem:[%s14396_s22 + $0x13f8] sm:$0xff] }
 0x3c8   : > { %6325 = vmatpush1.bf16.msra.mxu0 %v12350_v56  ;;  %6612 = vmatpush1.bf16.msra.mxu1 %v12352_v53  ;;  %v12406_v56 = vcombine.low %v1089_v41, %v1093_v42  ;;  %v12408_v53 = vcombine.low %v1090_v43, %v1094_v44  ;;  %v1145_v41 = vld [vmem:[%s14396_s22 + $0x1410] sm:$0xff]  ;;  %v1146_v43 = vld [vmem:[%s14396_s22 + $0x1418] sm:$0xff] }
 0x3c9   : > { %6326 = vmatprep.subr.bf16.mxu0 %v12359_v55  ;;  %6613 = vmatprep.subr.bf16.mxu1 %v12361_v57  ;;  %v12415_v55 = vcombine.high %v1097_v50, %v1101_v51  ;;  %v12417_v57 = vcombine.high %v1098_v13, %v1102_v52  ;;  %v1149_v42 = vld [vmem:[%s14396_s22 + $0x1430] sm:$0xff]  ;;  %v1150_v44 = vld [vmem:[%s14396_s22 + $0x1438] sm:$0xff] }
 0x3cc   : > { %6327 = vmatpush1.bf16.msra.mxu0 %v12358_v1  ;;  %6614 = vmatpush1.bf16.msra.mxu1 %v12360_v40  ;;  %v12414_v1 = vcombine.low %v1097_v50, %v1101_v51  ;;  %v12416_v40 = vcombine.low %v1098_v13, %v1102_v52  ;;  %v1153_v50 = vld [vmem:[%s14396_s22 + $0x1450] sm:$0xff]  ;;  %v1154_v13 = vld [vmem:[%s14396_s22 + $0x1458] sm:$0xff] }
 0x3cd   : > { %6328 = vmatprep.subr.bf16.mxu0 %v12367_v4  ;;  %6615 = vmatprep.subr.bf16.mxu1 %v12369_v5  ;;  %v12423_v4 = vcombine.high %v1105_v20, %v1109_v61  ;;  %v12425_v5 = vcombine.high %v1106_v62, %v1110_v0  ;;  %v1157_v51 = vld [vmem:[%s14396_s22 + $0x1470] sm:$0xff]  ;;  %v1158_v52 = vld [vmem:[%s14396_s22 + $0x1478] sm:$0xff] }
 0x3d0   : > { %6329 = vmatpush1.bf16.msra.mxu0 %v12366_v23  ;;  %6616 = vmatpush1.bf16.msra.mxu1 %v12368_v10  ;;  %v12422_v23 = vcombine.low %v1105_v20, %v1109_v61  ;;  %v12424_v10 = vcombine.low %v1106_v62, %v1110_v0  ;;  %v1161_v20 = vld [vmem:[%s14396_s22 + $0x1490] sm:$0xff]  ;;  %v1162_v62 = vld [vmem:[%s14396_s22 + $0x1498] sm:$0xff] }
 0x3d1   : > { %6330 = vmatprep.subr.bf16.mxu0 %v12375_v11  ;;  %6617 = vmatprep.subr.bf16.mxu1 %v12377_v12  ;;  %v12431_v11 = vcombine.high %v1113_v6, %v1117_v7  ;;  %v12433_v12 = vcombine.high %v1114_v8, %v1118_v9  ;;  %v1165_v61 = vld [vmem:[%s14396_s22 + $0x14b0] sm:$0xff]  ;;  %v1166_v0 = vld [vmem:[%s14396_s22 + $0x14b8] sm:$0xff] }
 0x3d4   : > { %6331 = vmatpush1.bf16.msra.mxu0 %v12374_v21  ;;  %6618 = vmatpush1.bf16.msra.mxu1 %v12376_v16  ;;  %v12430_v21 = vcombine.low %v1113_v6, %v1117_v7  ;;  %v12432_v16 = vcombine.low %v1114_v8, %v1118_v9  ;;  %v1169_v6 = vld [vmem:[%s14396_s22 + $0x14d0] sm:$0xff]  ;;  %v1170_v8 = vld [vmem:[%s14396_s22 + $0x14d8] sm:$0xff] }
 0x3d5   : > { %6332 = vmatprep.subr.bf16.mxu0 %v12383_v22  ;;  %6619 = vmatprep.subr.bf16.mxu1 %v12385_v24  ;;  %v12439_v22 = vcombine.high %v1121_v14, %v1125_v15  ;;  %v12441_v24 = vcombine.high %v1122_v18, %v1126_v19  ;;  %v1173_v7 = vld [vmem:[%s14396_s22 + $0x14f0] sm:$0xff]  ;;  %v1174_v9 = vld [vmem:[%s14396_s22 + $0x14f8] sm:$0xff] }
 0x3d8   : > { %6333 = vmatpush1.bf16.msra.mxu0 %v12382_v37  ;;  %6620 = vmatpush1.bf16.msra.mxu1 %v12384_v30  ;;  %v12438_v37 = vcombine.low %v1121_v14, %v1125_v15  ;;  %v12440_v30 = vcombine.low %v1122_v18, %v1126_v19  ;;  %v1181_v14 = vld [vmem:[%s14396_s22 + $0x1530] sm:$0xff]  ;;  %v1178_v15 = vld [vmem:[%s14396_s22 + $0x1518] sm:$0xff]  ;;  %v12486_v19 = vcombine.low %v1169_v6, %v1173_v7 }
 0x3d9   : > { %6334 = vmatprep.subr.bf16.mxu0 %v12391_v31  ;;  %6621 = vmatprep.subr.bf16.mxu1 %v12393_v32  ;;  %v12447_v31 = vcombine.high %v1129_v25, %v1133_v27  ;;  %v12449_v32 = vcombine.high %v1130_v28, %v1134_v29  ;;  %v1182_v18 = vld [vmem:[%s14396_s22 + $0x1538] sm:$0xff] }
 0x3dc   : > { %6335 = vmatpush1.bf16.msra.mxu0 %v12390_v36  ;;  %6622 = vmatpush1.bf16.msra.mxu1 %v12392_v26  ;;  %v12446_v36 = vcombine.low %v1129_v25, %v1133_v27  ;;  %v12448_v26 = vcombine.low %v1130_v28, %v1134_v29  ;;  %v1186_v25 = vld [vmem:[%s14396_s22 + $0x1558] sm:$0xff]  ;;  %v12496_v29 = vcombine.low %v1178_v15, %v1182_v18 }
 0x3dd   : > { %6336 = vmatprep.subr.bf16.mxu0 %v12399_v38  ;;  %6623 = vmatprep.subr.bf16.mxu1 %v12401_v39  ;;  %v12455_v38 = vcombine.high %v1137_v33, %v1141_v34  ;;  %v12457_v39 = vcombine.high %v1138_v58, %v1142_v35  ;;  %v1190_v27 = vld [vmem:[%s14396_s22 + $0x1578] sm:$0xff] }
 0x3e0   : > { %6337 = vmatpush1.bf16.msra.mxu0 %v12398_v45  ;;  %6624 = vmatpush1.bf16.msra.mxu1 %v12400_v46  ;;  %v12454_v45 = vcombine.low %v1137_v33, %v1141_v34  ;;  %v12456_v46 = vcombine.low %v1138_v58, %v1142_v35  ;;  %v1194_v33 = vld [vmem:[%s14396_s22 + $0x1598] sm:$0xff]  ;;  %v12504_v35 = vcombine.low %v1186_v25, %v1190_v27 }
 0x3e1   : > { %6338 = vmatprep.subr.bf16.mxu0 %v12407_v48  ;;  %6625 = vmatprep.subr.bf16.mxu1 %v12409_v49  ;;  %v12463_v48 = vcombine.high %v1145_v41, %v1149_v42  ;;  %v12465_v49 = vcombine.high %v1146_v43, %v1150_v44  ;;  %v1198_v34 = vld [vmem:[%s14396_s22 + $0x15b8] sm:$0xff] }
 0x3e4   : > { %6339 = vmatpush1.bf16.msra.mxu0 %v12406_v56  ;;  %6626 = vmatpush1.bf16.msra.mxu1 %v12408_v53  ;;  %v12462_v56 = vcombine.low %v1145_v41, %v1149_v42  ;;  %v12464_v53 = vcombine.low %v1146_v43, %v1150_v44  ;;  %v1202_v41 = vld [vmem:[%s14396_s22 + $0x15d8] sm:$0xff]  ;;  %v12512_v44 = vcombine.low %v1194_v33, %v1198_v34 }
 0x3e5   : > { %6340 = vmatprep.subr.bf16.mxu0 %v12415_v55  ;;  %6627 = vmatprep.subr.bf16.mxu1 %v12417_v57  ;;  %v12471_v55 = vcombine.high %v1153_v50, %v1157_v51  ;;  %v12473_v57 = vcombine.high %v1154_v13, %v1158_v52  ;;  %v1206_v42 = vld [vmem:[%s14396_s22 + $0x15f8] sm:$0xff] }
 0x3e8   : > { %6341 = vmatpush1.bf16.msra.mxu0 %v12414_v1  ;;  %6628 = vmatpush1.bf16.msra.mxu1 %v12416_v40  ;;  %v12470_v1 = vcombine.low %v1153_v50, %v1157_v51  ;;  %v12472_v40 = vcombine.low %v1154_v13, %v1158_v52  ;;  %v1210_v50 = vld [vmem:[%s14396_s22 + $0x1618] sm:$0xff]  ;;  %v12520_v52 = vcombine.low %v1202_v41, %v1206_v42 }
 0x3e9   : > { %6342 = vmatprep.subr.bf16.mxu0 %v12423_v4  ;;  %6629 = vmatprep.subr.bf16.mxu1 %v12425_v5  ;;  %v12479_v4 = vcombine.high %v1161_v20, %v1165_v61  ;;  %v12481_v5 = vcombine.high %v1162_v62, %v1166_v0  ;;  %v1214_v51 = vld [vmem:[%s14396_s22 + $0x1638] sm:$0xff] }
 0x3ec   : > { %6343 = vmatpush1.bf16.msra.mxu0 %v12422_v23  ;;  %6630 = vmatpush1.bf16.msra.mxu1 %v12424_v10  ;;  %v12480_v23 = vcombine.low %v1162_v62, %v1166_v0  ;;  %v12487_v10 = vcombine.high %v1169_v6, %v1173_v7  ;;  %v12528_v0 = vcombine.low %v1210_v50, %v1214_v51  ;;  %v1226_v6 = vld [vmem:[%s14396_s22 + $0x1698] sm:$0xff] }
 0x3ed   : > { %6344 = vmatprep.subr.bf16.mxu0 %v12431_v11  ;;  %6631 = vmatprep.subr.bf16.mxu1 %v12433_v12  ;;  %v12489_v11 = vcombine.high %v1170_v8, %v1174_v9  ;;  %v1177_v12 = vld [vmem:[%s14396_s22 + $0x1510] sm:$0xff]  ;;  %v1230_v7 = vld [vmem:[%s14396_s22 + $0x16b8] sm:$0xff] }
 0x3ee   : > { %v12494_v28 = vcombine.low %v1177_v12, %v1181_v14 }
 0x3f0   : > { %6345 = vmatpush1.bf16.msra.mxu0 %v12430_v21  ;;  %6632 = vmatpush1.bf16.msra.mxu1 %v12432_v16  ;;  %v12495_v21 = vcombine.high %v1177_v12, %v1181_v14  ;;  %v12497_v16 = vcombine.high %v1178_v15, %v1182_v18  ;;  %v1234_v12 = vld [vmem:[%s14396_s22 + $0x16d8] sm:$0xff]  ;;  %v12544_v18 = vcombine.low %v1226_v6, %v1230_v7 }
 0x3f1   : > { %6346 = vmatprep.subr.bf16.mxu0 %v12439_v22  ;;  %6633 = vmatprep.subr.bf16.mxu1 %v12441_v24  ;;  %v1185_v22 = vld [vmem:[%s14396_s22 + $0x1550] sm:$0xff]  ;;  %v1238_v14 = vld [vmem:[%s14396_s22 + $0x16f8] sm:$0xff] }
 0x3f2   : > { %v1189_v24 = vld [vmem:[%s14396_s22 + $0x1570] sm:$0xff] }
 0x3f3   : > { %v12502_v58 = vcombine.low %v1185_v22, %v1189_v24 }
 0x3f4   : > { %6347 = vmatpush1.bf16.msra.mxu0 %v12438_v37  ;;  %6634 = vmatpush1.bf16.msra.mxu1 %v12440_v30  ;;  %v12503_v37 = vcombine.high %v1185_v22, %v1189_v24  ;;  %v12505_v30 = vcombine.high %v1186_v25, %v1190_v27  ;;  %v1242_v22 = vld [vmem:[%s14396_s22 + $0x1718] sm:$0xff]  ;;  %v12552_v27 = vcombine.low %v1234_v12, %v1238_v14 }
 0x3f5   : > { %6348 = vmatprep.subr.bf16.mxu0 %v12447_v31  ;;  %6635 = vmatprep.subr.bf16.mxu1 %v12449_v32  ;;  %v1193_v31 = vld [vmem:[%s14396_s22 + $0x1590] sm:$0xff]  ;;  %v1246_v24 = vld [vmem:[%s14396_s22 + $0x1738] sm:$0xff] }
 0x3f6   : > { %v1197_v32 = vld [vmem:[%s14396_s22 + $0x15b0] sm:$0xff] }
 0x3f7   : > { %v12510_v43 = vcombine.low %v1193_v31, %v1197_v32 }
 0x3f8   : > { %6349 = vmatpush1.bf16.msra.mxu0 %v12446_v36  ;;  %6636 = vmatpush1.bf16.msra.mxu1 %v12448_v26  ;;  %v12511_v36 = vcombine.high %v1193_v31, %v1197_v32  ;;  %v12513_v26 = vcombine.high %v1194_v33, %v1198_v34  ;;  %v1250_v31 = vld [vmem:[%s14396_s22 + $0x1758] sm:$0xff]  ;;  %v12560_v34 = vcombine.low %v1242_v22, %v1246_v24 }
 0x3f9   : > { %6350 = vmatprep.subr.bf16.mxu0 %v12455_v38  ;;  %6637 = vmatprep.subr.bf16.mxu1 %v12457_v39  ;;  %v1201_v38 = vld [vmem:[%s14396_s22 + $0x15d0] sm:$0xff]  ;;  %v1254_v32 = vld [vmem:[%s14396_s22 + $0x1778] sm:$0xff] }
 0x3fa   : > { %v1205_v39 = vld [vmem:[%s14396_s22 + $0x15f0] sm:$0xff] }
 0x3fb   : > { %v12518_v13 = vcombine.low %v1201_v38, %v1205_v39 }
 0x3fc   : > { %6351 = vmatpush1.bf16.msra.mxu0 %v12454_v45  ;;  %6638 = vmatpush1.bf16.msra.mxu1 %v12456_v46  ;;  %v12519_v45 = vcombine.high %v1201_v38, %v1205_v39  ;;  %v12521_v46 = vcombine.high %v1202_v41, %v1206_v42  ;;  %v1258_v38 = vld [vmem:[%s14396_s22 + $0x1798] sm:$0xff]  ;;  %v12568_v42 = vcombine.low %v1250_v31, %v1254_v32 }
 0x3fd   : > { %6361 = vmatprep.subr.bf16.mxu0 %v12463_v48  ;;  %6648 = vmatprep.subr.bf16.mxu1 %v12465_v49  ;;  %v1209_v48 = vld [vmem:[%s14396_s22 + $0x1610] sm:$0xff]  ;;  %v1262_v39 = vld [vmem:[%s14396_s22 + $0x17b8] sm:$0xff] }
 0x3fe   : > { %v1213_v49 = vld [vmem:[%s14396_s22 + $0x1630] sm:$0xff] }
 0x3ff   : > { %6353 = vmatmul.mubr.bf16.vlgmr.msra.gmra.mrb[4].mxu0 %v14818_v17  ;;  %6640 = vmatmul.mubr.bf16.vlgmr.msra.gmra.mrb[4].mxu1 %v14818_v17  ;;  %v12478_v17 = vcombine.low %v1161_v20, %v1165_v61  ;;  %v1218_v20 = vld [vmem:[%s14396_s22 + $0x1658] sm:$0xff]  ;;  %v12526_v62 = vcombine.low %v1209_v48, %v1213_v49 }
 0x400   : > { %6362 = vmatpush1.bf16.msra.mxu0 %v12462_v56  ;;  %6649 = vmatpush1.bf16.msra.mxu1 %v12464_v53  ;;  %v12527_v56 = vcombine.high %v1209_v48, %v1213_v49  ;;  %v12529_v53 = vcombine.high %v1210_v50, %v1214_v51  ;;  %v1222_v61 = vld [vmem:[%s14396_s22 + $0x1678] sm:$0xff]  ;;  %v12576_v51 = vcombine.low %v1258_v38, %v1262_v39 }
 0x401   : > { %6363 = vmatprep.subr.bf16.mxu0 %v12471_v55  ;;  %6650 = vmatprep.subr.bf16.mxu1 %v12473_v57  ;;  %v1217_v55 = vld [vmem:[%s14396_s22 + $0x1650] sm:$0xff]  ;;  %v1266_v48 = vld [vmem:[%s14396_s22 + $0x17d8] sm:$0xff] }
 0x402   : > { %6393 = vmatprep.mubr.bf16.mxu0 %v14828_v60  ;;  %6680 = vmatprep.mubr.bf16.mxu1 %v14828_v60  ;;  %v12488_v60 = vcombine.low %v1170_v8, %v1174_v9  ;;  %v1221_v57 = vld [vmem:[%s14396_s22 + $0x1670] sm:$0xff]  ;;  %v12536_v9 = vcombine.low %v1218_v20, %v1222_v61  ;;  %v1270_v49 = vld [vmem:[%s14396_s22 + $0x17f8] sm:$0xff] }
 0x403   : > { %v12534_v8 = vcombine.low %v1217_v55, %v1221_v57 }
 0x404   : > { %6364 = vmatpush1.bf16.msra.mxu0 %v12470_v1  ;;  %6651 = vmatpush1.bf16.msra.mxu1 %v12472_v40  ;;  %v12535_v1 = vcombine.high %v1217_v55, %v1221_v57  ;;  %v12537_v40 = vcombine.high %v1218_v20, %v1222_v61  ;;  %v1274_v55 = vld [vmem:[%s14396_s22 + $0x1818] sm:$0xff]  ;;  %v12584_v61 = vcombine.low %v1266_v48, %v1270_v49 }
 0x405   : > { %6365 = vmatprep.subr.bf16.mxu0 %v12479_v4  ;;  %6652 = vmatprep.subr.bf16.mxu1 %v12481_v5  ;;  %v1225_v4 = vld [vmem:[%s14396_s22 + $0x1690] sm:$0xff]  ;;  %v1278_v57 = vld [vmem:[%s14396_s22 + $0x1838] sm:$0xff] }
 0x406   : > { %v1229_v5 = vld [vmem:[%s14396_s22 + $0x16b0] sm:$0xff] }
 0x407   : > { %v12542_v15 = vcombine.low %v1225_v4, %v1229_v5 }
 0x408   : > { %6366 = vmatpush1.bf16.msra.mxu0 %v12478_v17  ;;  %6653 = vmatpush1.bf16.msra.mxu1 %v12480_v23  ;;  %v12543_v17 = vcombine.high %v1225_v4, %v1229_v5  ;;  %v12545_v23 = vcombine.high %v1226_v6, %v1230_v7  ;;  %v1282_v4 = vld [vmem:[%s14396_s22 + $0x1858] sm:$0xff]  ;;  %v12592_v7 = vcombine.low %v1274_v55, %v1278_v57 }
 0x409   : > { %6367 = vmatprep.subr.bf16.mxu0 %v12487_v10  ;;  %6654 = vmatprep.subr.bf16.mxu1 %v12489_v11  ;;  %v1233_v10 = vld [vmem:[%s14396_s22 + $0x16d0] sm:$0xff]  ;;  %v1286_v5 = vld [vmem:[%s14396_s22 + $0x1878] sm:$0xff] }
 0x40a   : > { %v1237_v11 = vld [vmem:[%s14396_s22 + $0x16f0] sm:$0xff] }
 0x40b   : > { %v12550_v25 = vcombine.low %v1233_v10, %v1237_v11 }
 0x40c   : > { %6368 = vmatpush1.bf16.msra.mxu0 %v12486_v19  ;;  %6655 = vmatpush1.bf16.msra.mxu1 %v12488_v60  ;;  %v12551_v19 = vcombine.high %v1233_v10, %v1237_v11  ;;  %v12553_v60 = vcombine.high %v1234_v12, %v1238_v14  ;;  %v1290_v10 = vld [vmem:[%s14396_s22 + $0x1898] sm:$0xff]  ;;  %v12600_v14 = vcombine.low %v1282_v4, %v1286_v5 }
 0x40d   : > { %6369 = vmatprep.subr.bf16.mxu0 %v12495_v21  ;;  %6656 = vmatprep.subr.bf16.mxu1 %v12497_v16  ;;  %v1241_v21 = vld [vmem:[%s14396_s22 + $0x1710] sm:$0xff]  ;;  %v1294_v11 = vld [vmem:[%s14396_s22 + $0x18b8] sm:$0xff] }
 0x40e   : > { %v1245_v16 = vld [vmem:[%s14396_s22 + $0x1730] sm:$0xff] }
 0x40f   : > { %v12558_v33 = vcombine.low %v1241_v21, %v1245_v16 }
 0x410   : > { %6370 = vmatpush1.bf16.msra.mxu0 %v12494_v28  ;;  %6657 = vmatpush1.bf16.msra.mxu1 %v12496_v29  ;;  %v12559_v28 = vcombine.high %v1241_v21, %v1245_v16  ;;  %v12561_v29 = vcombine.high %v1242_v22, %v1246_v24  ;;  %v1298_v21 = vld [vmem:[%s14396_s22 + $0x18d8] sm:$0xff]  ;;  %v12608_v22 = vcombine.low %v1290_v10, %v1294_v11 }
 0x411   : > { %6371 = vmatprep.subr.bf16.mxu0 %v12503_v37  ;;  %6658 = vmatprep.subr.bf16.mxu1 %v12505_v30  ;;  %v1249_v37 = vld [vmem:[%s14396_s22 + $0x1750] sm:$0xff]  ;;  %v1302_v16 = vld [vmem:[%s14396_s22 + $0x18f8] sm:$0xff] }
 0x412   : > { %v1253_v30 = vld [vmem:[%s14396_s22 + $0x1770] sm:$0xff] }
 0x413   : > { %v12566_v41 = vcombine.low %v1249_v37, %v1253_v30 }
 0x414   : > { %6372 = vmatpush1.bf16.msra.mxu0 %v12502_v58  ;;  %6659 = vmatpush1.bf16.msra.mxu1 %v12504_v35  ;;  %v12567_v58 = vcombine.high %v1249_v37, %v1253_v30  ;;  %v12569_v35 = vcombine.high %v1250_v31, %v1254_v32  ;;  %v1310_v37 = vld [vmem:[%s14396_s22 + $0x1938] sm:$0xff] }
 0x415   : > { %6373 = vmatprep.subr.bf16.mxu0 %v12511_v36  ;;  %6660 = vmatprep.subr.bf16.mxu1 %v12513_v26  ;;  %v1257_v36 = vld [vmem:[%s14396_s22 + $0x1790] sm:$0xff] }
 0x416   : > { %v1261_v26 = vld [vmem:[%s14396_s22 + $0x17b0] sm:$0xff] }
 0x417   : > { %v12574_v50 = vcombine.low %v1257_v36, %v1261_v26 }
 0x418   : > { %6374 = vmatpush1.bf16.msra.mxu0 %v12510_v43  ;;  %6661 = vmatpush1.bf16.msra.mxu1 %v12512_v44  ;;  %v12575_v43 = vcombine.high %v1257_v36, %v1261_v26  ;;  %v12577_v44 = vcombine.high %v1258_v38, %v1262_v39 }
 0x419   : > { %6375 = vmatprep.subr.bf16.mxu0 %v12519_v45  ;;  %6662 = vmatprep.subr.bf16.mxu1 %v12521_v46  ;;  %v1265_v45 = vld [vmem:[%s14396_s22 + $0x17d0] sm:$0xff] }
 0x41a   : > { %v1269_v46 = vld [vmem:[%s14396_s22 + $0x17f0] sm:$0xff] }
 0x41b   : > { %v12582_v20 = vcombine.low %v1265_v45, %v1269_v46 }
 0x41c   : > { %6376 = vmatpush1.bf16.msra.mxu0 %v12518_v13  ;;  %6663 = vmatpush1.bf16.msra.mxu1 %v12520_v52  ;;  %v12583_v13 = vcombine.high %v1265_v45, %v1269_v46  ;;  %v12585_v52 = vcombine.high %v1266_v48, %v1270_v49 }
 0x41d   : > { %6377 = vmatprep.subr.bf16.mxu0 %v12527_v56  ;;  %6664 = vmatprep.subr.bf16.mxu1 %v12529_v53  ;;  %v1273_v56 = vld [vmem:[%s14396_s22 + $0x1810] sm:$0xff] }
 0x41e   : > { %v1277_v53 = vld [vmem:[%s14396_s22 + $0x1830] sm:$0xff] }
 0x41f   : > { %v12590_v6 = vcombine.low %v1273_v56, %v1277_v53 }
 0x420   : > { %6378 = vmatpush1.bf16.msra.mxu0 %v12526_v62  ;;  %6665 = vmatpush1.bf16.msra.mxu1 %v12528_v0  ;;  %v12591_v62 = vcombine.high %v1273_v56, %v1277_v53  ;;  %v12593_v0 = vcombine.high %v1274_v55, %v1278_v57 }
 0x421   : > { %6379 = vmatprep.subr.bf16.mxu0 %v12535_v1  ;;  %6666 = vmatprep.subr.bf16.mxu1 %v12537_v40  ;;  %v1281_v1 = vld [vmem:[%s14396_s22 + $0x1850] sm:$0xff] }
 0x422   : > { %v1285_v40 = vld [vmem:[%s14396_s22 + $0x1870] sm:$0xff] }
 0x423   : > { %v12598_v12 = vcombine.low %v1281_v1, %v1285_v40 }
 0x424   : > { %6380 = vmatpush1.bf16.msra.mxu0 %v12534_v8  ;;  %6667 = vmatpush1.bf16.msra.mxu1 %v12536_v9  ;;  %v12599_v8 = vcombine.high %v1281_v1, %v1285_v40  ;;  %v12601_v9 = vcombine.high %v1282_v4, %v1286_v5  ;;  %v7127_v1 = vld [vmem:[%s14410_s9 + $0x20] sm:$0xff] }
 0x425   : > { %6381 = vmatprep.subr.bf16.mxu0 %v12543_v17  ;;  %6668 = vmatprep.subr.bf16.mxu1 %v12545_v23  ;;  %v1289_v17 = vld [vmem:[%s14396_s22 + $0x1890] sm:$0xff] }
 0x426   : > { %v1293_v23 = vld [vmem:[%s14396_s22 + $0x18b0] sm:$0xff] }
 0x427   : > { %v7251_v40 = vld [vmem:[%s14410_s9 + $0x400] sm:$0xff] }
 0x428   : > { %6382 = vmatpush1.bf16.msra.mxu0 %v12542_v15  ;;  %6669 = vmatpush1.bf16.msra.mxu1 %v12544_v18  ;;  %v12607_v15 = vcombine.high %v1289_v17, %v1293_v23  ;;  %v12609_v18 = vcombine.high %v1290_v10, %v1294_v11  ;;  %v7255_v5 = vld [vmem:[%s14410_s9 + $0x420] sm:$0xff] }
 0x429   : > { %6383 = vmatprep.subr.bf16.mxu0 %v12551_v19  ;;  %6670 = vmatprep.subr.bf16.mxu1 %v12553_v60  ;;  %v1297_v19 = vld [vmem:[%s14396_s22 + $0x18d0] sm:$0xff] }
 0x42a   : > { %v1301_v60 = vld [vmem:[%s14396_s22 + $0x18f0] sm:$0xff] }
 0x42b   : > { %v12615_v24 = vcombine.high %v1297_v19, %v1301_v60  ;;  %v12614_v30 = vcombine.low %v1297_v19, %v1301_v60  ;;  %v7263_v11 = vld [vmem:[%s14410_s9 + $0x460] sm:$0xff] }
 0x42c   : > { %6384 = vmatpush1.bf16.msra.mxu0 %v12550_v25  ;;  %6671 = vmatpush1.bf16.msra.mxu1 %v12552_v27  ;;  %v12617_v25 = vcombine.high %v1298_v21, %v1302_v16  ;;  %v1305_v27 = vld [vmem:[%s14396_s22 + $0x1910] sm:$0xff] }
 0x42d   : > { %6385 = vmatprep.subr.bf16.mxu0 %v12559_v28  ;;  %6672 = vmatprep.subr.bf16.mxu1 %v12561_v29  ;;  %v1309_v28 = vld [vmem:[%s14396_s22 + $0x1930] sm:$0xff]  ;;  %v1306_v29 = vld [vmem:[%s14396_s22 + $0x1918] sm:$0xff] }
 0x42e   : > { %v12623_v31 = vcombine.high %v1305_v27, %v1309_v28  ;;  %v12625_v32 = vcombine.high %v1306_v29, %v1310_v37  ;;  %v12622_v36 = vcombine.low %v1305_v27, %v1309_v28  ;;  %v12624_v26 = vcombine.low %v1306_v29, %v1310_v37  ;;  %v7143_v19 = vld [vmem:[%s14410_s9 + $0xa0] sm:$0xff] }
 0x42f   : > { %v7267_v60 = vld [vmem:[%s14410_s9 + $0x480] sm:$0xff] }
 0x430   : > { %6386 = vmatpush1.bf16.msra.mxu0 %v12558_v33  ;;  %6673 = vmatpush1.bf16.msra.mxu1 %v12560_v34  ;;  %v1313_v33 = vld [vmem:[%s14396_s22 + $0x1950] sm:$0xff] }
 0x431   : > { %6387 = vmatprep.subr.bf16.mxu0 %v12567_v58  ;;  %6674 = vmatprep.subr.bf16.mxu1 %v12569_v35  ;;  %v1317_v34 = vld [vmem:[%s14396_s22 + $0x1970] sm:$0xff]  ;;  %v1314_v58 = vld [vmem:[%s14396_s22 + $0x1958] sm:$0xff] }
 0x432   : > { %v1318_v35 = vld [vmem:[%s14396_s22 + $0x1978] sm:$0xff]  ;;  %v12631_v38 = vcombine.high %v1313_v33, %v1317_v34  ;;  %v12630_v45 = vcombine.low %v1313_v33, %v1317_v34  ;;  %v7151_v27 = vld [vmem:[%s14410_s9 + $0xe0] sm:$0xff] }
 0x433   : > { %v12633_v39 = vcombine.high %v1314_v58, %v1318_v35  ;;  %v12632_v46 = vcombine.low %v1314_v58, %v1318_v35  ;;  %v7275_v28 = vld [vmem:[%s14410_s9 + $0x4c0] sm:$0xff] }
 0x434   : > { %6388 = vmatpush1.bf16.msra.mxu0 %v12566_v41  ;;  %6675 = vmatpush1.bf16.msra.mxu1 %v12568_v42  ;;  %v1321_v41 = vld [vmem:[%s14396_s22 + $0x1990] sm:$0xff] }
 0x435   : > { %6389 = vmatprep.subr.bf16.mxu0 %v12575_v43  ;;  %6676 = vmatprep.subr.bf16.mxu1 %v12577_v44  ;;  %v1325_v42 = vld [vmem:[%s14396_s22 + $0x19b0] sm:$0xff]  ;;  %v1322_v43 = vld [vmem:[%s14396_s22 + $0x1998] sm:$0xff] }
 0x436   : > { %v1326_v44 = vld [vmem:[%s14396_s22 + $0x19b8] sm:$0xff]  ;;  %v12639_v48 = vcombine.high %v1321_v41, %v1325_v42  ;;  %v12638_v56 = vcombine.low %v1321_v41, %v1325_v42  ;;  %v7279_v37 = vld [vmem:[%s14410_s9 + $0x4e0] sm:$0xff] }
 0x437   : > { %v12641_v49 = vcombine.high %v1322_v43, %v1326_v44  ;;  %v12640_v53 = vcombine.low %v1322_v43, %v1326_v44  ;;  %v7159_v33 = vld [vmem:[%s14410_s9 + $0x120] sm:$0xff] }
 0x438   : > { %6390 = vmatpush1.bf16.msra.mxu0 %v12574_v50  ;;  %6677 = vmatpush1.bf16.msra.mxu1 %v12576_v51  ;;  %v1329_v50 = vld [vmem:[%s14396_s22 + $0x19d0] sm:$0xff] }
 0x439   : > { %6391 = vmatprep.subr.bf16.mxu0 %v12583_v13  ;;  %6678 = vmatprep.subr.bf16.mxu1 %v12585_v52  ;;  %v1333_v51 = vld [vmem:[%s14396_s22 + $0x19f0] sm:$0xff]  ;;  %v1330_v13 = vld [vmem:[%s14396_s22 + $0x19d8] sm:$0xff] }
 0x43a   : > { %v1334_v52 = vld [vmem:[%s14396_s22 + $0x19f8] sm:$0xff]  ;;  %v12647_v55 = vcombine.high %v1329_v50, %v1333_v51  ;;  %v7283_v34 = vld [vmem:[%s14410_s9 + $0x500] sm:$0xff] }
 0x43b   : > { %v12649_v57 = vcombine.high %v1330_v13, %v1334_v52  ;;  %v7287_v35 = vld [vmem:[%s14410_s9 + $0x520] sm:$0xff] }
 0x43c   : > { %6392 = vmatpush1.bf16.msra.mxu0 %v12582_v20  ;;  %6679 = vmatpush1.bf16.msra.mxu1 %v12584_v61  ;;  %v12646_v20 = vcombine.low %v1329_v50, %v1333_v51  ;;  %v12648_v61 = vcombine.low %v1330_v13, %v1334_v52  ;;  %v7167_v41 = vld [vmem:[%s14410_s9 + $0x160] sm:$0xff] }
 0x43d   : > { %6402 = vmatprep.subr.bf16.mxu0 %v12591_v62  ;;  %6689 = vmatprep.subr.bf16.mxu1 %v12593_v0  ;;  %v13589_v62 = vld [vmem:[#allocation3 + $0x30] ss:$0 sps:$4 sm:$0xff]   ;;  %v7123_v0 = vld [vmem:[%s14410_s9] sm:$0xff] }
 0x43e   : > { %v12651_v4 = vcombine.high %v7123_v0, %v7127_v1  ;;  %v7291_v42 = vld [vmem:[%s14410_s9 + $0x540] sm:$0xff] }
 0x43f   : > { %6394 = vmatmul.mubr.bf16.vlgmr.msra.gmra.mrb[4].mxu0 %v14896_v47  ;;  %6681 = vmatmul.mubr.bf16.vlgmr.msra.gmra.mrb[4].mxu1 %v14896_v47  ;;  %v12606_v47 = vcombine.low %v1289_v17, %v1293_v23  ;;  %v7135_v17 = vld [vmem:[%s14410_s9 + $0x60] sm:$0xff] }
 0x440   : > { %6403 = vmatpush1.bf16.msra.mxu0 %v12590_v6  ;;  %6690 = vmatpush1.bf16.msra.mxu1 %v12592_v7  ;;  %v12650_v6 = vcombine.low %v7123_v0, %v7127_v1  ;;  %v12778_v7 = vcombine.low %v7251_v40, %v7255_v5  ;;  %v7259_v23 = vld [vmem:[%s14410_s9 + $0x440] sm:$0xff] }
 0x441   : > { %6404 = vmatprep.subr.bf16.mxu0 %v12599_v8  ;;  %6691 = vmatprep.subr.bf16.mxu1 %v12601_v9  ;;  %v12779_v8 = vcombine.high %v7251_v40, %v7255_v5  ;;  %v7131_v9 = vld [vmem:[%s14410_s9 + $0x40] sm:$0xff] }
 0x442   : > { %6434 = vmatprep.mubr.bf16.mxu0 %v14016_v3  ;;  %6721 = vmatprep.mubr.bf16.mxu1 %v14016_v3  ;;  %v12616_v3 = vcombine.low %v1298_v21, %v1302_v16  ;;  %v12659_v10 = vcombine.high %v7131_v9, %v7135_v17  ;;  %v7271_v16 = vld [vmem:[%s14410_s9 + $0x4a0] sm:$0xff] }
 0x443   : > { %v7295_v44 = vld [vmem:[%s14410_s9 + $0x560] sm:$0xff] }
 0x444   : > { %6405 = vmatpush1.bf16.msra.mxu0 %v12598_v12  ;;  %6692 = vmatpush1.bf16.msra.mxu1 %v12600_v14  ;;  %v12658_v12 = vcombine.low %v7131_v9, %v7135_v17  ;;  %v12786_v14 = vcombine.low %v7259_v23, %v7263_v11  ;;  %v7175_v50 = vld [vmem:[%s14410_s9 + $0x1a0] sm:$0xff] }
 0x445   : > { %6406 = vmatprep.subr.bf16.mxu0 %v12607_v15  ;;  %6693 = vmatprep.subr.bf16.mxu1 %v12609_v18  ;;  %v12787_v15 = vcombine.high %v7259_v23, %v7263_v11  ;;  %v7139_v18 = vld [vmem:[%s14410_s9 + $0x80] sm:$0xff] }
 0x446   : > { %v12667_v21 = vcombine.high %v7139_v18, %v7143_v19  ;;  %v7299_v51 = vld [vmem:[%s14410_s9 + $0x580] sm:$0xff] }
 0x447   : > { %v7303_v52 = vld [vmem:[%s14410_s9 + $0x5a0] sm:$0xff] }
 0x448   : > { %6407 = vmatpush1.bf16.msra.mxu0 %v12606_v47  ;;  %6694 = vmatpush1.bf16.msra.mxu1 %v12608_v22  ;;  %v12666_v47 = vcombine.low %v7139_v18, %v7143_v19  ;;  %v12794_v22 = vcombine.low %v7267_v60, %v7271_v16  ;;  %v7311_v0 = vld [vmem:[%s14410_s9 + $0x5e0] sm:$0xff] }
 0x449   : > { %6408 = vmatprep.subr.bf16.mxu0 %v12615_v24  ;;  %6695 = vmatprep.subr.bf16.mxu1 %v12617_v25  ;;  %v12795_v24 = vcombine.high %v7267_v60, %v7271_v16  ;;  %v7147_v25 = vld [vmem:[%s14410_s9 + $0xc0] sm:$0xff] }
 0x44a   : > { %v12675_v29 = vcombine.high %v7147_v25, %v7151_v27  ;;  %v7187_v5 = vld [vmem:[%s14410_s9 + $0x200] sm:$0xff] }
 0x44b   : > { %v7319_v9 = vld [vmem:[%s14410_s9 + $0x620] sm:$0xff] }
 0x44c   : > { %6409 = vmatpush1.bf16.msra.mxu0 %v12614_v30  ;;  %6696 = vmatpush1.bf16.msra.mxu1 %v12616_v3  ;;  %v12674_v30 = vcombine.low %v7147_v25, %v7151_v27  ;;  %v12802_v3 = vcombine.low %v7275_v28, %v7279_v37  ;;  %v7195_v11 = vld [vmem:[%s14410_s9 + $0x240] sm:$0xff] }
 0x44d   : > { %6410 = vmatprep.subr.bf16.mxu0 %v12623_v31  ;;  %6697 = vmatprep.subr.bf16.mxu1 %v12625_v32  ;;  %v12803_v31 = vcombine.high %v7275_v28, %v7279_v37  ;;  %v7155_v32 = vld [vmem:[%s14410_s9 + $0x100] sm:$0xff] }
 0x44e   : > { %v12683_v58 = vcombine.high %v7155_v32, %v7159_v33  ;;  %v7327_v18 = vld [vmem:[%s14410_s9 + $0x660] sm:$0xff] }
 0x44f   : > { %v7203_v16 = vld [vmem:[%s14410_s9 + $0x280] sm:$0xff] }
 0x450   : > { %6411 = vmatpush1.bf16.msra.mxu0 %v12622_v36  ;;  %6698 = vmatpush1.bf16.msra.mxu1 %v12624_v26  ;;  %v12682_v36 = vcombine.low %v7155_v32, %v7159_v33  ;;  %v12810_v26 = vcombine.low %v7283_v34, %v7287_v35  ;;  %v7335_v25 = vld [vmem:[%s14410_s9 + $0x6a0] sm:$0xff]  ;;  %v1336_v33 = vlaneseq }
 0x451   : > { %6412 = vmatprep.subr.bf16.mxu0 %v12631_v38  ;;  %6699 = vmatprep.subr.bf16.mxu1 %v12633_v39  ;;  %v12811_v38 = vcombine.high %v7283_v34, %v7287_v35  ;;  %v7163_v39 = vld [vmem:[%s14410_s9 + $0x140] sm:$0xff] }
 0x452   : > { %v12691_v43 = vcombine.high %v7163_v39, %v7167_v41  ;;  %v7211_v37 = vld [vmem:[%s14410_s9 + $0x2c0] sm:$0xff] }
 0x453   : > { %v7343_v32 = vld [vmem:[%s14410_s9 + $0x6e0] sm:$0xff] }
 0x454   : > { %6413 = vmatpush1.bf16.msra.mxu0 %v12630_v45  ;;  %6700 = vmatpush1.bf16.msra.mxu1 %v12632_v46  ;;  %v12690_v45 = vcombine.low %v7163_v39, %v7167_v41  ;;  %v12818_v46 = vcombine.low %v7291_v42, %v7295_v44  ;;  %v7351_v41 = vld [vmem:[%s14410_s9 + $0x720] sm:$0xff] }
 0x455   : > { %6414 = vmatprep.subr.bf16.mxu0 %v12639_v48  ;;  %6701 = vmatprep.subr.bf16.mxu1 %v12641_v49  ;;  %v12819_v48 = vcombine.high %v7291_v42, %v7295_v44  ;;  %v7171_v49 = vld [vmem:[%s14410_s9 + $0x180] sm:$0xff]  ;;  %v15433_v42 = vshrl.u32 %v1336_v33, 7 }
 0x456   : > { %v12699_v13 = vcombine.high %v7171_v49, %v7175_v50 }
 0x458   : > { %6415 = vmatpush1.bf16.msra.mxu0 %v12638_v56  ;;  %6702 = vmatpush1.bf16.msra.mxu1 %v12640_v53  ;;  %v12698_v56 = vcombine.low %v7171_v49, %v7175_v50  ;;  %v12826_v53 = vcombine.low %v7299_v51, %v7303_v52  ;;  %v7355_v49 = vld [vmem:[%s14410_s9 + $0x740] sm:$0xff] }
 0x459   : > { %6416 = vmatprep.subr.bf16.mxu0 %v12647_v55  ;;  %6703 = vmatprep.subr.bf16.mxu1 %v12649_v57  ;;  %v12827_v55 = vcombine.high %v7299_v51, %v7303_v52  ;;  %v7179_v57 = vld [vmem:[%s14410_s9 + $0x1c0] sm:$0xff]  ;;  %v15443_v52 = vsub.s32 0, %v15433_v42 }
 0x45a   : > { %v15439_v50 = vld [vmem:[%s490_s14] sm:$0xff] }
 0x45c   : > { %6417 = vmatpush1.bf16.msra.mxu0 %v12646_v20  ;;  %6704 = vmatpush1.bf16.msra.mxu1 %v12648_v61  ;;  %v7183_v20 = vld [vmem:[%s14410_s9 + $0x1e0] sm:$0xff] }
 0x45d   : > { %10195 = vmatprep.subr.bf16.mxu0 %v12651_v4  ;;  %10236 = vmatprep.subr.bf16.mxu1 %v12779_v8  ;;  %v7307_v61 = vld [vmem:[%s14410_s9 + $0x5c0] sm:$0xff]  ;;  %v12706_v1 = vcombine.low %v7179_v57, %v7183_v20 }
 0x45e   : > { %v12834_v40 = vcombine.low %v7307_v61, %v7311_v0  ;;  %v12835_v4 = vcombine.high %v7307_v61, %v7311_v0  ;;  %v7363_v61 = vld [vmem:[%s14410_s9 + $0x780] sm:$0xff] }
 0x45f   : > { %6435 = vmatmul.mubr.bf16.vlgmr.msra.gmra.mrb[4].mxu0 %v13589_v62  ;;  %6722 = vmatmul.mubr.bf16.vlgmr.msra.gmra.mrb[4].mxu1 %v13589_v62  ;;  %v12707_v62 = vcombine.high %v7179_v57, %v7183_v20  ;;  %v7235_v57 = vld [vmem:[%s14410_s9 + $0x380] sm:$0xff] }
 0x460   : > { %10196 = vmatpush1.bf16.msra.mxu0 %v12650_v6  ;;  %10237 = vmatpush1.bf16.msra.mxu1 %v12778_v7  ;;  %v7191_v6 = vld [vmem:[%s14410_s9 + $0x220] sm:$0xff] }
 0x461   : > { %10197 = vmatprep.subr.bf16.mxu0 %v12659_v10  ;;  %10238 = vmatprep.subr.bf16.mxu1 %v12787_v15  ;;  %v7315_v7 = vld [vmem:[%s14410_s9 + $0x600] sm:$0xff]  ;;  %v12715_v8 = vcombine.high %v7187_v5, %v7191_v6  ;;  %v12714_v17 = vcombine.low %v7187_v5, %v7191_v6  ;;  %v15455_v5 = vsub.s32 1, %v15433_v42 }
 0x462   : > { %v12842_v23 = vcombine.low %v7315_v7, %v7319_v9  ;;  %v12843_v10 = vcombine.high %v7315_v7, %v7319_v9  ;;  %v7239_v20 = vld [vmem:[%s14410_s9 + $0x3a0] sm:$0xff] }
 0x463   : > { %v12763_v0 = vcombine.high %v7235_v57, %v7239_v20  ;;  %v12762_v6 = vcombine.low %v7235_v57, %v7239_v20  ;;  %v7375_v9 = vld [vmem:[%s14410_s9 + $0x7e0] sm:$0xff] }
 0x464   : > { %10198 = vmatpush1.bf16.msra.mxu0 %v12658_v12  ;;  %10239 = vmatpush1.bf16.msra.mxu1 %v12786_v14  ;;  %v7199_v12 = vld [vmem:[%s14410_s9 + $0x260] sm:$0xff] }
 0x465   : > { %10199 = vmatprep.subr.bf16.mxu0 %v12667_v21  ;;  %10240 = vmatprep.subr.bf16.mxu1 %v12795_v24  ;;  %v7323_v14 = vld [vmem:[%s14410_s9 + $0x640] sm:$0xff]  ;;  %v12723_v15 = vcombine.high %v7195_v11, %v7199_v12  ;;  %v12722_v19 = vcombine.low %v7195_v11, %v7199_v12  ;;  %v1339_v11 = vrot.slane %v15439_v50, %v15443_v52 }
 0x466   : > { %v12850_v60 = vcombine.low %v7323_v14, %v7327_v18  ;;  %v12851_v21 = vcombine.high %v7323_v14, %v7327_v18 }
 0x468   : > { %10200 = vmatpush1.bf16.msra.mxu0 %v12666_v47  ;;  %10241 = vmatpush1.bf16.msra.mxu1 %v12794_v22  ;;  %v7207_v47 = vld [vmem:[%s14410_s9 + $0x2a0] sm:$0xff] }
 0x469   : > { %10201 = vmatprep.subr.bf16.mxu0 %v12675_v29  ;;  %10242 = vmatprep.subr.bf16.mxu1 %v12803_v31  ;;  %v7331_v22 = vld [vmem:[%s14410_s9 + $0x680] sm:$0xff]  ;;  %v12731_v24 = vcombine.high %v7203_v16, %v7207_v47  ;;  %v12730_v27 = vcombine.low %v7203_v16, %v7207_v47 }
 0x46a   : > { %v12858_v28 = vcombine.low %v7331_v22, %v7335_v25  ;;  %v12859_v29 = vcombine.high %v7331_v22, %v7335_v25  ;;  %v15477_v25 = vld [vmem:[%s14410_s9 + $0x800] sm:$0xff] }
 0x46c   : > { %10202 = vmatpush1.bf16.msra.mxu0 %v12674_v30  ;;  %10243 = vmatpush1.bf16.msra.mxu1 %v12802_v3  ;;  %v7215_v30 = vld [vmem:[%s14410_s9 + $0x2e0] sm:$0xff] }
 0x46d   : > { %10203 = vmatprep.subr.bf16.mxu0 %v12683_v58  ;;  %10244 = vmatprep.subr.bf16.mxu1 %v12811_v38  ;;  %v7339_v3 = vld [vmem:[%s14410_s9 + $0x6c0] sm:$0xff]  ;;  %v12739_v31 = vcombine.high %v7211_v37, %v7215_v30  ;;  %v12738_v34 = vcombine.low %v7211_v37, %v7215_v30 }
 0x46e   : > { %v12866_v58 = vcombine.low %v7339_v3, %v7343_v32  ;;  %v12867_v35 = vcombine.high %v7339_v3, %v7343_v32  ;;  %v7347_v38 = vld [vmem:[%s14410_s9 + $0x700] sm:$0xff] }
 0x46f   : > { %v12874_v44 = vcombine.low %v7347_v38, %v7351_v41 }
 0x470   : > { %10204 = vmatpush1.bf16.msra.mxu0 %v12682_v36  ;;  %10245 = vmatpush1.bf16.msra.mxu1 %v12810_v26  ;;  %v7219_v36 = vld [vmem:[%s14410_s9 + $0x300] sm:$0xff] }
 0x471   : > { %10205 = vmatprep.subr.bf16.mxu0 %v12691_v43  ;;  %10246 = vmatprep.subr.bf16.mxu1 %v12819_v48  ;;  %v7223_v26 = vld [vmem:[%s14410_s9 + $0x320] sm:$0xff] }
 0x472   : > { %v12747_v39 = vcombine.high %v7219_v36, %v7223_v26  ;;  %v12746_v43 = vcombine.low %v7219_v36, %v7223_v26  ;;  %v7231_v48 = vld [vmem:[%s14410_s9 + $0x360] sm:$0xff] }
 0x474   : > { %10206 = vmatpush1.bf16.msra.mxu0 %v12690_v45  ;;  %10247 = vmatpush1.bf16.msra.mxu1 %v12818_v46  ;;  %v12875_v45 = vcombine.high %v7347_v38, %v7351_v41  ;;  %v7227_v46 = vld [vmem:[%s14410_s9 + $0x340] sm:$0xff] }
 0x475   : > { %10207 = vmatprep.subr.bf16.mxu0 %v12699_v13  ;;  %10248 = vmatprep.subr.bf16.mxu1 %v12827_v55  ;;  %v12755_v51 = vcombine.high %v7227_v46, %v7231_v48  ;;  %v7359_v13 = vld [vmem:[%s14410_s9 + $0x760] sm:$0xff] }
 0x476   : > { %v12883_v55 = vcombine.high %v7355_v49, %v7359_v13 }
 0x478   : > { %10208 = vmatpush1.bf16.msra.mxu0 %v12698_v56  ;;  %10249 = vmatpush1.bf16.msra.mxu1 %v12826_v53  ;;  %v12754_v56 = vcombine.low %v7227_v46, %v7231_v48  ;;  %v12882_v53 = vcombine.low %v7355_v49, %v7359_v13 }
 0x479   : > { %10209 = vmatprep.subr.bf16.mxu0 %v12707_v62  ;;  %10250 = vmatprep.subr.bf16.mxu1 %v12835_v4  ;;  %v15449_v62 = vsub.s32 2, %v15433_v42  ;;  %v7247_v4 = vld [vmem:[%s14410_s9 + $0x3e0] sm:$0xff] }
 0x47b   : > { %v1347_v14 = vrot.slane %v15439_v50, %v15449_v62 }
 0x47c   : > { %10210 = vmatpush1.bf16.msra.mxu0 %v12706_v1  ;;  %10251 = vmatpush1.bf16.msra.mxu1 %v12834_v40  ;;  %v7367_v1 = vld [vmem:[%s14410_s9 + $0x7a0] sm:$0xff] }
 0x47d   : > { %10211 = vmatprep.subr.bf16.mxu0 %v12715_v8  ;;  %10252 = vmatprep.subr.bf16.mxu1 %v12843_v10  ;;  %v7243_v40 = vld [vmem:[%s14410_s9 + $0x3c0] sm:$0xff]  ;;  %v12891_v7 = vcombine.high %v7363_v61, %v7367_v1  ;;  %v13324_v16 = vadd.f32 %v15166_v54, %v1347_v14 }
 0x47e   : > { %v7371_v8 = vld [vmem:[%s14410_s9 + $0x7c0] sm:$0xff]  ;;  %v12771_v10 = vcombine.high %v7243_v40, %v7247_v4  ;;  %v12770_v18 = vcombine.low %v7243_v40, %v7247_v4 }
 0x47f   : > { %v12899_v12 = vcombine.high %v7371_v8, %v7375_v9  ;;  %v15490_v54 = vld [vmem:[%s14410_s9 + $0xc20] sm:$0xff] }
 0x480   : > { %10212 = vmatpush1.bf16.msra.mxu0 %v12714_v17  ;;  %10253 = vmatpush1.bf16.msra.mxu1 %v12842_v23  ;;  %v15460_v17 = vsub.s32 3, %v15433_v42  ;;  %v12890_v23 = vcombine.low %v7363_v61, %v7367_v1 }
 0x481   : > { %10213 = vmatprep.subr.bf16.mxu0 %v12723_v15  ;;  %10254 = vmatprep.subr.bf16.mxu1 %v12851_v21  ;;  %v1343_v15 = vrot.slane %v15439_v50, %v15455_v5  ;;  %v13322_v21 = vadd.f32 %v15162_v59, %v1339_v11 }
 0x483   : > { %v13323_v47 = vadd.f32 %v15168_v63, %v1343_v15 }
 0x484   : > { %10214 = vmatpush1.bf16.msra.mxu0 %v12722_v19  ;;  %10255 = vmatpush1.bf16.msra.mxu1 %v12850_v60  ;;  %v1351_v19 = vrot.slane %v15439_v50, %v15460_v17  ;;  %v12898_v60 = vcombine.low %v7371_v8, %v7375_v9  ;;  %v15525_v8 = vsub.s32 4, %v15433_v42 }
 0x485   : > { %10215 = vmatprep.subr.bf16.mxu0 %v12731_v24  ;;  %10256 = vmatprep.subr.bf16.mxu1 %v12859_v29  ;;  %v15474_v24 = vmax.f32 %v13322_v21, 0.0  ;;  %v15485_v29 = vmax.f32 %v13324_v16, 0.0  ;;  %v15492_v63 = vmax.f32 %v13323_v47, 0.0 }
 0x486   : > { %v13325_v22 = vadd.f32 %v15172_v2, %v1351_v19 }
 0x487   : > { %v6750_v32 = vrot.slane %v15485_v29, 4  ;;  %v6744_v33 = vrot.slane %v15492_v63, 4 }
 0x488   : > { %10216 = vmatpush1.bf16.msra.mxu0 %v12730_v27  ;;  %10257 = vmatpush1.bf16.msra.mxu1 %v12858_v28  ;;  %v15480_v27 = vld [vmem:[%s14410_s9 + $0x820] sm:$0xff]  ;;  %v15500_v3 = vmax.f32 %v13325_v22, 0.0 }
 0x489   : > { %10217 = vmatprep.subr.bf16.mxu0 %v12739_v31  ;;  %10258 = vmatprep.subr.bf16.mxu1 %v12867_v35  ;;  %v15483_v28 = vld [vmem:[%s14410_s9 + $0xc00] sm:$0xff]  ;;  %v12907_v59 = vcombine.high %v15477_v25, %v15480_v27  ;;  %v12906_v2 = vcombine.low %v15477_v25, %v15480_v27  ;;  %v6738_v31 = vrot.slane %v15474_v24, 4  ;;  %v6751_v35 = vadd.f32 %v6750_v32, %v15485_v29 }
 0x48a   : > { %v13034_v37 = vcombine.low %v15483_v28, %v15490_v54  ;;  %v13035_v30 = vcombine.high %v15483_v28, %v15490_v54  ;;  %v6745_v36 = vadd.f32 %v6744_v33, %v15492_v63  ;;  %v7407_v25 = vld [vmem:[%s14410_s9 + $0x8e0] sm:$0xff] }
 0x48b   : > { %v7531_v27 = vld [vmem:[%s14410_s9 + $0xcc0] sm:$0xff] }
 0x48c   : > { %10218 = vmatpush1.bf16.msra.mxu0 %v12738_v34  ;;  %10259 = vmatpush1.bf16.msra.mxu1 %v12866_v58  ;;  %v6756_v34 = vrot.slane %v15500_v3, 4  ;;  %v6739_v58 = vadd.f32 %v6738_v31, %v15474_v24  ;;  %v6746_v41 = vrot.slane %v6745_v36, 2 }
 0x48d   : > { %10219 = vmatprep.subr.bf16.mxu0 %v12747_v39  ;;  %10260 = vmatprep.subr.bf16.mxu1 %v12875_v45  ;;  %v6752_v39 = vrot.slane %v6751_v35, 2 }
 0x48e   : > { %v6757_v26 = vadd.f32 %v6756_v34, %v15500_v3  ;;  %v6740_v38 = vrot.slane %v6739_v58, 2  ;;  %v6747_v46 = vadd.f32 %v6746_v41, %v6745_v36 }
 0x48f   : > { %v6753_v45 = vadd.f32 %v6752_v39, %v6751_v35 }
 0x490   : > { %10220 = vmatpush1.bf16.msra.mxu0 %v12746_v43  ;;  %10261 = vmatpush1.bf16.msra.mxu1 %v12874_v44  ;;  %v6758_v43 = vrot.slane %v6757_v26, 2  ;;  %v6741_v44 = vadd.f32 %v6740_v38, %v6739_v58  ;;  %v6748_v13 = vrot.slane %v6747_v46, 1 }
 0x491   : > { %10221 = vmatprep.subr.bf16.mxu0 %v12755_v51  ;;  %10262 = vmatprep.subr.bf16.mxu1 %v12883_v55  ;;  %v6754_v51 = vrot.slane %v6753_v45, 1 }
 0x492   : > { %v6759_v48 = vadd.f32 %v6758_v43, %v6757_v26  ;;  %v6742_v49 = vrot.slane %v6741_v44, 1  ;;  %v6749_v57 = vadd.f32 %v6748_v13, %v6747_v46 }
 0x493   : > { %v6755_v55 = vadd.f32 %v6754_v51, %v6753_v45 }
 0x494   : > { %10222 = vmatpush1.bf16.msra.mxu0 %v12754_v56  ;;  %10263 = vmatpush1.bf16.msra.mxu1 %v12882_v53  ;;  %v6760_v56 = vrot.slane %v6759_v48, 1  ;;  %v6743_v53 = vadd.f32 %v6742_v49, %v6741_v44  ;;  %v15514_v1 = vmul.f32 0.125, %v6749_v57 }
 0x495   : > { %10223 = vmatprep.subr.bf16.mxu0 %v12763_v0  ;;  %10264 = vmatprep.subr.bf16.mxu1 %v12891_v7  ;;  %v15512_v0 = vmul.f32 0.125, %v6755_v55 }
 0x496   : > { %v6761_v20 = vadd.f32 %v6760_v56, %v6759_v48  ;;  %v15510_v61 = vmul.f32 0.125, %v6743_v53  ;;  %v6796_v7 = vsub.f32 %v15492_v63, %v15514_v1 }
 0x498   : > { %10224 = vmatpush1.bf16.msra.mxu0 %v12762_v6  ;;  %10265 = vmatpush1.bf16.msra.mxu1 %v12890_v23  ;;  %v15516_v40 = vmul.f32 0.125, %v6761_v20  ;;  %v6795_v4 = vsub.f32 %v15474_v24, %v15510_v61  ;;  %v6797_v6 = vsub.f32 %v15485_v29, %v15512_v0  ;;  %v15530_v23 = vsub.s32 6, %v15433_v42 }
 0x499   : > { %10225 = vmatprep.subr.bf16.mxu0 %v12771_v10  ;;  %10266 = vmatprep.subr.bf16.mxu1 %v12899_v12  ;;  %v15533_v10 = vsub.s32 5, %v15433_v42  ;;  %v15536_v12 = vsub.s32 7, %v15433_v42  ;;  %v6804_v15 = vmul.f32 %v6796_v7, %v6796_v7 }
 0x49a   : > { %v6798_v9 = vsub.f32 %v15500_v3, %v15516_v40  ;;  %v6803_v11 = vmul.f32 %v6795_v4, %v6795_v4  ;;  %v6805_v14 = vmul.f32 %v6797_v6, %v6797_v6 }
 0x49b   : > { %v1359_v21 = vrot.slane %v15439_v50, %v15533_v10  ;;  %v1367_v47 = vrot.slane %v15439_v50, %v15536_v12 }
 0x49c   : > { %10226 = vmatpush1.bf16.msra.mxu0 %v12770_v18  ;;  %10267 = vmatpush1.bf16.msra.mxu1 %v12898_v60  ;;  %v1355_v18 = vrot.slane %v15439_v50, %v15525_v8  ;;  %v6806_v19 = vmul.f32 %v6798_v9, %v6798_v9  ;;  %v1363_v60 = vrot.slane %v15439_v50, %v15530_v23  ;;  %v6811_v16 = vrot.slane %v6803_v11, 4 }
 0x49d   : > { %10277 = vmatprep.subr.bf16.mxu0 %v12907_v59  ;;  %10318 = vmatprep.subr.bf16.mxu1 %v13035_v30  ;;  %v6823_v22 = vrot.slane %v6805_v14, 4  ;;  %v6817_v30 = vrot.slane %v6804_v15, 4 }
 0x49e   : > { %v6829_v34 = vrot.slane %v6806_v19, 4  ;;  %v6812_v38 = vadd.f32 %v6811_v16, %v6803_v11 }
 0x49f   : > { %v6824_v45 = vadd.f32 %v6823_v22, %v6805_v14  ;;  %v6818_v49 = vadd.f32 %v6817_v30, %v6804_v15 }
 0x4a0   : > { %v6830_v56 = vadd.f32 %v6829_v34, %v6806_v19  ;;  %v6813_v57 = vrot.slane %v6812_v38, 2 }
 0x4a1   : > { %v6825_v6 = vrot.slane %v6824_v45, 2  ;;  %v6819_v11 = vrot.slane %v6818_v49, 2 }
 0x4a3   : > { %v6826_v22 = vadd.f32 %v6825_v6, %v6824_v45 }
 0x532   : > { %v6436_v59 = vpop.f32.mrb[4].mxu0  ;;  %v6723_v32 = vpop.f32.mrb[4].mxu1 }
 0x533   : > { %v13326_v31 = vadd.f32 %v6436_v59, %v1355_v18  ;;  %v6438_v33 = vpop.f32.mrb[5].mxu0  ;;  %v13328_v58 = vadd.f32 %v6723_v32, %v1363_v60  ;;  %v6725_v36 = vpop.f32.mrb[5].mxu1  ;;  %v6831_v18 = vrot.slane %v6830_v56, 2 }
 0x534   : > { %v13327_v35 = vadd.f32 %v6438_v33, %v1359_v21  ;;  %v6440_v26 = vpop.f32.mrb[6].mxu0  ;;  %v13329_v41 = vadd.f32 %v6725_v36, %v1367_v47  ;;  %v6727_v43 = vpop.f32.mrb[6].mxu1  ;;  %v6814_v21 = vadd.f32 %v6813_v57, %v6812_v38 }
 0x535   : > { %v15546_v39 = vmax.f32 %v13326_v31, 0.0  ;;  %v6441_v44 = vpop.f32.mrb[7].mxu0  ;;  %v15548_v46 = vmax.f32 %v13328_v58, 0.0  ;;  %v6728_v48 = vpop.f32.mrb[7].mxu1  ;;  %v6820_v31 = vadd.f32 %v6819_v11, %v6818_v49  ;;  %v6832_v34 = vadd.f32 %v6831_v18, %v6830_v56 }
 0x536   : > { %v15550_v50 = vmax.f32 %v13327_v35, 0.0  ;;  %v15553_v13 = vmax.f32 %v13329_v41, 0.0  ;;  %v6815_v36 = vrot.slane %v6814_v21, 1  ;;  %v6827_v43 = vrot.slane %v6826_v22, 1 }
 0x537   : > { %v6762_v51 = vrot.slane %v15546_v39, 4  ;;  %v6774_v53 = vrot.slane %v15548_v46, 4 }
 0x538   : > { %v6768_v55 = vrot.slane %v15550_v50, 4  ;;  %v6780_v4 = vrot.slane %v15553_v13, 4  ;;  %v6816_v49 = vadd.f32 %v6815_v36, %v6814_v21 }
 0x539   : > { %v6763_v20 = vadd.f32 %v6762_v51, %v15546_v39  ;;  %v6775_v7 = vadd.f32 %v6774_v53, %v15548_v46  ;;  %v6821_v51 = vrot.slane %v6820_v31, 1 }
 0x53a   : > { %v6769_v9 = vadd.f32 %v6768_v55, %v15550_v50  ;;  %v6781_v15 = vadd.f32 %v6780_v4, %v15553_v13  ;;  %v6833_v55 = vrot.slane %v6832_v34, 1  ;;  %v6828_v4 = vadd.f32 %v6827_v43, %v6826_v22 }
 0x53b   : > { %v6764_v14 = vrot.slane %v6763_v20, 2  ;;  %v6776_v19 = vrot.slane %v6775_v7, 2 }
 0x53c   : > { %v6770_v60 = vrot.slane %v6769_v9, 2  ;;  %v6782_v47 = vrot.slane %v6781_v15, 2 }
 0x53d   : > { %v6765_v16 = vadd.f32 %v6764_v14, %v6763_v20  ;;  %v6777_v59 = vadd.f32 %v6776_v19, %v6775_v7 }
 0x53e   : > { %v6771_v30 = vadd.f32 %v6770_v60, %v6769_v9  ;;  %v6783_v33 = vadd.f32 %v6782_v47, %v6781_v15  ;;  %v6822_v9 = vadd.f32 %v6821_v51, %v6820_v31  ;;  %v6834_v15 = vadd.f32 %v6833_v55, %v6832_v34 }
 0x53f   : > { %v6766_v32 = vrot.slane %v6765_v16, 1  ;;  %v6778_v58 = vrot.slane %v6777_v59, 1  ;;  %v6859_v60 = vmul.f32 0.125, %v6816_v49  ;;  %v6861_v47 = vmul.f32 0.125, %v6828_v4 }
 0x540   : > { %v6772_v35 = vrot.slane %v6771_v30, 1  ;;  %v6784_v41 = vrot.slane %v6783_v33, 1 }
 0x541   : > { %v6767_v26 = vadd.f32 %v6766_v32, %v6765_v16  ;;  %v6779_v44 = vadd.f32 %v6778_v58, %v6777_v59  ;;  %v6862_v58 = vmul.f32 0.125, %v6834_v15  ;;  %v6867_v31 = vadd.f32 1e-05, %v6859_v60 }
 0x542   : > { %v6773_v48 = vadd.f32 %v6772_v35, %v6771_v30  ;;  %v6785_v38 = vadd.f32 %v6784_v41, %v6783_v33  ;;  %v6860_v30 = vmul.f32 0.125, %v6822_v9  ;;  %v6869_v43 = vadd.f32 1e-05, %v6861_v47 }
 0x543   : > { %v15562_v53 = vmul.f32 0.125, %v6767_v26  ;;  %v15564_v45 = vmul.f32 0.125, %v6779_v44  ;;  %v6870_v55 = vadd.f32 1e-05, %v6862_v58  ;;  %13573 = vrsqrt.f32 %v6867_v31 }
 0x544   : > { %v15566_v57 = vmul.f32 0.125, %v6773_v48  ;;  %v15570_v20 = vmul.f32 0.125, %v6785_v38  ;;  %v6868_v48 = vadd.f32 1e-05, %v6860_v30  ;;  %13575 = vrsqrt.f32 %v6869_v43 }
 0x545   : > { %v6799_v56 = vsub.f32 %v15546_v39, %v15562_v53  ;;  %v6801_v6 = vsub.f32 %v15548_v46, %v15564_v45 }
 0x546   : > { %v6800_v7 = vsub.f32 %v15550_v50, %v15566_v57  ;;  %v6802_v14 = vsub.f32 %v15553_v13, %v15570_v20  ;;  %13577 = vrsqrt.f32 %v6868_v48 }
 0x547   : > { %v6807_v11 = vmul.f32 %v6799_v56, %v6799_v56  ;;  %v6809_v18 = vmul.f32 %v6801_v6, %v6801_v6  ;;  %13579 = vrsqrt.f32 %v6870_v55 }
 0x548   : > { %v6808_v19 = vmul.f32 %v6800_v7, %v6800_v7  ;;  %v6810_v16 = vmul.f32 %v6802_v14, %v6802_v14 }
 0x549   : > { %v6835_v21 = vrot.slane %v6807_v11, 4  ;;  %v6847_v59 = vrot.slane %v6809_v18, 4 }
 0x54a   : > { %v6841_v22 = vrot.slane %v6808_v19, 4  ;;  %v6853_v33 = vrot.slane %v6810_v16, 4 }
 0x54b   : > { %v6836_v32 = vadd.f32 %v6835_v21, %v6807_v11  ;;  %v6848_v35 = vadd.f32 %v6847_v59, %v6809_v18 }
 0x54c   : > { %v6842_v36 = vadd.f32 %v6841_v22, %v6808_v19  ;;  %v6854_v41 = vadd.f32 %v6853_v33, %v6810_v16 }
 0x54d   : > { %v6837_v26 = vrot.slane %v6836_v32, 2  ;;  %v6849_v44 = vrot.slane %v6848_v35, 2 }
 0x54e   : > { %v6843_v34 = vrot.slane %v6842_v36, 2  ;;  %v6855_v38 = vrot.slane %v6854_v41, 2 }
 0x54f   : > { %v6838_v51 = vadd.f32 %v6837_v26, %v6836_v32  ;;  %v6850_v49 = vadd.f32 %v6849_v44, %v6848_v35  ;;  %v14017_v32 = vmov 1966171168   ;;  %v13574_v35 = vpop.eup %13573 }
 0x550   : > { %v6844_v56 = vadd.f32 %v6843_v34, %v6842_v36  ;;  %v6856_v6 = vadd.f32 %v6855_v38, %v6854_v41  ;;  %v6896_v33 = vunpack.c.l.s4 %v14017_v32  ;;  %v13576_v36 = vpop.eup %13575 }
 0x551   : > { %v6839_v4 = vrot.slane %v6838_v51, 1  ;;  %v6851_v7 = vrot.slane %v6850_v49, 1  ;;  %v13578_v31 = vpop.eup %13577 }
 0x552   : > { %v6845_v9 = vrot.slane %v6844_v56, 1  ;;  %v6857_v14 = vrot.slane %v6856_v6, 1  ;;  %v6897_v26 = vunpack.c.0.s8 %v6896_v33  ;;  %v13580_v41 = vpop.eup %13579  ;;  %v6891_v44 = vcombine.low %v13574_v35, %v13578_v31 }
 0x553   : > { %v6840_v11 = vadd.f32 %v6839_v4, %v6838_v51  ;;  %v6852_v15 = vadd.f32 %v6851_v7, %v6850_v49  ;;  %v6892_v34 = vcombine.low %v13576_v36, %v13580_v41 }
 0x554   : > { %v6846_v18 = vadd.f32 %v6845_v9, %v6844_v56  ;;  %v6858_v60 = vadd.f32 %v6857_v14, %v6856_v6  ;;  %v6900_v43 = vsub.s32 %v6897_v26, %v15433_v42 }
 0x555   : > { %v6863_v19 = vmul.f32 0.125, %v6840_v11  ;;  %v6865_v21 = vmul.f32 0.125, %v6852_v15 }
 0x556   : > { %v6864_v16 = vmul.f32 0.125, %v6846_v18  ;;  %v6866_v59 = vmul.f32 0.125, %v6858_v60  ;;  %v6901_v55 = vrot.slane %v6891_v44, %v6900_v43  ;;  %v6908_v49 = vrot.slane %v6892_v34, %v6900_v43 }
 0x557   : > { %v6871_v47 = vadd.f32 1e-05, %v6863_v19  ;;  %v6873_v22 = vadd.f32 1e-05, %v6865_v21  ;;  %v493_v19 = vld [vmem:[%s492_s30] sm:$0xff] }
 0x558   : > { %v6872_v30 = vadd.f32 1e-05, %v6864_v16  ;;  %v6874_v58 = vadd.f32 1e-05, %v6866_v59  ;;  %v6923_v9 = vcombine.low %v6901_v55, %v6908_v49 }
 0x559   : > { %13581 = vrsqrt.f32 %v6871_v47 }
 0x55a   : > { %13583 = vrsqrt.f32 %v6873_v22  ;;  %v6931_v15 = vrot.slane %v6923_v9, %v6900_v43 }
 0x55b   : > { %13585 = vrsqrt.f32 %v6872_v30 }
 0x55c   : > { %13587 = vrsqrt.f32 %v6874_v58 }
 0x563   : > { %v13582_v48 = vpop.eup %13581 }
 0x564   : > { %v13584_v51 = vpop.eup %13583 }
 0x565   : > { %v13586_v38 = vpop.eup %13585 }
 0x566   : > { %v13588_v56 = vpop.eup %13587  ;;  %v6893_v4 = vcombine.low %v13582_v48, %v13586_v38 }
 0x567   : > { %v6894_v6 = vcombine.low %v13584_v51, %v13588_v56 }
 0x568   : > { %v6915_v7 = vrot.slane %v6893_v4, %v6900_v43 }
 0x569   : > { %v6922_v11 = vrot.slane %v6894_v6, %v6900_v43 }
 0x56b   : > { %v6924_v14 = vcombine.low %v6915_v7, %v6922_v11 }
 0x56d   : > { %v6938_v18 = vrot.slane %v6924_v14, %v6900_v43 }
 0x56f   : > { %v6939_v42 = vcombine.low %v6931_v15, %v6938_v18 }
 0x571   : > { %v6941_v60 = vmul.f32 %v6939_v42, %v493_v19 }
 0x573   : > { %v6962_v21 = vrot.slane %v6941_v60, %v15525_v8  ;;  %v6966_v16 = vrot.slane %v6941_v60, %v15533_v10  ;;  %v6970_v47 = vrot.slane %v6941_v60, %v15530_v23  ;;  %v6974_v59 = vrot.slane %v6941_v60, %v15536_v12 }
 0x574   : > { %v6946_v22 = vrot.slane %v6941_v60, %v15443_v52  ;;  %v6950_v30 = vrot.slane %v6941_v60, %v15455_v5  ;;  %v6954_v32 = vrot.slane %v6941_v60, %v15449_v62  ;;  %v6958_v33 = vrot.slane %v6941_v60, %v15460_v17 }
 0x575   : > { %v6987_v58 = vmul.f32 %v6962_v21, %v15562_v53  ;;  %v6988_v35 = vmul.f32 %v6966_v16, %v15566_v57  ;;  %v6989_v36 = vmul.f32 %v6970_v47, %v15564_v45  ;;  %v6990_v31 = vmul.f32 %v6974_v59, %v15570_v20 }
 0x576   : > { %v7057_v26 = vmul.f32 %v6974_v59, %v15553_v13  ;;  %v6983_v41 = vmul.f32 %v6946_v22, %v15510_v61  ;;  %v6984_v44 = vmul.f32 %v6950_v30, %v15514_v1  ;;  %v6985_v34 = vmul.f32 %v6954_v32, %v15512_v0  ;;  %v495_v61 = vld [vmem:[%s494_s27] sm:$0xff] }
 0x577   : > { %v7001_v48 = vcombine.low %v6987_v58, %v6988_v35  ;;  %v7002_v51 = vcombine.low %v6989_v36, %v6990_v31  ;;  %v6986_v38 = vmul.f32 %v6958_v33, %v15516_v40  ;;  %v7051_v0 = vmul.f32 %v6950_v30, %v15492_v63  ;;  %v7515_v30 = vld [vmem:[%s14410_s9 + $0xc40] sm:$0xff] }
 0x578   : > { %v6999_v53 = vcombine.low %v6983_v41, %v6984_v44  ;;  %v7053_v9 = vmul.f32 %v6958_v33, %v15500_v3  ;;  %v7050_v40 = vmul.f32 %v6946_v22, %v15474_v24  ;;  %v7052_v11 = vmul.f32 %v6954_v32, %v15485_v29  ;;  %v7391_v22 = vld [vmem:[%s14410_s9 + $0x860] sm:$0xff] }
 0x579   : > { %v7023_v55 = vrot.slane %v7001_v48, %v6900_v43  ;;  %v7030_v57 = vrot.slane %v7002_v51, %v6900_v43  ;;  %v7000_v49 = vcombine.low %v6985_v34, %v6986_v38  ;;  %v7055_v14 = vmul.f32 %v6966_v16, %v15550_v50  ;;  %v7387_v16 = vld [vmem:[%s14410_s9 + $0x840] sm:$0xff] }
 0x57a   : > { %v7009_v45 = vrot.slane %v6999_v53, %v6900_v43  ;;  %v7054_v15 = vmul.f32 %v6962_v21, %v15546_v39  ;;  %v7056_v18 = vmul.f32 %v6970_v47, %v15548_v46  ;;  %v7519_v32 = vld [vmem:[%s14410_s9 + $0xc60] sm:$0xff] }
 0x57b   : > { %v7032_v56 = vcombine.low %v7023_v55, %v7030_v57  ;;  %v7016_v20 = vrot.slane %v7000_v49, %v6900_v43  ;;  %v7395_v44 = vld [vmem:[%s14410_s9 + $0x880] sm:$0xff]  ;;  %v13043_v34 = vcombine.high %v7515_v30, %v7519_v32  ;;  %v12914_v57 = vcombine.low %v7387_v16, %v7391_v22 }
 0x57c   : > { %v7399_v48 = vld [vmem:[%s14410_s9 + $0x8a0] sm:$0xff]  ;;  %v13042_v49 = vcombine.low %v7515_v30, %v7519_v32 }
 0x57d   : > { %v7046_v4 = vrot.slane %v7032_v56, %v6900_v43  ;;  %v7031_v13 = vcombine.low %v7009_v45, %v7016_v20  ;;  %v7523_v51 = vld [vmem:[%s14410_s9 + $0xc80] sm:$0xff]  ;;  %v12923_v45 = vcombine.high %v7395_v44, %v7399_v48  ;;  %v12922_v28 = vcombine.low %v7395_v44, %v7399_v48 }
 0x57e   : > { %v7527_v38 = vld [vmem:[%s14410_s9 + $0xca0] sm:$0xff] }
 0x57f   : > { %v7039_v6 = vrot.slane %v7031_v13, %v6900_v43  ;;  %v13051_v56 = vcombine.high %v7523_v51, %v7527_v38  ;;  %v7403_v20 = vld [vmem:[%s14410_s9 + $0x8c0] sm:$0xff]  ;;  %v13050_v54 = vcombine.low %v7523_v51, %v7527_v38 }
 0x580   : > { %v7411_v13 = vld [vmem:[%s14410_s9 + $0x900] sm:$0xff] }
 0x581   : > { %v7047_v7 = vcombine.low %v7039_v6, %v7046_v4  ;;  %v7415_v6 = vld [vmem:[%s14410_s9 + $0x920] sm:$0xff] }
 0x582   : > { %v7447_v48 = vld [vmem:[%s14410_s9 + $0xa20] sm:$0xff] }
 0x583   : > { %v7049_v1 = vsub.f32 %v495_v61, %v7047_v7  ;;  %v7539_v61 = vld [vmem:[%s14410_s9 + $0xd00] sm:$0xff] }
 0x584   : > { %v7543_v7 = vld [vmem:[%s14410_s9 + $0xd20] sm:$0xff] }
 0x585   : > { %v7066_v43 = vrot.slane %v7049_v1, %v15455_v5  ;;  %v7074_v19 = vrot.slane %v7049_v1, %v15460_v17  ;;  %v7062_v63 = vrot.slane %v7049_v1, %v15443_v52  ;;  %v7070_v24 = vrot.slane %v7049_v1, %v15449_v62  ;;  %v7571_v51 = vld [vmem:[%s14410_s9 + $0xe00] sm:$0xff] }
 0x586   : > { %v7082_v29 = vrot.slane %v7049_v1, %v15533_v10  ;;  %v7090_v3 = vrot.slane %v7049_v1, %v15536_v12  ;;  %v7078_v50 = vrot.slane %v7049_v1, %v15525_v8  ;;  %v7086_v39 = vrot.slane %v7049_v1, %v15530_v23  ;;  %v7575_v38 = vld [vmem:[%s14410_s9 + $0xe20] sm:$0xff] }
 0x587   : > { %v7100_v46 = vadd.f32 %v7066_v43, %v7051_v0  ;;  %v7102_v42 = vadd.f32 %v7074_v19, %v7053_v9  ;;  %v7099_v60 = vadd.f32 %v7062_v63, %v7050_v40  ;;  %v7101_v21 = vadd.f32 %v7070_v24, %v7052_v11  ;;  %v7419_v11 = vld [vmem:[%s14410_s9 + $0x940] sm:$0xff] }
 0x588   : > { %v7104_v47 = vadd.f32 %v7082_v29, %v7055_v14  ;;  %v7106_v59 = vadd.f32 %v7090_v3, %v7057_v26  ;;  %v15617_v33 = vadd.f32 %v7078_v50, %v7054_v15  ;;  %v15619_v58 = vadd.f32 %v7086_v39, %v7056_v18  ;;  %v7423_v14 = vld [vmem:[%s14410_s9 + $0x960] sm:$0xff] }
 0x589   : > { %v15621_v35 = vpack.c.bf16 %v7100_v46, %v7100_v46  ;;  %v15623_v36 = vpack.c.bf16 %v7102_v42, %v7102_v42  ;;  %v15625_v31 = vpack.c.bf16 %v7099_v60, %v7099_v60  ;;  %v15627_v41 = vpack.c.bf16 %v7101_v21, %v7101_v21  ;;  %v7547_v15 = vld [vmem:[%s14410_s9 + $0xd40] sm:$0xff] }
 0x58a   : > { %v12915_v26 = vcombine.high %v7387_v16, %v7391_v22  ;;  %v15637_v53 = vpack.c.bf16 %v7104_v47, %v7104_v47  ;;  %v15639_v55 = vpack.c.bf16 %v7106_v59, %v7106_v59  ;;  %v12930_v1 = vcombine.low %v7403_v20, %v7407_v25  ;;  %v7551_v18 = vld [vmem:[%s14410_s9 + $0xd60] sm:$0xff] }
 0x58b   : > { %10227 = vmatprep.mubr.bf16.mxu0 %v15621_v35  ;;  %10268 = vmatprep.mubr.bf16.mxu1 %v15623_v36  ;;  %v12939_v9 = vcombine.high %v7411_v13, %v7415_v6  ;;  %v13067_v40 = vcombine.high %v7539_v61, %v7543_v7  ;;  %v12938_v43 = vcombine.low %v7411_v13, %v7415_v6  ;;  %v7427_v29 = vld [vmem:[%s14410_s9 + $0x980] sm:$0xff] }
 0x58c   : > { %10228 = vmatmul.mubr.bf16.vlgmr.msra.gmra.mrb[8].mxu0 %v15625_v31  ;;  %10269 = vmatmul.mubr.bf16.vlgmr.msra.gmra.mrb[8].mxu1 %v15627_v41  ;;  %v13066_v19 = vcombine.low %v7539_v61, %v7543_v7  ;;  %v12947_v63 = vcombine.high %v7419_v11, %v7423_v14  ;;  %v13075_v24 = vcombine.high %v7547_v15, %v7551_v18  ;;  %v7431_v3 = vld [vmem:[%s14410_s9 + $0x9a0] sm:$0xff] }
 0x58d   : > { %10278 = vmatpush1.bf16.msra.mxu0 %v12906_v2  ;;  %10319 = vmatpush1.bf16.msra.mxu1 %v13034_v37  ;;  %v7535_v2 = vld [vmem:[%s14410_s9 + $0xce0] sm:$0xff]  ;;  %v12931_v37 = vcombine.high %v7403_v20, %v7407_v25  ;;  %v12946_v46 = vcombine.low %v7419_v11, %v7423_v14  ;;  %v13074_v42 = vcombine.low %v7547_v15, %v7551_v18 }
 0x58e   : > { %10309 = vmatprep.mubr.bf16.mxu0 %v15637_v53  ;;  %10350 = vmatprep.mubr.bf16.mxu1 %v15639_v55  ;;  %v13059_v4 = vcombine.high %v7531_v27, %v7535_v2  ;;  %v13058_v0 = vcombine.low %v7531_v27, %v7535_v2  ;;  %v7555_v50 = vld [vmem:[%s14410_s9 + $0xd80] sm:$0xff]  ;;  %v12955_v60 = vcombine.high %v7427_v29, %v7431_v3 }
 0x58f   : > { %10279 = vmatprep.subr.bf16.mxu0 %v12915_v26  ;;  %10320 = vmatprep.subr.bf16.mxu1 %v13043_v34  ;;  %v7559_v39 = vld [vmem:[%s14410_s9 + $0xda0] sm:$0xff]  ;;  %v12954_v30 = vcombine.low %v7427_v29, %v7431_v3 }
 0x590   : > { %v13083_v21 = vcombine.high %v7555_v50, %v7559_v39  ;;  %v7435_v16 = vld [vmem:[%s14410_s9 + $0x9c0] sm:$0xff]  ;;  %v13082_v32 = vcombine.low %v7555_v50, %v7559_v39 }
 0x591   : > { %10280 = vmatpush1.bf16.msra.mxu0 %v12914_v57  ;;  %10321 = vmatpush1.bf16.msra.mxu1 %v13042_v49  ;;  %v7439_v47 = vld [vmem:[%s14410_s9 + $0x9e0] sm:$0xff] }
 0x592   : > { %10281 = vmatprep.subr.bf16.mxu0 %v12923_v45  ;;  %10322 = vmatprep.subr.bf16.mxu1 %v13051_v56  ;;  %v7563_v59 = vld [vmem:[%s14410_s9 + $0xdc0] sm:$0xff]  ;;  %v12963_v44 = vcombine.high %v7435_v16, %v7439_v47  ;;  %v12962_v57 = vcombine.low %v7435_v16, %v7439_v47  ;;  %v13099_v56 = vcombine.high %v7571_v51, %v7575_v38 }
 0x593   : > { %v7567_v22 = vld [vmem:[%s14410_s9 + $0xde0] sm:$0xff] }
 0x594   : > { %v13091_v26 = vcombine.high %v7563_v59, %v7567_v22  ;;  %v7443_v34 = vld [vmem:[%s14410_s9 + $0xa00] sm:$0xff]  ;;  %v13090_v49 = vcombine.low %v7563_v59, %v7567_v22 }
 0x595   : > { %10282 = vmatpush1.bf16.msra.mxu0 %v12922_v28  ;;  %10323 = vmatpush1.bf16.msra.mxu1 %v13050_v54  ;;  %v12971_v45 = vcombine.high %v7443_v34, %v7447_v48  ;;  %v7451_v20 = vld [vmem:[%s14410_s9 + $0xa40] sm:$0xff]  ;;  %v12970_v28 = vcombine.low %v7443_v34, %v7447_v48  ;;  %v13098_v54 = vcombine.low %v7571_v51, %v7575_v38 }
 0x596   : > { %10283 = vmatprep.subr.bf16.mxu0 %v12931_v37  ;;  %10324 = vmatprep.subr.bf16.mxu1 %v13059_v4  ;;  %v7455_v25 = vld [vmem:[%s14410_s9 + $0xa60] sm:$0xff] }
 0x597   : > { %v7579_v27 = vld [vmem:[%s14410_s9 + $0xe40] sm:$0xff]  ;;  %v12979_v37 = vcombine.high %v7451_v20, %v7455_v25 }
 0x598   : > { %v7583_v2 = vld [vmem:[%s14410_s9 + $0xe60] sm:$0xff] }
 0x599   : > { %10284 = vmatpush1.bf16.msra.mxu0 %v12930_v1  ;;  %10325 = vmatpush1.bf16.msra.mxu1 %v13058_v0  ;;  %v13107_v4 = vcombine.high %v7579_v27, %v7583_v2  ;;  %v7459_v13 = vld [vmem:[%s14410_s9 + $0xa80] sm:$0xff]  ;;  %v12978_v1 = vcombine.low %v7451_v20, %v7455_v25  ;;  %v13106_v0 = vcombine.low %v7579_v27, %v7583_v2 }
 0x59a   : > { %10285 = vmatprep.subr.bf16.mxu0 %v12939_v9  ;;  %10326 = vmatprep.subr.bf16.mxu1 %v13067_v40  ;;  %v7463_v6 = vld [vmem:[%s14410_s9 + $0xaa0] sm:$0xff] }
 0x59b   : > { %v7587_v61 = vld [vmem:[%s14410_s9 + $0xe80] sm:$0xff]  ;;  %v12987_v9 = vcombine.high %v7459_v13, %v7463_v6 }
 0x59c   : > { %v7591_v7 = vld [vmem:[%s14410_s9 + $0xea0] sm:$0xff] }
 0x59d   : > { %10286 = vmatpush1.bf16.msra.mxu0 %v12938_v43  ;;  %10327 = vmatpush1.bf16.msra.mxu1 %v13066_v19  ;;  %v13115_v40 = vcombine.high %v7587_v61, %v7591_v7  ;;  %v7467_v11 = vld [vmem:[%s14410_s9 + $0xac0] sm:$0xff]  ;;  %v12986_v43 = vcombine.low %v7459_v13, %v7463_v6  ;;  %v13114_v19 = vcombine.low %v7587_v61, %v7591_v7  ;;  %v7124_v13 = vld [vmem:[%s14410_s9 + $0x8] sm:$0xff] }
 0x59e   : > { %10287 = vmatprep.subr.bf16.mxu0 %v12947_v63  ;;  %10328 = vmatprep.subr.bf16.mxu1 %v13075_v24  ;;  %v7471_v14 = vld [vmem:[%s14410_s9 + $0xae0] sm:$0xff]  ;;  %v7128_v6 = vld [vmem:[%s14410_s9 + $0x28] sm:$0xff] }
 0x59f   : > { %v7595_v15 = vld [vmem:[%s14410_s9 + $0xec0] sm:$0xff]  ;;  %v12995_v63 = vcombine.high %v7467_v11, %v7471_v14  ;;  %v7252_v61 = vld [vmem:[%s14410_s9 + $0x408] sm:$0xff] }
 0x5a0   : > { %v7599_v18 = vld [vmem:[%s14410_s9 + $0xee0] sm:$0xff]  ;;  %v7256_v7 = vld [vmem:[%s14410_s9 + $0x428] sm:$0xff] }
 0x5a1   : > { %10288 = vmatpush1.bf16.msra.mxu0 %v12946_v46  ;;  %10329 = vmatpush1.bf16.msra.mxu1 %v13074_v42  ;;  %v13123_v24 = vcombine.high %v7595_v15, %v7599_v18  ;;  %v7475_v29 = vld [vmem:[%s14410_s9 + $0xb00] sm:$0xff]  ;;  %v12994_v46 = vcombine.low %v7467_v11, %v7471_v14  ;;  %v13122_v42 = vcombine.low %v7595_v15, %v7599_v18  ;;  %v7132_v11 = vld [vmem:[%s14410_s9 + $0x48] sm:$0xff] }
 0x5a2   : > { %10289 = vmatprep.subr.bf16.mxu0 %v12955_v60  ;;  %10330 = vmatprep.subr.bf16.mxu1 %v13083_v21  ;;  %v7479_v3 = vld [vmem:[%s14410_s9 + $0xb20] sm:$0xff]  ;;  %v7136_v14 = vld [vmem:[%s14410_s9 + $0x68] sm:$0xff] }
 0x5a3   : > { %v7603_v50 = vld [vmem:[%s14410_s9 + $0xf00] sm:$0xff]  ;;  %v13003_v60 = vcombine.high %v7475_v29, %v7479_v3  ;;  %v7260_v15 = vld [vmem:[%s14410_s9 + $0x448] sm:$0xff] }
 0x5a4   : > { %v7607_v39 = vld [vmem:[%s14410_s9 + $0xf20] sm:$0xff]  ;;  %v7264_v18 = vld [vmem:[%s14410_s9 + $0x468] sm:$0xff] }
 0x5a5   : > { %10290 = vmatpush1.bf16.msra.mxu0 %v12954_v30  ;;  %10331 = vmatpush1.bf16.msra.mxu1 %v13082_v32  ;;  %v13131_v21 = vcombine.high %v7603_v50, %v7607_v39  ;;  %v7483_v16 = vld [vmem:[%s14410_s9 + $0xb40] sm:$0xff]  ;;  %v13002_v30 = vcombine.low %v7475_v29, %v7479_v3  ;;  %v13130_v32 = vcombine.low %v7603_v50, %v7607_v39  ;;  %v7140_v50 = vld [vmem:[%s14410_s9 + $0x88] sm:$0xff] }
 0x5a6   : > { %10291 = vmatprep.subr.bf16.mxu0 %v12963_v44  ;;  %10332 = vmatprep.subr.bf16.mxu1 %v13091_v26  ;;  %v7487_v47 = vld [vmem:[%s14410_s9 + $0xb60] sm:$0xff]  ;;  %v12661_v29 = vcombine.high %v7132_v11, %v7136_v14  ;;  %v12789_v3 = vcombine.high %v7260_v15, %v7264_v18  ;;  %v7144_v39 = vld [vmem:[%s14410_s9 + $0xa8] sm:$0xff] }
 0x5a7   : > { %v7611_v59 = vld [vmem:[%s14410_s9 + $0xf40] sm:$0xff]  ;;  %v13011_v44 = vcombine.high %v7483_v16, %v7487_v47 }
 0x5a8   : > { %v7615_v22 = vld [vmem:[%s14410_s9 + $0xf60] sm:$0xff] }
 0x5a9   : > { %10292 = vmatpush1.bf16.msra.mxu0 %v12962_v57  ;;  %10333 = vmatpush1.bf16.msra.mxu1 %v13090_v49  ;;  %v13139_v26 = vcombine.high %v7611_v59, %v7615_v22  ;;  %v7491_v34 = vld [vmem:[%s14410_s9 + $0xb80] sm:$0xff]  ;;  %v13010_v57 = vcombine.low %v7483_v16, %v7487_v47  ;;  %v13138_v49 = vcombine.low %v7611_v59, %v7615_v22  ;;  %v7148_v16 = vld [vmem:[%s14410_s9 + $0xc8] sm:$0xff] }
 0x5aa   : > { %10293 = vmatprep.subr.bf16.mxu0 %v12971_v45  ;;  %10334 = vmatprep.subr.bf16.mxu1 %v13099_v56  ;;  %v7495_v48 = vld [vmem:[%s14410_s9 + $0xba0] sm:$0xff]  ;;  %v7152_v47 = vld [vmem:[%s14410_s9 + $0xe8] sm:$0xff] }
 0x5ab   : > { %v7619_v51 = vld [vmem:[%s14410_s9 + $0xf80] sm:$0xff]  ;;  %v13019_v45 = vcombine.high %v7491_v34, %v7495_v48  ;;  %v7276_v59 = vld [vmem:[%s14410_s9 + $0x4c8] sm:$0xff] }
 0x5ac   : > { %v7623_v38 = vld [vmem:[%s14410_s9 + $0xfa0] sm:$0xff]  ;;  %v7280_v22 = vld [vmem:[%s14410_s9 + $0x4e8] sm:$0xff] }
 0x5ad   : > { %10294 = vmatpush1.bf16.msra.mxu0 %v12970_v28  ;;  %10335 = vmatpush1.bf16.msra.mxu1 %v13098_v54  ;;  %v13147_v56 = vcombine.high %v7619_v51, %v7623_v38  ;;  %v7499_v20 = vld [vmem:[%s14410_s9 + $0xbc0] sm:$0xff]  ;;  %v13018_v28 = vcombine.low %v7491_v34, %v7495_v48  ;;  %v13146_v54 = vcombine.low %v7619_v51, %v7623_v38  ;;  %v7156_v34 = vld [vmem:[%s14410_s9 + $0x108] sm:$0xff] }
 0x5ae   : > { %10295 = vmatprep.subr.bf16.mxu0 %v12979_v37  ;;  %10336 = vmatprep.subr.bf16.mxu1 %v13107_v4  ;;  %v7503_v25 = vld [vmem:[%s14410_s9 + $0xbe0] sm:$0xff]  ;;  %v7160_v48 = vld [vmem:[%s14410_s9 + $0x128] sm:$0xff] }
 0x5af   : > { %v7627_v27 = vld [vmem:[%s14410_s9 + $0xfc0] sm:$0xff]  ;;  %v13027_v37 = vcombine.high %v7499_v20, %v7503_v25  ;;  %v7284_v51 = vld [vmem:[%s14410_s9 + $0x508] sm:$0xff] }
 0x5b0   : > { %v7631_v2 = vld [vmem:[%s14410_s9 + $0xfe0] sm:$0xff]  ;;  %v7288_v38 = vld [vmem:[%s14410_s9 + $0x528] sm:$0xff] }
 0x5b1   : > { %10296 = vmatpush1.bf16.msra.mxu0 %v12978_v1  ;;  %10337 = vmatpush1.bf16.msra.mxu1 %v13106_v0  ;;  %v13155_v4 = vcombine.high %v7627_v27, %v7631_v2  ;;  %v13026_v1 = vcombine.low %v7499_v20, %v7503_v25  ;;  %v13154_v0 = vcombine.low %v7627_v27, %v7631_v2  ;;  %v7164_v20 = vld [vmem:[%s14410_s9 + $0x148] sm:$0xff] }
 0x5b2   : > { %10297 = vmatprep.subr.bf16.mxu0 %v12987_v9  ;;  %10338 = vmatprep.subr.bf16.mxu1 %v13115_v40  ;;  %v12653_v9 = vcombine.high %v7124_v13, %v7128_v6  ;;  %v12781_v40 = vcombine.high %v7252_v61, %v7256_v7  ;;  %v7168_v25 = vld [vmem:[%s14410_s9 + $0x168] sm:$0xff] }
 0x5b3   : > { %v7292_v27 = vld [vmem:[%s14410_s9 + $0x548] sm:$0xff] }
 0x5b4   : > { %v7296_v2 = vld [vmem:[%s14410_s9 + $0x568] sm:$0xff] }
 0x5b5   : > { %10298 = vmatpush1.bf16.msra.mxu0 %v12986_v43  ;;  %10339 = vmatpush1.bf16.msra.mxu1 %v13114_v19  ;;  %v12652_v43 = vcombine.low %v7124_v13, %v7128_v6  ;;  %v15711_v19 = vpack.c.bf16 %v15617_v33, %v15617_v33  ;;  %v7268_v33 = vld [vmem:[%s14410_s9 + $0x488] sm:$0xff] }
 0x5b6   : > { %10299 = vmatprep.subr.bf16.mxu0 %v12995_v63  ;;  %10340 = vmatprep.subr.bf16.mxu1 %v13123_v24  ;;  %v15715_v63 = vpack.c.bf16 %v15619_v58, %v15619_v58  ;;  %v12780_v24 = vcombine.low %v7252_v61, %v7256_v7  ;;  %v12660_v58 = vcombine.low %v7132_v11, %v7136_v14  ;;  %v7172_v13 = vld [vmem:[%s14410_s9 + $0x188] sm:$0xff] }
 0x5b7   : > { %v7176_v6 = vld [vmem:[%s14410_s9 + $0x1a8] sm:$0xff] }
 0x5b8   : > { %v7300_v61 = vld [vmem:[%s14410_s9 + $0x588] sm:$0xff] }
 0x5b9   : > { %10300 = vmatpush1.bf16.msra.mxu0 %v12994_v46  ;;  %10341 = vmatpush1.bf16.msra.mxu1 %v13122_v42  ;;  %v7272_v46 = vld [vmem:[%s14410_s9 + $0x4a8] sm:$0xff]  ;;  %v12788_v42 = vcombine.low %v7260_v15, %v7264_v18 }
 0x5ba   : > { %10301 = vmatprep.subr.bf16.mxu0 %v13003_v60  ;;  %10342 = vmatprep.subr.bf16.mxu1 %v13131_v21  ;;  %v12669_v60 = vcombine.high %v7140_v50, %v7144_v39  ;;  %v12797_v21 = vcombine.high %v7268_v33, %v7272_v46  ;;  %v7304_v7 = vld [vmem:[%s14410_s9 + $0x5a8] sm:$0xff] }
 0x5bb   : > { %v7180_v11 = vld [vmem:[%s14410_s9 + $0x1c8] sm:$0xff] }
 0x5bc   : > { %v7184_v14 = vld [vmem:[%s14410_s9 + $0x1e8] sm:$0xff] }
 0x5bd   : > { %10302 = vmatpush1.bf16.msra.mxu0 %v13002_v30  ;;  %10343 = vmatpush1.bf16.msra.mxu1 %v13130_v32  ;;  %v12668_v30 = vcombine.low %v7140_v50, %v7144_v39  ;;  %v12796_v32 = vcombine.low %v7268_v33, %v7272_v46  ;;  %v7308_v15 = vld [vmem:[%s14410_s9 + $0x5c8] sm:$0xff] }
 0x5be   : > { %10303 = vmatprep.subr.bf16.mxu0 %v13011_v44  ;;  %10344 = vmatprep.subr.bf16.mxu1 %v13139_v26  ;;  %v12677_v44 = vcombine.high %v7148_v16, %v7152_v47  ;;  %v12805_v26 = vcombine.high %v7276_v59, %v7280_v22  ;;  %v7312_v18 = vld [vmem:[%s14410_s9 + $0x5e8] sm:$0xff] }
 0x5bf   : > { %v7188_v50 = vld [vmem:[%s14410_s9 + $0x208] sm:$0xff] }
 0x5c0   : > { %v7192_v39 = vld [vmem:[%s14410_s9 + $0x228] sm:$0xff] }
 0x5c1   : > { %10304 = vmatpush1.bf16.msra.mxu0 %v13010_v57  ;;  %10345 = vmatpush1.bf16.msra.mxu1 %v13138_v49  ;;  %v12676_v57 = vcombine.low %v7148_v16, %v7152_v47  ;;  %v12804_v49 = vcombine.low %v7276_v59, %v7280_v22  ;;  %v7316_v33 = vld [vmem:[%s14410_s9 + $0x608] sm:$0xff] }
 0x5c2   : > { %10305 = vmatprep.subr.bf16.mxu0 %v13019_v45  ;;  %10346 = vmatprep.subr.bf16.mxu1 %v13147_v56  ;;  %v12685_v45 = vcombine.high %v7156_v34, %v7160_v48  ;;  %v12813_v56 = vcombine.high %v7284_v51, %v7288_v38  ;;  %v7320_v46 = vld [vmem:[%s14410_s9 + $0x628] sm:$0xff] }
 0x5c3   : > { %v7196_v16 = vld [vmem:[%s14410_s9 + $0x248] sm:$0xff] }
 0x5c4   : > { %v7200_v47 = vld [vmem:[%s14410_s9 + $0x268] sm:$0xff] }
 0x5c5   : > { %10306 = vmatpush1.bf16.msra.mxu0 %v13018_v28  ;;  %10347 = vmatpush1.bf16.msra.mxu1 %v13146_v54  ;;  %v12684_v28 = vcombine.low %v7156_v34, %v7160_v48  ;;  %v12812_v54 = vcombine.low %v7284_v51, %v7288_v38  ;;  %v7324_v59 = vld [vmem:[%s14410_s9 + $0x648] sm:$0xff] }
 0x5c6   : > { %10307 = vmatprep.subr.bf16.mxu0 %v13027_v37  ;;  %10348 = vmatprep.subr.bf16.mxu1 %v13155_v4  ;;  %v12693_v37 = vcombine.high %v7164_v20, %v7168_v25  ;;  %v12821_v4 = vcombine.high %v7292_v27, %v7296_v2  ;;  %v7328_v22 = vld [vmem:[%s14410_s9 + $0x668] sm:$0xff] }
 0x5c7   : > { %v7204_v34 = vld [vmem:[%s14410_s9 + $0x288] sm:$0xff] }
 0x5c8   : > { %v7208_v48 = vld [vmem:[%s14410_s9 + $0x2a8] sm:$0xff] }
 0x5c9   : > { %10308 = vmatpush1.bf16.msra.mxu0 %v13026_v1  ;;  %10349 = vmatpush1.bf16.msra.mxu1 %v13154_v0  ;;  %v12692_v1 = vcombine.low %v7164_v20, %v7168_v25  ;;  %v12820_v0 = vcombine.low %v7292_v27, %v7296_v2  ;;  %v7332_v51 = vld [vmem:[%s14410_s9 + $0x688] sm:$0xff] }
 0x5ca   : > { %10359 = vmatprep.subr.bf16.mxu0 %v12653_v9  ;;  %10400 = vmatprep.subr.bf16.mxu1 %v12781_v40  ;;  %v12701_v9 = vcombine.high %v7172_v13, %v7176_v6  ;;  %v12829_v40 = vcombine.high %v7300_v61, %v7304_v7  ;;  %v7336_v38 = vld [vmem:[%s14410_s9 + $0x6a8] sm:$0xff] }
 0x5cb   : > { %v7212_v20 = vld [vmem:[%s14410_s9 + $0x2c8] sm:$0xff] }
 0x5cc   : > { %10310 = vmatmul.mubr.bf16.vlgmr.msra.gmra.mrb[12].mxu0 %v15711_v19  ;;  %10351 = vmatmul.mubr.bf16.vlgmr.msra.gmra.mrb[12].mxu1 %v15715_v63  ;;  %v7216_v25 = vld [vmem:[%s14410_s9 + $0x2e8] sm:$0xff] }
 0x5cd   : > { %10360 = vmatpush1.bf16.msra.mxu0 %v12652_v43  ;;  %10391 = vmatprep.mubr.bf16.mxu0 %v15621_v35  ;;  %v12700_v43 = vcombine.low %v7172_v13, %v7176_v6  ;;  %v7340_v27 = vld [vmem:[%s14410_s9 + $0x6c8] sm:$0xff] }
 0x5ce   : > { %10401 = vmatpush1.bf16.msra.mxu1 %v12780_v24  ;;  %10432 = vmatprep.mubr.bf16.mxu1 %v15623_v36  ;;  %v12828_v24 = vcombine.low %v7300_v61, %v7304_v7  ;;  %v7344_v2 = vld [vmem:[%s14410_s9 + $0x6e8] sm:$0xff] }
 0x5cf   : > { %10361 = vmatprep.subr.bf16.mxu0 %v12661_v29  ;;  %10402 = vmatprep.subr.bf16.mxu1 %v12789_v3  ;;  %v12709_v29 = vcombine.high %v7180_v11, %v7184_v14  ;;  %v12837_v3 = vcombine.high %v7308_v15, %v7312_v18  ;;  %v7220_v13 = vld [vmem:[%s14410_s9 + $0x308] sm:$0xff] }
 0x5d0   : > { %v7224_v6 = vld [vmem:[%s14410_s9 + $0x328] sm:$0xff] }
 0x5d1   : > { %10362 = vmatpush1.bf16.msra.mxu0 %v12660_v58  ;;  %v12708_v58 = vcombine.low %v7180_v11, %v7184_v14  ;;  %v7348_v61 = vld [vmem:[%s14410_s9 + $0x708] sm:$0xff] }
 0x5d2   : > { %10403 = vmatpush1.bf16.msra.mxu1 %v12788_v42  ;;  %10363 = vmatprep.subr.bf16.mxu0 %v12669_v60  ;;  %v12836_v42 = vcombine.low %v7308_v15, %v7312_v18  ;;  %v12717_v60 = vcombine.high %v7188_v50, %v7192_v39  ;;  %v7352_v7 = vld [vmem:[%s14410_s9 + $0x728] sm:$0xff] }
 0x5d3   : > { %10404 = vmatprep.subr.bf16.mxu1 %v12797_v21  ;;  %v12845_v21 = vcombine.high %v7316_v33, %v7320_v46  ;;  %v7228_v11 = vld [vmem:[%s14410_s9 + $0x348] sm:$0xff] }
 0x5d4   : > { %v7232_v14 = vld [vmem:[%s14410_s9 + $0x368] sm:$0xff] }
 0x5d5   : > { %10364 = vmatpush1.bf16.msra.mxu0 %v12668_v30  ;;  %v12716_v30 = vcombine.low %v7188_v50, %v7192_v39  ;;  %v7356_v15 = vld [vmem:[%s14410_s9 + $0x748] sm:$0xff] }
 0x5d6   : > { %10405 = vmatpush1.bf16.msra.mxu1 %v12796_v32  ;;  %10365 = vmatprep.subr.bf16.mxu0 %v12677_v44  ;;  %v12844_v32 = vcombine.low %v7316_v33, %v7320_v46  ;;  %v12725_v44 = vcombine.high %v7196_v16, %v7200_v47  ;;  %v7360_v18 = vld [vmem:[%s14410_s9 + $0x768] sm:$0xff] }
 0x5d7   : > { %10406 = vmatprep.subr.bf16.mxu1 %v12805_v26  ;;  %v12853_v26 = vcombine.high %v7324_v59, %v7328_v22  ;;  %v7236_v50 = vld [vmem:[%s14410_s9 + $0x388] sm:$0xff] }
 0x5d8   : > { %v7240_v39 = vld [vmem:[%s14410_s9 + $0x3a8] sm:$0xff] }
 0x5d9   : > { %10366 = vmatpush1.bf16.msra.mxu0 %v12676_v57  ;;  %v12724_v57 = vcombine.low %v7196_v16, %v7200_v47  ;;  %v7364_v33 = vld [vmem:[%s14410_s9 + $0x788] sm:$0xff] }
 0x5da   : > { %10407 = vmatpush1.bf16.msra.mxu1 %v12804_v49  ;;  %10367 = vmatprep.subr.bf16.mxu0 %v12685_v45  ;;  %v12852_v49 = vcombine.low %v7324_v59, %v7328_v22  ;;  %v12733_v45 = vcombine.high %v7204_v34, %v7208_v48  ;;  %v7368_v46 = vld [vmem:[%s14410_s9 + $0x7a8] sm:$0xff] }
 0x5db   : > { %10408 = vmatprep.subr.bf16.mxu1 %v12813_v56  ;;  %v12861_v56 = vcombine.high %v7332_v51, %v7336_v38  ;;  %v7244_v16 = vld [vmem:[%s14410_s9 + $0x3c8] sm:$0xff] }
 0x5dc   : > { %v7248_v47 = vld [vmem:[%s14410_s9 + $0x3e8] sm:$0xff] }
 0x5dd   : > { %10368 = vmatpush1.bf16.msra.mxu0 %v12684_v28  ;;  %v12732_v28 = vcombine.low %v7204_v34, %v7208_v48  ;;  %v7372_v59 = vld [vmem:[%s14410_s9 + $0x7c8] sm:$0xff] }
 0x5de   : > { %10409 = vmatpush1.bf16.msra.mxu1 %v12812_v54  ;;  %10369 = vmatprep.subr.bf16.mxu0 %v12693_v37  ;;  %v12860_v54 = vcombine.low %v7332_v51, %v7336_v38  ;;  %v12741_v37 = vcombine.high %v7212_v20, %v7216_v25  ;;  %v7376_v22 = vld [vmem:[%s14410_s9 + $0x7e8] sm:$0xff] }
 0x5df   : > { %10410 = vmatprep.subr.bf16.mxu1 %v12821_v4  ;;  %v12869_v4 = vcombine.high %v7340_v27, %v7344_v2  ;;  %v7380_v34 = vld [vmem:[%s14410_s9 + $0x808] sm:$0xff] }
 0x5e0   : > { %v7384_v48 = vld [vmem:[%s14410_s9 + $0x828] sm:$0xff] }
 0x5e1   : > { %10370 = vmatpush1.bf16.msra.mxu0 %v12692_v1  ;;  %v12740_v1 = vcombine.low %v7212_v20, %v7216_v25  ;;  %v7508_v51 = vld [vmem:[%s14410_s9 + $0xc08] sm:$0xff] }
 0x5e2   : > { %10411 = vmatpush1.bf16.msra.mxu1 %v12820_v0  ;;  %10371 = vmatprep.subr.bf16.mxu0 %v12701_v9  ;;  %v12868_v0 = vcombine.low %v7340_v27, %v7344_v2  ;;  %v12749_v9 = vcombine.high %v7220_v13, %v7224_v6  ;;  %v7512_v38 = vld [vmem:[%s14410_s9 + $0xc28] sm:$0xff]  ;;  %v12908_v27 = vcombine.low %v7380_v34, %v7384_v48 }
 0x5e3   : > { %10412 = vmatprep.subr.bf16.mxu1 %v12829_v40  ;;  %v12877_v40 = vcombine.high %v7348_v61, %v7352_v7  ;;  %v7388_v20 = vld [vmem:[%s14410_s9 + $0x848] sm:$0xff] }
 0x5e4   : > { %v7392_v25 = vld [vmem:[%s14410_s9 + $0x868] sm:$0xff] }
 0x5e5   : > { %10372 = vmatpush1.bf16.msra.mxu0 %v12700_v43  ;;  %v12748_v43 = vcombine.low %v7220_v13, %v7224_v6  ;;  %v7516_v2 = vld [vmem:[%s14410_s9 + $0xc48] sm:$0xff] }
 0x5e6   : > { %10413 = vmatpush1.bf16.msra.mxu1 %v12828_v24  ;;  %10373 = vmatprep.subr.bf16.mxu0 %v12709_v29  ;;  %v12876_v24 = vcombine.low %v7348_v61, %v7352_v7  ;;  %v12757_v29 = vcombine.high %v7228_v11, %v7232_v14  ;;  %v7400_v13 = vld [vmem:[%s14410_s9 + $0x8a8] sm:$0xff] }
 0x5e7   : > { %10414 = vmatprep.subr.bf16.mxu1 %v12837_v3  ;;  %v12885_v3 = vcombine.high %v7356_v15, %v7360_v18  ;;  %v7524_v61 = vld [vmem:[%s14410_s9 + $0xc88] sm:$0xff] }
 0x5e8   : > { %v7528_v7 = vld [vmem:[%s14410_s9 + $0xca8] sm:$0xff] }
 0x5e9   : > { %10374 = vmatpush1.bf16.msra.mxu0 %v12708_v58  ;;  %v12756_v58 = vcombine.low %v7228_v11, %v7232_v14  ;;  %v7404_v11 = vld [vmem:[%s14410_s9 + $0x8c8] sm:$0xff] }
 0x5ea   : > { %10415 = vmatpush1.bf16.msra.mxu1 %v12836_v42  ;;  %10375 = vmatprep.subr.bf16.mxu0 %v12717_v60  ;;  %v12884_v42 = vcombine.low %v7356_v15, %v7360_v18  ;;  %v12765_v60 = vcombine.high %v7236_v50, %v7240_v39  ;;  %v7408_v14 = vld [vmem:[%s14410_s9 + $0x8e8] sm:$0xff] }
 0x5eb   : > { %10416 = vmatprep.subr.bf16.mxu1 %v12845_v21  ;;  %v12893_v21 = vcombine.high %v7364_v33, %v7368_v46  ;;  %v7532_v15 = vld [vmem:[%s14410_s9 + $0xcc8] sm:$0xff] }
 0x5ec   : > { %v7536_v18 = vld [vmem:[%s14410_s9 + $0xce8] sm:$0xff] }
 0x5ed   : > { %10376 = vmatpush1.bf16.msra.mxu0 %v12716_v30  ;;  %v12764_v30 = vcombine.low %v7236_v50, %v7240_v39  ;;  %v7412_v50 = vld [vmem:[%s14410_s9 + $0x908] sm:$0xff] }
 0x5ee   : > { %10417 = vmatpush1.bf16.msra.mxu1 %v12844_v32  ;;  %10377 = vmatprep.subr.bf16.mxu0 %v12725_v44  ;;  %v12892_v32 = vcombine.low %v7364_v33, %v7368_v46  ;;  %v12773_v44 = vcombine.high %v7244_v16, %v7248_v47  ;;  %v7416_v39 = vld [vmem:[%s14410_s9 + $0x928] sm:$0xff] }
 0x5ef   : > { %10418 = vmatprep.subr.bf16.mxu1 %v12853_v26  ;;  %v12901_v26 = vcombine.high %v7372_v59, %v7376_v22  ;;  %v7540_v33 = vld [vmem:[%s14410_s9 + $0xd08] sm:$0xff] }
 0x5f0   : > { %v7544_v46 = vld [vmem:[%s14410_s9 + $0xd28] sm:$0xff] }
 0x5f1   : > { %10378 = vmatpush1.bf16.msra.mxu0 %v12724_v57  ;;  %v12772_v57 = vcombine.low %v7244_v16, %v7248_v47  ;;  %v7420_v16 = vld [vmem:[%s14410_s9 + $0x948] sm:$0xff] }
 0x5f2   : > { %10419 = vmatpush1.bf16.msra.mxu1 %v12852_v49  ;;  %10379 = vmatprep.subr.bf16.mxu0 %v12733_v45  ;;  %v12900_v49 = vcombine.low %v7372_v59, %v7376_v22  ;;  %v12909_v45 = vcombine.high %v7380_v34, %v7384_v48  ;;  %v7424_v47 = vld [vmem:[%s14410_s9 + $0x968] sm:$0xff] }
 0x5f3   : > { %10420 = vmatprep.subr.bf16.mxu1 %v12861_v56  ;;  %v13037_v56 = vcombine.high %v7508_v51, %v7512_v38  ;;  %v7548_v59 = vld [vmem:[%s14410_s9 + $0xd48] sm:$0xff] }
 0x5f4   : > { %v7552_v22 = vld [vmem:[%s14410_s9 + $0xd68] sm:$0xff] }
 0x5f5   : > { %10380 = vmatpush1.bf16.msra.mxu0 %v12732_v28  ;;  %v7520_v28 = vld [vmem:[%s14410_s9 + $0xc68] sm:$0xff] }
 0x5f6   : > { %10421 = vmatpush1.bf16.msra.mxu1 %v12860_v54  ;;  %10381 = vmatprep.subr.bf16.mxu0 %v12741_v37  ;;  %v13036_v54 = vcombine.low %v7508_v51, %v7512_v38  ;;  %v12917_v37 = vcombine.high %v7388_v20, %v7392_v25  ;;  %v13045_v6 = vcombine.high %v7516_v2, %v7520_v28  ;;  %v7428_v34 = vld [vmem:[%s14410_s9 + $0x988] sm:$0xff] }
 0x5f7   : > { %10422 = vmatprep.subr.bf16.mxu1 %v12869_v4  ;;  %v7396_v4 = vld [vmem:[%s14410_s9 + $0x888] sm:$0xff] }
 0x5f8   : > { %v7432_v48 = vld [vmem:[%s14410_s9 + $0x9a8] sm:$0xff] }
 0x5f9   : > { %10382 = vmatpush1.bf16.msra.mxu0 %v12740_v1  ;;  %v12916_v1 = vcombine.low %v7388_v20, %v7392_v25  ;;  %v7556_v51 = vld [vmem:[%s14410_s9 + $0xd88] sm:$0xff] }
 0x5fa   : > { %10423 = vmatpush1.bf16.msra.mxu1 %v12868_v0  ;;  %10383 = vmatprep.subr.bf16.mxu0 %v12749_v9  ;;  %v13044_v0 = vcombine.low %v7516_v2, %v7520_v28  ;;  %v12925_v9 = vcombine.high %v7396_v4, %v7400_v13  ;;  %v7560_v38 = vld [vmem:[%s14410_s9 + $0xda8] sm:$0xff]  ;;  %v12956_v28 = vcombine.low %v7428_v34, %v7432_v48 }
 0x5fb   : > { %10424 = vmatprep.subr.bf16.mxu1 %v12877_v40  ;;  %v13053_v40 = vcombine.high %v7524_v61, %v7528_v7  ;;  %v7436_v20 = vld [vmem:[%s14410_s9 + $0x9c8] sm:$0xff] }
 0x5fc   : > { %v7440_v25 = vld [vmem:[%s14410_s9 + $0x9e8] sm:$0xff] }
 0x5fd   : > { %10384 = vmatpush1.bf16.msra.mxu0 %v12748_v43  ;;  %v12924_v43 = vcombine.low %v7396_v4, %v7400_v13  ;;  %v7568_v2 = vld [vmem:[%s14410_s9 + $0xde8] sm:$0xff] }
 0x5fe   : > { %10425 = vmatpush1.bf16.msra.mxu1 %v12876_v24  ;;  %10385 = vmatprep.subr.bf16.mxu0 %v12757_v29  ;;  %v13052_v24 = vcombine.low %v7524_v61, %v7528_v7  ;;  %v12933_v29 = vcombine.high %v7404_v11, %v7408_v14  ;;  %v7444_v13 = vld [vmem:[%s14410_s9 + $0xa08] sm:$0xff] }
 0x5ff   : > { %10426 = vmatprep.subr.bf16.mxu1 %v12885_v3  ;;  %v13061_v3 = vcombine.high %v7532_v15, %v7536_v18  ;;  %v7572_v61 = vld [vmem:[%s14410_s9 + $0xe08] sm:$0xff] }
 0x600   : > { %v7576_v7 = vld [vmem:[%s14410_s9 + $0xe28] sm:$0xff] }
 0x601   : > { %10386 = vmatpush1.bf16.msra.mxu0 %v12756_v58  ;;  %v12932_v58 = vcombine.low %v7404_v11, %v7408_v14  ;;  %v7452_v11 = vld [vmem:[%s14410_s9 + $0xa48] sm:$0xff] }
 0x602   : > { %10427 = vmatpush1.bf16.msra.mxu1 %v12884_v42  ;;  %10387 = vmatprep.subr.bf16.mxu0 %v12765_v60  ;;  %v13060_v42 = vcombine.low %v7532_v15, %v7536_v18  ;;  %v12941_v60 = vcombine.high %v7412_v50, %v7416_v39  ;;  %v7456_v14 = vld [vmem:[%s14410_s9 + $0xa68] sm:$0xff] }
 0x603   : > { %10428 = vmatprep.subr.bf16.mxu1 %v12893_v21  ;;  %v13069_v21 = vcombine.high %v7540_v33, %v7544_v46  ;;  %v7580_v15 = vld [vmem:[%s14410_s9 + $0xe48] sm:$0xff] }
 0x604   : > { %v7584_v18 = vld [vmem:[%s14410_s9 + $0xe68] sm:$0xff] }
 0x605   : > { %10388 = vmatpush1.bf16.msra.mxu0 %v12764_v30  ;;  %v12940_v30 = vcombine.low %v7412_v50, %v7416_v39  ;;  %v7460_v50 = vld [vmem:[%s14410_s9 + $0xa88] sm:$0xff] }
 0x606   : > { %10429 = vmatpush1.bf16.msra.mxu1 %v12892_v32  ;;  %10389 = vmatprep.subr.bf16.mxu0 %v12773_v44  ;;  %v13068_v32 = vcombine.low %v7540_v33, %v7544_v46  ;;  %v12949_v44 = vcombine.high %v7420_v16, %v7424_v47  ;;  %v7464_v39 = vld [vmem:[%s14410_s9 + $0xaa8] sm:$0xff] }
 0x607   : > { %10430 = vmatprep.subr.bf16.mxu1 %v12901_v26  ;;  %v13077_v26 = vcombine.high %v7548_v59, %v7552_v22  ;;  %v7588_v33 = vld [vmem:[%s14410_s9 + $0xe88] sm:$0xff] }
 0x608   : > { %v7592_v46 = vld [vmem:[%s14410_s9 + $0xea8] sm:$0xff] }
 0x609   : > { %10390 = vmatpush1.bf16.msra.mxu0 %v12772_v57  ;;  %v12948_v57 = vcombine.low %v7420_v16, %v7424_v47  ;;  %v7468_v16 = vld [vmem:[%s14410_s9 + $0xac8] sm:$0xff] }
 0x60a   : > { %10431 = vmatpush1.bf16.msra.mxu1 %v12900_v49  ;;  %10441 = vmatprep.subr.bf16.mxu0 %v12909_v45  ;;  %v13076_v49 = vcombine.low %v7548_v59, %v7552_v22  ;;  %v12957_v45 = vcombine.high %v7428_v34, %v7432_v48  ;;  %v7472_v47 = vld [vmem:[%s14410_s9 + $0xae8] sm:$0xff] }
 0x60b   : > { %10482 = vmatprep.subr.bf16.mxu1 %v13037_v56  ;;  %v13085_v56 = vcombine.high %v7556_v51, %v7560_v38  ;;  %v7596_v59 = vld [vmem:[%s14410_s9 + $0xec8] sm:$0xff] }
 0x60c   : > { %10392 = vmatmul.mubr.bf16.vlgmr.msra.gmra.mrb[16].mxu0 %v15625_v31  ;;  %v7600_v22 = vld [vmem:[%s14410_s9 + $0xee8] sm:$0xff] }
 0x60d   : > { %10433 = vmatmul.mubr.bf16.vlgmr.msra.gmra.mrb[16].mxu1 %v15627_v41  ;;  %10442 = vmatpush1.bf16.msra.mxu0 %v12908_v27  ;;  %v7564_v27 = vld [vmem:[%s14410_s9 + $0xdc8] sm:$0xff] }
 0x60e   : > { %10473 = vmatprep.mubr.bf16.mxu0 %v15637_v53  ;;  %10483 = vmatpush1.bf16.msra.mxu1 %v13036_v54  ;;  %v13084_v54 = vcombine.low %v7556_v51, %v7560_v38  ;;  %v13093_v4 = vcombine.high %v7564_v27, %v7568_v2  ;;  %v7476_v34 = vld [vmem:[%s14410_s9 + $0xb08] sm:$0xff] }
 0x60f   : > { %10514 = vmatprep.mubr.bf16.mxu1 %v15639_v55  ;;  %10443 = vmatprep.subr.bf16.mxu0 %v12917_v37  ;;  %v12965_v37 = vcombine.high %v7436_v20, %v7440_v25  ;;  %v7480_v48 = vld [vmem:[%s14410_s9 + $0xb28] sm:$0xff] }
 0x610   : > { %10484 = vmatprep.subr.bf16.mxu1 %v13045_v6  ;;  %v7448_v6 = vld [vmem:[%s14410_s9 + $0xa28] sm:$0xff] }
 0x611   : > { %10444 = vmatpush1.bf16.msra.mxu0 %v12916_v1  ;;  %v12964_v1 = vcombine.low %v7436_v20, %v7440_v25  ;;  %v7604_v51 = vld [vmem:[%s14410_s9 + $0xf08] sm:$0xff] }
 0x612   : > { %10485 = vmatpush1.bf16.msra.mxu1 %v13044_v0  ;;  %10445 = vmatprep.subr.bf16.mxu0 %v12925_v9  ;;  %v13092_v0 = vcombine.low %v7564_v27, %v7568_v2  ;;  %v12973_v9 = vcombine.high %v7444_v13, %v7448_v6  ;;  %v7608_v38 = vld [vmem:[%s14410_s9 + $0xf28] sm:$0xff] }
 0x613   : > { %10486 = vmatprep.subr.bf16.mxu1 %v13053_v40  ;;  %v13101_v40 = vcombine.high %v7572_v61, %v7576_v7  ;;  %v7484_v20 = vld [vmem:[%s14410_s9 + $0xb48] sm:$0xff] }
 0x614   : > { %v7488_v25 = vld [vmem:[%s14410_s9 + $0xb68] sm:$0xff] }
 0x615   : > { %10446 = vmatpush1.bf16.msra.mxu0 %v12924_v43  ;;  %v12972_v43 = vcombine.low %v7444_v13, %v7448_v6  ;;  %v7612_v27 = vld [vmem:[%s14410_s9 + $0xf48] sm:$0xff] }
 0x616   : > { %10487 = vmatpush1.bf16.msra.mxu1 %v13052_v24  ;;  %10447 = vmatprep.subr.bf16.mxu0 %v12933_v29  ;;  %v13100_v24 = vcombine.low %v7572_v61, %v7576_v7  ;;  %v12981_v29 = vcombine.high %v7452_v11, %v7456_v14  ;;  %v7616_v2 = vld [vmem:[%s14410_s9 + $0xf68] sm:$0xff] }
 0x617   : > { %10488 = vmatprep.subr.bf16.mxu1 %v13061_v3  ;;  %v13109_v3 = vcombine.high %v7580_v15, %v7584_v18  ;;  %v7492_v13 = vld [vmem:[%s14410_s9 + $0xb88] sm:$0xff] }
 0x618   : > { %v7496_v6 = vld [vmem:[%s14410_s9 + $0xba8] sm:$0xff] }
 0x619   : > { %10448 = vmatpush1.bf16.msra.mxu0 %v12932_v58  ;;  %v12980_v58 = vcombine.low %v7452_v11, %v7456_v14  ;;  %v7620_v61 = vld [vmem:[%s14410_s9 + $0xf88] sm:$0xff] }
 0x61a   : > { %10489 = vmatpush1.bf16.msra.mxu1 %v13060_v42  ;;  %10449 = vmatprep.subr.bf16.mxu0 %v12941_v60  ;;  %v13108_v42 = vcombine.low %v7580_v15, %v7584_v18  ;;  %v12989_v60 = vcombine.high %v7460_v50, %v7464_v39  ;;  %v7624_v7 = vld [vmem:[%s14410_s9 + $0xfa8] sm:$0xff] }
 0x61b   : > { %10490 = vmatprep.subr.bf16.mxu1 %v13069_v21  ;;  %v13117_v21 = vcombine.high %v7588_v33, %v7592_v46  ;;  %v7500_v11 = vld [vmem:[%s14410_s9 + $0xbc8] sm:$0xff] }
 0x61c   : > { %v7504_v14 = vld [vmem:[%s14410_s9 + $0xbe8] sm:$0xff] }
 0x61d   : > { %10450 = vmatpush1.bf16.msra.mxu0 %v12940_v30  ;;  %v12988_v30 = vcombine.low %v7460_v50, %v7464_v39  ;;  %v7628_v15 = vld [vmem:[%s14410_s9 + $0xfc8] sm:$0xff]  ;;  %v7125_v50 = vld [vmem:[%s14410_s9 + $0x10] sm:$0xff] }
 0x61e   : > { %10491 = vmatpush1.bf16.msra.mxu1 %v13068_v32  ;;  %10451 = vmatprep.subr.bf16.mxu0 %v12949_v44  ;;  %v13116_v32 = vcombine.low %v7588_v33, %v7592_v46  ;;  %v12997_v44 = vcombine.high %v7468_v16, %v7472_v47  ;;  %v7632_v18 = vld [vmem:[%s14410_s9 + $0xfe8] sm:$0xff]  ;;  %v7129_v39 = vld [vmem:[%s14410_s9 + $0x30] sm:$0xff] }
 0x61f   : > { %10492 = vmatprep.subr.bf16.mxu1 %v13077_v26  ;;  %v13125_v26 = vcombine.high %v7596_v59, %v7600_v22  ;;  %v7253_v33 = vld [vmem:[%s14410_s9 + $0x410] sm:$0xff] }
 0x620   : > { %v7257_v46 = vld [vmem:[%s14410_s9 + $0x430] sm:$0xff] }
 0x621   : > { %10452 = vmatpush1.bf16.msra.mxu0 %v12948_v57  ;;  %v12996_v57 = vcombine.low %v7468_v16, %v7472_v47  ;;  %v7133_v16 = vld [vmem:[%s14410_s9 + $0x50] sm:$0xff] }
 0x622   : > { %10493 = vmatpush1.bf16.msra.mxu1 %v13076_v49  ;;  %10453 = vmatprep.subr.bf16.mxu0 %v12957_v45  ;;  %v13124_v49 = vcombine.low %v7596_v59, %v7600_v22  ;;  %v13005_v45 = vcombine.high %v7476_v34, %v7480_v48  ;;  %v7137_v47 = vld [vmem:[%s14410_s9 + $0x70] sm:$0xff]  ;;  %v12654_v59 = vcombine.low %v7125_v50, %v7129_v39 }
 0x623   : > { %10494 = vmatprep.subr.bf16.mxu1 %v13085_v56  ;;  %v13133_v56 = vcombine.high %v7604_v51, %v7608_v38  ;;  %v7261_v22 = vld [vmem:[%s14410_s9 + $0x450] sm:$0xff] }
 0x625   : > { %10454 = vmatpush1.bf16.msra.mxu0 %v12956_v28  ;;  %v13004_v28 = vcombine.low %v7476_v34, %v7480_v48  ;;  %v7145_v34 = vld [vmem:[%s14410_s9 + $0xb0] sm:$0xff] }
 0x626   : > { %10495 = vmatpush1.bf16.msra.mxu1 %v13084_v54  ;;  %10455 = vmatprep.subr.bf16.mxu0 %v12965_v37  ;;  %v13132_v54 = vcombine.low %v7604_v51, %v7608_v38  ;;  %v13013_v37 = vcombine.high %v7484_v20, %v7488_v25  ;;  %v7269_v51 = vld [vmem:[%s14410_s9 + $0x490] sm:$0xff] }
 0x627   : > { %10496 = vmatprep.subr.bf16.mxu1 %v13093_v4  ;;  %v13141_v4 = vcombine.high %v7612_v27, %v7616_v2  ;;  %v7273_v38 = vld [vmem:[%s14410_s9 + $0x4b0] sm:$0xff] }
 0x629   : > { %10456 = vmatpush1.bf16.msra.mxu0 %v12964_v1  ;;  %v13012_v1 = vcombine.low %v7484_v20, %v7488_v25  ;;  %v7149_v20 = vld [vmem:[%s14410_s9 + $0xd0] sm:$0xff] }
 0x62a   : > { %10497 = vmatpush1.bf16.msra.mxu1 %v13092_v0  ;;  %10457 = vmatprep.subr.bf16.mxu0 %v12973_v9  ;;  %v13140_v0 = vcombine.low %v7612_v27, %v7616_v2  ;;  %v13021_v9 = vcombine.high %v7492_v13, %v7496_v6  ;;  %v7153_v25 = vld [vmem:[%s14410_s9 + $0xf0] sm:$0xff] }
 0x62b   : > { %10498 = vmatprep.subr.bf16.mxu1 %v13101_v40  ;;  %v13149_v40 = vcombine.high %v7620_v61, %v7624_v7  ;;  %v7277_v27 = vld [vmem:[%s14410_s9 + $0x4d0] sm:$0xff] }
 0x62c   : > { %v7281_v2 = vld [vmem:[%s14410_s9 + $0x4f0] sm:$0xff] }
 0x62d   : > { %10458 = vmatpush1.bf16.msra.mxu0 %v12972_v43  ;;  %v13020_v43 = vcombine.low %v7492_v13, %v7496_v6  ;;  %v7157_v13 = vld [vmem:[%s14410_s9 + $0x110] sm:$0xff] }
 0x62e   : > { %10499 = vmatpush1.bf16.msra.mxu1 %v13100_v24  ;;  %10459 = vmatprep.subr.bf16.mxu0 %v12981_v29  ;;  %v13148_v24 = vcombine.low %v7620_v61, %v7624_v7  ;;  %v13029_v29 = vcombine.high %v7500_v11, %v7504_v14  ;;  %v7161_v6 = vld [vmem:[%s14410_s9 + $0x130] sm:$0xff] }
 0x62f   : > { %10500 = vmatprep.subr.bf16.mxu1 %v13109_v3  ;;  %v13157_v3 = vcombine.high %v7628_v15, %v7632_v18  ;;  %v7285_v61 = vld [vmem:[%s14410_s9 + $0x510] sm:$0xff] }
 0x630   : > { %v7289_v7 = vld [vmem:[%s14410_s9 + $0x530] sm:$0xff] }
 0x631   : > { %10460 = vmatpush1.bf16.msra.mxu0 %v12980_v58  ;;  %v13028_v58 = vcombine.low %v7500_v11, %v7504_v14  ;;  %v7165_v11 = vld [vmem:[%s14410_s9 + $0x150] sm:$0xff] }
 0x632   : > { %10501 = vmatpush1.bf16.msra.mxu1 %v13108_v42  ;;  %10461 = vmatprep.subr.bf16.mxu0 %v12989_v60  ;;  %v13156_v42 = vcombine.low %v7628_v15, %v7632_v18  ;;  %v12655_v60 = vcombine.high %v7125_v50, %v7129_v39  ;;  %v7169_v14 = vld [vmem:[%s14410_s9 + $0x170] sm:$0xff] }
 0x633   : > { %10502 = vmatprep.subr.bf16.mxu1 %v13117_v21  ;;  %v12783_v21 = vcombine.high %v7253_v33, %v7257_v46  ;;  %v7293_v15 = vld [vmem:[%s14410_s9 + $0x550] sm:$0xff] }
 0x634   : > { %v7297_v18 = vld [vmem:[%s14410_s9 + $0x570] sm:$0xff] }
 0x635   : > { %10462 = vmatpush1.bf16.msra.mxu0 %v12988_v30  ;;  %v7265_v30 = vld [vmem:[%s14410_s9 + $0x470] sm:$0xff] }
 0x636   : > { %10503 = vmatpush1.bf16.msra.mxu1 %v13116_v32  ;;  %10463 = vmatprep.subr.bf16.mxu0 %v12997_v44  ;;  %v12782_v32 = vcombine.low %v7253_v33, %v7257_v46  ;;  %v12663_v44 = vcombine.high %v7133_v16, %v7137_v47  ;;  %v12791_v48 = vcombine.high %v7261_v22, %v7265_v30  ;;  %v7173_v50 = vld [vmem:[%s14410_s9 + $0x190] sm:$0xff] }
 0x637   : > { %10504 = vmatprep.subr.bf16.mxu1 %v13125_v26  ;;  %v7141_v26 = vld [vmem:[%s14410_s9 + $0x90] sm:$0xff] }
 0x638   : > { %v7177_v39 = vld [vmem:[%s14410_s9 + $0x1b0] sm:$0xff] }
 0x639   : > { %10464 = vmatpush1.bf16.msra.mxu0 %v12996_v57  ;;  %v12662_v57 = vcombine.low %v7133_v16, %v7137_v47  ;;  %v7301_v33 = vld [vmem:[%s14410_s9 + $0x590] sm:$0xff] }
 0x63a   : > { %10505 = vmatpush1.bf16.msra.mxu1 %v13124_v49  ;;  %10465 = vmatprep.subr.bf16.mxu0 %v13005_v45  ;;  %v12790_v49 = vcombine.low %v7261_v22, %v7265_v30  ;;  %v12671_v45 = vcombine.high %v7141_v26, %v7145_v34  ;;  %v7305_v46 = vld [vmem:[%s14410_s9 + $0x5b0] sm:$0xff] }
 0x63b   : > { %10506 = vmatprep.subr.bf16.mxu1 %v13133_v56  ;;  %v12799_v56 = vcombine.high %v7269_v51, %v7273_v38  ;;  %v12831_v47 = vcombine.high %v7301_v33, %v7305_v46  ;;  %v7185_v22 = vld [vmem:[%s14410_s9 + $0x1f0] sm:$0xff] }
 0x63d   : > { %10466 = vmatpush1.bf16.msra.mxu0 %v13004_v28  ;;  %v12670_v28 = vcombine.low %v7141_v26, %v7145_v34  ;;  %v7309_v26 = vld [vmem:[%s14410_s9 + $0x5d0] sm:$0xff] }
 0x63e   : > { %10507 = vmatpush1.bf16.msra.mxu1 %v13132_v54  ;;  %10467 = vmatprep.subr.bf16.mxu0 %v13013_v37  ;;  %v12798_v54 = vcombine.low %v7269_v51, %v7273_v38  ;;  %v12679_v37 = vcombine.high %v7149_v20, %v7153_v25  ;;  %v7313_v34 = vld [vmem:[%s14410_s9 + $0x5f0] sm:$0xff] }
 0x63f   : > { %10508 = vmatprep.subr.bf16.mxu1 %v13141_v4  ;;  %v12807_v4 = vcombine.high %v7277_v27, %v7281_v2 }
 0x641   : > { %10468 = vmatpush1.bf16.msra.mxu0 %v13012_v1  ;;  %v12678_v1 = vcombine.low %v7149_v20, %v7153_v25  ;;  %v12839_v25 = vcombine.high %v7309_v26, %v7313_v34 }
 0x642   : > { %10509 = vmatpush1.bf16.msra.mxu1 %v13140_v0  ;;  %10469 = vmatprep.subr.bf16.mxu0 %v13021_v9  ;;  %v12806_v0 = vcombine.low %v7277_v27, %v7281_v2  ;;  %v12687_v9 = vcombine.high %v7157_v13, %v7161_v6  ;;  %v7189_v27 = vld [vmem:[%s14410_s9 + $0x210] sm:$0xff] }
 0x643   : > { %10510 = vmatprep.subr.bf16.mxu1 %v13149_v40  ;;  %v12815_v40 = vcombine.high %v7285_v61, %v7289_v7  ;;  %v7193_v2 = vld [vmem:[%s14410_s9 + $0x230] sm:$0xff] }
 0x645   : > { %10470 = vmatpush1.bf16.msra.mxu0 %v13020_v43  ;;  %v12686_v43 = vcombine.low %v7157_v13, %v7161_v6  ;;  %v12719_v13 = vcombine.high %v7189_v27, %v7193_v2 }
 0x646   : > { %10511 = vmatpush1.bf16.msra.mxu1 %v13148_v24  ;;  %10471 = vmatprep.subr.bf16.mxu0 %v13029_v29  ;;  %v12814_v24 = vcombine.low %v7285_v61, %v7289_v7  ;;  %v12695_v29 = vcombine.high %v7165_v11, %v7169_v14  ;;  %v7197_v61 = vld [vmem:[%s14410_s9 + $0x250] sm:$0xff] }
 0x647   : > { %10512 = vmatprep.subr.bf16.mxu1 %v13157_v3  ;;  %v12823_v3 = vcombine.high %v7293_v15, %v7297_v18  ;;  %v7201_v7 = vld [vmem:[%s14410_s9 + $0x270] sm:$0xff] }
 0x649   : > { %10472 = vmatpush1.bf16.msra.mxu0 %v13028_v58  ;;  %v12694_v58 = vcombine.low %v7165_v11, %v7169_v14  ;;  %v12727_v11 = vcombine.high %v7197_v61, %v7201_v7 }
 0x64a   : > { %10513 = vmatpush1.bf16.msra.mxu1 %v13156_v42  ;;  %10523 = vmatprep.subr.bf16.mxu0 %v12655_v60  ;;  %v12822_v42 = vcombine.low %v7293_v15, %v7297_v18  ;;  %v12703_v60 = vcombine.high %v7173_v50, %v7177_v39  ;;  %v7205_v15 = vld [vmem:[%s14410_s9 + $0x290] sm:$0xff] }
 0x64b   : > { %10564 = vmatprep.subr.bf16.mxu1 %v12783_v21  ;;  %v7209_v18 = vld [vmem:[%s14410_s9 + $0x2b0] sm:$0xff] }
 0x64c   : > { %10474 = vmatmul.mubr.bf16.vlgmr.msra.gmra.mrb[20].mxu0 %v15711_v19 }
 0x64d   : > { %10515 = vmatmul.mubr.bf16.vlgmr.msra.gmra.mrb[20].mxu1 %v15715_v63  ;;  %10524 = vmatpush1.bf16.msra.mxu0 %v12654_v59  ;;  %v7181_v59 = vld [vmem:[%s14410_s9 + $0x1d0] sm:$0xff] }
 0x64e   : > { %10555 = vmatprep.mubr.bf16.mxu0 %v15621_v35  ;;  %10565 = vmatpush1.bf16.msra.mxu1 %v12782_v32  ;;  %v12711_v20 = vcombine.high %v7181_v59, %v7185_v22 }
 0x64f   : > { %10596 = vmatprep.mubr.bf16.mxu1 %v15623_v36  ;;  %10525 = vmatprep.subr.bf16.mxu0 %v12663_v44 }
 0x650   : > { %10566 = vmatprep.subr.bf16.mxu1 %v12791_v48 }
 0x651   : > { %10526 = vmatpush1.bf16.msra.mxu0 %v12662_v57  ;;  %v12702_v57 = vcombine.low %v7173_v50, %v7177_v39  ;;  %v12735_v50 = vcombine.high %v7205_v15, %v7209_v18 }
 0x652   : > { %10567 = vmatpush1.bf16.msra.mxu1 %v12790_v49  ;;  %10527 = vmatprep.subr.bf16.mxu0 %v12671_v45 }
 0x653   : > { %10568 = vmatprep.subr.bf16.mxu1 %v12799_v56  ;;  %v12830_v56 = vcombine.low %v7301_v33, %v7305_v46  ;;  %v7213_v33 = vld [vmem:[%s14410_s9 + $0x2d0] sm:$0xff] }
 0x654   : > { %v7217_v46 = vld [vmem:[%s14410_s9 + $0x2f0] sm:$0xff] }
 0x655   : > { %10528 = vmatpush1.bf16.msra.mxu0 %v12670_v28  ;;  %v7317_v28 = vld [vmem:[%s14410_s9 + $0x610] sm:$0xff] }
 0x656   : > { %10569 = vmatpush1.bf16.msra.mxu1 %v12798_v54  ;;  %10529 = vmatprep.subr.bf16.mxu0 %v12679_v37  ;;  %v7321_v54 = vld [vmem:[%s14410_s9 + $0x630] sm:$0xff]  ;;  %v12710_v37 = vcombine.low %v7181_v59, %v7185_v22 }
 0x657   : > { %10570 = vmatprep.subr.bf16.mxu1 %v12807_v4  ;;  %v12838_v4 = vcombine.low %v7309_v26, %v7313_v34  ;;  %v12847_v6 = vcombine.high %v7317_v28, %v7321_v54  ;;  %v7221_v59 = vld [vmem:[%s14410_s9 + $0x310] sm:$0xff]  ;;  %v12742_v26 = vcombine.low %v7213_v33, %v7217_v46 }
 0x658   : > { %v7225_v22 = vld [vmem:[%s14410_s9 + $0x330] sm:$0xff] }
 0x659   : > { %10530 = vmatpush1.bf16.msra.mxu0 %v12678_v1  ;;  %v7325_v1 = vld [vmem:[%s14410_s9 + $0x650] sm:$0xff] }
 0x65a   : > { %10571 = vmatpush1.bf16.msra.mxu1 %v12806_v0  ;;  %10531 = vmatprep.subr.bf16.mxu0 %v12687_v9  ;;  %v7329_v0 = vld [vmem:[%s14410_s9 + $0x670] sm:$0xff]  ;;  %v12718_v9 = vcombine.low %v7189_v27, %v7193_v2 }
 0x65b   : > { %10572 = vmatprep.subr.bf16.mxu1 %v12815_v40  ;;  %v12846_v40 = vcombine.low %v7317_v28, %v7321_v54  ;;  %v12855_v14 = vcombine.high %v7325_v1, %v7329_v0  ;;  %v7237_v28 = vld [vmem:[%s14410_s9 + $0x390] sm:$0xff] }
 0x65c   : > { %v7241_v54 = vld [vmem:[%s14410_s9 + $0x3b0] sm:$0xff] }
 0x65d   : > { %10532 = vmatpush1.bf16.msra.mxu0 %v12686_v43  ;;  %v7333_v43 = vld [vmem:[%s14410_s9 + $0x690] sm:$0xff] }
 0x65e   : > { %10573 = vmatpush1.bf16.msra.mxu1 %v12814_v24  ;;  %10533 = vmatprep.subr.bf16.mxu0 %v12695_v29  ;;  %v7337_v24 = vld [vmem:[%s14410_s9 + $0x6b0] sm:$0xff]  ;;  %v12726_v29 = vcombine.low %v7197_v61, %v7201_v7  ;;  %v12767_v61 = vcombine.high %v7237_v28, %v7241_v54 }
 0x65f   : > { %v10229_v21 = vpop.f32.mrb[8].mxu0  ;;  %v10270_v16 = vpop.f32.mrb[8].mxu1  ;;  %10574 = vmatprep.subr.bf16.mxu1 %v12823_v3  ;;  %v12854_v3 = vcombine.low %v7325_v1, %v7329_v0  ;;  %v12863_v39 = vcombine.high %v7333_v43, %v7337_v24  ;;  %v7245_v1 = vld [vmem:[%s14410_s9 + $0x3d0] sm:$0xff] }
 0x660   : > { %v15879_v30 = vadd.f32 %v10270_v16, %v10229_v21  ;;  %v10231_v32 = vpop.f32.mrb[9].mxu0  ;;  %v10272_v44 = vpop.f32.mrb[9].mxu1  ;;  %v12862_v21 = vcombine.low %v7333_v43, %v7337_v24  ;;  %v12743_v16 = vcombine.high %v7213_v33, %v7217_v46  ;;  %v7249_v0 = vld [vmem:[%s14410_s9 + $0x3f0] sm:$0xff] }
 0x661   : > { %v15883_v48 = vadd.f32 %v10272_v44, %v10231_v32  ;;  %10534 = vmatpush1.bf16.msra.mxu0 %v12694_v58  ;;  %v10233_v51 = vpop.f32.mrb[10].mxu0  ;;  %v10274_v38 = vpop.f32.mrb[10].mxu1  ;;  %v7341_v58 = vld [vmem:[%s14410_s9 + $0x6d0] sm:$0xff] }
 0x662   : > { %10575 = vmatpush1.bf16.msra.mxu1 %v12822_v42  ;;  %v10234_v49 = vpop.f32.mrb[11].mxu0  ;;  %v10275_v45 = vpop.f32.mrb[11].mxu1  ;;  %10535 = vmatprep.subr.bf16.mxu0 %v12703_v60  ;;  %v7345_v42 = vld [vmem:[%s14410_s9 + $0x6f0] sm:$0xff]  ;;  %v12734_v60 = vcombine.low %v7205_v15, %v7209_v18  ;;  %v12751_v51 = vcombine.high %v7221_v59, %v7225_v22  ;;  %v12775_v15 = vcombine.high %v7245_v1, %v7249_v0 }
 0x663   : > { %10576 = vmatprep.subr.bf16.mxu1 %v12831_v47  ;;  %v12871_v47 = vcombine.high %v7341_v58, %v7345_v42  ;;  %v7349_v32 = vld [vmem:[%s14410_s9 + $0x710] sm:$0xff]  ;;  %v12870_v34 = vcombine.low %v7341_v58, %v7345_v42 }
 0x664   : > { %v7353_v44 = vld [vmem:[%s14410_s9 + $0x730] sm:$0xff] }
 0x665   : > { %10536 = vmatpush1.bf16.msra.mxu0 %v12702_v57  ;;  %v12879_v38 = vcombine.high %v7349_v32, %v7353_v44  ;;  %v7229_v57 = vld [vmem:[%s14410_s9 + $0x350] sm:$0xff] }
 0x666   : > { %10577 = vmatpush1.bf16.msra.mxu1 %v12830_v56  ;;  %10537 = vmatprep.subr.bf16.mxu0 %v12711_v20  ;;  %v7233_v49 = vld [vmem:[%s14410_s9 + $0x370] sm:$0xff]  ;;  %v12750_v20 = vcombine.low %v7221_v59, %v7225_v22 }
 0x667   : > { %10578 = vmatprep.subr.bf16.mxu1 %v12839_v25  ;;  %v7357_v45 = vld [vmem:[%s14410_s9 + $0x750] sm:$0xff]  ;;  %v12878_v25 = vcombine.low %v7349_v32, %v7353_v44  ;;  %v12759_v27 = vcombine.high %v7229_v57, %v7233_v49 }
 0x668   : > { %v7361_v56 = vld [vmem:[%s14410_s9 + $0x770] sm:$0xff] }
 0x669   : > { %10538 = vmatpush1.bf16.msra.mxu0 %v12710_v37  ;;  %v12887_v2 = vcombine.high %v7357_v45, %v7361_v56  ;;  %v7365_v37 = vld [vmem:[%s14410_s9 + $0x790] sm:$0xff] }
 0x66a   : > { %10579 = vmatpush1.bf16.msra.mxu1 %v12838_v4  ;;  %10539 = vmatprep.subr.bf16.mxu0 %v12719_v13  ;;  %v7369_v4 = vld [vmem:[%s14410_s9 + $0x7b0] sm:$0xff]  ;;  %v12758_v13 = vcombine.low %v7229_v57, %v7233_v49 }
 0x66b   : > { %10580 = vmatprep.subr.bf16.mxu1 %v12847_v6  ;;  %v12886_v6 = vcombine.low %v7357_v45, %v7361_v56  ;;  %v12895_v7 = vcombine.high %v7365_v37, %v7369_v4  ;;  %v7381_v43 = vld [vmem:[%s14410_s9 + $0x810] sm:$0xff] }
 0x66c   : > { %v7385_v24 = vld [vmem:[%s14410_s9 + $0x830] sm:$0xff] }
 0x66d   : > { %10540 = vmatpush1.bf16.msra.mxu0 %v12718_v9  ;;  %v7373_v9 = vld [vmem:[%s14410_s9 + $0x7d0] sm:$0xff]  ;;  %v12911_v33 = vcombine.high %v7381_v43, %v7385_v24 }
 0x66e   : > { %10581 = vmatpush1.bf16.msra.mxu1 %v12846_v40  ;;  %10541 = vmatprep.subr.bf16.mxu0 %v12727_v11  ;;  %v7377_v40 = vld [vmem:[%s14410_s9 + $0x7f0] sm:$0xff]  ;;  %v12766_v11 = vcombine.low %v7237_v28, %v7241_v54 }
 0x66f   : > { %10582 = vmatprep.subr.bf16.mxu1 %v12855_v14  ;;  %v12894_v14 = vcombine.low %v7365_v37, %v7369_v4  ;;  %v12903_v18 = vcombine.high %v7373_v9, %v7377_v40  ;;  %v7389_v58 = vld [vmem:[%s14410_s9 + $0x850] sm:$0xff] }
 0x670   : > { %v7393_v42 = vld [vmem:[%s14410_s9 + $0x870] sm:$0xff] }
 0x671   : > { %10542 = vmatpush1.bf16.msra.mxu0 %v12726_v29  ;;  %v7509_v29 = vld [vmem:[%s14410_s9 + $0xc10] sm:$0xff]  ;;  %v12919_v59 = vcombine.high %v7389_v58, %v7393_v42 }
 0x672   : > { %10583 = vmatpush1.bf16.msra.mxu1 %v12854_v3  ;;  %10543 = vmatprep.subr.bf16.mxu0 %v12735_v50  ;;  %v7513_v3 = vld [vmem:[%s14410_s9 + $0xc30] sm:$0xff]  ;;  %v12774_v50 = vcombine.low %v7245_v1, %v7249_v0 }
 0x673   : > { %10584 = vmatprep.subr.bf16.mxu1 %v12863_v39  ;;  %v12902_v39 = vcombine.low %v7373_v9, %v7377_v40  ;;  %v13039_v46 = vcombine.high %v7509_v29, %v7513_v3  ;;  %v7397_v22 = vld [vmem:[%s14410_s9 + $0x890] sm:$0xff] }
 0x674   : > { %v7401_v32 = vld [vmem:[%s14410_s9 + $0x8b0] sm:$0xff] }
 0x675   : > { %10544 = vmatpush1.bf16.msra.mxu0 %v12734_v60  ;;  %v12910_v60 = vcombine.low %v7381_v43, %v7385_v24  ;;  %v12927_v57 = vcombine.high %v7397_v22, %v7401_v32  ;;  %v7405_v45 = vld [vmem:[%s14410_s9 + $0x8d0] sm:$0xff] }
 0x676   : > { %10585 = vmatpush1.bf16.msra.mxu1 %v12862_v21  ;;  %10545 = vmatprep.subr.bf16.mxu0 %v12743_v16  ;;  %v7517_v21 = vld [vmem:[%s14410_s9 + $0xc50] sm:$0xff] }
 0x677   : > { %10586 = vmatprep.subr.bf16.mxu1 %v12871_v47  ;;  %v7521_v16 = vld [vmem:[%s14410_s9 + $0xc70] sm:$0xff]  ;;  %v13038_v47 = vcombine.low %v7509_v29, %v7513_v3 }
 0x678   : > { %v13047_v44 = vcombine.high %v7517_v21, %v7521_v16  ;;  %v7409_v56 = vld [vmem:[%s14410_s9 + $0x8f0] sm:$0xff] }
 0x679   : > { %10546 = vmatpush1.bf16.msra.mxu0 %v12742_v26  ;;  %v7525_v26 = vld [vmem:[%s14410_s9 + $0xc90] sm:$0xff]  ;;  %v12935_v28 = vcombine.high %v7405_v45, %v7409_v56 }
 0x67a   : > { %10587 = vmatpush1.bf16.msra.mxu1 %v12870_v34  ;;  %10547 = vmatprep.subr.bf16.mxu0 %v12751_v51  ;;  %v7529_v34 = vld [vmem:[%s14410_s9 + $0xcb0] sm:$0xff]  ;;  %v12918_v51 = vcombine.low %v7389_v58, %v7393_v42 }
 0x67b   : > { %10588 = vmatprep.subr.bf16.mxu1 %v12879_v38  ;;  %v13046_v38 = vcombine.low %v7517_v21, %v7521_v16  ;;  %v13055_v49 = vcombine.high %v7525_v26, %v7529_v34  ;;  %v7413_v37 = vld [vmem:[%s14410_s9 + $0x910] sm:$0xff] }
 0x67c   : > { %v7417_v4 = vld [vmem:[%s14410_s9 + $0x930] sm:$0xff] }
 0x67d   : > { %10548 = vmatpush1.bf16.msra.mxu0 %v12750_v20  ;;  %v7533_v20 = vld [vmem:[%s14410_s9 + $0xcd0] sm:$0xff]  ;;  %v12943_v1 = vcombine.high %v7413_v37, %v7417_v4 }
 0x67e   : > { %10589 = vmatpush1.bf16.msra.mxu1 %v12878_v25  ;;  %10549 = vmatprep.subr.bf16.mxu0 %v12759_v27  ;;  %v7537_v25 = vld [vmem:[%s14410_s9 + $0xcf0] sm:$0xff]  ;;  %v12926_v27 = vcombine.low %v7397_v22, %v7401_v32 }
 0x67f   : > { %10590 = vmatprep.subr.bf16.mxu1 %v12887_v2  ;;  %v13054_v2 = vcombine.low %v7525_v26, %v7529_v34  ;;  %v13063_v54 = vcombine.high %v7533_v20, %v7537_v25  ;;  %v7421_v9 = vld [vmem:[%s14410_s9 + $0x950] sm:$0xff]  ;;  %v7107_v34 = vld [vmem:[#allocation2] sm:$0xff] }
 0x680   : > { %v7425_v40 = vld [vmem:[%s14410_s9 + $0x970] sm:$0xff] }
 0x681   : > { %10550 = vmatpush1.bf16.msra.mxu0 %v12758_v13  ;;  %v7541_v13 = vld [vmem:[%s14410_s9 + $0xd10] sm:$0xff]  ;;  %v12951_v43 = vcombine.high %v7421_v9, %v7425_v40 }
 0x682   : > { %10591 = vmatpush1.bf16.msra.mxu1 %v12886_v6  ;;  %10551 = vmatprep.subr.bf16.mxu0 %v12767_v61  ;;  %v7545_v6 = vld [vmem:[%s14410_s9 + $0xd30] sm:$0xff]  ;;  %v12934_v61 = vcombine.low %v7405_v45, %v7409_v56  ;;  %v7108_v56 = vld [vmem:[#allocation2 + $0x8] sm:$0xff] }
 0x683   : > { %10592 = vmatprep.subr.bf16.mxu1 %v12895_v7  ;;  %v13062_v7 = vcombine.low %v7533_v20, %v7537_v25  ;;  %v13071_v0 = vcombine.high %v7541_v13, %v7545_v6  ;;  %v7429_v29 = vld [vmem:[%s14410_s9 + $0x990] sm:$0xff] }
 0x684   : > { %v7433_v3 = vld [vmem:[%s14410_s9 + $0x9b0] sm:$0xff] }
 0x685   : > { %10552 = vmatpush1.bf16.msra.mxu0 %v12766_v11  ;;  %v7549_v11 = vld [vmem:[%s14410_s9 + $0xd50] sm:$0xff]  ;;  %v12959_v58 = vcombine.high %v7429_v29, %v7433_v3 }
 0x686   : > { %10593 = vmatpush1.bf16.msra.mxu1 %v12894_v14  ;;  %10553 = vmatprep.subr.bf16.mxu0 %v12775_v15  ;;  %v7553_v14 = vld [vmem:[%s14410_s9 + $0xd70] sm:$0xff]  ;;  %v12942_v15 = vcombine.low %v7413_v37, %v7417_v4 }
 0x687   : > { %10594 = vmatprep.subr.bf16.mxu1 %v12903_v18  ;;  %v13070_v18 = vcombine.low %v7541_v13, %v7545_v6  ;;  %v13079_v24 = vcombine.high %v7549_v11, %v7553_v14  ;;  %v7437_v16 = vld [vmem:[%s14410_s9 + $0x9d0] sm:$0xff] }
 0x688   : > { %v7569_v26 = vld [vmem:[%s14410_s9 + $0xdf0] sm:$0xff] }
 0x689   : > { %10554 = vmatpush1.bf16.msra.mxu0 %v12774_v50  ;;  %v7557_v50 = vld [vmem:[%s14410_s9 + $0xd90] sm:$0xff] }
 0x68a   : > { %10595 = vmatpush1.bf16.msra.mxu1 %v12902_v39  ;;  %10605 = vmatprep.subr.bf16.mxu0 %v12911_v33  ;;  %v7561_v39 = vld [vmem:[%s14410_s9 + $0xdb0] sm:$0xff]  ;;  %v12950_v33 = vcombine.low %v7421_v9, %v7425_v40 }
 0x68b   : > { %10646 = vmatprep.subr.bf16.mxu1 %v13039_v46  ;;  %v13078_v46 = vcombine.low %v7549_v11, %v7553_v14  ;;  %v13087_v21 = vcombine.high %v7557_v50, %v7561_v39  ;;  %v13086_v25 = vcombine.low %v7557_v50, %v7561_v39  ;;  %v7573_v4 = vld [vmem:[%s14410_s9 + $0xe10] sm:$0xff] }
 0x68c   : > { %10556 = vmatmul.mubr.bf16.vlgmr.msra.gmra.mrb[24].mxu0 %v15625_v31  ;;  %v7577_v13 = vld [vmem:[%s14410_s9 + $0xe30] sm:$0xff] }
 0x68d   : > { %10597 = vmatmul.mubr.bf16.vlgmr.msra.gmra.mrb[24].mxu1 %v15627_v41  ;;  %10606 = vmatpush1.bf16.msra.mxu0 %v12910_v60  ;;  %v7453_v9 = vld [vmem:[%s14410_s9 + $0xa50] sm:$0xff] }
 0x68e   : > { %10637 = vmatprep.mubr.bf16.mxu0 %v15637_v53  ;;  %10647 = vmatpush1.bf16.msra.mxu1 %v13038_v47  ;;  %v7441_v47 = vld [vmem:[%s14410_s9 + $0x9f0] sm:$0xff] }
 0x68f   : > { %10678 = vmatprep.mubr.bf16.mxu1 %v15639_v55  ;;  %10607 = vmatprep.subr.bf16.mxu0 %v12919_v59  ;;  %v7457_v40 = vld [vmem:[%s14410_s9 + $0xa70] sm:$0xff] }
 0x690   : > { %10648 = vmatprep.subr.bf16.mxu1 %v13047_v44  ;;  %v7565_v44 = vld [vmem:[%s14410_s9 + $0xdd0] sm:$0xff] }
 0x691   : > { %10608 = vmatpush1.bf16.msra.mxu0 %v12918_v51  ;;  %v7581_v11 = vld [vmem:[%s14410_s9 + $0xe50] sm:$0xff] }
 0x692   : > { %10649 = vmatpush1.bf16.msra.mxu1 %v13046_v38  ;;  %10609 = vmatprep.subr.bf16.mxu0 %v12927_v57  ;;  %v7585_v14 = vld [vmem:[%s14410_s9 + $0xe70] sm:$0xff] }
 0x693   : > { %10650 = vmatprep.subr.bf16.mxu1 %v13055_v49  ;;  %v12958_v49 = vcombine.low %v7429_v29, %v7433_v3  ;;  %v7461_v29 = vld [vmem:[%s14410_s9 + $0xa90] sm:$0xff] }
 0x694   : > { %v7465_v3 = vld [vmem:[%s14410_s9 + $0xab0] sm:$0xff] }
 0x695   : > { %10610 = vmatpush1.bf16.msra.mxu0 %v12926_v27  ;;  %v12967_v27 = vcombine.high %v7437_v16, %v7441_v47  ;;  %v7589_v50 = vld [vmem:[%s14410_s9 + $0xe90] sm:$0xff] }
 0x696   : > { %10651 = vmatpush1.bf16.msra.mxu1 %v13054_v2  ;;  %10611 = vmatprep.subr.bf16.mxu0 %v12935_v28  ;;  %v13095_v28 = vcombine.high %v7565_v44, %v7569_v26  ;;  %v7593_v39 = vld [vmem:[%s14410_s9 + $0xeb0] sm:$0xff] }
 0x697   : > { %10652 = vmatprep.subr.bf16.mxu1 %v13063_v54  ;;  %v7449_v54 = vld [vmem:[%s14410_s9 + $0xa30] sm:$0xff] }
 0x699   : > { %10612 = vmatpush1.bf16.msra.mxu0 %v12934_v61  ;;  %v12966_v61 = vcombine.low %v7437_v16, %v7441_v47  ;;  %v7597_v16 = vld [vmem:[%s14410_s9 + $0xed0] sm:$0xff] }
 0x69a   : > { %10653 = vmatpush1.bf16.msra.mxu1 %v13062_v7  ;;  %10613 = vmatprep.subr.bf16.mxu0 %v12943_v1  ;;  %v13094_v7 = vcombine.low %v7565_v44, %v7569_v26  ;;  %v7601_v47 = vld [vmem:[%s14410_s9 + $0xef0] sm:$0xff] }
 0x69b   : > { %10654 = vmatprep.subr.bf16.mxu1 %v13071_v0  ;;  %v13103_v0 = vcombine.high %v7573_v4, %v7577_v13  ;;  %v13127_v44 = vcombine.high %v7597_v16, %v7601_v47  ;;  %v7477_v26 = vld [vmem:[%s14410_s9 + $0xb10] sm:$0xff] }
 0x69d   : > { %10614 = vmatpush1.bf16.msra.mxu0 %v12942_v15 }
 0x69e   : > { %10655 = vmatpush1.bf16.msra.mxu1 %v13070_v18  ;;  %10615 = vmatprep.subr.bf16.mxu0 %v12951_v43  ;;  %v13102_v18 = vcombine.low %v7573_v4, %v7577_v13  ;;  %v12983_v43 = vcombine.high %v7453_v9, %v7457_v40  ;;  %v7497_v4 = vld [vmem:[%s14410_s9 + $0xbb0] sm:$0xff] }
 0x69f   : > { %v10311_v42 = vpop.f32.mrb[12].mxu0  ;;  %v10352_v60 = vpop.f32.mrb[12].mxu1  ;;  %10656 = vmatprep.subr.bf16.mxu1 %v13079_v24  ;;  %v13111_v24 = vcombine.high %v7581_v11, %v7585_v14  ;;  %v7621_v13 = vld [vmem:[%s14410_s9 + $0xf90] sm:$0xff] }
 0x6a0   : > { %v10312_v59 = vadd.f32 %v10311_v42, %v15879_v30  ;;  %v10313_v22 = vpop.f32.mrb[13].mxu0  ;;  %v10354_v32 = vpop.f32.mrb[13].mxu1  ;;  %v13119_v42 = vcombine.high %v7589_v50, %v7593_v39 }
 0x6a1   : > { %v10314_v51 = vadd.f32 %v10313_v22, %v15883_v48  ;;  %v10315_v38 = vpop.f32.mrb[14].mxu0  ;;  %v10356_v57 = vpop.f32.mrb[14].mxu1  ;;  %10616 = vmatpush1.bf16.msra.mxu0 %v12950_v33  ;;  %v7445_v48 = vld [vmem:[%s14410_s9 + $0xa10] sm:$0xff]  ;;  %v12982_v33 = vcombine.low %v7453_v9, %v7457_v40  ;;  %v13118_v22 = vcombine.low %v7589_v50, %v7593_v39  ;;  %v7254_v50 = vld [vmem:[%s14410_s9 + $0x418] sm:$0xff] }
 0x6a2   : > { %v10353_v45 = vadd.f32 %v10352_v60, %v10312_v59  ;;  %10657 = vmatpush1.bf16.msra.mxu1 %v13078_v46  ;;  %v10316_v20 = vpop.f32.mrb[15].mxu0  ;;  %v10357_v30 = vpop.f32.mrb[15].mxu1  ;;  %10617 = vmatprep.subr.bf16.mxu0 %v12959_v58  ;;  %v12975_v1 = vcombine.high %v7445_v48, %v7449_v54  ;;  %v12974_v15 = vcombine.low %v7445_v48, %v7449_v54  ;;  %v7469_v60 = vld [vmem:[%s14410_s9 + $0xad0] sm:$0xff]  ;;  %v7258_v39 = vld [vmem:[%s14410_s9 + $0x438] sm:$0xff] }
 0x6a3   : > { %v10355_v2 = vadd.f32 %v10354_v32, %v10314_v51  ;;  %10658 = vmatprep.subr.bf16.mxu1 %v13087_v21  ;;  %v13110_v46 = vcombine.low %v7581_v11, %v7585_v14  ;;  %v12991_v58 = vcombine.high %v7461_v29, %v7465_v3  ;;  %v7473_v21 = vld [vmem:[%s14410_s9 + $0xaf0] sm:$0xff]  ;;  %v12990_v59 = vcombine.low %v7461_v29, %v7465_v3  ;;  %v7126_v29 = vld [vmem:[%s14410_s9 + $0x18] sm:$0xff] }
 0x6a4   : > { %v10851_v37 = vadd.f32 %v10353_v45, %v7107_v34  ;;  %v12999_v32 = vcombine.high %v7469_v60, %v7473_v21  ;;  %v7481_v34 = vld [vmem:[%s14410_s9 + $0xb30] sm:$0xff]  ;;  %v12998_v57 = vcombine.low %v7469_v60, %v7473_v21  ;;  %v7130_v3 = vld [vmem:[%s14410_s9 + $0x38] sm:$0xff] }
 0x6a5   : > { %v10852_v6 = vadd.f32 %v10355_v2, %v7108_v56  ;;  %10618 = vmatpush1.bf16.msra.mxu0 %v12958_v49  ;;  %v7605_v51 = vld [vmem:[%s14410_s9 + $0xf10] sm:$0xff]  ;;  %v13126_v49 = vcombine.low %v7597_v16, %v7601_v47  ;;  %v13007_v45 = vcombine.high %v7477_v26, %v7481_v34  ;;  %v13006_v2 = vcombine.low %v7477_v26, %v7481_v34  ;;  %v7134_v60 = vld [vmem:[%s14410_s9 + $0x58] sm:$0xff] }
 0x6a6   : > { %10859 = vst [vmem:[#allocation2] sm:$0xff] %v10851_v37  ;;  %10659 = vmatpush1.bf16.msra.mxu1 %v13086_v25  ;;  %10619 = vmatprep.subr.bf16.mxu0 %v12967_v27  ;;  %v7609_v38 = vld [vmem:[%s14410_s9 + $0xf30] sm:$0xff]  ;;  %v7138_v21 = vld [vmem:[%s14410_s9 + $0x78] sm:$0xff]  ;;  %v12656_v16 = vcombine.low %v7126_v29, %v7130_v3 }
 0x6a7   : > { %10860 = vst [vmem:[#allocation2 + $0x8] sm:$0xff] %v10852_v6  ;;  %10660 = vmatprep.subr.bf16.mxu1 %v13095_v28  ;;  %v13135_v56 = vcombine.high %v7605_v51, %v7609_v38  ;;  %v7485_v20 = vld [vmem:[%s14410_s9 + $0xb50] sm:$0xff]  ;;  %v13134_v28 = vcombine.low %v7605_v51, %v7609_v38  ;;  %v7262_v47 = vld [vmem:[%s14410_s9 + $0x458] sm:$0xff] }
 0x6a8   : > { %v7489_v30 = vld [vmem:[%s14410_s9 + $0xb70] sm:$0xff]  ;;  %v7146_v26 = vld [vmem:[%s14410_s9 + $0xb8] sm:$0xff] }
 0x6a9   : > { %10620 = vmatpush1.bf16.msra.mxu0 %v12966_v61  ;;  %v7613_v25 = vld [vmem:[%s14410_s9 + $0xf50] sm:$0xff]  ;;  %v13015_v48 = vcombine.high %v7485_v20, %v7489_v30  ;;  %v13014_v61 = vcombine.low %v7485_v20, %v7489_v30  ;;  %v7270_v51 = vld [vmem:[%s14410_s9 + $0x498] sm:$0xff] }
 0x6aa   : > { %10661 = vmatpush1.bf16.msra.mxu1 %v13094_v7  ;;  %10621 = vmatprep.subr.bf16.mxu0 %v12975_v1  ;;  %v7617_v27 = vld [vmem:[%s14410_s9 + $0xf70] sm:$0xff]  ;;  %v7274_v38 = vld [vmem:[%s14410_s9 + $0x4b8] sm:$0xff] }
 0x6ab   : > { %10662 = vmatprep.subr.bf16.mxu1 %v13103_v0  ;;  %v13143_v54 = vcombine.high %v7613_v25, %v7617_v27  ;;  %v7493_v37 = vld [vmem:[%s14410_s9 + $0xb90] sm:$0xff]  ;;  %v13142_v7 = vcombine.low %v7613_v25, %v7617_v27  ;;  %v7150_v20 = vld [vmem:[%s14410_s9 + $0xd8] sm:$0xff] }
 0x6ac   : > { %v7625_v6 = vld [vmem:[%s14410_s9 + $0xfb0] sm:$0xff]  ;;  %v13023_v1 = vcombine.high %v7493_v37, %v7497_v4  ;;  %v7154_v30 = vld [vmem:[%s14410_s9 + $0xf8] sm:$0xff] }
 0x6ad   : > { %10622 = vmatpush1.bf16.msra.mxu0 %v12974_v15  ;;  %v13151_v0 = vcombine.high %v7621_v13, %v7625_v6  ;;  %v7501_v9 = vld [vmem:[%s14410_s9 + $0xbd0] sm:$0xff]  ;;  %v13022_v15 = vcombine.low %v7493_v37, %v7497_v4  ;;  %v7278_v25 = vld [vmem:[%s14410_s9 + $0x4d8] sm:$0xff] }
 0x6ae   : > { %10663 = vmatpush1.bf16.msra.mxu1 %v13102_v18  ;;  %10623 = vmatprep.subr.bf16.mxu0 %v12983_v43  ;;  %v7505_v40 = vld [vmem:[%s14410_s9 + $0xbf0] sm:$0xff]  ;;  %v13150_v18 = vcombine.low %v7621_v13, %v7625_v6  ;;  %v7282_v27 = vld [vmem:[%s14410_s9 + $0x4f8] sm:$0xff]  ;;  %v12680_v13 = vcombine.low %v7150_v20, %v7154_v30 }
 0x6af   : > { %10664 = vmatprep.subr.bf16.mxu1 %v13111_v24  ;;  %v7629_v11 = vld [vmem:[%s14410_s9 + $0xfd0] sm:$0xff]  ;;  %v13031_v43 = vcombine.high %v7501_v9, %v7505_v40  ;;  %v7286_v37 = vld [vmem:[%s14410_s9 + $0x518] sm:$0xff]  ;;  %v12808_v6 = vcombine.low %v7278_v25, %v7282_v27 }
 0x6b0   : > { %v7633_v14 = vld [vmem:[%s14410_s9 + $0xff0] sm:$0xff]  ;;  %v7290_v4 = vld [vmem:[%s14410_s9 + $0x538] sm:$0xff] }
 0x6b1   : > { %10624 = vmatpush1.bf16.msra.mxu0 %v12982_v33  ;;  %v13159_v24 = vcombine.high %v7629_v11, %v7633_v14  ;;  %v13030_v33 = vcombine.low %v7501_v9, %v7505_v40  ;;  %v7294_v9 = vld [vmem:[%s14410_s9 + $0x558] sm:$0xff] }
 0x6b2   : > { %10665 = vmatpush1.bf16.msra.mxu1 %v13110_v46  ;;  %10625 = vmatprep.subr.bf16.mxu0 %v12991_v58  ;;  %v13158_v46 = vcombine.low %v7629_v11, %v7633_v14  ;;  %v12657_v58 = vcombine.high %v7126_v29, %v7130_v3  ;;  %v7298_v40 = vld [vmem:[%s14410_s9 + $0x578] sm:$0xff]  ;;  %v12816_v14 = vcombine.low %v7286_v37, %v7290_v4 }
 0x6b3   : > { %10666 = vmatprep.subr.bf16.mxu1 %v13119_v42  ;;  %v12785_v42 = vcombine.high %v7254_v50, %v7258_v39  ;;  %v7302_v29 = vld [vmem:[%s14410_s9 + $0x598] sm:$0xff] }
 0x6b4   : > { %v7306_v3 = vld [vmem:[%s14410_s9 + $0x5b8] sm:$0xff] }
 0x6b5   : > { %10626 = vmatpush1.bf16.msra.mxu0 %v12990_v59  ;;  %v7266_v59 = vld [vmem:[%s14410_s9 + $0x478] sm:$0xff] }
 0x6b6   : > { %10667 = vmatpush1.bf16.msra.mxu1 %v13118_v22  ;;  %10627 = vmatprep.subr.bf16.mxu0 %v12999_v32  ;;  %v12784_v22 = vcombine.low %v7254_v50, %v7258_v39  ;;  %v12665_v32 = vcombine.high %v7134_v60, %v7138_v21  ;;  %v12793_v34 = vcombine.high %v7262_v47, %v7266_v59 }
 0x6b7   : > { %10668 = vmatprep.subr.bf16.mxu1 %v13127_v44  ;;  %v7142_v44 = vld [vmem:[%s14410_s9 + $0x98] sm:$0xff]  ;;  %v12824_v39 = vcombine.low %v7294_v9, %v7298_v40 }
 0x6b9   : > { %10628 = vmatpush1.bf16.msra.mxu0 %v12998_v57  ;;  %v12664_v57 = vcombine.low %v7134_v60, %v7138_v21  ;;  %v7186_v60 = vld [vmem:[%s14410_s9 + $0x1f8] sm:$0xff] }
 0x6ba   : > { %10669 = vmatpush1.bf16.msra.mxu1 %v13126_v49  ;;  %10629 = vmatprep.subr.bf16.mxu0 %v13007_v45  ;;  %v12792_v49 = vcombine.low %v7262_v47, %v7266_v59  ;;  %v12673_v45 = vcombine.high %v7142_v44, %v7146_v26  ;;  %v7310_v47 = vld [vmem:[%s14410_s9 + $0x5d8] sm:$0xff] }
 0x6bb   : > { %10670 = vmatprep.subr.bf16.mxu1 %v13135_v56  ;;  %v12801_v56 = vcombine.high %v7270_v51, %v7274_v38  ;;  %v7314_v59 = vld [vmem:[%s14410_s9 + $0x5f8] sm:$0xff] }
 0x6bd   : > { %10630 = vmatpush1.bf16.msra.mxu0 %v13006_v2  ;;  %v12672_v2 = vcombine.low %v7142_v44, %v7146_v26 }
 0x6be   : > { %10671 = vmatpush1.bf16.msra.mxu1 %v13134_v28  ;;  %10631 = vmatprep.subr.bf16.mxu0 %v13015_v48  ;;  %v12681_v28 = vcombine.high %v7150_v20, %v7154_v30  ;;  %v7158_v48 = vld [vmem:[%s14410_s9 + $0x118] sm:$0xff] }
 0x6bf   : > { %10672 = vmatprep.subr.bf16.mxu1 %v13143_v54  ;;  %v7162_v54 = vld [vmem:[%s14410_s9 + $0x138] sm:$0xff] }
 0x6c0   : > { %v12688_v11 = vcombine.low %v7158_v48, %v7162_v54  ;;  %v7190_v20 = vld [vmem:[%s14410_s9 + $0x218] sm:$0xff] }
 0x6c1   : > { %10632 = vmatpush1.bf16.msra.mxu0 %v13014_v61  ;;  %v12689_v61 = vcombine.high %v7158_v48, %v7162_v54  ;;  %v7194_v30 = vld [vmem:[%s14410_s9 + $0x238] sm:$0xff] }
 0x6c2   : > { %10673 = vmatpush1.bf16.msra.mxu1 %v13142_v7  ;;  %10633 = vmatprep.subr.bf16.mxu0 %v13023_v1  ;;  %v12817_v7 = vcombine.high %v7286_v37, %v7290_v4  ;;  %v7166_v1 = vld [vmem:[%s14410_s9 + $0x158] sm:$0xff] }
 0x6c3   : > { %10674 = vmatprep.subr.bf16.mxu1 %v13151_v0  ;;  %v7170_v0 = vld [vmem:[%s14410_s9 + $0x178] sm:$0xff] }
 0x6c4   : > { %v12696_v50 = vcombine.low %v7166_v1, %v7170_v0  ;;  %v7198_v48 = vld [vmem:[%s14410_s9 + $0x258] sm:$0xff] }
 0x6c5   : > { %10634 = vmatpush1.bf16.msra.mxu0 %v13022_v15  ;;  %v12697_v15 = vcombine.high %v7166_v1, %v7170_v0  ;;  %v7202_v54 = vld [vmem:[%s14410_s9 + $0x278] sm:$0xff] }
 0x6c6   : > { %10675 = vmatpush1.bf16.msra.mxu1 %v13150_v18  ;;  %10635 = vmatprep.subr.bf16.mxu0 %v13031_v43  ;;  %v12825_v18 = vcombine.high %v7294_v9, %v7298_v40  ;;  %v7174_v43 = vld [vmem:[%s14410_s9 + $0x198] sm:$0xff] }
 0x6c7   : > { %10676 = vmatprep.subr.bf16.mxu1 %v13159_v24  ;;  %v7178_v24 = vld [vmem:[%s14410_s9 + $0x1b8] sm:$0xff] }
 0x6c8   : > { %v12704_v26 = vcombine.low %v7174_v43, %v7178_v24  ;;  %v7326_v37 = vld [vmem:[%s14410_s9 + $0x658] sm:$0xff] }
 0x6c9   : > { %10636 = vmatpush1.bf16.msra.mxu0 %v13030_v33  ;;  %v12705_v33 = vcombine.high %v7174_v43, %v7178_v24  ;;  %v7330_v4 = vld [vmem:[%s14410_s9 + $0x678] sm:$0xff] }
 0x6ca   : > { %10677 = vmatpush1.bf16.msra.mxu1 %v13158_v46  ;;  %10687 = vmatprep.subr.bf16.mxu0 %v12657_v58  ;;  %v12833_v58 = vcombine.high %v7302_v29, %v7306_v3  ;;  %v7206_v1 = vld [vmem:[%s14410_s9 + $0x298] sm:$0xff] }
 0x6cb   : > { %10728 = vmatprep.subr.bf16.mxu1 %v12785_v42  ;;  %v7182_v42 = vld [vmem:[%s14410_s9 + $0x1d8] sm:$0xff] }
 0x6cc   : > { %10638 = vmatmul.mubr.bf16.vlgmr.msra.gmra.mrb[28].mxu0 %v15711_v19  ;;  %v7210_v0 = vld [vmem:[%s14410_s9 + $0x2b8] sm:$0xff] }
 0x6cd   : > { %10679 = vmatmul.mubr.bf16.vlgmr.msra.gmra.mrb[28].mxu1 %v15715_v63  ;;  %10688 = vmatpush1.bf16.msra.mxu0 %v12656_v16  ;;  %v7334_v9 = vld [vmem:[%s14410_s9 + $0x698] sm:$0xff] }
 0x6ce   : > { %10719 = vmatprep.mubr.bf16.mxu0 %v15621_v35  ;;  %10729 = vmatpush1.bf16.msra.mxu1 %v12784_v22  ;;  %v12800_v35 = vcombine.low %v7270_v51, %v7274_v38  ;;  %v7338_v40 = vld [vmem:[%s14410_s9 + $0x6b8] sm:$0xff] }
 0x6cf   : > { %10760 = vmatprep.mubr.bf16.mxu1 %v15623_v36  ;;  %10689 = vmatprep.subr.bf16.mxu0 %v12665_v32  ;;  %v12809_v36 = vcombine.high %v7278_v25, %v7282_v27  ;;  %v7318_v25 = vld [vmem:[%s14410_s9 + $0x618] sm:$0xff] }
 0x6d0   : > { %10730 = vmatprep.subr.bf16.mxu1 %v12793_v34  ;;  %v7322_v27 = vld [vmem:[%s14410_s9 + $0x638] sm:$0xff] }
 0x6d1   : > { %10690 = vmatpush1.bf16.msra.mxu0 %v12664_v57  ;;  %v12832_v57 = vcombine.low %v7302_v29, %v7306_v3  ;;  %v7214_v43 = vld [vmem:[%s14410_s9 + $0x2d8] sm:$0xff] }
 0x6d2   : > { %10731 = vmatpush1.bf16.msra.mxu1 %v12792_v49  ;;  %10691 = vmatprep.subr.bf16.mxu0 %v12673_v45  ;;  %v12713_v49 = vcombine.high %v7182_v42, %v7186_v60  ;;  %v7218_v24 = vld [vmem:[%s14410_s9 + $0x2f8] sm:$0xff] }
 0x6d3   : > { %10732 = vmatprep.subr.bf16.mxu1 %v12801_v56  ;;  %v12841_v56 = vcombine.high %v7310_v47, %v7314_v59  ;;  %v7342_v29 = vld [vmem:[%s14410_s9 + $0x6d8] sm:$0xff] }
 0x6d4   : > { %v7346_v3 = vld [vmem:[%s14410_s9 + $0x6f8] sm:$0xff] }
 0x6d5   : > { %10692 = vmatpush1.bf16.msra.mxu0 %v12672_v2  ;;  %v12712_v2 = vcombine.low %v7182_v42, %v7186_v60  ;;  %v7226_v42 = vld [vmem:[%s14410_s9 + $0x338] sm:$0xff] }
 0x6d6   : > { %10733 = vmatpush1.bf16.msra.mxu1 %v12800_v35  ;;  %10693 = vmatprep.subr.bf16.mxu0 %v12681_v28  ;;  %v12840_v35 = vcombine.low %v7310_v47, %v7314_v59  ;;  %v12721_v28 = vcombine.high %v7190_v20, %v7194_v30  ;;  %v7350_v60 = vld [vmem:[%s14410_s9 + $0x718] sm:$0xff]  ;;  %v12872_v47 = vcombine.low %v7342_v29, %v7346_v3 }
 0x6d7   : > { %10734 = vmatprep.subr.bf16.mxu1 %v12809_v36  ;;  %v12849_v36 = vcombine.high %v7318_v25, %v7322_v27 }
 0x6d9   : > { %10694 = vmatpush1.bf16.msra.mxu0 %v12680_v13  ;;  %v12720_v13 = vcombine.low %v7190_v20, %v7194_v30  ;;  %v7238_v20 = vld [vmem:[%s14410_s9 + $0x398] sm:$0xff] }
 0x6da   : > { %10735 = vmatpush1.bf16.msra.mxu1 %v12808_v6  ;;  %10695 = vmatprep.subr.bf16.mxu0 %v12689_v61  ;;  %v12848_v6 = vcombine.low %v7318_v25, %v7322_v27  ;;  %v12729_v61 = vcombine.high %v7198_v48, %v7202_v54  ;;  %v7242_v30 = vld [vmem:[%s14410_s9 + $0x3b8] sm:$0xff] }
 0x6db   : > { %10736 = vmatprep.subr.bf16.mxu1 %v12817_v7  ;;  %v12857_v7 = vcombine.high %v7326_v37, %v7330_v4  ;;  %v7366_v25 = vld [vmem:[%s14410_s9 + $0x798] sm:$0xff] }
 0x6dc   : > { %v7370_v27 = vld [vmem:[%s14410_s9 + $0x7b8] sm:$0xff] }
 0x6dd   : > { %10696 = vmatpush1.bf16.msra.mxu0 %v12688_v11  ;;  %v12728_v11 = vcombine.low %v7198_v48, %v7202_v54  ;;  %v7246_v48 = vld [vmem:[%s14410_s9 + $0x3d8] sm:$0xff] }
 0x6de   : > { %10737 = vmatpush1.bf16.msra.mxu1 %v12816_v14  ;;  %10697 = vmatprep.subr.bf16.mxu0 %v12697_v15  ;;  %v12856_v14 = vcombine.low %v7326_v37, %v7330_v4  ;;  %v12737_v15 = vcombine.high %v7206_v1, %v7210_v0  ;;  %v7250_v54 = vld [vmem:[%s14410_s9 + $0x3f8] sm:$0xff] }
 0x6df   : > { %v10393_v46 = vpop.f32.mrb[16].mxu0  ;;  %10738 = vmatprep.subr.bf16.mxu1 %v12825_v18  ;;  %v12865_v18 = vcombine.high %v7334_v9, %v7338_v40  ;;  %v7374_v37 = vld [vmem:[%s14410_s9 + $0x7d8] sm:$0xff] }
 0x6e0   : > { %v10434_v21 = vpop.f32.mrb[16].mxu1  ;;  %v10395_v16 = vpop.f32.mrb[17].mxu0  ;;  %v7378_v4 = vld [vmem:[%s14410_s9 + $0x7f8] sm:$0xff] }
 0x6e1   : > { %v16023_v22 = vadd.f32 %v10434_v21, %v10393_v46  ;;  %v10436_v32 = vpop.f32.mrb[17].mxu1  ;;  %v10397_v44 = vpop.f32.mrb[18].mxu0  ;;  %10698 = vmatpush1.bf16.msra.mxu0 %v12696_v50  ;;  %v12736_v50 = vcombine.low %v7206_v1, %v7210_v0  ;;  %v12873_v46 = vcombine.high %v7342_v29, %v7346_v3  ;;  %v7354_v21 = vld [vmem:[%s14410_s9 + $0x738] sm:$0xff] }
 0x6e2   : > { %v16025_v34 = vadd.f32 %v10436_v32, %v10395_v16  ;;  %v10438_v51 = vpop.f32.mrb[18].mxu1  ;;  %10739 = vmatpush1.bf16.msra.mxu1 %v12824_v39  ;;  %v10398_v38 = vpop.f32.mrb[19].mxu0  ;;  %10699 = vmatprep.subr.bf16.mxu0 %v12705_v33  ;;  %v12864_v39 = vcombine.low %v7334_v9, %v7338_v40  ;;  %v12745_v33 = vcombine.high %v7214_v43, %v7218_v24  ;;  %v7230_v44 = vld [vmem:[%s14410_s9 + $0x358] sm:$0xff] }
 0x6e3   : > { %v10439_v45 = vpop.f32.mrb[19].mxu1  ;;  %10740 = vmatprep.subr.bf16.mxu1 %v12833_v58  ;;  %v7222_v58 = vld [vmem:[%s14410_s9 + $0x318] sm:$0xff]  ;;  %v12744_v16 = vcombine.low %v7214_v43, %v7218_v24  ;;  %v12881_v32 = vcombine.high %v7350_v60, %v7354_v21 }
 0x6e4   : > { %v12753_v59 = vcombine.high %v7222_v58, %v7226_v42  ;;  %v7358_v51 = vld [vmem:[%s14410_s9 + $0x758] sm:$0xff] }
 0x6e5   : > { %10700 = vmatpush1.bf16.msra.mxu0 %v12704_v26  ;;  %v7234_v26 = vld [vmem:[%s14410_s9 + $0x378] sm:$0xff] }
 0x6e6   : > { %10741 = vmatpush1.bf16.msra.mxu1 %v12832_v57  ;;  %10701 = vmatprep.subr.bf16.mxu0 %v12713_v49  ;;  %v7362_v38 = vld [vmem:[%s14410_s9 + $0x778] sm:$0xff]  ;;  %v12752_v57 = vcombine.low %v7222_v58, %v7226_v42  ;;  %v12880_v49 = vcombine.low %v7350_v60, %v7354_v21  ;;  %v12761_v45 = vcombine.high %v7230_v44, %v7234_v26 }
 0x6e7   : > { %10742 = vmatprep.subr.bf16.mxu1 %v12841_v56  ;;  %v12889_v56 = vcombine.high %v7358_v51, %v7362_v38  ;;  %v7382_v1 = vld [vmem:[%s14410_s9 + $0x818] sm:$0xff] }
 0x6e8   : > { %v7386_v0 = vld [vmem:[%s14410_s9 + $0x838] sm:$0xff] }
 0x6e9   : > { %10702 = vmatpush1.bf16.msra.mxu0 %v12712_v2  ;;  %v12760_v2 = vcombine.low %v7230_v44, %v7234_v26  ;;  %v7510_v9 = vld [vmem:[%s14410_s9 + $0xc18] sm:$0xff]  ;;  %v12912_v29 = vcombine.low %v7382_v1, %v7386_v0 }
 0x6ea   : > { %10743 = vmatpush1.bf16.msra.mxu1 %v12840_v35  ;;  %10703 = vmatprep.subr.bf16.mxu0 %v12721_v28  ;;  %v12888_v35 = vcombine.low %v7358_v51, %v7362_v38  ;;  %v12769_v28 = vcombine.high %v7238_v20, %v7242_v30  ;;  %v7514_v40 = vld [vmem:[%s14410_s9 + $0xc38] sm:$0xff] }
 0x6eb   : > { %10744 = vmatprep.subr.bf16.mxu1 %v12849_v36  ;;  %v12897_v36 = vcombine.high %v7366_v25, %v7370_v27  ;;  %v7390_v43 = vld [vmem:[%s14410_s9 + $0x858] sm:$0xff] }
 0x6ec   : > { %v7394_v24 = vld [vmem:[%s14410_s9 + $0x878] sm:$0xff] }
 0x6ed   : > { %10704 = vmatpush1.bf16.msra.mxu0 %v12720_v13  ;;  %v12768_v13 = vcombine.low %v7238_v20, %v7242_v30  ;;  %v7518_v3 = vld [vmem:[%s14410_s9 + $0xc58] sm:$0xff] }
 0x6ee   : > { %10745 = vmatpush1.bf16.msra.mxu1 %v12848_v6  ;;  %10705 = vmatprep.subr.bf16.mxu0 %v12729_v61  ;;  %v12896_v6 = vcombine.low %v7366_v25, %v7370_v27  ;;  %v12777_v61 = vcombine.high %v7246_v48, %v7250_v54  ;;  %v7402_v58 = vld [vmem:[%s14410_s9 + $0x8b8] sm:$0xff] }
 0x6ef   : > { %10746 = vmatprep.subr.bf16.mxu1 %v12857_v7  ;;  %v12905_v7 = vcombine.high %v7374_v37, %v7378_v4  ;;  %v7526_v60 = vld [vmem:[%s14410_s9 + $0xc98] sm:$0xff] }
 0x6f0   : > { %v7530_v21 = vld [vmem:[%s14410_s9 + $0xcb8] sm:$0xff] }
 0x6f1   : > { %10706 = vmatpush1.bf16.msra.mxu0 %v12728_v11  ;;  %v12776_v11 = vcombine.low %v7246_v48, %v7250_v54  ;;  %v7410_v44 = vld [vmem:[%s14410_s9 + $0x8f8] sm:$0xff] }
 0x6f2   : > { %10747 = vmatpush1.bf16.msra.mxu1 %v12856_v14  ;;  %10707 = vmatprep.subr.bf16.mxu0 %v12737_v15  ;;  %v12904_v14 = vcombine.low %v7374_v37, %v7378_v4  ;;  %v12913_v15 = vcombine.high %v7382_v1, %v7386_v0  ;;  %v7534_v26 = vld [vmem:[%s14410_s9 + $0xcd8] sm:$0xff] }
 0x6f3   : > { %10748 = vmatprep.subr.bf16.mxu1 %v12865_v18  ;;  %v13041_v18 = vcombine.high %v7510_v9, %v7514_v40 }
 0x6f5   : > { %10708 = vmatpush1.bf16.msra.mxu0 %v12736_v50  ;;  %v7522_v50 = vld [vmem:[%s14410_s9 + $0xc78] sm:$0xff] }
 0x6f6   : > { %10749 = vmatpush1.bf16.msra.mxu1 %v12864_v39  ;;  %10709 = vmatprep.subr.bf16.mxu0 %v12745_v33  ;;  %v13040_v39 = vcombine.low %v7510_v9, %v7514_v40  ;;  %v12921_v33 = vcombine.high %v7390_v43, %v7394_v24  ;;  %v13049_v42 = vcombine.high %v7518_v3, %v7522_v50 }
 0x6f7   : > { %10750 = vmatprep.subr.bf16.mxu1 %v12873_v46  ;;  %v7398_v46 = vld [vmem:[%s14410_s9 + $0x898] sm:$0xff] }
 0x6f8   : > { %v12928_v51 = vcombine.low %v7398_v46, %v7402_v58 }
 0x6f9   : > { %10710 = vmatpush1.bf16.msra.mxu0 %v12744_v16  ;;  %v12920_v16 = vcombine.low %v7390_v43, %v7394_v24 }
 0x6fa   : > { %10751 = vmatpush1.bf16.msra.mxu1 %v12872_v47  ;;  %10711 = vmatprep.subr.bf16.mxu0 %v12753_v59  ;;  %v13048_v47 = vcombine.low %v7518_v3, %v7522_v50  ;;  %v12929_v59 = vcombine.high %v7398_v46, %v7402_v58  ;;  %v7570_v3 = vld [vmem:[%s14410_s9 + $0xdf8] sm:$0xff]  ;;  %v7109_v50 = vld [vmem:[#allocation2 + $0x10] sm:$0xff] }
 0x6fb   : > { %10752 = vmatprep.subr.bf16.mxu1 %v12881_v32  ;;  %v7406_v32 = vld [vmem:[%s14410_s9 + $0x8d8] sm:$0xff] }
 0x6fc   : > { %v12937_v38 = vcombine.high %v7406_v32, %v7410_v44  ;;  %v12936_v20 = vcombine.low %v7406_v32, %v7410_v44  ;;  %v7446_v32 = vld [vmem:[%s14410_s9 + $0xa18] sm:$0xff] }
 0x6fd   : > { %10712 = vmatpush1.bf16.msra.mxu0 %v12752_v57  ;;  %v7414_v57 = vld [vmem:[%s14410_s9 + $0x918] sm:$0xff] }
 0x6fe   : > { %10753 = vmatpush1.bf16.msra.mxu1 %v12880_v49  ;;  %10713 = vmatprep.subr.bf16.mxu0 %v12761_v45  ;;  %v7418_v49 = vld [vmem:[%s14410_s9 + $0x938] sm:$0xff] }
 0x6ff   : > { %10754 = vmatprep.subr.bf16.mxu1 %v12889_v56  ;;  %v7542_v45 = vld [vmem:[%s14410_s9 + $0xd18] sm:$0xff]  ;;  %v12945_v25 = vcombine.high %v7414_v57, %v7418_v49  ;;  %v12944_v48 = vcombine.low %v7414_v57, %v7418_v49 }
 0x700   : > { %v7546_v56 = vld [vmem:[%s14410_s9 + $0xd38] sm:$0xff] }
 0x701   : > { %10714 = vmatpush1.bf16.msra.mxu0 %v12760_v2  ;;  %v13073_v27 = vcombine.high %v7542_v45, %v7546_v56  ;;  %v7422_v2 = vld [vmem:[%s14410_s9 + $0x958] sm:$0xff]  ;;  %v13072_v54 = vcombine.low %v7542_v45, %v7546_v56 }
 0x702   : > { %10755 = vmatpush1.bf16.msra.mxu1 %v12888_v35  ;;  %10715 = vmatprep.subr.bf16.mxu0 %v12769_v28  ;;  %v7426_v35 = vld [vmem:[%s14410_s9 + $0x978] sm:$0xff] }
 0x703   : > { %10756 = vmatprep.subr.bf16.mxu1 %v12897_v36  ;;  %v7550_v28 = vld [vmem:[%s14410_s9 + $0xd58] sm:$0xff]  ;;  %v12953_v37 = vcombine.high %v7422_v2, %v7426_v35  ;;  %v12952_v1 = vcombine.low %v7422_v2, %v7426_v35 }
 0x704   : > { %v7554_v36 = vld [vmem:[%s14410_s9 + $0xd78] sm:$0xff] }
 0x705   : > { %10716 = vmatpush1.bf16.msra.mxu0 %v12768_v13  ;;  %v13081_v4 = vcombine.high %v7550_v28, %v7554_v36  ;;  %v7430_v13 = vld [vmem:[%s14410_s9 + $0x998] sm:$0xff]  ;;  %v13080_v0 = vcombine.low %v7550_v28, %v7554_v36 }
 0x706   : > { %10757 = vmatpush1.bf16.msra.mxu1 %v12896_v6  ;;  %10717 = vmatprep.subr.bf16.mxu0 %v12777_v61  ;;  %v7434_v6 = vld [vmem:[%s14410_s9 + $0x9b8] sm:$0xff] }
 0x707   : > { %10758 = vmatprep.subr.bf16.mxu1 %v12905_v7  ;;  %v7558_v61 = vld [vmem:[%s14410_s9 + $0xd98] sm:$0xff]  ;;  %v12961_v9 = vcombine.high %v7430_v13, %v7434_v6  ;;  %v12960_v58 = vcombine.low %v7430_v13, %v7434_v6 }
 0x708   : > { %v7562_v7 = vld [vmem:[%s14410_s9 + $0xdb8] sm:$0xff] }
 0x709   : > { %10718 = vmatpush1.bf16.msra.mxu0 %v12776_v11  ;;  %v13089_v11 = vcombine.high %v7558_v61, %v7562_v7  ;;  %v7450_v44 = vld [vmem:[%s14410_s9 + $0xa38] sm:$0xff] }
 0x70a   : > { %10759 = vmatpush1.bf16.msra.mxu1 %v12904_v14  ;;  %10769 = vmatprep.subr.bf16.mxu0 %v12913_v15  ;;  %v7438_v14 = vld [vmem:[%s14410_s9 + $0x9d8] sm:$0xff]  ;;  %v12977_v57 = vcombine.high %v7446_v32, %v7450_v44 }
 0x70b   : > { %10810 = vmatprep.subr.bf16.mxu1 %v13041_v18  ;;  %v7442_v15 = vld [vmem:[%s14410_s9 + $0x9f8] sm:$0xff] }
 0x70c   : > { %10720 = vmatmul.mubr.bf16.vlgmr.msra.gmra.mrb[32].mxu0 %v15625_v31  ;;  %v13057_v31 = vcombine.high %v7526_v60, %v7530_v21  ;;  %v7454_v45 = vld [vmem:[%s14410_s9 + $0xa58] sm:$0xff] }
 0x70d   : > { %10761 = vmatmul.mubr.bf16.vlgmr.msra.gmra.mrb[32].mxu1 %v15627_v41  ;;  %10770 = vmatpush1.bf16.msra.mxu0 %v12912_v29  ;;  %v7538_v41 = vld [vmem:[%s14410_s9 + $0xcf8] sm:$0xff] }
 0x70e   : > { %10801 = vmatprep.mubr.bf16.mxu0 %v15637_v53  ;;  %10811 = vmatpush1.bf16.msra.mxu1 %v13040_v39  ;;  %v13056_v53 = vcombine.low %v7526_v60, %v7530_v21  ;;  %v13064_v30 = vcombine.low %v7534_v26, %v7538_v41  ;;  %v7566_v29 = vld [vmem:[%s14410_s9 + $0xdd8] sm:$0xff] }
 0x70f   : > { %10842 = vmatprep.mubr.bf16.mxu1 %v15639_v55  ;;  %10771 = vmatprep.subr.bf16.mxu0 %v12921_v33  ;;  %v13065_v55 = vcombine.high %v7534_v26, %v7538_v41  ;;  %v7110_v60 = vld [vmem:[#allocation2 + $0x18] sm:$0xff] }
 0x710   : > { %10812 = vmatprep.subr.bf16.mxu1 %v13049_v42  ;;  %v7574_v41 = vld [vmem:[%s14410_s9 + $0xe18] sm:$0xff] }
 0x711   : > { %10772 = vmatpush1.bf16.msra.mxu0 %v12920_v16  ;;  %v13088_v16 = vcombine.low %v7558_v61, %v7562_v7  ;;  %v7458_v56 = vld [vmem:[%s14410_s9 + $0xa78] sm:$0xff] }
 0x712   : > { %10813 = vmatpush1.bf16.msra.mxu1 %v13048_v47  ;;  %10773 = vmatprep.subr.bf16.mxu0 %v12929_v59  ;;  %v12969_v47 = vcombine.high %v7438_v14, %v7442_v15  ;;  %v12985_v2 = vcombine.high %v7454_v45, %v7458_v56  ;;  %v7462_v28 = vld [vmem:[%s14410_s9 + $0xa98] sm:$0xff] }
 0x713   : > { %10814 = vmatprep.subr.bf16.mxu1 %v13057_v31  ;;  %v7466_v36 = vld [vmem:[%s14410_s9 + $0xab8] sm:$0xff] }
 0x714   : > { %v12993_v13 = vcombine.high %v7462_v28, %v7466_v36  ;;  %v7470_v61 = vld [vmem:[%s14410_s9 + $0xad8] sm:$0xff] }
 0x715   : > { %10774 = vmatpush1.bf16.msra.mxu0 %v12928_v51  ;;  %v7578_v51 = vld [vmem:[%s14410_s9 + $0xe38] sm:$0xff] }
 0x716   : > { %10815 = vmatpush1.bf16.msra.mxu1 %v13056_v53  ;;  %10775 = vmatprep.subr.bf16.mxu0 %v12937_v38  ;;  %v12968_v38 = vcombine.low %v7438_v14, %v7442_v15  ;;  %v13105_v49 = vcombine.high %v7574_v41, %v7578_v51  ;;  %v7474_v7 = vld [vmem:[%s14410_s9 + $0xaf8] sm:$0xff] }
 0x717   : > { %10816 = vmatprep.subr.bf16.mxu1 %v13065_v55  ;;  %v13096_v55 = vcombine.low %v7566_v29, %v7570_v3  ;;  %v7478_v15 = vld [vmem:[%s14410_s9 + $0xb18] sm:$0xff] }
 0x719   : > { %10776 = vmatpush1.bf16.msra.mxu0 %v12936_v20  ;;  %v7582_v20 = vld [vmem:[%s14410_s9 + $0xe58] sm:$0xff] }
 0x71a   : > { %10817 = vmatpush1.bf16.msra.mxu1 %v13064_v30  ;;  %10777 = vmatprep.subr.bf16.mxu0 %v12945_v25  ;;  %v7586_v30 = vld [vmem:[%s14410_s9 + $0xe78] sm:$0xff]  ;;  %v12976_v25 = vcombine.low %v7446_v32, %v7450_v44 }
 0x71b   : > { %10818 = vmatprep.subr.bf16.mxu1 %v13073_v27  ;;  %v13104_v27 = vcombine.low %v7574_v41, %v7578_v51  ;;  %v13113_v35 = vcombine.high %v7582_v20, %v7586_v30  ;;  %v7502_v51 = vld [vmem:[%s14410_s9 + $0xbd8] sm:$0xff] }
 0x71d   : > { %10778 = vmatpush1.bf16.msra.mxu0 %v12944_v48  ;;  %v7590_v48 = vld [vmem:[%s14410_s9 + $0xe98] sm:$0xff] }
 0x71e   : > { %10819 = vmatpush1.bf16.msra.mxu1 %v13072_v54  ;;  %10779 = vmatprep.subr.bf16.mxu0 %v12953_v37  ;;  %v7594_v54 = vld [vmem:[%s14410_s9 + $0xeb8] sm:$0xff]  ;;  %v12984_v37 = vcombine.low %v7454_v45, %v7458_v56 }
 0x71f   : > { %v10475_v40 = vpop.f32.mrb[20].mxu0  ;;  %10820 = vmatprep.subr.bf16.mxu1 %v13081_v4  ;;  %v13112_v4 = vcombine.low %v7582_v20, %v7586_v30  ;;  %v13121_v6 = vcombine.high %v7590_v48, %v7594_v54 }
 0x720   : > { %v10476_v18 = vadd.f32 %v10475_v40, %v16023_v22  ;;  %v10516_v43 = vpop.f32.mrb[20].mxu1  ;;  %v10477_v24 = vpop.f32.mrb[21].mxu0  ;;  %v13120_v40 = vcombine.low %v7590_v48, %v7594_v54 }
 0x721   : > { %v10478_v39 = vadd.f32 %v10477_v24, %v16025_v34  ;;  %v10518_v33 = vpop.f32.mrb[21].mxu1  ;;  %v10479_v46 = vpop.f32.mrb[22].mxu0  ;;  %10780 = vmatpush1.bf16.msra.mxu0 %v12952_v1  ;;  %v13097_v34 = vcombine.high %v7566_v29, %v7570_v3  ;;  %v7598_v1 = vld [vmem:[%s14410_s9 + $0xed8] sm:$0xff]  ;;  %v13000_v29 = vcombine.low %v7470_v61, %v7474_v7 }
 0x722   : > { %v10517_v42 = vadd.f32 %v10516_v43, %v10476_v18  ;;  %v10520_v21 = vpop.f32.mrb[22].mxu1  ;;  %10821 = vmatpush1.bf16.msra.mxu1 %v13080_v0  ;;  %v10480_v22 = vpop.f32.mrb[23].mxu0  ;;  %10781 = vmatprep.subr.bf16.mxu0 %v12961_v9  ;;  %v7602_v0 = vld [vmem:[%s14410_s9 + $0xef8] sm:$0xff]  ;;  %v12992_v9 = vcombine.low %v7462_v28, %v7466_v36 }
 0x723   : > { %v10519_v59 = vadd.f32 %v10518_v33, %v10478_v39  ;;  %v10521_v31 = vpop.f32.mrb[23].mxu1  ;;  %10822 = vmatprep.subr.bf16.mxu1 %v13089_v11  ;;  %v13001_v11 = vcombine.high %v7470_v61, %v7474_v7  ;;  %v13129_v14 = vcombine.high %v7598_v1, %v7602_v0  ;;  %v7482_v18 = vld [vmem:[%s14410_s9 + $0xb38] sm:$0xff]  ;;  %v13128_v3 = vcombine.low %v7598_v1, %v7602_v0 }
 0x724   : > { %v10853_v26 = vadd.f32 %v10517_v42, %v7109_v50  ;;  %v7606_v43 = vld [vmem:[%s14410_s9 + $0xf18] sm:$0xff]  ;;  %v13009_v50 = vcombine.high %v7478_v15, %v7482_v18 }
 0x725   : > { %v10854_v53 = vadd.f32 %v10519_v59, %v7110_v60  ;;  %10782 = vmatpush1.bf16.msra.mxu0 %v12960_v58  ;;  %v7610_v24 = vld [vmem:[%s14410_s9 + $0xf38] sm:$0xff]  ;;  %v13008_v60 = vcombine.low %v7478_v15, %v7482_v18 }
 0x726   : > { %10861 = vst [vmem:[#allocation2 + $0x10] sm:$0xff] %v10853_v26  ;;  %10823 = vmatpush1.bf16.msra.mxu1 %v13088_v16  ;;  %10783 = vmatprep.subr.bf16.mxu0 %v12969_v47  ;;  %v13137_v39 = vcombine.high %v7606_v43, %v7610_v24  ;;  %v7486_v33 = vld [vmem:[%s14410_s9 + $0xb58] sm:$0xff]  ;;  %v13136_v21 = vcombine.low %v7606_v43, %v7610_v24 }
 0x727   : > { %10862 = vst [vmem:[#allocation2 + $0x18] sm:$0xff] %v10854_v53  ;;  %10824 = vmatprep.subr.bf16.mxu1 %v13097_v34  ;;  %v7490_v46 = vld [vmem:[%s14410_s9 + $0xb78] sm:$0xff] }
 0x728   : > { %v7614_v58 = vld [vmem:[%s14410_s9 + $0xf58] sm:$0xff]  ;;  %v13017_v22 = vcombine.high %v7486_v33, %v7490_v46  ;;  %v13016_v32 = vcombine.low %v7486_v33, %v7490_v46 }
 0x729   : > { %10784 = vmatpush1.bf16.msra.mxu0 %v12968_v38  ;;  %v7618_v42 = vld [vmem:[%s14410_s9 + $0xf78] sm:$0xff] }
 0x72a   : > { %10825 = vmatpush1.bf16.msra.mxu1 %v13096_v55  ;;  %10785 = vmatprep.subr.bf16.mxu0 %v12977_v57  ;;  %v13145_v16 = vcombine.high %v7614_v58, %v7618_v42  ;;  %v7494_v47 = vld [vmem:[%s14410_s9 + $0xb98] sm:$0xff]  ;;  %v13144_v44 = vcombine.low %v7614_v58, %v7618_v42 }
 0x72b   : > { %10826 = vmatprep.subr.bf16.mxu1 %v13105_v49  ;;  %v7498_v59 = vld [vmem:[%s14410_s9 + $0xbb8] sm:$0xff] }
 0x72c   : > { %v7622_v31 = vld [vmem:[%s14410_s9 + $0xf98] sm:$0xff]  ;;  %v13025_v26 = vcombine.high %v7494_v47, %v7498_v59  ;;  %v13024_v57 = vcombine.low %v7494_v47, %v7498_v59 }
 0x72d   : > { %10786 = vmatpush1.bf16.msra.mxu0 %v12976_v25  ;;  %v7626_v34 = vld [vmem:[%s14410_s9 + $0xfb8] sm:$0xff] }
 0x72e   : > { %10827 = vmatpush1.bf16.msra.mxu1 %v13104_v27  ;;  %10787 = vmatprep.subr.bf16.mxu0 %v12985_v2  ;;  %v13153_v41 = vcombine.high %v7622_v31, %v7626_v34  ;;  %v7506_v53 = vld [vmem:[%s14410_s9 + $0xbf8] sm:$0xff]  ;;  %v13152_v49 = vcombine.low %v7622_v31, %v7626_v34  ;;  %v7113_v31 = vld [vmem:[#allocation2 + $0x30] sm:$0xff] }
 0x72f   : > { %10828 = vmatprep.subr.bf16.mxu1 %v13113_v35  ;;  %v7630_v38 = vld [vmem:[%s14410_s9 + $0xfd8] sm:$0xff]  ;;  %v13033_v45 = vcombine.high %v7502_v51, %v7506_v53  ;;  %v13032_v20 = vcombine.low %v7502_v51, %v7506_v53 }
 0x730   : > { %v7634_v55 = vld [vmem:[%s14410_s9 + $0xff8] sm:$0xff] }
 0x731   : > { %10788 = vmatpush1.bf16.msra.mxu0 %v12984_v37  ;;  %v13161_v56 = vcombine.high %v7630_v38, %v7634_v55  ;;  %v13160_v30 = vcombine.low %v7630_v38, %v7634_v55  ;;  %v7111_v1 = vld [vmem:[#allocation2 + $0x20] sm:$0xff] }
 0x732   : > { %10829 = vmatpush1.bf16.msra.mxu1 %v13112_v4  ;;  %10789 = vmatprep.subr.bf16.mxu0 %v12993_v13 }
 0x733   : > { %10830 = vmatprep.subr.bf16.mxu1 %v13121_v6 }
 0x735   : > { %10790 = vmatpush1.bf16.msra.mxu0 %v12992_v9 }
 0x736   : > { %10831 = vmatpush1.bf16.msra.mxu1 %v13120_v40  ;;  %10791 = vmatprep.subr.bf16.mxu0 %v13001_v11 }
 0x737   : > { %10832 = vmatprep.subr.bf16.mxu1 %v13129_v14 }
 0x739   : > { %10792 = vmatpush1.bf16.msra.mxu0 %v13000_v29 }
 0x73a   : > { %10833 = vmatpush1.bf16.msra.mxu1 %v13128_v3  ;;  %10793 = vmatprep.subr.bf16.mxu0 %v13009_v50 }
 0x73b   : > { %10834 = vmatprep.subr.bf16.mxu1 %v13137_v39 }
 0x73d   : > { %10794 = vmatpush1.bf16.msra.mxu0 %v13008_v60 }
 0x73e   : > { %10835 = vmatpush1.bf16.msra.mxu1 %v13136_v21  ;;  %10795 = vmatprep.subr.bf16.mxu0 %v13017_v22 }
 0x73f   : > { %10836 = vmatprep.subr.bf16.mxu1 %v13145_v16 }
 0x741   : > { %10796 = vmatpush1.bf16.msra.mxu0 %v13016_v32 }
 0x742   : > { %10837 = vmatpush1.bf16.msra.mxu1 %v13144_v44  ;;  %10797 = vmatprep.subr.bf16.mxu0 %v13025_v26 }
 0x743   : > { %10838 = vmatprep.subr.bf16.mxu1 %v13153_v41  ;;  %v7114_v41 = vld [vmem:[#allocation2 + $0x38] sm:$0xff] }
 0x745   : > { %10798 = vmatpush1.bf16.msra.mxu0 %v13024_v57 }
 0x746   : > { %10839 = vmatpush1.bf16.msra.mxu1 %v13152_v49  ;;  %10799 = vmatprep.subr.bf16.mxu0 %v13033_v45  ;;  %v13590_v45 = vld [vmem:[#allocation15 + $0x40] sm:$0xff] (!%p13162_p5)  }
 0x747   : > { %10840 = vmatprep.subr.bf16.mxu1 %v13161_v56  ;;  %v13591_v56 = vld [vmem:[#allocation15 + $0xc0] sm:$0xff] (!%p13162_p5)  }
 0x749   : > { %10800 = vmatpush1.bf16.msra.mxu0 %v13032_v20  ;;  %v13592_v20 = vld [vmem:[#allocation15] sm:$0xff] (!%p13162_p5)  }
 0x74a   : > { %10841 = vmatpush1.bf16.msra.mxu1 %v13160_v30  ;;  %13234 = vmatprep.subr.bf16.mxu0 (!%p13162_p5), %v13590_v45  ;;  %v13593_v30 = vld [vmem:[#allocation15 + $0x80] sm:$0xff] (!%p13162_p5)   ;;  %v13629_v45 = vld [vmem:[#allocation15 + $0x188] sm:$0xff] (!%p13162_p5)  }
 0x74b   : > { %13256 = vmatprep.subr.bf16.mxu1 (!%p13162_p5), %v13591_v56  ;;  %v13630_v56 = vld [vmem:[#allocation15 + $0x150] sm:$0xff] (!%p13162_p5)  }
 0x74c   : > { %10802 = vmatmul.mubr.bf16.vlgmr.msra.gmra.mrb[36].mxu0 %v15711_v19 }
 0x74d   : > { %10843 = vmatmul.mubr.bf16.vlgmr.msra.gmra.mrb[36].mxu1 %v15715_v63  ;;  %v7112_v63 = vld [vmem:[#allocation2 + $0x28] sm:$0xff]  ;;  %13235 = vmatpush3.bf16.msra.mxu0 (!%p13162_p5), %v13592_v20  ;;  %v13631_v20 = vld [vmem:[#allocation15 + $0x1d0] sm:$0xff] (!%p13162_p5)  }
 0x74e   : > { %13257 = vmatpush3.bf16.msra.mxu1 (!%p13162_p5), %v13593_v30  ;;  %v13632_v30 = vld [vmem:[#allocation15 + $0x110] sm:$0xff] (!%p13162_p5)  }
 0x75f   : > { %v10557_v25 = vpop.f32.mrb[24].mxu0 }
 0x760   : > { %v10598_v27 = vpop.f32.mrb[24].mxu1  ;;  %v10559_v2 = vpop.f32.mrb[25].mxu0 }
 0x761   : > { %v10599_v35 = vadd.f32 %v10598_v27, %v10557_v25  ;;  %v10600_v28 = vpop.f32.mrb[25].mxu1  ;;  %v10561_v36 = vpop.f32.mrb[26].mxu0  ;;  %v13594_v25 = vld [vmem:[#allocation15 + $0x48] sm:$0xff] (!%p13162_p5)  }
 0x762   : > { %v10601_v48 = vadd.f32 %v10600_v28, %v10559_v2  ;;  %v10602_v54 = vpop.f32.mrb[26].mxu1  ;;  %v10562_v37 = vpop.f32.mrb[27].mxu0  ;;  %v13595_v27 = vld [vmem:[#allocation15 + $0xc8] sm:$0xff] (!%p13162_p5)   ;;  %13236 = vmatprep.subr.bf16.mxu0 (!%p13162_p5), %v13594_v25  ;;  %v13598_v28 = vld [vmem:[#allocation15 + $0x50] sm:$0xff] (!%p13162_p5)  }
 0x763   : > { %v10603_v4 = vpop.f32.mrb[27].mxu1  ;;  %v13596_v2 = vld [vmem:[#allocation15 + $0x8] sm:$0xff] (!%p13162_p5)   ;;  %13258 = vmatprep.subr.bf16.mxu1 (!%p13162_p5), %v13595_v27  ;;  %v13599_v36 = vld [vmem:[#allocation15 + $0xd0] sm:$0xff] (!%p13162_p5)   ;;  %v13602_v37 = vld [vmem:[#allocation15 + $0x58] sm:$0xff] (!%p13162_p5)  }
 0x764   : > { %13237 = vmatpush3.bf16.msra.mxu0 (!%p13162_p5), %v13596_v2  ;;  %v13601_v54 = vld [vmem:[#allocation15 + $0x90] sm:$0xff] (!%p13162_p5)   ;;  %v13603_v4 = vld [vmem:[#allocation15 + $0xd8] sm:$0xff] (!%p13162_p5)  }
 0x765   : > { %13238 = vmatprep.subr.bf16.mxu0 (!%p13162_p5), %v13598_v28  ;;  %v13633_v25 = vld [vmem:[#allocation15 + $0x190] sm:$0xff] (!%p13162_p5)   ;;  %v13634_v27 = vld [vmem:[#allocation15 + $0x158] sm:$0xff] (!%p13162_p5)  }
 0x766   : > { %v13635_v2 = vld [vmem:[#allocation15 + $0x1d8] sm:$0xff] (!%p13162_p5)  }
 0x767   : > { %v13637_v28 = vld [vmem:[#allocation15 + $0x198] sm:$0xff] (!%p13162_p5)  }
 0x79f   : > { %v10639_v13 = vpop.f32.mrb[28].mxu0 }
 0x7a0   : > { %v10640_v6 = vadd.f32 %v10639_v13, %v10599_v35  ;;  %v10680_v61 = vpop.f32.mrb[28].mxu1  ;;  %v10641_v7 = vpop.f32.mrb[29].mxu0  ;;  %v13597_v35 = vld [vmem:[#allocation15 + $0x88] sm:$0xff] (!%p13162_p5)   ;;  %v13604_v13 = vld [vmem:[#allocation15 + $0x18] sm:$0xff] (!%p13162_p5)  }
 0x7a1   : > { %v10642_v0 = vadd.f32 %v10641_v7, %v10601_v48  ;;  %v10682_v9 = vpop.f32.mrb[29].mxu1  ;;  %v10643_v19 = vpop.f32.mrb[30].mxu0  ;;  %13259 = vmatpush3.bf16.msra.mxu1 (!%p13162_p5), %v13597_v35  ;;  %v13600_v48 = vld [vmem:[#allocation15 + $0x10] sm:$0xff] (!%p13162_p5)   ;;  %v13607_v7 = vld [vmem:[#allocation15 + $0xe0] sm:$0xff] (!%p13162_p5)   ;;  %v13636_v35 = vld [vmem:[#allocation15 + $0x118] sm:$0xff] (!%p13162_p5)  }
 0x7a2   : > { %v10681_v40 = vadd.f32 %v10680_v61, %v10640_v6  ;;  %v10684_v11 = vpop.f32.mrb[30].mxu1  ;;  %v10644_v14 = vpop.f32.mrb[31].mxu0  ;;  %13260 = vmatprep.subr.bf16.mxu1 (!%p13162_p5), %v13599_v36  ;;  %13239 = vmatpush3.bf16.msra.mxu0 (!%p13162_p5), %v13600_v48  ;;  %v13605_v6 = vld [vmem:[#allocation15 + $0x98] sm:$0xff] (!%p13162_p5)   ;;  %v13606_v61 = vld [vmem:[#allocation15 + $0x60] sm:$0xff] (!%p13162_p5)   ;;  %v13611_v19 = vld [vmem:[#allocation15 + $0xe8] sm:$0xff] (!%p13162_p5)  }
 0x7a3   : > { %v10683_v15 = vadd.f32 %v10682_v9, %v10642_v0  ;;  %v10685_v18 = vpop.f32.mrb[31].mxu1  ;;  %13240 = vmatprep.subr.bf16.mxu0 (!%p13162_p5), %v13602_v37  ;;  %v13609_v0 = vld [vmem:[#allocation15 + $0xa0] sm:$0xff] (!%p13162_p5)   ;;  %v13610_v9 = vld [vmem:[#allocation15 + $0x68] sm:$0xff] (!%p13162_p5)   ;;  %v13614_v11 = vld [vmem:[#allocation15 + $0x70] sm:$0xff] (!%p13162_p5)  }
 0x7a4   : > { %v10855_v43 = vadd.f32 %v10681_v40, %v7111_v1  ;;  %v13608_v1 = vld [vmem:[#allocation15 + $0x20] sm:$0xff] (!%p13162_p5)   ;;  %v13612_v40 = vld [vmem:[#allocation15 + $0x28] sm:$0xff] (!%p13162_p5)   ;;  %v13615_v14 = vld [vmem:[#allocation15 + $0xf0] sm:$0xff] (!%p13162_p5)  }
 0x7a5   : > { %v10856_v24 = vadd.f32 %v10683_v15, %v7112_v63  ;;  %13261 = vmatpush3.bf16.msra.mxu1 (!%p13162_p5), %v13601_v54  ;;  %v13613_v63 = vld [vmem:[#allocation15 + $0xa8] sm:$0xff] (!%p13162_p5)   ;;  %v13616_v15 = vld [vmem:[#allocation15 + $0x30] sm:$0xff] (!%p13162_p5)   ;;  %v13638_v36 = vld [vmem:[#allocation15 + $0x160] sm:$0xff] (!%p13162_p5)  }
 0x7a6   : > { %10863 = vst [vmem:[#allocation2 + $0x20] sm:$0xff] %v10855_v43  ;;  %13262 = vmatprep.subr.bf16.mxu1 (!%p13162_p5), %v13603_v4  ;;  %13241 = vmatpush3.bf16.msra.mxu0 (!%p13162_p5), %v13604_v13  ;;  %v13617_v18 = vld [vmem:[#allocation15 + $0xb0] sm:$0xff] (!%p13162_p5)   ;;  %v13618_v43 = vld [vmem:[#allocation15 + $0x78] sm:$0xff] (!%p13162_p5)   ;;  %v13639_v48 = vld [vmem:[#allocation15 + $0x1e0] sm:$0xff] (!%p13162_p5)  }
 0x7a7   : > { %10864 = vst [vmem:[#allocation2 + $0x28] sm:$0xff] %v10856_v24  ;;  %13242 = vmatprep.subr.bf16.mxu0 (!%p13162_p5), %v13606_v61  ;;  %v13619_v24 = vld [vmem:[#allocation15 + $0xf8] sm:$0xff] (!%p13162_p5)   ;;  %v13640_v54 = vld [vmem:[#allocation15 + $0x120] sm:$0xff] (!%p13162_p5)   ;;  %v13642_v4 = vld [vmem:[#allocation15 + $0x168] sm:$0xff] (!%p13162_p5)  }
 0x7a8   : > { %v13641_v37 = vld [vmem:[#allocation15 + $0x1a0] sm:$0xff] (!%p13162_p5)   ;;  %v13643_v13 = vld [vmem:[#allocation15 + $0x1e8] sm:$0xff] (!%p13162_p5)  }
 0x7a9   : > { %13263 = vmatpush3.bf16.msra.mxu1 (!%p13162_p5), %v13605_v6  ;;  %v13644_v6 = vld [vmem:[#allocation15 + $0x128] sm:$0xff] (!%p13162_p5)  }
 0x7aa   : > { %13264 = vmatprep.subr.bf16.mxu1 (!%p13162_p5), %v13607_v7  ;;  %13243 = vmatpush3.bf16.msra.mxu0 (!%p13162_p5), %v13608_v1  ;;  %v13645_v61 = vld [vmem:[#allocation15 + $0x1a8] sm:$0xff] (!%p13162_p5)   ;;  %v13646_v7 = vld [vmem:[#allocation15 + $0x170] sm:$0xff] (!%p13162_p5)  }
 0x7ab   : > { %13244 = vmatprep.subr.bf16.mxu0 (!%p13162_p5), %v13610_v9  ;;  %v13647_v1 = vld [vmem:[#allocation15 + $0x1f0] sm:$0xff] (!%p13162_p5)  }
 0x7ac   : > { %v13649_v9 = vld [vmem:[#allocation15 + $0x1b0] sm:$0xff] (!%p13162_p5)  }
 0x7ad   : > { %13265 = vmatpush3.bf16.msra.mxu1 (!%p13162_p5), %v13609_v0  ;;  %v13648_v0 = vld [vmem:[#allocation15 + $0x130] sm:$0xff] (!%p13162_p5)  }
 0x7ae   : > { %13266 = vmatprep.subr.bf16.mxu1 (!%p13162_p5), %v13611_v19  ;;  %13245 = vmatpush3.bf16.msra.mxu0 (!%p13162_p5), %v13612_v40  ;;  %v13650_v19 = vld [vmem:[#allocation15 + $0x178] sm:$0xff] (!%p13162_p5)  }
 0x7af   : > { %13246 = vmatprep.subr.bf16.mxu0 (!%p13162_p5), %v13614_v11  ;;  %v13651_v11 = vld [vmem:[#allocation15 + $0x1f8] sm:$0xff] (!%p13162_p5)  }
 0x7b1   : > { %13267 = vmatpush3.bf16.msra.mxu1 (!%p13162_p5), %v13613_v63 }
 0x7b2   : > { %13268 = vmatprep.subr.bf16.mxu1 (!%p13162_p5), %v13615_v14  ;;  %13247 = vmatpush3.bf16.msra.mxu0 (!%p13162_p5), %v13616_v15 }
 0x7b3   : > { %13248 = vmatprep.subr.bf16.mxu0 (!%p13162_p5), %v13618_v43  ;;  %v10876_v43 = vld [vmem:[#allocation2 + $0x28] sm:$0xff] (!%p13162_p5) }
 0x7b5   : > { %13269 = vmatpush3.bf16.msra.mxu1 (!%p13162_p5), %v13617_v18  ;;  %v13652_v18 = vld [vmem:[#allocation15 + $0x138] sm:$0xff] (!%p13162_p5)  }
 0x7b6   : > { %13270 = vmatprep.subr.bf16.mxu1 (!%p13162_p5), %v13619_v24 }
 0x7df   : > { %v10721_v29 = vpop.f32.mrb[32].mxu0 }
 0x7e0   : > { %v10762_v3 = vpop.f32.mrb[32].mxu1  ;;  %v10723_v50 = vpop.f32.mrb[33].mxu0 }
 0x7e1   : > { %v10763_v39 = vadd.f32 %v10762_v3, %v10721_v29  ;;  %v10764_v33 = vpop.f32.mrb[33].mxu1  ;;  %v10725_v46 = vpop.f32.mrb[34].mxu0  ;;  %v13620_v29 = vld [vmem:[#allocation15 + $0x38] sm:$0xff] (!%p13162_p5)  }
 0x7e2   : > { %v10765_v58 = vadd.f32 %v10764_v33, %v10723_v50  ;;  %v10766_v42 = vpop.f32.mrb[34].mxu1  ;;  %v10726_v60 = vpop.f32.mrb[35].mxu0  ;;  %v13621_v3 = vld [vmem:[#allocation15 + $0xb8] sm:$0xff] (!%p13162_p5)   ;;  %13249 = vmatpush3.bf16.msra.mxu0 (!%p13162_p5), %v13620_v29  ;;  %v10874_v33 = vld [vmem:[#allocation2 + $0x18] sm:$0xff] (!%p13162_p5) }
 0x7e3   : > { %v10767_v21 = vpop.f32.mrb[35].mxu1  ;;  %v10872_v50 = vld [vmem:[#allocation2 + $0x8] sm:$0xff] (!%p13162_p5)  ;;  %13271 = vmatpush3.bf16.msra.mxu1 (!%p13162_p5), %v13621_v3  ;;  %v10871_v42 = vld [vmem:[#allocation2] sm:$0xff] (!%p13162_p5) }
 0x7e4   : > { %v10873_v21 = vld [vmem:[#allocation2 + $0x10] sm:$0xff] (!%p13162_p5)  ;;  %v13653_v29 = vld [vmem:[#allocation15 + $0x1b8] sm:$0xff] (!%p13162_p5)  }
 0x81f   : > { %v10803_v22 = vpop.f32.mrb[36].mxu0 }
 0x820   : > { %v10804_v16 = vadd.f32 %v10803_v22, %v10763_v39  ;;  %v10844_v47 = vpop.f32.mrb[36].mxu1  ;;  %v10805_v59 = vpop.f32.mrb[37].mxu0  ;;  %v16132_v39 = vld [vmem:[#allocation14] sm:$0xff] (!%p13162_p5) }
 0x821   : > { %v10806_v34 = vadd.f32 %v10805_v59, %v10765_v58  ;;  %v10846_v32 = vpop.f32.mrb[37].mxu1  ;;  %v10807_v44 = vpop.f32.mrb[38].mxu0  ;;  %10870 = sbr.rel (%p13162_p5) target bundleno = 2342 (0x926), region = 100  ;;  %v10888_v46 = vrot.slane (!%p13162_p5), %v16132_v39, %v15455_v5  ;;  %v10896_v58 = vrot.slane (!%p13162_p5), %v16132_v39, %v15460_v17  ;;  %v10884_v60 = vrot.slane (!%p13162_p5), %v16132_v39, %v15443_v52  ;;  %v13624_v17 = vld [vmem:[#allocation15 + $0x100] sm:$0xff] (!%p13162_p5)  }
 0x822   : > { %v10845_v26 = vadd.f32 %v10844_v47, %v10804_v16  ;;  %v10848_v51 = vpop.f32.mrb[38].mxu1  ;;  %v10808_v53 = vpop.f32.mrb[39].mxu0  ;;  %v10892_v22 = vrot.slane (!%p13162_p5), %v16132_v39, %v15449_v62  ;;  %v13622_v16 = vld [vmem:[#allocation15 + $0x140] sm:$0xff] (!%p13162_p5)   ;;  %v13627_v62 = vld [vmem:[#allocation15 + $0x1c8] sm:$0xff] (!%p13162_p5)   ;;  %v10904_v40 = vrot.slane (!%p13162_p5), %v16132_v39, %v15533_v10  ;;  %v10912_v63 = vrot.slane (!%p13162_p5), %v16132_v39, %v15536_v12 }
 0x823   : > { %v10847_v38 = vadd.f32 %v10846_v32, %v10806_v34  ;;  %v10849_v55 = vpop.f32.mrb[39].mxu1  ;;  %v10922_v47 = vadd.f32 (!%p13162_p5), %v10888_v46, %v10872_v50  ;;  %v10924_v59 = vadd.f32 (!%p13162_p5), %v10896_v58, %v10874_v33  ;;  %v13623_v32 = vld [vmem:[#allocation15 + $0x1c0] sm:$0xff] (!%p13162_p5)   ;;  %13278 = vmatprep.subr.bf16.mxu0 (!%p13162_p5), %v13622_v16  ;;  %v10900_v14 = vrot.slane (!%p13162_p5), %v16132_v39, %v15525_v8  ;;  %v10875_v50 = vld [vmem:[#allocation2 + $0x20] sm:$0xff] (!%p13162_p5) }
 0x824   : > { %v10857_v57 = vadd.f32 %v10845_v26, %v7113_v31  ;;  %v10921_v31 = vadd.f32 (!%p13162_p5), %v10884_v60, %v10871_v42  ;;  %v10923_v34 = vadd.f32 (!%p13162_p5), %v10892_v22, %v10873_v21  ;;  %13300 = vmatprep.subr.bf16.mxu1 (!%p13162_p5), %v13623_v32  ;;  %v13625_v51 = vld [vmem:[#allocation15 + $0x180] sm:$0xff] (!%p13162_p5)   ;;  %v10908_v15 = vrot.slane (!%p13162_p5), %v16132_v39, %v15530_v23 }
 0x825   : > { %v10858_v49 = vadd.f32 %v10847_v38, %v7114_v41  ;;  %v10930_v44 = vmax.f32 (!%p13162_p5), %v10922_v47, 0.0  ;;  %v10932_v5 = vmax.f32 (!%p13162_p5), %v10924_v59, 0.0  ;;  %v10926_v3 = vadd.f32 (!%p13162_p5), %v10904_v40, %v10876_v43  ;;  %v13163_v59 = vld [vmem:[#allocation17] ss:$0 sm:$0xff] (!%p13162_p5) }
 0x826   : > { %10865 = vst [vmem:[#allocation2 + $0x30] sm:$0xff] %v10857_v57  ;;  %v10929_v26 = vmax.f32 (!%p13162_p5), %v10921_v31, 0.0  ;;  %v10931_v41 = vmax.f32 (!%p13162_p5), %v10923_v34, 0.0  ;;  %v13626_v57 = vld [vmem:[#allocation15 + $0x148] sm:$0xff] (!%p13162_p5)   ;;  %v10925_v12 = vadd.f32 (!%p13162_p5), %v10900_v14, %v10875_v50 }
 0x827   : > { %10866 = vst [vmem:[#allocation2 + $0x38] sm:$0xff] %v10858_v49  ;;  %v10938_v53 = vpack.c.bf16 (!%p13162_p5), %v10930_v44, %v10930_v44  ;;  %v10940_v52 = vpack.c.bf16 (!%p13162_p5), %v10932_v5, %v10932_v5  ;;  %v13628_v49 = vld [vmem:[#allocation15 + $0x108] sm:$0xff] (!%p13162_p5)   ;;  %v10934_v58 = vmax.f32 (!%p13162_p5), %v10926_v3, 0.0 }
 0x828   : > { %v10937_v38 = vpack.c.bf16 %v10929_v26, %v10929_v26  ;;  %v10939_v55 = vpack.c.bf16 %v10931_v41, %v10931_v41  ;;  %v10933_v8 = vmax.f32 %v10925_v12, 0.0 }
 0x829   : > { %11496 = vmatprep.mubr.bf16.mxu0 %v10938_v53  ;;  %11536 = vmatprep.mubr.bf16.mxu1 %v10940_v52  ;;  %v10942_v23 = vpack.c.bf16 %v10934_v58, %v10934_v58 }
 0x82a   : > { %11497 = vmatmul.mubr.bf16.vlgmr.msra.gmra.mrb[0].mxu0 %v10937_v38  ;;  %11537 = vmatmul.mubr.bf16.vlgmr.msra.gmra.mrb[0].mxu1 %v10939_v55  ;;  %v10941_v21 = vpack.c.bf16 %v10933_v8, %v10933_v8 }
 0x82b   : > { %13279 = vmatpush3.bf16.msra.mxu0 %v13624_v17  ;;  %13301 = vmatpush3.bf16.msra.mxu1 %v13625_v51 }
 0x82c   : > { %13280 = vmatprep.subr.bf16.mxu0 %v13626_v57  ;;  %13302 = vmatprep.subr.bf16.mxu1 %v13627_v62 }
 0x82d   : > { %v10877_v33 = vld [vmem:[#allocation2 + $0x30] sm:$0xff]  ;;  %11576 = vmatprep.mubr.bf16.mxu0 %v10942_v23 }
 0x82e   : > { %v10878_v24 = vld [vmem:[#allocation2 + $0x38] sm:$0xff]  ;;  %v10927_v46 = vadd.f32 %v10908_v15, %v10877_v33 }
 0x82f   : > { %13281 = vmatpush3.bf16.msra.mxu0 %v13628_v49  ;;  %13303 = vmatpush3.bf16.msra.mxu1 %v13629_v45  ;;  %v10928_v10 = vadd.f32 %v10912_v63, %v10878_v24 }
 0x830   : > { %13282 = vmatprep.subr.bf16.mxu0 %v13630_v56  ;;  %13304 = vmatprep.subr.bf16.mxu1 %v13631_v20  ;;  %v10935_v60 = vmax.f32 %v10927_v46, 0.0 }
 0x831   : > { %v10936_v42 = vmax.f32 %v10928_v10, 0.0 }
 0x832   : > { %v10943_v22 = vpack.c.bf16 %v10935_v60, %v10935_v60 }
 0x833   : > { %13283 = vmatpush3.bf16.msra.mxu0 %v13632_v30  ;;  %13305 = vmatpush3.bf16.msra.mxu1 %v13633_v25  ;;  %v10944_v39 = vpack.c.bf16 %v10936_v42, %v10936_v42 }
 0x834   : > { %13284 = vmatprep.subr.bf16.mxu0 %v13634_v27  ;;  %13306 = vmatprep.subr.bf16.mxu1 %v13635_v2 }
 0x835   : > { %11616 = vmatprep.mubr.bf16.mxu1 %v10944_v39 }
 0x837   : > { %13285 = vmatpush3.bf16.msra.mxu0 %v13636_v35  ;;  %13307 = vmatpush3.bf16.msra.mxu1 %v13637_v28 }
 0x838   : > { %13286 = vmatprep.subr.bf16.mxu0 %v13638_v36  ;;  %13308 = vmatprep.subr.bf16.mxu1 %v13639_v48 }
 0x83b   : > { %13287 = vmatpush3.bf16.msra.mxu0 %v13640_v54  ;;  %13309 = vmatpush3.bf16.msra.mxu1 %v13641_v37 }
 0x83c   : > { %13288 = vmatprep.subr.bf16.mxu0 %v13642_v4  ;;  %13310 = vmatprep.subr.bf16.mxu1 %v13643_v13 }
 0x83f   : > { %13289 = vmatpush3.bf16.msra.mxu0 %v13644_v6  ;;  %13311 = vmatpush3.bf16.msra.mxu1 %v13645_v61 }
 0x840   : > { %13290 = vmatprep.subr.bf16.mxu0 %v13646_v7  ;;  %13312 = vmatprep.subr.bf16.mxu1 %v13647_v1 }
 0x843   : > { %13291 = vmatpush3.bf16.msra.mxu0 %v13648_v0  ;;  %13313 = vmatpush3.bf16.msra.mxu1 %v13649_v9 }
 0x844   : > { %13292 = vmatprep.subr.bf16.mxu0 %v13650_v19  ;;  %13314 = vmatprep.subr.bf16.mxu1 %v13651_v11 }
 0x847   : > { %13293 = vmatpush3.bf16.msra.mxu0 %v13652_v18  ;;  %13315 = vmatpush3.bf16.msra.mxu1 %v13653_v29 }
 0x84a   : > { %11577 = vmatmul.mubr.bf16.vlgmr.msra.gmra.mrb[4].mxu0 %v10941_v21  ;;  %11617 = vmatmul.mubr.bf16.vlgmr.msra.gmra.mrb[4].mxu1 %v10943_v22 }
 0x8fd   : > { %v13250_v16 = vpop.f32.mrb[0].mxu0  ;;  %v13272_v47 = vpop.f32.mrb[0].mxu1 }
 0x8fe   : > { %v13251_v31 = vpop.f32.mrb[1].mxu0  ;;  %v13273_v34 = vpop.f32.mrb[1].mxu1 }
 0x8ff   : > { %v13252_v32 = vadd.f32 %v13251_v31, %v13250_v16  ;;  %v13274_v44 = vadd.f32 %v13273_v34, %v13272_v47  ;;  %v13253_v5 = vpop.f32.mrb[2].mxu0  ;;  %v13275_v26 = vpop.f32.mrb[2].mxu1 }
 0x900   : > { %v13254_v41 = vpop.f32.mrb[3].mxu0  ;;  %v13276_v17 = vpop.f32.mrb[3].mxu1 }
 0x901   : > { %v11499_v51 = vadd.f32 %v13252_v32, %v13163_v59 }
 0x903   : > { %v11539_v53 = vadd.f32 %v13274_v44, %v11499_v51 }
 0x91d   : > { %v13294_v52 = vpop.f32.mrb[4].mxu0  ;;  %v13316_v38 = vpop.f32.mrb[4].mxu1 }
 0x91e   : > { %v13295_v55 = vpop.f32.mrb[5].mxu0  ;;  %v13317_v57 = vpop.f32.mrb[5].mxu1 }
 0x91f   : > { %v13296_v62 = vadd.f32 %v13295_v55, %v13294_v52  ;;  %v13318_v49 = vadd.f32 %v13317_v57, %v13316_v38  ;;  %v13297_v45 = vpop.f32.mrb[6].mxu0  ;;  %v13319_v56 = vpop.f32.mrb[6].mxu1 }
 0x920   : > { %v13298_v20 = vpop.f32.mrb[7].mxu0  ;;  %v13320_v30 = vpop.f32.mrb[7].mxu1 }
 0x921   : > { %v11579_v25 = vadd.f32 %v13296_v62, %v11539_v53 }
 0x923   : > { %v11619_v27 = vadd.f32 %v13318_v49, %v11579_v25 }
 0x925   : > { %11624 = vst [vmem:[#allocation18] sm:$0xff] %v11619_v27 }
 0x926 PF: > { %p13509_p6 = scmp.eq.s32.totalorder %s14090_s15, 1  ;;  %s14018_s23 = smov [#allocation18]  }
 0x927   : > { %s11632_s28 = sshll.u32 %s14018_s23, 4  ;;  %s11633_s28 = int_to_ptr.vmem [resolvable:$true] %s11632_s28 }
 0x928   : > { %s13910_s21 = scalar_lea.vmem %s11633_s28, 128  ;;  %p13917_p7 = scmp.lt.s32.totalorder %s11633_s28, %s11633_s28 }
 0x929   : > { %p13911_p3 = scmp.ne.s32.totalorder %s11633_s28, %s13910_s21  ;;  %p13918_p10 = scmp.lt.s32.totalorder %s13910_s21, %s13910_s21 }
 0x92b   : > { %p13912_p13 = pnand %p13911_p3, %p13509_p6  ;;  %p13919_p12 = por %p13918_p10, %p13917_p7 }
 0x92d   : > { %p13913_p9 = pneg %p13912_p13 }
 0x92f   : > { %p13920_p8 = pnand %p13919_p12, %p13913_p9 }
 0x931   : > { %13923 = shalt.err (!%p13920_p8)
}
 0x932   : > { %s16228_s18 = sld [smem:[#allocation29_spill]] }
 0x938   : > { %s13924_s29 = scalar_lea.hbm %s16228_s18, 128 }
 0x939   : > { %p13925_p1 = scmp.ne.s32.totalorder %s16228_s18, %s13924_s29  ;;  %p13930_p0 = scmp.lt.u32.totalorder %s13924_s29, %s16228_s18 }
 0x93b   : > { %p13926_p11 = pnand %p13925_p1, %p13509_p6 }
 0x93d   : > { %p13927_p4 = pneg %p13926_p11 }
 0x93f   : > { %p13932_p2 = pnand %p13930_p0, %p13927_p4 }
 0x941   : > { %13935 = shalt.err (!%p13932_p2)
}
 0x942   : > { %13462 = dma.vmem_to_hbm [thread:$0]  (%p13509_p6), %s11633_s28, 128, %s16228_s18, [#allocation5]  }
 0x943   : > { %13981 = dma.done.wait (%p13509_p6), [#allocation5], 128  }
 0x944   : > { %13983 = vsyncadd (%p13509_p6), [#allocation5], 4294967168 }
 0x945 PF: > { %p26_p5 = scmp.ge.s32.totalorder %s14278_s19, 4   ;;  %s16229_s30 = smov %s13990_s10 }
 0x946   : > { %s16230_s10 = smov %s13994_s11  ;;  %s16231_s11 = smov %s14289_s20 }
 0x947   : > { %s16232_s12 = smov %s14278_s19  ;;  %28 = sbr.rel (!%p26_p5) target bundleno = 13 (0xd), region = 146 }
 0x94e   :  { %11645 = vsyncpa [#allocation4], 1 }
 0x94f   :  { %11647 = vsyncpa [#allocation4 + $0x1], 1 }
 0x950   :  { %11648 = vsyncpa [#allocation7], 1 }
 0x951   :  { %11650 = vsyncpa [#allocation7 + $0x1], 1 }
 0x952   :  { %11651 = vsyncpa [#allocation10], 1 }
 0x953   :  { %11652 = vsyncpa [#allocation13], 1 }
 0x954   :  { %11654 = vsyncpa [#allocation13 + $0x1], 1 }
 0x955   :  { %11655 = vsyncpa [#allocation16], 1 }
 0x956   :  { %11656 = vsyncpa [#allocation5], 1 }
 0x957   :  { %11658 = vsyncpa [#allocation5 + $0x1], 1 }

</bundles_post_ra>
